<compile_context>
chip_gen: v7x
topology: tpu7x:2x2x1
jax: 0.10.0
libtpu: 0.0.40
codegen_flags: <defaults>
</compile_context>

<pallas_src>
import jax
import jax.numpy as jnp
from jax import lax
from jax.experimental import pallas as pl
from jax.experimental.pallas import tpu as pltpu

TB = 8            # batch tile (multiple of 8 -> all sublane slices are aligned)
C = 64            # channel count of every conv layer
FC1 = 128
FC2_PAD = 128     # fc2 output padded 8 -> 128 lanes (lane-dense store)


def _fused_kernel(x_ref, w1_ref, b1_ref, w2_ref, b2_ref, w3_ref, b3_ref,
                  fw1_ref, fb1_ref, fw2_ref, fb2_ref, out_ref,
                  p1_ref, p2_ref, p3_ref):
    f32 = jnp.float32
    bf16 = jnp.bfloat16

    # ---------------- layer 1: conv1 (Cin=1, VPU broadcast MAC) + ReLU + pool
    W1O = 38  # conv1 output width

    def l1_body(i, carry):
        rows = [x_ref[0, 2 * i + d, :, :].astype(f32) for d in range(4)]  # (320,1)

        def conv_row(r):
            acc = jnp.zeros((W1O * TB, C), f32)
            for kh in range(3):
                for kw in range(3):
                    xs = r[kh][kw * TB: kw * TB + W1O * TB, :]        # (304, 1)
                    acc = acc + xs * w1_ref[kh, kw, :, :]             # bcast -> (304, 64)
            return jnp.maximum(acc + b1_ref[...], 0.0)

        m = jnp.maximum(conv_row(rows[0:3]), conv_row(rows[1:4]))     # pool over H
        for j in range(19):                                           # pool over W
            p1_ref[i, j * TB:(j + 1) * TB, :] = jnp.maximum(
                m[(2 * j) * TB:(2 * j + 1) * TB, :],
                m[(2 * j + 1) * TB:(2 * j + 2) * TB, :])
        return carry

    lax.fori_loop(0, 19, l1_body, 0)

    # ---------------- conv2 / conv3: shifted bf16 matmuls (MXU) + ReLU + pool
    def conv_pool(in_ref, w_ref, b_ref, o_ref, wo, n_pool_rows, n_pool_cols):
        def body(i, carry):
            rows = [in_ref[2 * i + d, :, :] for d in range(4)]

            def conv_row(r):
                acc = jnp.zeros((wo * TB, C), f32)
                for kh in range(3):
                    lhs_row = r[kh]
                    for kw in range(3):
                        lhs = lhs_row[kw * TB: kw * TB + wo * TB, :].astype(bf16)
                        acc = acc + jnp.dot(lhs, w_ref[kh, kw, :, :],
                                            preferred_element_type=f32)
                return jnp.maximum(acc + b_ref[...], 0.0)

            m = jnp.maximum(conv_row(rows[0:3]), conv_row(rows[1:4]))  # pool over H
            for j in range(n_pool_cols):                               # pool over W
                o_ref[i, j * TB:(j + 1) * TB, :] = jnp.maximum(
                    m[(2 * j) * TB:(2 * j + 1) * TB, :],
                    m[(2 * j + 1) * TB:(2 * j + 2) * TB, :])
            return carry

        lax.fori_loop(0, n_pool_rows, body, 0)

    conv_pool(p1_ref, w2_ref, b2_ref, p2_ref, wo=17, n_pool_rows=8, n_pool_cols=8)
    conv_pool(p2_ref, w3_ref, b3_ref, p3_ref, wo=6, n_pool_rows=3, n_pool_cols=3)

    # ---------------- fc1 + ReLU (torch flatten folded into per-(h,w) matmuls)
    acc = jnp.zeros((TB, FC1), f32)
    for h in range(3):
        for w in range(3):
            slab = p3_ref[h, w * TB:(w + 1) * TB, :].astype(bf16)      # (TB, 64)
            acc = acc + jnp.dot(slab, fw1_ref[h, w, :, :],
                                preferred_element_type=f32)
    h1 = jnp.maximum(acc + fb1_ref[...], 0.0)
    # TODO(synk): Dropout(p=0.2) is training-only; identity at inference.

    # ---------------- fc2 (output padded to 128 lanes; sliced in the wrapper)
    out = jnp.dot(h1.astype(bf16), fw2_ref[...], preferred_element_type=f32)
    out_ref[...] = out + fb2_ref[...]


# ----------------------------------------------------------------------------
# Parameters: PyTorch-shaped synthetic init + one-time kernel re-layout
# ----------------------------------------------------------------------------
def init_params(key):
    ks = jax.random.split(key, 10)

    def u(k, shape, fan_in):
        bound = 1.0 / jnp.sqrt(jnp.float32(fan_in))
        return jax.random.uniform(k, shape, jnp.float32, -bound, bound)

    return {
        "conv1_w": u(ks[0], (64, 1, 3, 3), 9),
        "conv1_b": u(ks[1], (64,), 9),
        "conv2_w": u(ks[2], (64, 64, 3, 3), 64 * 9),
        "conv2_b": u(ks[3], (64,), 64 * 9),
        "conv3_w": u(ks[4], (64, 64, 3, 3), 64 * 9),
        "conv3_b": u(ks[5], (64,), 64 * 9),
        "fc1_w": u(ks[6], (128, 576), 576),
        "fc1_b": u(ks[7], (128,), 576),
        "fc2_w": u(ks[8], (8, 128), 128),
        "fc2_b": u(ks[9], (8,), 128),
    }


def prepare_params(p):
    """Hoisted one-time weight re-layout / bf16 cast (kernel layouts)."""
    kp = {}
    # conv weights: (Cout, Cin, kh, kw) -> (kh, kw, Cin, Cout)
    kp["w1"] = jnp.transpose(p["conv1_w"], (2, 3, 1, 0)).astype(jnp.float32)   # (3,3,1,64)
    kp["b1"] = p["conv1_b"].reshape(1, C).astype(jnp.float32)
    kp["w2"] = jnp.transpose(p["conv2_w"], (2, 3, 1, 0)).astype(jnp.bfloat16)  # (3,3,64,64)
    kp["b2"] = p["conv2_b"].reshape(1, C).astype(jnp.float32)
    kp["w3"] = jnp.transpose(p["conv3_w"], (2, 3, 1, 0)).astype(jnp.bfloat16)
    kp["b3"] = p["conv3_b"].reshape(1, C).astype(jnp.float32)
    # fc1: (128, 576) where 576 flattens (C=64, H=3, W=3) -> (h, w, c, n)
    kp["fw1"] = jnp.transpose(p["fc1_w"].reshape(FC1, C, 3, 3),
                              (2, 3, 1, 0)).astype(jnp.bfloat16)               # (3,3,64,128)
    kp["fb1"] = p["fc1_b"].reshape(1, FC1).astype(jnp.float32)
    # fc2: (8, 128) -> (128, 8) zero-padded to (128, 128)
    fw2 = jnp.zeros((FC1, FC2_PAD), jnp.float32).at[:, :8].set(p["fc2_w"].T)
    kp["fw2"] = fw2.astype(jnp.bfloat16)
    kp["fb2"] = jnp.zeros((1, FC2_PAD), jnp.float32).at[:, :8].set(p["fc2_b"])
    return kp


# ----------------------------------------------------------------------------
# Forward pass (mirrors GesturePredictor.forward)
# ----------------------------------------------------------------------------
@jax.jit
def gesture_predictor_forward(params, x_nchw):
    kp = prepare_params(params)
    B = x_nchw.shape[0]
    G = (B + TB - 1) // TB
    Bp = G * TB

    # Boundary layout transform only (tiny input):
    # (B,1,40,40) -> (G, 40, 40*TB, 1), sublane index = w*TB + t (image-minor).
    x = x_nchw[:, 0, :, :].astype(jnp.float32)
    if Bp != B:
        x = jnp.pad(x, ((0, Bp - B), (0, 0), (0, 0)))
    x = jnp.transpose(x, (1, 2, 0)).reshape(40, 40, G, TB)
    x = jnp.transpose(x, (2, 0, 1, 3)).reshape(G, 40, 40 * TB, 1)
    x = x.astype(jnp.bfloat16)

    out = pl.pallas_call(
        _fused_kernel,
        out_shape=jax.ShapeDtypeStruct((Bp, FC2_PAD), jnp.float32),
        grid=(G,),
        in_specs=[
            pl.BlockSpec((1, 40, 40 * TB, 1), lambda g: (g, 0, 0, 0)),  # input tile
            pl.BlockSpec((3, 3, 1, C), lambda g: (0, 0, 0, 0)),         # conv1 w
            pl.BlockSpec((1, C), lambda g: (0, 0)),                     # conv1 b
            pl.BlockSpec((3, 3, C, C), lambda g: (0, 0, 0, 0)),         # conv2 w
            pl.BlockSpec((1, C), lambda g: (0, 0)),                     # conv2 b
            pl.BlockSpec((3, 3, C, C), lambda g: (0, 0, 0, 0)),         # conv3 w
            pl.BlockSpec((1, C), lambda g: (0, 0)),                     # conv3 b
            pl.BlockSpec((3, 3, C, FC1), lambda g: (0, 0, 0, 0)),       # fc1 w
            pl.BlockSpec((1, FC1), lambda g: (0, 0)),                   # fc1 b
            pl.BlockSpec((FC1, FC2_PAD), lambda g: (0, 0)),             # fc2 w (padded)
            pl.BlockSpec((1, FC2_PAD), lambda g: (0, 0)),               # fc2 b (padded)
        ],
        out_specs=pl.BlockSpec((TB, FC2_PAD), lambda g: (g, 0)),
        scratch_shapes=[
            pltpu.VMEM((19, 19 * TB, C), jnp.float32),   # pooled after conv1
            pltpu.VMEM((8, 8 * TB, C), jnp.float32),     # pooled after conv2
            pltpu.VMEM((3, 3 * TB, C), jnp.float32),     # pooled after conv3
        ],
        compiler_params=pltpu.CompilerParams(
            dimension_semantics=("parallel",),
            vmem_limit_bytes=32 * 1024 * 1024,
        ),
    )(x, kp["w1"], kp["b1"], kp["w2"], kp["b2"], kp["w3"], kp["b3"],
      kp["fw1"], kp["fb1"], kp["fw2"], kp["fb2"])

    return out[:B, :8]


if __name__ == "__main__":
    key = jax.random.PRNGKey(0)
    pkey, xkey = jax.random.split(key)
    params = init_params(pkey)

    x = jax.random.normal(xkey, (2, 1, 40, 40), dtype=jnp.float32)

    out = gesture_predictor_forward(params, x)
    out = jax.block_until_ready(out)
    assert out.shape == (2, 8), out.shape
    print("KERNEL_OK")
</pallas_src>

<mosaic_0001>
module attributes {stable_mosaic.version = 11 : i64} {
  func.func @_fused_kernel(%arg0: i32, %arg1: memref<1x40x320x1xbf16, #tpu.memory_space<vmem>>, %arg2: memref<3x3x1x64xf32, #tpu.memory_space<vmem>>, %arg3: memref<1x64xf32, #tpu.memory_space<vmem>>, %arg4: memref<3x3x64x64xbf16, #tpu.memory_space<vmem>>, %arg5: memref<1x64xf32, #tpu.memory_space<vmem>>, %arg6: memref<3x3x64x64xbf16, #tpu.memory_space<vmem>>, %arg7: memref<1x64xf32, #tpu.memory_space<vmem>>, %arg8: memref<3x3x64x128xbf16, #tpu.memory_space<vmem>>, %arg9: memref<1x128xf32, #tpu.memory_space<vmem>>, %arg10: memref<128x128xbf16, #tpu.memory_space<vmem>>, %arg11: memref<1x128xf32, #tpu.memory_space<vmem>>, %arg12: memref<8x128xf32, #tpu.memory_space<vmem>>, %arg13: memref<19x152x64xf32, #tpu.memory_space<vmem>>, %arg14: memref<8x64x64xf32, #tpu.memory_space<vmem>>, %arg15: memref<3x24x64xf32, #tpu.memory_space<vmem>>) attributes {dimension_semantics = [#tpu.dimension_semantics<parallel>], iteration_bounds = array<i64: 1>, scalar_prefetch = 0 : i64, scratch_operands = 3 : i64, tpu.core_type = #tpu.core_type<tc>, window_params = [{transform_indices = @transform_0, window_bounds = array<i64: 1, 40, 320, 1>}, {pipeline_mode = #tpu.pipeline_mode<synchronous>, transform_indices = @transform_1, window_bounds = array<i64: 3, 3, 1, 64>}, {pipeline_mode = #tpu.pipeline_mode<synchronous>, transform_indices = @transform_2, window_bounds = array<i64: 1, 64>}, {pipeline_mode = #tpu.pipeline_mode<synchronous>, transform_indices = @transform_3, window_bounds = array<i64: 3, 3, 64, 64>}, {pipeline_mode = #tpu.pipeline_mode<synchronous>, transform_indices = @transform_4, window_bounds = array<i64: 1, 64>}, {pipeline_mode = #tpu.pipeline_mode<synchronous>, transform_indices = @transform_5, window_bounds = array<i64: 3, 3, 64, 64>}, {pipeline_mode = #tpu.pipeline_mode<synchronous>, transform_indices = @transform_6, window_bounds = array<i64: 1, 64>}, {pipeline_mode = #tpu.pipeline_mode<synchronous>, transform_indices = @transform_7, window_bounds = array<i64: 3, 3, 64, 128>}, {pipeline_mode = #tpu.pipeline_mode<synchronous>, transform_indices = @transform_8, window_bounds = array<i64: 1, 128>}, {pipeline_mode = #tpu.pipeline_mode<synchronous>, transform_indices = @transform_9, window_bounds = array<i64: 128, 128>}, {pipeline_mode = #tpu.pipeline_mode<synchronous>, transform_indices = @transform_10, window_bounds = array<i64: 1, 128>}, {transform_indices = @transform_11, window_bounds = array<i64: 8, 128>}]} {
    %c0_i32 = arith.constant 0 : i32
    %c19_i32 = arith.constant 19 : i32
    %0 = arith.addi %c0_i32, %c19_i32 : i32
    %c1_i32 = arith.constant 1 : i32
    scf.for %arg16 = %c0_i32 to %0 step %c1_i32  : i32 {
      %c2_i32 = arith.constant 2 : i32
      %79 = arith.muli %c2_i32, %arg16 : i32
      %c0_i32_84 = arith.constant 0 : i32
      %80 = arith.addi %79, %c0_i32_84 : i32
      %c0_85 = arith.constant 0 : index
      %81 = arith.index_cast %80 : i32 to index
      %c0_86 = arith.constant 0 : index
      %c0_87 = arith.constant 0 : index
      %82 = vector.load %arg1[%c0_85, %81, %c0_86, %c0_87] : memref<1x40x320x1xbf16, #tpu.memory_space<vmem>>, vector<1x1x320x1xbf16>
      %83 = vector.shape_cast %82 : vector<1x1x320x1xbf16> to vector<320x1xbf16>
      %84 = arith.extf %83 : vector<320x1xbf16> to vector<320x1xf32>
      %c2_i32_88 = arith.constant 2 : i32
      %85 = arith.muli %c2_i32_88, %arg16 : i32
      %c1_i32_89 = arith.constant 1 : i32
      %86 = arith.addi %85, %c1_i32_89 : i32
      %c0_90 = arith.constant 0 : index
      %87 = arith.index_cast %86 : i32 to index
      %c0_91 = arith.constant 0 : index
      %c0_92 = arith.constant 0 : index
      %88 = vector.load %arg1[%c0_90, %87, %c0_91, %c0_92] : memref<1x40x320x1xbf16, #tpu.memory_space<vmem>>, vector<1x1x320x1xbf16>
      %89 = vector.shape_cast %88 : vector<1x1x320x1xbf16> to vector<320x1xbf16>
      %90 = arith.extf %89 : vector<320x1xbf16> to vector<320x1xf32>
      %c2_i32_93 = arith.constant 2 : i32
      %91 = arith.muli %c2_i32_93, %arg16 : i32
      %c2_i32_94 = arith.constant 2 : i32
      %92 = arith.addi %91, %c2_i32_94 : i32
      %c0_95 = arith.constant 0 : index
      %93 = arith.index_cast %92 : i32 to index
      %c0_96 = arith.constant 0 : index
      %c0_97 = arith.constant 0 : index
      %94 = vector.load %arg1[%c0_95, %93, %c0_96, %c0_97] : memref<1x40x320x1xbf16, #tpu.memory_space<vmem>>, vector<1x1x320x1xbf16>
      %95 = vector.shape_cast %94 : vector<1x1x320x1xbf16> to vector<320x1xbf16>
      %96 = arith.extf %95 : vector<320x1xbf16> to vector<320x1xf32>
      %c2_i32_98 = arith.constant 2 : i32
      %97 = arith.muli %c2_i32_98, %arg16 : i32
      %c3_i32_99 = arith.constant 3 : i32
      %98 = arith.addi %97, %c3_i32_99 : i32
      %c0_100 = arith.constant 0 : index
      %99 = arith.index_cast %98 : i32 to index
      %c0_101 = arith.constant 0 : index
      %c0_102 = arith.constant 0 : index
      %100 = vector.load %arg1[%c0_100, %99, %c0_101, %c0_102] : memref<1x40x320x1xbf16, #tpu.memory_space<vmem>>, vector<1x1x320x1xbf16>
      %101 = vector.shape_cast %100 : vector<1x1x320x1xbf16> to vector<320x1xbf16>
      %102 = arith.extf %101 : vector<320x1xbf16> to vector<320x1xf32>
      %cst_103 = arith.constant 0.000000e+00 : f32
      %103 = vector.broadcast %cst_103 : f32 to vector<304x64xf32>
      %104 = vector.extract_strided_slice %84 {offsets = [0, 0], sizes = [304, 1], strides = [1, 1]} : vector<320x1xf32> to vector<304x1xf32>
      %c0_104 = arith.constant 0 : index
      %c0_105 = arith.constant 0 : index
      %c0_106 = arith.constant 0 : index
      %c0_107 = arith.constant 0 : index
      %105 = vector.load %arg2[%c0_104, %c0_105, %c0_106, %c0_107] : memref<3x3x1x64xf32, #tpu.memory_space<vmem>>, vector<1x1x1x64xf32>
      %106 = vector.shape_cast %105 : vector<1x1x1x64xf32> to vector<1x64xf32>
      %107 = vector.broadcast %104 : vector<304x1xf32> to vector<304x64xf32>
      %108 = vector.broadcast %106 : vector<1x64xf32> to vector<304x64xf32>
      %109 = arith.mulf %107, %108 : vector<304x64xf32>
      %110 = arith.addf %103, %109 : vector<304x64xf32>
      %111 = vector.extract_strided_slice %84 {offsets = [8, 0], sizes = [304, 1], strides = [1, 1]} : vector<320x1xf32> to vector<304x1xf32>
      %c0_108 = arith.constant 0 : index
      %c1_109 = arith.constant 1 : index
      %c0_110 = arith.constant 0 : index
      %c0_111 = arith.constant 0 : index
      %112 = vector.load %arg2[%c0_108, %c1_109, %c0_110, %c0_111] : memref<3x3x1x64xf32, #tpu.memory_space<vmem>>, vector<1x1x1x64xf32>
      %113 = vector.shape_cast %112 : vector<1x1x1x64xf32> to vector<1x64xf32>
      %114 = vector.broadcast %111 : vector<304x1xf32> to vector<304x64xf32>
      %115 = vector.broadcast %113 : vector<1x64xf32> to vector<304x64xf32>
      %116 = arith.mulf %114, %115 : vector<304x64xf32>
      %117 = arith.addf %110, %116 : vector<304x64xf32>
      %118 = vector.extract_strided_slice %84 {offsets = [16, 0], sizes = [304, 1], strides = [1, 1]} : vector<320x1xf32> to vector<304x1xf32>
      %c0_112 = arith.constant 0 : index
      %c2_113 = arith.constant 2 : index
      %c0_114 = arith.constant 0 : index
      %c0_115 = arith.constant 0 : index
      %119 = vector.load %arg2[%c0_112, %c2_113, %c0_114, %c0_115] : memref<3x3x1x64xf32, #tpu.memory_space<vmem>>, vector<1x1x1x64xf32>
      %120 = vector.shape_cast %119 : vector<1x1x1x64xf32> to vector<1x64xf32>
      %121 = vector.broadcast %118 : vector<304x1xf32> to vector<304x64xf32>
      %122 = vector.broadcast %120 : vector<1x64xf32> to vector<304x64xf32>
      %123 = arith.mulf %121, %122 : vector<304x64xf32>
      %124 = arith.addf %117, %123 : vector<304x64xf32>
      %125 = vector.extract_strided_slice %90 {offsets = [0, 0], sizes = [304, 1], strides = [1, 1]} : vector<320x1xf32> to vector<304x1xf32>
      %c1_116 = arith.constant 1 : index
      %c0_117 = arith.constant 0 : index
      %c0_118 = arith.constant 0 : index
      %c0_119 = arith.constant 0 : index
      %126 = vector.load %arg2[%c1_116, %c0_117, %c0_118, %c0_119] : memref<3x3x1x64xf32, #tpu.memory_space<vmem>>, vector<1x1x1x64xf32>
      %127 = vector.shape_cast %126 : vector<1x1x1x64xf32> to vector<1x64xf32>
      %128 = vector.broadcast %125 : vector<304x1xf32> to vector<304x64xf32>
      %129 = vector.broadcast %127 : vector<1x64xf32> to vector<304x64xf32>
      %130 = arith.mulf %128, %129 : vector<304x64xf32>
      %131 = arith.addf %124, %130 : vector<304x64xf32>
      %132 = vector.extract_strided_slice %90 {offsets = [8, 0], sizes = [304, 1], strides = [1, 1]} : vector<320x1xf32> to vector<304x1xf32>
      %c1_120 = arith.constant 1 : index
      %c1_121 = arith.constant 1 : index
      %c0_122 = arith.constant 0 : index
      %c0_123 = arith.constant 0 : index
      %133 = vector.load %arg2[%c1_120, %c1_121, %c0_122, %c0_123] : memref<3x3x1x64xf32, #tpu.memory_space<vmem>>, vector<1x1x1x64xf32>
      %134 = vector.shape_cast %133 : vector<1x1x1x64xf32> to vector<1x64xf32>
      %135 = vector.broadcast %132 : vector<304x1xf32> to vector<304x64xf32>
      %136 = vector.broadcast %134 : vector<1x64xf32> to vector<304x64xf32>
      %137 = arith.mulf %135, %136 : vector<304x64xf32>
      %138 = arith.addf %131, %137 : vector<304x64xf32>
      %139 = vector.extract_strided_slice %90 {offsets = [16, 0], sizes = [304, 1], strides = [1, 1]} : vector<320x1xf32> to vector<304x1xf32>
      %c1_124 = arith.constant 1 : index
      %c2_125 = arith.constant 2 : index
      %c0_126 = arith.constant 0 : index
      %c0_127 = arith.constant 0 : index
      %140 = vector.load %arg2[%c1_124, %c2_125, %c0_126, %c0_127] : memref<3x3x1x64xf32, #tpu.memory_space<vmem>>, vector<1x1x1x64xf32>
      %141 = vector.shape_cast %140 : vector<1x1x1x64xf32> to vector<1x64xf32>
      %142 = vector.broadcast %139 : vector<304x1xf32> to vector<304x64xf32>
      %143 = vector.broadcast %141 : vector<1x64xf32> to vector<304x64xf32>
      %144 = arith.mulf %142, %143 : vector<304x64xf32>
      %145 = arith.addf %138, %144 : vector<304x64xf32>
      %146 = vector.extract_strided_slice %96 {offsets = [0, 0], sizes = [304, 1], strides = [1, 1]} : vector<320x1xf32> to vector<304x1xf32>
      %c2_128 = arith.constant 2 : index
      %c0_129 = arith.constant 0 : index
      %c0_130 = arith.constant 0 : index
      %c0_131 = arith.constant 0 : index
      %147 = vector.load %arg2[%c2_128, %c0_129, %c0_130, %c0_131] : memref<3x3x1x64xf32, #tpu.memory_space<vmem>>, vector<1x1x1x64xf32>
      %148 = vector.shape_cast %147 : vector<1x1x1x64xf32> to vector<1x64xf32>
      %149 = vector.broadcast %146 : vector<304x1xf32> to vector<304x64xf32>
      %150 = vector.broadcast %148 : vector<1x64xf32> to vector<304x64xf32>
      %151 = arith.mulf %149, %150 : vector<304x64xf32>
      %152 = arith.addf %145, %151 : vector<304x64xf32>
      %153 = vector.extract_strided_slice %96 {offsets = [8, 0], sizes = [304, 1], strides = [1, 1]} : vector<320x1xf32> to vector<304x1xf32>
      %c2_132 = arith.constant 2 : index
      %c1_133 = arith.constant 1 : index
      %c0_134 = arith.constant 0 : index
      %c0_135 = arith.constant 0 : index
      %154 = vector.load %arg2[%c2_132, %c1_133, %c0_134, %c0_135] : memref<3x3x1x64xf32, #tpu.memory_space<vmem>>, vector<1x1x1x64xf32>
      %155 = vector.shape_cast %154 : vector<1x1x1x64xf32> to vector<1x64xf32>
      %156 = vector.broadcast %153 : vector<304x1xf32> to vector<304x64xf32>
      %157 = vector.broadcast %155 : vector<1x64xf32> to vector<304x64xf32>
      %158 = arith.mulf %156, %157 : vector<304x64xf32>
      %159 = arith.addf %152, %158 : vector<304x64xf32>
      %160 = vector.extract_strided_slice %96 {offsets = [16, 0], sizes = [304, 1], strides = [1, 1]} : vector<320x1xf32> to vector<304x1xf32>
      %c2_136 = arith.constant 2 : index
      %c2_137 = arith.constant 2 : index
      %c0_138 = arith.constant 0 : index
      %c0_139 = arith.constant 0 : index
      %161 = vector.load %arg2[%c2_136, %c2_137, %c0_138, %c0_139] : memref<3x3x1x64xf32, #tpu.memory_space<vmem>>, vector<1x1x1x64xf32>
      %162 = vector.shape_cast %161 : vector<1x1x1x64xf32> to vector<1x64xf32>
      %163 = vector.broadcast %160 : vector<304x1xf32> to vector<304x64xf32>
      %164 = vector.broadcast %162 : vector<1x64xf32> to vector<304x64xf32>
      %165 = arith.mulf %163, %164 : vector<304x64xf32>
      %166 = arith.addf %159, %165 : vector<304x64xf32>
      %c0_140 = arith.constant 0 : index
      %c0_141 = arith.constant 0 : index
      %167 = vector.load %arg3[%c0_140, %c0_141] : memref<1x64xf32, #tpu.memory_space<vmem>>, vector<1x64xf32>
      %168 = vector.broadcast %167 : vector<1x64xf32> to vector<304x64xf32>
      %169 = arith.addf %166, %168 : vector<304x64xf32>
      %cst_142 = arith.constant 0.000000e+00 : f32
      %170 = vector.broadcast %cst_142 : f32 to vector<304x64xf32>
      %171 = arith.maximumf %169, %170 : vector<304x64xf32>
      %cst_143 = arith.constant 0.000000e+00 : f32
      %172 = vector.broadcast %cst_143 : f32 to vector<304x64xf32>
      %173 = vector.extract_strided_slice %90 {offsets = [0, 0], sizes = [304, 1], strides = [1, 1]} : vector<320x1xf32> to vector<304x1xf32>
      %c0_144 = arith.constant 0 : index
      %c0_145 = arith.constant 0 : index
      %c0_146 = arith.constant 0 : index
      %c0_147 = arith.constant 0 : index
      %174 = vector.load %arg2[%c0_144, %c0_145, %c0_146, %c0_147] : memref<3x3x1x64xf32, #tpu.memory_space<vmem>>, vector<1x1x1x64xf32>
      %175 = vector.shape_cast %174 : vector<1x1x1x64xf32> to vector<1x64xf32>
      %176 = vector.broadcast %173 : vector<304x1xf32> to vector<304x64xf32>
      %177 = vector.broadcast %175 : vector<1x64xf32> to vector<304x64xf32>
      %178 = arith.mulf %176, %177 : vector<304x64xf32>
      %179 = arith.addf %172, %178 : vector<304x64xf32>
      %180 = vector.extract_strided_slice %90 {offsets = [8, 0], sizes = [304, 1], strides = [1, 1]} : vector<320x1xf32> to vector<304x1xf32>
      %c0_148 = arith.constant 0 : index
      %c1_149 = arith.constant 1 : index
      %c0_150 = arith.constant 0 : index
      %c0_151 = arith.constant 0 : index
      %181 = vector.load %arg2[%c0_148, %c1_149, %c0_150, %c0_151] : memref<3x3x1x64xf32, #tpu.memory_space<vmem>>, vector<1x1x1x64xf32>
      %182 = vector.shape_cast %181 : vector<1x1x1x64xf32> to vector<1x64xf32>
      %183 = vector.broadcast %180 : vector<304x1xf32> to vector<304x64xf32>
      %184 = vector.broadcast %182 : vector<1x64xf32> to vector<304x64xf32>
      %185 = arith.mulf %183, %184 : vector<304x64xf32>
      %186 = arith.addf %179, %185 : vector<304x64xf32>
      %187 = vector.extract_strided_slice %90 {offsets = [16, 0], sizes = [304, 1], strides = [1, 1]} : vector<320x1xf32> to vector<304x1xf32>
      %c0_152 = arith.constant 0 : index
      %c2_153 = arith.constant 2 : index
      %c0_154 = arith.constant 0 : index
      %c0_155 = arith.constant 0 : index
      %188 = vector.load %arg2[%c0_152, %c2_153, %c0_154, %c0_155] : memref<3x3x1x64xf32, #tpu.memory_space<vmem>>, vector<1x1x1x64xf32>
      %189 = vector.shape_cast %188 : vector<1x1x1x64xf32> to vector<1x64xf32>
      %190 = vector.broadcast %187 : vector<304x1xf32> to vector<304x64xf32>
      %191 = vector.broadcast %189 : vector<1x64xf32> to vector<304x64xf32>
      %192 = arith.mulf %190, %191 : vector<304x64xf32>
      %193 = arith.addf %186, %192 : vector<304x64xf32>
      %194 = vector.extract_strided_slice %96 {offsets = [0, 0], sizes = [304, 1], strides = [1, 1]} : vector<320x1xf32> to vector<304x1xf32>
      %c1_156 = arith.constant 1 : index
      %c0_157 = arith.constant 0 : index
      %c0_158 = arith.constant 0 : index
      %c0_159 = arith.constant 0 : index
      %195 = vector.load %arg2[%c1_156, %c0_157, %c0_158, %c0_159] : memref<3x3x1x64xf32, #tpu.memory_space<vmem>>, vector<1x1x1x64xf32>
      %196 = vector.shape_cast %195 : vector<1x1x1x64xf32> to vector<1x64xf32>
      %197 = vector.broadcast %194 : vector<304x1xf32> to vector<304x64xf32>
      %198 = vector.broadcast %196 : vector<1x64xf32> to vector<304x64xf32>
      %199 = arith.mulf %197, %198 : vector<304x64xf32>
      %200 = arith.addf %193, %199 : vector<304x64xf32>
      %201 = vector.extract_strided_slice %96 {offsets = [8, 0], sizes = [304, 1], strides = [1, 1]} : vector<320x1xf32> to vector<304x1xf32>
      %c1_160 = arith.constant 1 : index
      %c1_161 = arith.constant 1 : index
      %c0_162 = arith.constant 0 : index
      %c0_163 = arith.constant 0 : index
      %202 = vector.load %arg2[%c1_160, %c1_161, %c0_162, %c0_163] : memref<3x3x1x64xf32, #tpu.memory_space<vmem>>, vector<1x1x1x64xf32>
      %203 = vector.shape_cast %202 : vector<1x1x1x64xf32> to vector<1x64xf32>
      %204 = vector.broadcast %201 : vector<304x1xf32> to vector<304x64xf32>
      %205 = vector.broadcast %203 : vector<1x64xf32> to vector<304x64xf32>
      %206 = arith.mulf %204, %205 : vector<304x64xf32>
      %207 = arith.addf %200, %206 : vector<304x64xf32>
      %208 = vector.extract_strided_slice %96 {offsets = [16, 0], sizes = [304, 1], strides = [1, 1]} : vector<320x1xf32> to vector<304x1xf32>
      %c1_164 = arith.constant 1 : index
      %c2_165 = arith.constant 2 : index
      %c0_166 = arith.constant 0 : index
      %c0_167 = arith.constant 0 : index
      %209 = vector.load %arg2[%c1_164, %c2_165, %c0_166, %c0_167] : memref<3x3x1x64xf32, #tpu.memory_space<vmem>>, vector<1x1x1x64xf32>
      %210 = vector.shape_cast %209 : vector<1x1x1x64xf32> to vector<1x64xf32>
      %211 = vector.broadcast %208 : vector<304x1xf32> to vector<304x64xf32>
      %212 = vector.broadcast %210 : vector<1x64xf32> to vector<304x64xf32>
      %213 = arith.mulf %211, %212 : vector<304x64xf32>
      %214 = arith.addf %207, %213 : vector<304x64xf32>
      %215 = vector.extract_strided_slice %102 {offsets = [0, 0], sizes = [304, 1], strides = [1, 1]} : vector<320x1xf32> to vector<304x1xf32>
      %c2_168 = arith.constant 2 : index
      %c0_169 = arith.constant 0 : index
      %c0_170 = arith.constant 0 : index
      %c0_171 = arith.constant 0 : index
      %216 = vector.load %arg2[%c2_168, %c0_169, %c0_170, %c0_171] : memref<3x3x1x64xf32, #tpu.memory_space<vmem>>, vector<1x1x1x64xf32>
      %217 = vector.shape_cast %216 : vector<1x1x1x64xf32> to vector<1x64xf32>
      %218 = vector.broadcast %215 : vector<304x1xf32> to vector<304x64xf32>
      %219 = vector.broadcast %217 : vector<1x64xf32> to vector<304x64xf32>
      %220 = arith.mulf %218, %219 : vector<304x64xf32>
      %221 = arith.addf %214, %220 : vector<304x64xf32>
      %222 = vector.extract_strided_slice %102 {offsets = [8, 0], sizes = [304, 1], strides = [1, 1]} : vector<320x1xf32> to vector<304x1xf32>
      %c2_172 = arith.constant 2 : index
      %c1_173 = arith.constant 1 : index
      %c0_174 = arith.constant 0 : index
      %c0_175 = arith.constant 0 : index
      %223 = vector.load %arg2[%c2_172, %c1_173, %c0_174, %c0_175] : memref<3x3x1x64xf32, #tpu.memory_space<vmem>>, vector<1x1x1x64xf32>
      %224 = vector.shape_cast %223 : vector<1x1x1x64xf32> to vector<1x64xf32>
      %225 = vector.broadcast %222 : vector<304x1xf32> to vector<304x64xf32>
      %226 = vector.broadcast %224 : vector<1x64xf32> to vector<304x64xf32>
      %227 = arith.mulf %225, %226 : vector<304x64xf32>
      %228 = arith.addf %221, %227 : vector<304x64xf32>
      %229 = vector.extract_strided_slice %102 {offsets = [16, 0], sizes = [304, 1], strides = [1, 1]} : vector<320x1xf32> to vector<304x1xf32>
      %c2_176 = arith.constant 2 : index
      %c2_177 = arith.constant 2 : index
      %c0_178 = arith.constant 0 : index
      %c0_179 = arith.constant 0 : index
      %230 = vector.load %arg2[%c2_176, %c2_177, %c0_178, %c0_179] : memref<3x3x1x64xf32, #tpu.memory_space<vmem>>, vector<1x1x1x64xf32>
      %231 = vector.shape_cast %230 : vector<1x1x1x64xf32> to vector<1x64xf32>
      %232 = vector.broadcast %229 : vector<304x1xf32> to vector<304x64xf32>
      %233 = vector.broadcast %231 : vector<1x64xf32> to vector<304x64xf32>
      %234 = arith.mulf %232, %233 : vector<304x64xf32>
      %235 = arith.addf %228, %234 : vector<304x64xf32>
      %c0_180 = arith.constant 0 : index
      %c0_181 = arith.constant 0 : index
      %236 = vector.load %arg3[%c0_180, %c0_181] : memref<1x64xf32, #tpu.memory_space<vmem>>, vector<1x64xf32>
      %237 = vector.broadcast %236 : vector<1x64xf32> to vector<304x64xf32>
      %238 = arith.addf %235, %237 : vector<304x64xf32>
      %cst_182 = arith.constant 0.000000e+00 : f32
      %239 = vector.broadcast %cst_182 : f32 to vector<304x64xf32>
      %240 = arith.maximumf %238, %239 : vector<304x64xf32>
      %241 = arith.maximumf %171, %240 : vector<304x64xf32>
      %242 = vector.extract_strided_slice %241 {offsets = [0, 0], sizes = [8, 64], strides = [1, 1]} : vector<304x64xf32> to vector<8x64xf32>
      %243 = vector.extract_strided_slice %241 {offsets = [8, 0], sizes = [8, 64], strides = [1, 1]} : vector<304x64xf32> to vector<8x64xf32>
      %244 = arith.maximumf %242, %243 : vector<8x64xf32>
      %245 = arith.index_cast %arg16 : i32 to index
      %c0_183 = arith.constant 0 : index
      %c0_184 = arith.constant 0 : index
      %246 = vector.load %arg13[%245, %c0_183, %c0_184] : memref<19x152x64xf32, #tpu.memory_space<vmem>>, vector<1x8x64xf32>
      %247 = vector.shape_cast %246 : vector<1x8x64xf32> to vector<8x64xf32>
      %248 = vector.shape_cast %244 : vector<8x64xf32> to vector<1x8x64xf32>
      tpu.vector_store %arg13[%245, %c0_183, %c0_184], %248 {strides = array<i32>} : memref<19x152x64xf32, #tpu.memory_space<vmem>>, vector<1x8x64xf32>,
      %249 = vector.extract_strided_slice %241 {offsets = [16, 0], sizes = [8, 64], strides = [1, 1]} : vector<304x64xf32> to vector<8x64xf32>
      %250 = vector.extract_strided_slice %241 {offsets = [24, 0], sizes = [8, 64], strides = [1, 1]} : vector<304x64xf32> to vector<8x64xf32>
      %251 = arith.maximumf %249, %250 : vector<8x64xf32>
      %252 = arith.index_cast %arg16 : i32 to index
      %c8_185 = arith.constant 8 : index
      %c0_186 = arith.constant 0 : index
      %253 = vector.load %arg13[%252, %c8_185, %c0_186] : memref<19x152x64xf32, #tpu.memory_space<vmem>>, vector<1x8x64xf32>
      %254 = vector.shape_cast %253 : vector<1x8x64xf32> to vector<8x64xf32>
      %255 = vector.shape_cast %251 : vector<8x64xf32> to vector<1x8x64xf32>
      tpu.vector_store %arg13[%252, %c8_185, %c0_186], %255 {strides = array<i32>} : memref<19x152x64xf32, #tpu.memory_space<vmem>>, vector<1x8x64xf32>,
      %256 = vector.extract_strided_slice %241 {offsets = [32, 0], sizes = [8, 64], strides = [1, 1]} : vector<304x64xf32> to vector<8x64xf32>
      %257 = vector.extract_strided_slice %241 {offsets = [40, 0], sizes = [8, 64], strides = [1, 1]} : vector<304x64xf32> to vector<8x64xf32>
      %258 = arith.maximumf %256, %257 : vector<8x64xf32>
      %259 = arith.index_cast %arg16 : i32 to index
      %c16_187 = arith.constant 16 : index
      %c0_188 = arith.constant 0 : index
      %260 = vector.load %arg13[%259, %c16_187, %c0_188] : memref<19x152x64xf32, #tpu.memory_space<vmem>>, vector<1x8x64xf32>
      %261 = vector.shape_cast %260 : vector<1x8x64xf32> to vector<8x64xf32>
      %262 = vector.shape_cast %258 : vector<8x64xf32> to vector<1x8x64xf32>
      tpu.vector_store %arg13[%259, %c16_187, %c0_188], %262 {strides = array<i32>} : memref<19x152x64xf32, #tpu.memory_space<vmem>>, vector<1x8x64xf32>,
      %263 = vector.extract_strided_slice %241 {offsets = [48, 0], sizes = [8, 64], strides = [1, 1]} : vector<304x64xf32> to vector<8x64xf32>
      %264 = vector.extract_strided_slice %241 {offsets = [56, 0], sizes = [8, 64], strides = [1, 1]} : vector<304x64xf32> to vector<8x64xf32>
      %265 = arith.maximumf %263, %264 : vector<8x64xf32>
      %266 = arith.index_cast %arg16 : i32 to index
      %c24 = arith.constant 24 : index
      %c0_189 = arith.constant 0 : index
      %267 = vector.load %arg13[%266, %c24, %c0_189] : memref<19x152x64xf32, #tpu.memory_space<vmem>>, vector<1x8x64xf32>
      %268 = vector.shape_cast %267 : vector<1x8x64xf32> to vector<8x64xf32>
      %269 = vector.shape_cast %265 : vector<8x64xf32> to vector<1x8x64xf32>
      tpu.vector_store %arg13[%266, %c24, %c0_189], %269 {strides = array<i32>} : memref<19x152x64xf32, #tpu.memory_space<vmem>>, vector<1x8x64xf32>,
      %270 = vector.extract_strided_slice %241 {offsets = [64, 0], sizes = [8, 64], strides = [1, 1]} : vector<304x64xf32> to vector<8x64xf32>
      %271 = vector.extract_strided_slice %241 {offsets = [72, 0], sizes = [8, 64], strides = [1, 1]} : vector<304x64xf32> to vector<8x64xf32>
      %272 = arith.maximumf %270, %271 : vector<8x64xf32>
      %273 = arith.index_cast %arg16 : i32 to index
      %c32 = arith.constant 32 : index
      %c0_190 = arith.constant 0 : index
      %274 = vector.load %arg13[%273, %c32, %c0_190] : memref<19x152x64xf32, #tpu.memory_space<vmem>>, vector<1x8x64xf32>
      %275 = vector.shape_cast %274 : vector<1x8x64xf32> to vector<8x64xf32>
      %276 = vector.shape_cast %272 : vector<8x64xf32> to vector<1x8x64xf32>
      tpu.vector_store %arg13[%273, %c32, %c0_190], %276 {strides = array<i32>} : memref<19x152x64xf32, #tpu.memory_space<vmem>>, vector<1x8x64xf32>,
      %277 = vector.extract_strided_slice %241 {offsets = [80, 0], sizes = [8, 64], strides = [1, 1]} : vector<304x64xf32> to vector<8x64xf32>
      %278 = vector.extract_strided_slice %241 {offsets = [88, 0], sizes = [8, 64], strides = [1, 1]} : vector<304x64xf32> to vector<8x64xf32>
      %279 = arith.maximumf %277, %278 : vector<8x64xf32>
      %280 = arith.index_cast %arg16 : i32 to index
      %c40 = arith.constant 40 : index
      %c0_191 = arith.constant 0 : index
      %281 = vector.load %arg13[%280, %c40, %c0_191] : memref<19x152x64xf32, #tpu.memory_space<vmem>>, vector<1x8x64xf32>
      %282 = vector.shape_cast %281 : vector<1x8x64xf32> to vector<8x64xf32>
      %283 = vector.shape_cast %279 : vector<8x64xf32> to vector<1x8x64xf32>
      tpu.vector_store %arg13[%280, %c40, %c0_191], %283 {strides = array<i32>} : memref<19x152x64xf32, #tpu.memory_space<vmem>>, vector<1x8x64xf32>,
      %284 = vector.extract_strided_slice %241 {offsets = [96, 0], sizes = [8, 64], strides = [1, 1]} : vector<304x64xf32> to vector<8x64xf32>
      %285 = vector.extract_strided_slice %241 {offsets = [104, 0], sizes = [8, 64], strides = [1, 1]} : vector<304x64xf32> to vector<8x64xf32>
      %286 = arith.maximumf %284, %285 : vector<8x64xf32>
      %287 = arith.index_cast %arg16 : i32 to index
      %c48 = arith.constant 48 : index
      %c0_192 = arith.constant 0 : index
      %288 = vector.load %arg13[%287, %c48, %c0_192] : memref<19x152x64xf32, #tpu.memory_space<vmem>>, vector<1x8x64xf32>
      %289 = vector.shape_cast %288 : vector<1x8x64xf32> to vector<8x64xf32>
      %290 = vector.shape_cast %286 : vector<8x64xf32> to vector<1x8x64xf32>
      tpu.vector_store %arg13[%287, %c48, %c0_192], %290 {strides = array<i32>} : memref<19x152x64xf32, #tpu.memory_space<vmem>>, vector<1x8x64xf32>,
      %291 = vector.extract_strided_slice %241 {offsets = [112, 0], sizes = [8, 64], strides = [1, 1]} : vector<304x64xf32> to vector<8x64xf32>
      %292 = vector.extract_strided_slice %241 {offsets = [120, 0], sizes = [8, 64], strides = [1, 1]} : vector<304x64xf32> to vector<8x64xf32>
      %293 = arith.maximumf %291, %292 : vector<8x64xf32>
      %294 = arith.index_cast %arg16 : i32 to index
      %c56 = arith.constant 56 : index
      %c0_193 = arith.constant 0 : index
      %295 = vector.load %arg13[%294, %c56, %c0_193] : memref<19x152x64xf32, #tpu.memory_space<vmem>>, vector<1x8x64xf32>
      %296 = vector.shape_cast %295 : vector<1x8x64xf32> to vector<8x64xf32>
      %297 = vector.shape_cast %293 : vector<8x64xf32> to vector<1x8x64xf32>
      tpu.vector_store %arg13[%294, %c56, %c0_193], %297 {strides = array<i32>} : memref<19x152x64xf32, #tpu.memory_space<vmem>>, vector<1x8x64xf32>,
      %298 = vector.extract_strided_slice %241 {offsets = [128, 0], sizes = [8, 64], strides = [1, 1]} : vector<304x64xf32> to vector<8x64xf32>
      %299 = vector.extract_strided_slice %241 {offsets = [136, 0], sizes = [8, 64], strides = [1, 1]} : vector<304x64xf32> to vector<8x64xf32>
      %300 = arith.maximumf %298, %299 : vector<8x64xf32>
      %301 = arith.index_cast %arg16 : i32 to index
      %c64 = arith.constant 64 : index
      %c0_194 = arith.constant 0 : index
      %302 = vector.load %arg13[%301, %c64, %c0_194] : memref<19x152x64xf32, #tpu.memory_space<vmem>>, vector<1x8x64xf32>
      %303 = vector.shape_cast %302 : vector<1x8x64xf32> to vector<8x64xf32>
      %304 = vector.shape_cast %300 : vector<8x64xf32> to vector<1x8x64xf32>
      tpu.vector_store %arg13[%301, %c64, %c0_194], %304 {strides = array<i32>} : memref<19x152x64xf32, #tpu.memory_space<vmem>>, vector<1x8x64xf32>,
      %305 = vector.extract_strided_slice %241 {offsets = [144, 0], sizes = [8, 64], strides = [1, 1]} : vector<304x64xf32> to vector<8x64xf32>
      %306 = vector.extract_strided_slice %241 {offsets = [152, 0], sizes = [8, 64], strides = [1, 1]} : vector<304x64xf32> to vector<8x64xf32>
      %307 = arith.maximumf %305, %306 : vector<8x64xf32>
      %308 = arith.index_cast %arg16 : i32 to index
      %c72 = arith.constant 72 : index
      %c0_195 = arith.constant 0 : index
      %309 = vector.load %arg13[%308, %c72, %c0_195] : memref<19x152x64xf32, #tpu.memory_space<vmem>>, vector<1x8x64xf32>
      %310 = vector.shape_cast %309 : vector<1x8x64xf32> to vector<8x64xf32>
      %311 = vector.shape_cast %307 : vector<8x64xf32> to vector<1x8x64xf32>
      tpu.vector_store %arg13[%308, %c72, %c0_195], %311 {strides = array<i32>} : memref<19x152x64xf32, #tpu.memory_space<vmem>>, vector<1x8x64xf32>,
      %312 = vector.extract_strided_slice %241 {offsets = [160, 0], sizes = [8, 64], strides = [1, 1]} : vector<304x64xf32> to vector<8x64xf32>
      %313 = vector.extract_strided_slice %241 {offsets = [168, 0], sizes = [8, 64], strides = [1, 1]} : vector<304x64xf32> to vector<8x64xf32>
      %314 = arith.maximumf %312, %313 : vector<8x64xf32>
      %315 = arith.index_cast %arg16 : i32 to index
      %c80 = arith.constant 80 : index
      %c0_196 = arith.constant 0 : index
      %316 = vector.load %arg13[%315, %c80, %c0_196] : memref<19x152x64xf32, #tpu.memory_space<vmem>>, vector<1x8x64xf32>
      %317 = vector.shape_cast %316 : vector<1x8x64xf32> to vector<8x64xf32>
      %318 = vector.shape_cast %314 : vector<8x64xf32> to vector<1x8x64xf32>
      tpu.vector_store %arg13[%315, %c80, %c0_196], %318 {strides = array<i32>} : memref<19x152x64xf32, #tpu.memory_space<vmem>>, vector<1x8x64xf32>,
      %319 = vector.extract_strided_slice %241 {offsets = [176, 0], sizes = [8, 64], strides = [1, 1]} : vector<304x64xf32> to vector<8x64xf32>
      %320 = vector.extract_strided_slice %241 {offsets = [184, 0], sizes = [8, 64], strides = [1, 1]} : vector<304x64xf32> to vector<8x64xf32>
      %321 = arith.maximumf %319, %320 : vector<8x64xf32>
      %322 = arith.index_cast %arg16 : i32 to index
      %c88 = arith.constant 88 : index
      %c0_197 = arith.constant 0 : index
      %323 = vector.load %arg13[%322, %c88, %c0_197] : memref<19x152x64xf32, #tpu.memory_space<vmem>>, vector<1x8x64xf32>
      %324 = vector.shape_cast %323 : vector<1x8x64xf32> to vector<8x64xf32>
      %325 = vector.shape_cast %321 : vector<8x64xf32> to vector<1x8x64xf32>
      tpu.vector_store %arg13[%322, %c88, %c0_197], %325 {strides = array<i32>} : memref<19x152x64xf32, #tpu.memory_space<vmem>>, vector<1x8x64xf32>,
      %326 = vector.extract_strided_slice %241 {offsets = [192, 0], sizes = [8, 64], strides = [1, 1]} : vector<304x64xf32> to vector<8x64xf32>
      %327 = vector.extract_strided_slice %241 {offsets = [200, 0], sizes = [8, 64], strides = [1, 1]} : vector<304x64xf32> to vector<8x64xf32>
      %328 = arith.maximumf %326, %327 : vector<8x64xf32>
      %329 = arith.index_cast %arg16 : i32 to index
      %c96 = arith.constant 96 : index
      %c0_198 = arith.constant 0 : index
      %330 = vector.load %arg13[%329, %c96, %c0_198] : memref<19x152x64xf32, #tpu.memory_space<vmem>>, vector<1x8x64xf32>
      %331 = vector.shape_cast %330 : vector<1x8x64xf32> to vector<8x64xf32>
      %332 = vector.shape_cast %328 : vector<8x64xf32> to vector<1x8x64xf32>
      tpu.vector_store %arg13[%329, %c96, %c0_198], %332 {strides = array<i32>} : memref<19x152x64xf32, #tpu.memory_space<vmem>>, vector<1x8x64xf32>,
      %333 = vector.extract_strided_slice %241 {offsets = [208, 0], sizes = [8, 64], strides = [1, 1]} : vector<304x64xf32> to vector<8x64xf32>
      %334 = vector.extract_strided_slice %241 {offsets = [216, 0], sizes = [8, 64], strides = [1, 1]} : vector<304x64xf32> to vector<8x64xf32>
      %335 = arith.maximumf %333, %334 : vector<8x64xf32>
      %336 = arith.index_cast %arg16 : i32 to index
      %c104 = arith.constant 104 : index
      %c0_199 = arith.constant 0 : index
      %337 = vector.load %arg13[%336, %c104, %c0_199] : memref<19x152x64xf32, #tpu.memory_space<vmem>>, vector<1x8x64xf32>
      %338 = vector.shape_cast %337 : vector<1x8x64xf32> to vector<8x64xf32>
      %339 = vector.shape_cast %335 : vector<8x64xf32> to vector<1x8x64xf32>
      tpu.vector_store %arg13[%336, %c104, %c0_199], %339 {strides = array<i32>} : memref<19x152x64xf32, #tpu.memory_space<vmem>>, vector<1x8x64xf32>,
      %340 = vector.extract_strided_slice %241 {offsets = [224, 0], sizes = [8, 64], strides = [1, 1]} : vector<304x64xf32> to vector<8x64xf32>
      %341 = vector.extract_strided_slice %241 {offsets = [232, 0], sizes = [8, 64], strides = [1, 1]} : vector<304x64xf32> to vector<8x64xf32>
      %342 = arith.maximumf %340, %341 : vector<8x64xf32>
      %343 = arith.index_cast %arg16 : i32 to index
      %c112 = arith.constant 112 : index
      %c0_200 = arith.constant 0 : index
      %344 = vector.load %arg13[%343, %c112, %c0_200] : memref<19x152x64xf32, #tpu.memory_space<vmem>>, vector<1x8x64xf32>
      %345 = vector.shape_cast %344 : vector<1x8x64xf32> to vector<8x64xf32>
      %346 = vector.shape_cast %342 : vector<8x64xf32> to vector<1x8x64xf32>
      tpu.vector_store %arg13[%343, %c112, %c0_200], %346 {strides = array<i32>} : memref<19x152x64xf32, #tpu.memory_space<vmem>>, vector<1x8x64xf32>,
      %347 = vector.extract_strided_slice %241 {offsets = [240, 0], sizes = [8, 64], strides = [1, 1]} : vector<304x64xf32> to vector<8x64xf32>
      %348 = vector.extract_strided_slice %241 {offsets = [248, 0], sizes = [8, 64], strides = [1, 1]} : vector<304x64xf32> to vector<8x64xf32>
      %349 = arith.maximumf %347, %348 : vector<8x64xf32>
      %350 = arith.index_cast %arg16 : i32 to index
      %c120 = arith.constant 120 : index
      %c0_201 = arith.constant 0 : index
      %351 = vector.load %arg13[%350, %c120, %c0_201] : memref<19x152x64xf32, #tpu.memory_space<vmem>>, vector<1x8x64xf32>
      %352 = vector.shape_cast %351 : vector<1x8x64xf32> to vector<8x64xf32>
      %353 = vector.shape_cast %349 : vector<8x64xf32> to vector<1x8x64xf32>
      tpu.vector_store %arg13[%350, %c120, %c0_201], %353 {strides = array<i32>} : memref<19x152x64xf32, #tpu.memory_space<vmem>>, vector<1x8x64xf32>,
      %354 = vector.extract_strided_slice %241 {offsets = [256, 0], sizes = [8, 64], strides = [1, 1]} : vector<304x64xf32> to vector<8x64xf32>
      %355 = vector.extract_strided_slice %241 {offsets = [264, 0], sizes = [8, 64], strides = [1, 1]} : vector<304x64xf32> to vector<8x64xf32>
      %356 = arith.maximumf %354, %355 : vector<8x64xf32>
      %357 = arith.index_cast %arg16 : i32 to index
      %c128 = arith.constant 128 : index
      %c0_202 = arith.constant 0 : index
      %358 = vector.load %arg13[%357, %c128, %c0_202] : memref<19x152x64xf32, #tpu.memory_space<vmem>>, vector<1x8x64xf32>
      %359 = vector.shape_cast %358 : vector<1x8x64xf32> to vector<8x64xf32>
      %360 = vector.shape_cast %356 : vector<8x64xf32> to vector<1x8x64xf32>
      tpu.vector_store %arg13[%357, %c128, %c0_202], %360 {strides = array<i32>} : memref<19x152x64xf32, #tpu.memory_space<vmem>>, vector<1x8x64xf32>,
      %361 = vector.extract_strided_slice %241 {offsets = [272, 0], sizes = [8, 64], strides = [1, 1]} : vector<304x64xf32> to vector<8x64xf32>
      %362 = vector.extract_strided_slice %241 {offsets = [280, 0], sizes = [8, 64], strides = [1, 1]} : vector<304x64xf32> to vector<8x64xf32>
      %363 = arith.maximumf %361, %362 : vector<8x64xf32>
      %364 = arith.index_cast %arg16 : i32 to index
      %c136 = arith.constant 136 : index
      %c0_203 = arith.constant 0 : index
      %365 = vector.load %arg13[%364, %c136, %c0_203] : memref<19x152x64xf32, #tpu.memory_space<vmem>>, vector<1x8x64xf32>
      %366 = vector.shape_cast %365 : vector<1x8x64xf32> to vector<8x64xf32>
      %367 = vector.shape_cast %363 : vector<8x64xf32> to vector<1x8x64xf32>
      tpu.vector_store %arg13[%364, %c136, %c0_203], %367 {strides = array<i32>} : memref<19x152x64xf32, #tpu.memory_space<vmem>>, vector<1x8x64xf32>,
      %368 = vector.extract_strided_slice %241 {offsets = [288, 0], sizes = [8, 64], strides = [1, 1]} : vector<304x64xf32> to vector<8x64xf32>
      %369 = vector.extract_strided_slice %241 {offsets = [296, 0], sizes = [8, 64], strides = [1, 1]} : vector<304x64xf32> to vector<8x64xf32>
      %370 = arith.maximumf %368, %369 : vector<8x64xf32>
      %371 = arith.index_cast %arg16 : i32 to index
      %c144 = arith.constant 144 : index
      %c0_204 = arith.constant 0 : index
      %372 = vector.load %arg13[%371, %c144, %c0_204] : memref<19x152x64xf32, #tpu.memory_space<vmem>>, vector<1x8x64xf32>
      %373 = vector.shape_cast %372 : vector<1x8x64xf32> to vector<8x64xf32>
      %374 = vector.shape_cast %370 : vector<8x64xf32> to vector<1x8x64xf32>
      tpu.vector_store %arg13[%371, %c144, %c0_204], %374 {strides = array<i32>} : memref<19x152x64xf32, #tpu.memory_space<vmem>>, vector<1x8x64xf32>,
    }
    %c19_i32_0 = arith.constant 19 : i32
    %c0_i32_1 = arith.constant 0 : i32
    %c8_i32 = arith.constant 8 : i32
    %1 = arith.addi %c0_i32_1, %c8_i32 : i32
    %c1_i32_2 = arith.constant 1 : i32
    scf.for %arg16 = %c0_i32_1 to %1 step %c1_i32_2  : i32 {
      %c2_i32 = arith.constant 2 : i32
      %79 = arith.muli %c2_i32, %arg16 : i32
      %c0_i32_84 = arith.constant 0 : i32
      %80 = arith.addi %79, %c0_i32_84 : i32
      %81 = arith.index_cast %80 : i32 to index
      %c0_85 = arith.constant 0 : index
      %c0_86 = arith.constant 0 : index
      %82 = vector.load %arg13[%81, %c0_85, %c0_86] : memref<19x152x64xf32, #tpu.memory_space<vmem>>, vector<1x152x64xf32>
      %83 = vector.shape_cast %82 : vector<1x152x64xf32> to vector<152x64xf32>
      %c2_i32_87 = arith.constant 2 : i32
      %84 = arith.muli %c2_i32_87, %arg16 : i32
      %c1_i32_88 = arith.constant 1 : i32
      %85 = arith.addi %84, %c1_i32_88 : i32
      %86 = arith.index_cast %85 : i32 to index
      %c0_89 = arith.constant 0 : index
      %c0_90 = arith.constant 0 : index
      %87 = vector.load %arg13[%86, %c0_89, %c0_90] : memref<19x152x64xf32, #tpu.memory_space<vmem>>, vector<1x152x64xf32>
      %88 = vector.shape_cast %87 : vector<1x152x64xf32> to vector<152x64xf32>
      %c2_i32_91 = arith.constant 2 : i32
      %89 = arith.muli %c2_i32_91, %arg16 : i32
      %c2_i32_92 = arith.constant 2 : i32
      %90 = arith.addi %89, %c2_i32_92 : i32
      %91 = arith.index_cast %90 : i32 to index
      %c0_93 = arith.constant 0 : index
      %c0_94 = arith.constant 0 : index
      %92 = vector.load %arg13[%91, %c0_93, %c0_94] : memref<19x152x64xf32, #tpu.memory_space<vmem>>, vector<1x152x64xf32>
      %93 = vector.shape_cast %92 : vector<1x152x64xf32> to vector<152x64xf32>
      %c2_i32_95 = arith.constant 2 : i32
      %94 = arith.muli %c2_i32_95, %arg16 : i32
      %c3_i32_96 = arith.constant 3 : i32
      %95 = arith.addi %94, %c3_i32_96 : i32
      %96 = arith.index_cast %95 : i32 to index
      %c0_97 = arith.constant 0 : index
      %c0_98 = arith.constant 0 : index
      %97 = vector.load %arg13[%96, %c0_97, %c0_98] : memref<19x152x64xf32, #tpu.memory_space<vmem>>, vector<1x152x64xf32>
      %98 = vector.shape_cast %97 : vector<1x152x64xf32> to vector<152x64xf32>
      %cst_99 = arith.constant 0.000000e+00 : f32
      %99 = vector.broadcast %cst_99 : f32 to vector<136x64xf32>
      %100 = vector.extract_strided_slice %83 {offsets = [0, 0], sizes = [136, 64], strides = [1, 1]} : vector<152x64xf32> to vector<136x64xf32>
      %101 = arith.truncf %100 : vector<136x64xf32> to vector<136x64xbf16>
      %c0_100 = arith.constant 0 : index
      %c0_101 = arith.constant 0 : index
      %c0_102 = arith.constant 0 : index
      %c0_103 = arith.constant 0 : index
      %102 = vector.load %arg4[%c0_100, %c0_101, %c0_102, %c0_103] : memref<3x3x64x64xbf16, #tpu.memory_space<vmem>>, vector<1x1x64x64xbf16>
      %103 = vector.shape_cast %102 : vector<1x1x64x64xbf16> to vector<64x64xbf16>
      %cst_104 = arith.constant dense<0.000000e+00> : vector<136x64xf32>
      %104 = tpu.matmul %101, %103, %cst_104 {dimension_numbers = #tpu.dot_dimension_numbers<[1], [0], [0], [1], [0, 0, 1, 1], [], []>} : vector<136x64xbf16>, vector<64x64xbf16>, vector<136x64xf32> -> vector<136x64xf32>
      %105 = arith.addf %99, %104 : vector<136x64xf32>
      %106 = vector.extract_strided_slice %83 {offsets = [8, 0], sizes = [136, 64], strides = [1, 1]} : vector<152x64xf32> to vector<136x64xf32>
      %107 = arith.truncf %106 : vector<136x64xf32> to vector<136x64xbf16>
      %c0_105 = arith.constant 0 : index
      %c1_106 = arith.constant 1 : index
      %c0_107 = arith.constant 0 : index
      %c0_108 = arith.constant 0 : index
      %108 = vector.load %arg4[%c0_105, %c1_106, %c0_107, %c0_108] : memref<3x3x64x64xbf16, #tpu.memory_space<vmem>>, vector<1x1x64x64xbf16>
      %109 = vector.shape_cast %108 : vector<1x1x64x64xbf16> to vector<64x64xbf16>
      %cst_109 = arith.constant dense<0.000000e+00> : vector<136x64xf32>
      %110 = tpu.matmul %107, %109, %cst_109 {dimension_numbers = #tpu.dot_dimension_numbers<[1], [0], [0], [1], [0, 0, 1, 1], [], []>} : vector<136x64xbf16>, vector<64x64xbf16>, vector<136x64xf32> -> vector<136x64xf32>
      %111 = arith.addf %105, %110 : vector<136x64xf32>
      %112 = vector.extract_strided_slice %83 {offsets = [16, 0], sizes = [136, 64], strides = [1, 1]} : vector<152x64xf32> to vector<136x64xf32>
      %113 = arith.truncf %112 : vector<136x64xf32> to vector<136x64xbf16>
      %c0_110 = arith.constant 0 : index
      %c2_111 = arith.constant 2 : index
      %c0_112 = arith.constant 0 : index
      %c0_113 = arith.constant 0 : index
      %114 = vector.load %arg4[%c0_110, %c2_111, %c0_112, %c0_113] : memref<3x3x64x64xbf16, #tpu.memory_space<vmem>>, vector<1x1x64x64xbf16>
      %115 = vector.shape_cast %114 : vector<1x1x64x64xbf16> to vector<64x64xbf16>
      %cst_114 = arith.constant dense<0.000000e+00> : vector<136x64xf32>
      %116 = tpu.matmul %113, %115, %cst_114 {dimension_numbers = #tpu.dot_dimension_numbers<[1], [0], [0], [1], [0, 0, 1, 1], [], []>} : vector<136x64xbf16>, vector<64x64xbf16>, vector<136x64xf32> -> vector<136x64xf32>
      %117 = arith.addf %111, %116 : vector<136x64xf32>
      %118 = vector.extract_strided_slice %88 {offsets = [0, 0], sizes = [136, 64], strides = [1, 1]} : vector<152x64xf32> to vector<136x64xf32>
      %119 = arith.truncf %118 : vector<136x64xf32> to vector<136x64xbf16>
      %c1_115 = arith.constant 1 : index
      %c0_116 = arith.constant 0 : index
      %c0_117 = arith.constant 0 : index
      %c0_118 = arith.constant 0 : index
      %120 = vector.load %arg4[%c1_115, %c0_116, %c0_117, %c0_118] : memref<3x3x64x64xbf16, #tpu.memory_space<vmem>>, vector<1x1x64x64xbf16>
      %121 = vector.shape_cast %120 : vector<1x1x64x64xbf16> to vector<64x64xbf16>
      %cst_119 = arith.constant dense<0.000000e+00> : vector<136x64xf32>
      %122 = tpu.matmul %119, %121, %cst_119 {dimension_numbers = #tpu.dot_dimension_numbers<[1], [0], [0], [1], [0, 0, 1, 1], [], []>} : vector<136x64xbf16>, vector<64x64xbf16>, vector<136x64xf32> -> vector<136x64xf32>
      %123 = arith.addf %117, %122 : vector<136x64xf32>
      %124 = vector.extract_strided_slice %88 {offsets = [8, 0], sizes = [136, 64], strides = [1, 1]} : vector<152x64xf32> to vector<136x64xf32>
      %125 = arith.truncf %124 : vector<136x64xf32> to vector<136x64xbf16>
      %c1_120 = arith.constant 1 : index
      %c1_121 = arith.constant 1 : index
      %c0_122 = arith.constant 0 : index
      %c0_123 = arith.constant 0 : index
      %126 = vector.load %arg4[%c1_120, %c1_121, %c0_122, %c0_123] : memref<3x3x64x64xbf16, #tpu.memory_space<vmem>>, vector<1x1x64x64xbf16>
      %127 = vector.shape_cast %126 : vector<1x1x64x64xbf16> to vector<64x64xbf16>
      %cst_124 = arith.constant dense<0.000000e+00> : vector<136x64xf32>
      %128 = tpu.matmul %125, %127, %cst_124 {dimension_numbers = #tpu.dot_dimension_numbers<[1], [0], [0], [1], [0, 0, 1, 1], [], []>} : vector<136x64xbf16>, vector<64x64xbf16>, vector<136x64xf32> -> vector<136x64xf32>
      %129 = arith.addf %123, %128 : vector<136x64xf32>
      %130 = vector.extract_strided_slice %88 {offsets = [16, 0], sizes = [136, 64], strides = [1, 1]} : vector<152x64xf32> to vector<136x64xf32>
      %131 = arith.truncf %130 : vector<136x64xf32> to vector<136x64xbf16>
      %c1_125 = arith.constant 1 : index
      %c2_126 = arith.constant 2 : index
      %c0_127 = arith.constant 0 : index
      %c0_128 = arith.constant 0 : index
      %132 = vector.load %arg4[%c1_125, %c2_126, %c0_127, %c0_128] : memref<3x3x64x64xbf16, #tpu.memory_space<vmem>>, vector<1x1x64x64xbf16>
      %133 = vector.shape_cast %132 : vector<1x1x64x64xbf16> to vector<64x64xbf16>
      %cst_129 = arith.constant dense<0.000000e+00> : vector<136x64xf32>
      %134 = tpu.matmul %131, %133, %cst_129 {dimension_numbers = #tpu.dot_dimension_numbers<[1], [0], [0], [1], [0, 0, 1, 1], [], []>} : vector<136x64xbf16>, vector<64x64xbf16>, vector<136x64xf32> -> vector<136x64xf32>
      %135 = arith.addf %129, %134 : vector<136x64xf32>
      %136 = vector.extract_strided_slice %93 {offsets = [0, 0], sizes = [136, 64], strides = [1, 1]} : vector<152x64xf32> to vector<136x64xf32>
      %137 = arith.truncf %136 : vector<136x64xf32> to vector<136x64xbf16>
      %c2_130 = arith.constant 2 : index
      %c0_131 = arith.constant 0 : index
      %c0_132 = arith.constant 0 : index
      %c0_133 = arith.constant 0 : index
      %138 = vector.load %arg4[%c2_130, %c0_131, %c0_132, %c0_133] : memref<3x3x64x64xbf16, #tpu.memory_space<vmem>>, vector<1x1x64x64xbf16>
      %139 = vector.shape_cast %138 : vector<1x1x64x64xbf16> to vector<64x64xbf16>
      %cst_134 = arith.constant dense<0.000000e+00> : vector<136x64xf32>
      %140 = tpu.matmul %137, %139, %cst_134 {dimension_numbers = #tpu.dot_dimension_numbers<[1], [0], [0], [1], [0, 0, 1, 1], [], []>} : vector<136x64xbf16>, vector<64x64xbf16>, vector<136x64xf32> -> vector<136x64xf32>
      %141 = arith.addf %135, %140 : vector<136x64xf32>
      %142 = vector.extract_strided_slice %93 {offsets = [8, 0], sizes = [136, 64], strides = [1, 1]} : vector<152x64xf32> to vector<136x64xf32>
      %143 = arith.truncf %142 : vector<136x64xf32> to vector<136x64xbf16>
      %c2_135 = arith.constant 2 : index
      %c1_136 = arith.constant 1 : index
      %c0_137 = arith.constant 0 : index
      %c0_138 = arith.constant 0 : index
      %144 = vector.load %arg4[%c2_135, %c1_136, %c0_137, %c0_138] : memref<3x3x64x64xbf16, #tpu.memory_space<vmem>>, vector<1x1x64x64xbf16>
      %145 = vector.shape_cast %144 : vector<1x1x64x64xbf16> to vector<64x64xbf16>
      %cst_139 = arith.constant dense<0.000000e+00> : vector<136x64xf32>
      %146 = tpu.matmul %143, %145, %cst_139 {dimension_numbers = #tpu.dot_dimension_numbers<[1], [0], [0], [1], [0, 0, 1, 1], [], []>} : vector<136x64xbf16>, vector<64x64xbf16>, vector<136x64xf32> -> vector<136x64xf32>
      %147 = arith.addf %141, %146 : vector<136x64xf32>
      %148 = vector.extract_strided_slice %93 {offsets = [16, 0], sizes = [136, 64], strides = [1, 1]} : vector<152x64xf32> to vector<136x64xf32>
      %149 = arith.truncf %148 : vector<136x64xf32> to vector<136x64xbf16>
      %c2_140 = arith.constant 2 : index
      %c2_141 = arith.constant 2 : index
      %c0_142 = arith.constant 0 : index
      %c0_143 = arith.constant 0 : index
      %150 = vector.load %arg4[%c2_140, %c2_141, %c0_142, %c0_143] : memref<3x3x64x64xbf16, #tpu.memory_space<vmem>>, vector<1x1x64x64xbf16>
      %151 = vector.shape_cast %150 : vector<1x1x64x64xbf16> to vector<64x64xbf16>
      %cst_144 = arith.constant dense<0.000000e+00> : vector<136x64xf32>
      %152 = tpu.matmul %149, %151, %cst_144 {dimension_numbers = #tpu.dot_dimension_numbers<[1], [0], [0], [1], [0, 0, 1, 1], [], []>} : vector<136x64xbf16>, vector<64x64xbf16>, vector<136x64xf32> -> vector<136x64xf32>
      %153 = arith.addf %147, %152 : vector<136x64xf32>
      %c0_145 = arith.constant 0 : index
      %c0_146 = arith.constant 0 : index
      %154 = vector.load %arg5[%c0_145, %c0_146] : memref<1x64xf32, #tpu.memory_space<vmem>>, vector<1x64xf32>
      %155 = vector.broadcast %154 : vector<1x64xf32> to vector<136x64xf32>
      %156 = arith.addf %153, %155 : vector<136x64xf32>
      %cst_147 = arith.constant 0.000000e+00 : f32
      %157 = vector.broadcast %cst_147 : f32 to vector<136x64xf32>
      %158 = arith.maximumf %156, %157 : vector<136x64xf32>
      %cst_148 = arith.constant 0.000000e+00 : f32
      %159 = vector.broadcast %cst_148 : f32 to vector<136x64xf32>
      %160 = vector.extract_strided_slice %88 {offsets = [0, 0], sizes = [136, 64], strides = [1, 1]} : vector<152x64xf32> to vector<136x64xf32>
      %161 = arith.truncf %160 : vector<136x64xf32> to vector<136x64xbf16>
      %c0_149 = arith.constant 0 : index
      %c0_150 = arith.constant 0 : index
      %c0_151 = arith.constant 0 : index
      %c0_152 = arith.constant 0 : index
      %162 = vector.load %arg4[%c0_149, %c0_150, %c0_151, %c0_152] : memref<3x3x64x64xbf16, #tpu.memory_space<vmem>>, vector<1x1x64x64xbf16>
      %163 = vector.shape_cast %162 : vector<1x1x64x64xbf16> to vector<64x64xbf16>
      %cst_153 = arith.constant dense<0.000000e+00> : vector<136x64xf32>
      %164 = tpu.matmul %161, %163, %cst_153 {dimension_numbers = #tpu.dot_dimension_numbers<[1], [0], [0], [1], [0, 0, 1, 1], [], []>} : vector<136x64xbf16>, vector<64x64xbf16>, vector<136x64xf32> -> vector<136x64xf32>
      %165 = arith.addf %159, %164 : vector<136x64xf32>
      %166 = vector.extract_strided_slice %88 {offsets = [8, 0], sizes = [136, 64], strides = [1, 1]} : vector<152x64xf32> to vector<136x64xf32>
      %167 = arith.truncf %166 : vector<136x64xf32> to vector<136x64xbf16>
      %c0_154 = arith.constant 0 : index
      %c1_155 = arith.constant 1 : index
      %c0_156 = arith.constant 0 : index
      %c0_157 = arith.constant 0 : index
      %168 = vector.load %arg4[%c0_154, %c1_155, %c0_156, %c0_157] : memref<3x3x64x64xbf16, #tpu.memory_space<vmem>>, vector<1x1x64x64xbf16>
      %169 = vector.shape_cast %168 : vector<1x1x64x64xbf16> to vector<64x64xbf16>
      %cst_158 = arith.constant dense<0.000000e+00> : vector<136x64xf32>
      %170 = tpu.matmul %167, %169, %cst_158 {dimension_numbers = #tpu.dot_dimension_numbers<[1], [0], [0], [1], [0, 0, 1, 1], [], []>} : vector<136x64xbf16>, vector<64x64xbf16>, vector<136x64xf32> -> vector<136x64xf32>
      %171 = arith.addf %165, %170 : vector<136x64xf32>
      %172 = vector.extract_strided_slice %88 {offsets = [16, 0], sizes = [136, 64], strides = [1, 1]} : vector<152x64xf32> to vector<136x64xf32>
      %173 = arith.truncf %172 : vector<136x64xf32> to vector<136x64xbf16>
      %c0_159 = arith.constant 0 : index
      %c2_160 = arith.constant 2 : index
      %c0_161 = arith.constant 0 : index
      %c0_162 = arith.constant 0 : index
      %174 = vector.load %arg4[%c0_159, %c2_160, %c0_161, %c0_162] : memref<3x3x64x64xbf16, #tpu.memory_space<vmem>>, vector<1x1x64x64xbf16>
      %175 = vector.shape_cast %174 : vector<1x1x64x64xbf16> to vector<64x64xbf16>
      %cst_163 = arith.constant dense<0.000000e+00> : vector<136x64xf32>
      %176 = tpu.matmul %173, %175, %cst_163 {dimension_numbers = #tpu.dot_dimension_numbers<[1], [0], [0], [1], [0, 0, 1, 1], [], []>} : vector<136x64xbf16>, vector<64x64xbf16>, vector<136x64xf32> -> vector<136x64xf32>
      %177 = arith.addf %171, %176 : vector<136x64xf32>
      %178 = vector.extract_strided_slice %93 {offsets = [0, 0], sizes = [136, 64], strides = [1, 1]} : vector<152x64xf32> to vector<136x64xf32>
      %179 = arith.truncf %178 : vector<136x64xf32> to vector<136x64xbf16>
      %c1_164 = arith.constant 1 : index
      %c0_165 = arith.constant 0 : index
      %c0_166 = arith.constant 0 : index
      %c0_167 = arith.constant 0 : index
      %180 = vector.load %arg4[%c1_164, %c0_165, %c0_166, %c0_167] : memref<3x3x64x64xbf16, #tpu.memory_space<vmem>>, vector<1x1x64x64xbf16>
      %181 = vector.shape_cast %180 : vector<1x1x64x64xbf16> to vector<64x64xbf16>
      %cst_168 = arith.constant dense<0.000000e+00> : vector<136x64xf32>
      %182 = tpu.matmul %179, %181, %cst_168 {dimension_numbers = #tpu.dot_dimension_numbers<[1], [0], [0], [1], [0, 0, 1, 1], [], []>} : vector<136x64xbf16>, vector<64x64xbf16>, vector<136x64xf32> -> vector<136x64xf32>
      %183 = arith.addf %177, %182 : vector<136x64xf32>
      %184 = vector.extract_strided_slice %93 {offsets = [8, 0], sizes = [136, 64], strides = [1, 1]} : vector<152x64xf32> to vector<136x64xf32>
      %185 = arith.truncf %184 : vector<136x64xf32> to vector<136x64xbf16>
      %c1_169 = arith.constant 1 : index
      %c1_170 = arith.constant 1 : index
      %c0_171 = arith.constant 0 : index
      %c0_172 = arith.constant 0 : index
      %186 = vector.load %arg4[%c1_169, %c1_170, %c0_171, %c0_172] : memref<3x3x64x64xbf16, #tpu.memory_space<vmem>>, vector<1x1x64x64xbf16>
      %187 = vector.shape_cast %186 : vector<1x1x64x64xbf16> to vector<64x64xbf16>
      %cst_173 = arith.constant dense<0.000000e+00> : vector<136x64xf32>
      %188 = tpu.matmul %185, %187, %cst_173 {dimension_numbers = #tpu.dot_dimension_numbers<[1], [0], [0], [1], [0, 0, 1, 1], [], []>} : vector<136x64xbf16>, vector<64x64xbf16>, vector<136x64xf32> -> vector<136x64xf32>
      %189 = arith.addf %183, %188 : vector<136x64xf32>
      %190 = vector.extract_strided_slice %93 {offsets = [16, 0], sizes = [136, 64], strides = [1, 1]} : vector<152x64xf32> to vector<136x64xf32>
      %191 = arith.truncf %190 : vector<136x64xf32> to vector<136x64xbf16>
      %c1_174 = arith.constant 1 : index
      %c2_175 = arith.constant 2 : index
      %c0_176 = arith.constant 0 : index
      %c0_177 = arith.constant 0 : index
      %192 = vector.load %arg4[%c1_174, %c2_175, %c0_176, %c0_177] : memref<3x3x64x64xbf16, #tpu.memory_space<vmem>>, vector<1x1x64x64xbf16>
      %193 = vector.shape_cast %192 : vector<1x1x64x64xbf16> to vector<64x64xbf16>
      %cst_178 = arith.constant dense<0.000000e+00> : vector<136x64xf32>
      %194 = tpu.matmul %191, %193, %cst_178 {dimension_numbers = #tpu.dot_dimension_numbers<[1], [0], [0], [1], [0, 0, 1, 1], [], []>} : vector<136x64xbf16>, vector<64x64xbf16>, vector<136x64xf32> -> vector<136x64xf32>
      %195 = arith.addf %189, %194 : vector<136x64xf32>
      %196 = vector.extract_strided_slice %98 {offsets = [0, 0], sizes = [136, 64], strides = [1, 1]} : vector<152x64xf32> to vector<136x64xf32>
      %197 = arith.truncf %196 : vector<136x64xf32> to vector<136x64xbf16>
      %c2_179 = arith.constant 2 : index
      %c0_180 = arith.constant 0 : index
      %c0_181 = arith.constant 0 : index
      %c0_182 = arith.constant 0 : index
      %198 = vector.load %arg4[%c2_179, %c0_180, %c0_181, %c0_182] : memref<3x3x64x64xbf16, #tpu.memory_space<vmem>>, vector<1x1x64x64xbf16>
      %199 = vector.shape_cast %198 : vector<1x1x64x64xbf16> to vector<64x64xbf16>
      %cst_183 = arith.constant dense<0.000000e+00> : vector<136x64xf32>
      %200 = tpu.matmul %197, %199, %cst_183 {dimension_numbers = #tpu.dot_dimension_numbers<[1], [0], [0], [1], [0, 0, 1, 1], [], []>} : vector<136x64xbf16>, vector<64x64xbf16>, vector<136x64xf32> -> vector<136x64xf32>
      %201 = arith.addf %195, %200 : vector<136x64xf32>
      %202 = vector.extract_strided_slice %98 {offsets = [8, 0], sizes = [136, 64], strides = [1, 1]} : vector<152x64xf32> to vector<136x64xf32>
      %203 = arith.truncf %202 : vector<136x64xf32> to vector<136x64xbf16>
      %c2_184 = arith.constant 2 : index
      %c1_185 = arith.constant 1 : index
      %c0_186 = arith.constant 0 : index
      %c0_187 = arith.constant 0 : index
      %204 = vector.load %arg4[%c2_184, %c1_185, %c0_186, %c0_187] : memref<3x3x64x64xbf16, #tpu.memory_space<vmem>>, vector<1x1x64x64xbf16>
      %205 = vector.shape_cast %204 : vector<1x1x64x64xbf16> to vector<64x64xbf16>
      %cst_188 = arith.constant dense<0.000000e+00> : vector<136x64xf32>
      %206 = tpu.matmul %203, %205, %cst_188 {dimension_numbers = #tpu.dot_dimension_numbers<[1], [0], [0], [1], [0, 0, 1, 1], [], []>} : vector<136x64xbf16>, vector<64x64xbf16>, vector<136x64xf32> -> vector<136x64xf32>
      %207 = arith.addf %201, %206 : vector<136x64xf32>
      %208 = vector.extract_strided_slice %98 {offsets = [16, 0], sizes = [136, 64], strides = [1, 1]} : vector<152x64xf32> to vector<136x64xf32>
      %209 = arith.truncf %208 : vector<136x64xf32> to vector<136x64xbf16>
      %c2_189 = arith.constant 2 : index
      %c2_190 = arith.constant 2 : index
      %c0_191 = arith.constant 0 : index
      %c0_192 = arith.constant 0 : index
      %210 = vector.load %arg4[%c2_189, %c2_190, %c0_191, %c0_192] : memref<3x3x64x64xbf16, #tpu.memory_space<vmem>>, vector<1x1x64x64xbf16>
      %211 = vector.shape_cast %210 : vector<1x1x64x64xbf16> to vector<64x64xbf16>
      %cst_193 = arith.constant dense<0.000000e+00> : vector<136x64xf32>
      %212 = tpu.matmul %209, %211, %cst_193 {dimension_numbers = #tpu.dot_dimension_numbers<[1], [0], [0], [1], [0, 0, 1, 1], [], []>} : vector<136x64xbf16>, vector<64x64xbf16>, vector<136x64xf32> -> vector<136x64xf32>
      %213 = arith.addf %207, %212 : vector<136x64xf32>
      %c0_194 = arith.constant 0 : index
      %c0_195 = arith.constant 0 : index
      %214 = vector.load %arg5[%c0_194, %c0_195] : memref<1x64xf32, #tpu.memory_space<vmem>>, vector<1x64xf32>
      %215 = vector.broadcast %214 : vector<1x64xf32> to vector<136x64xf32>
      %216 = arith.addf %213, %215 : vector<136x64xf32>
      %cst_196 = arith.constant 0.000000e+00 : f32
      %217 = vector.broadcast %cst_196 : f32 to vector<136x64xf32>
      %218 = arith.maximumf %216, %217 : vector<136x64xf32>
      %219 = arith.maximumf %158, %218 : vector<136x64xf32>
      %220 = vector.extract_strided_slice %219 {offsets = [0, 0], sizes = [8, 64], strides = [1, 1]} : vector<136x64xf32> to vector<8x64xf32>
      %221 = vector.extract_strided_slice %219 {offsets = [8, 0], sizes = [8, 64], strides = [1, 1]} : vector<136x64xf32> to vector<8x64xf32>
      %222 = arith.maximumf %220, %221 : vector<8x64xf32>
      %223 = arith.index_cast %arg16 : i32 to index
      %c0_197 = arith.constant 0 : index
      %c0_198 = arith.constant 0 : index
      %224 = vector.load %arg14[%223, %c0_197, %c0_198] : memref<8x64x64xf32, #tpu.memory_space<vmem>>, vector<1x8x64xf32>
      %225 = vector.shape_cast %224 : vector<1x8x64xf32> to vector<8x64xf32>
      %226 = vector.shape_cast %222 : vector<8x64xf32> to vector<1x8x64xf32>
      tpu.vector_store %arg14[%223, %c0_197, %c0_198], %226 {strides = array<i32>} : memref<8x64x64xf32, #tpu.memory_space<vmem>>, vector<1x8x64xf32>,
      %227 = vector.extract_strided_slice %219 {offsets = [16, 0], sizes = [8, 64], strides = [1, 1]} : vector<136x64xf32> to vector<8x64xf32>
      %228 = vector.extract_strided_slice %219 {offsets = [24, 0], sizes = [8, 64], strides = [1, 1]} : vector<136x64xf32> to vector<8x64xf32>
      %229 = arith.maximumf %227, %228 : vector<8x64xf32>
      %230 = arith.index_cast %arg16 : i32 to index
      %c8_199 = arith.constant 8 : index
      %c0_200 = arith.constant 0 : index
      %231 = vector.load %arg14[%230, %c8_199, %c0_200] : memref<8x64x64xf32, #tpu.memory_space<vmem>>, vector<1x8x64xf32>
      %232 = vector.shape_cast %231 : vector<1x8x64xf32> to vector<8x64xf32>
      %233 = vector.shape_cast %229 : vector<8x64xf32> to vector<1x8x64xf32>
      tpu.vector_store %arg14[%230, %c8_199, %c0_200], %233 {strides = array<i32>} : memref<8x64x64xf32, #tpu.memory_space<vmem>>, vector<1x8x64xf32>,
      %234 = vector.extract_strided_slice %219 {offsets = [32, 0], sizes = [8, 64], strides = [1, 1]} : vector<136x64xf32> to vector<8x64xf32>
      %235 = vector.extract_strided_slice %219 {offsets = [40, 0], sizes = [8, 64], strides = [1, 1]} : vector<136x64xf32> to vector<8x64xf32>
      %236 = arith.maximumf %234, %235 : vector<8x64xf32>
      %237 = arith.index_cast %arg16 : i32 to index
      %c16_201 = arith.constant 16 : index
      %c0_202 = arith.constant 0 : index
      %238 = vector.load %arg14[%237, %c16_201, %c0_202] : memref<8x64x64xf32, #tpu.memory_space<vmem>>, vector<1x8x64xf32>
      %239 = vector.shape_cast %238 : vector<1x8x64xf32> to vector<8x64xf32>
      %240 = vector.shape_cast %236 : vector<8x64xf32> to vector<1x8x64xf32>
      tpu.vector_store %arg14[%237, %c16_201, %c0_202], %240 {strides = array<i32>} : memref<8x64x64xf32, #tpu.memory_space<vmem>>, vector<1x8x64xf32>,
      %241 = vector.extract_strided_slice %219 {offsets = [48, 0], sizes = [8, 64], strides = [1, 1]} : vector<136x64xf32> to vector<8x64xf32>
      %242 = vector.extract_strided_slice %219 {offsets = [56, 0], sizes = [8, 64], strides = [1, 1]} : vector<136x64xf32> to vector<8x64xf32>
      %243 = arith.maximumf %241, %242 : vector<8x64xf32>
      %244 = arith.index_cast %arg16 : i32 to index
      %c24 = arith.constant 24 : index
      %c0_203 = arith.constant 0 : index
      %245 = vector.load %arg14[%244, %c24, %c0_203] : memref<8x64x64xf32, #tpu.memory_space<vmem>>, vector<1x8x64xf32>
      %246 = vector.shape_cast %245 : vector<1x8x64xf32> to vector<8x64xf32>
      %247 = vector.shape_cast %243 : vector<8x64xf32> to vector<1x8x64xf32>
      tpu.vector_store %arg14[%244, %c24, %c0_203], %247 {strides = array<i32>} : memref<8x64x64xf32, #tpu.memory_space<vmem>>, vector<1x8x64xf32>,
      %248 = vector.extract_strided_slice %219 {offsets = [64, 0], sizes = [8, 64], strides = [1, 1]} : vector<136x64xf32> to vector<8x64xf32>
      %249 = vector.extract_strided_slice %219 {offsets = [72, 0], sizes = [8, 64], strides = [1, 1]} : vector<136x64xf32> to vector<8x64xf32>
      %250 = arith.maximumf %248, %249 : vector<8x64xf32>
      %251 = arith.index_cast %arg16 : i32 to index
      %c32 = arith.constant 32 : index
      %c0_204 = arith.constant 0 : index
      %252 = vector.load %arg14[%251, %c32, %c0_204] : memref<8x64x64xf32, #tpu.memory_space<vmem>>, vector<1x8x64xf32>
      %253 = vector.shape_cast %252 : vector<1x8x64xf32> to vector<8x64xf32>
      %254 = vector.shape_cast %250 : vector<8x64xf32> to vector<1x8x64xf32>
      tpu.vector_store %arg14[%251, %c32, %c0_204], %254 {strides = array<i32>} : memref<8x64x64xf32, #tpu.memory_space<vmem>>, vector<1x8x64xf32>,
      %255 = vector.extract_strided_slice %219 {offsets = [80, 0], sizes = [8, 64], strides = [1, 1]} : vector<136x64xf32> to vector<8x64xf32>
      %256 = vector.extract_strided_slice %219 {offsets = [88, 0], sizes = [8, 64], strides = [1, 1]} : vector<136x64xf32> to vector<8x64xf32>
      %257 = arith.maximumf %255, %256 : vector<8x64xf32>
      %258 = arith.index_cast %arg16 : i32 to index
      %c40 = arith.constant 40 : index
      %c0_205 = arith.constant 0 : index
      %259 = vector.load %arg14[%258, %c40, %c0_205] : memref<8x64x64xf32, #tpu.memory_space<vmem>>, vector<1x8x64xf32>
      %260 = vector.shape_cast %259 : vector<1x8x64xf32> to vector<8x64xf32>
      %261 = vector.shape_cast %257 : vector<8x64xf32> to vector<1x8x64xf32>
      tpu.vector_store %arg14[%258, %c40, %c0_205], %261 {strides = array<i32>} : memref<8x64x64xf32, #tpu.memory_space<vmem>>, vector<1x8x64xf32>,
      %262 = vector.extract_strided_slice %219 {offsets = [96, 0], sizes = [8, 64], strides = [1, 1]} : vector<136x64xf32> to vector<8x64xf32>
      %263 = vector.extract_strided_slice %219 {offsets = [104, 0], sizes = [8, 64], strides = [1, 1]} : vector<136x64xf32> to vector<8x64xf32>
      %264 = arith.maximumf %262, %263 : vector<8x64xf32>
      %265 = arith.index_cast %arg16 : i32 to index
      %c48 = arith.constant 48 : index
      %c0_206 = arith.constant 0 : index
      %266 = vector.load %arg14[%265, %c48, %c0_206] : memref<8x64x64xf32, #tpu.memory_space<vmem>>, vector<1x8x64xf32>
      %267 = vector.shape_cast %266 : vector<1x8x64xf32> to vector<8x64xf32>
      %268 = vector.shape_cast %264 : vector<8x64xf32> to vector<1x8x64xf32>
      tpu.vector_store %arg14[%265, %c48, %c0_206], %268 {strides = array<i32>} : memref<8x64x64xf32, #tpu.memory_space<vmem>>, vector<1x8x64xf32>,
      %269 = vector.extract_strided_slice %219 {offsets = [112, 0], sizes = [8, 64], strides = [1, 1]} : vector<136x64xf32> to vector<8x64xf32>
      %270 = vector.extract_strided_slice %219 {offsets = [120, 0], sizes = [8, 64], strides = [1, 1]} : vector<136x64xf32> to vector<8x64xf32>
      %271 = arith.maximumf %269, %270 : vector<8x64xf32>
      %272 = arith.index_cast %arg16 : i32 to index
      %c56 = arith.constant 56 : index
      %c0_207 = arith.constant 0 : index
      %273 = vector.load %arg14[%272, %c56, %c0_207] : memref<8x64x64xf32, #tpu.memory_space<vmem>>, vector<1x8x64xf32>
      %274 = vector.shape_cast %273 : vector<1x8x64xf32> to vector<8x64xf32>
      %275 = vector.shape_cast %271 : vector<8x64xf32> to vector<1x8x64xf32>
      tpu.vector_store %arg14[%272, %c56, %c0_207], %275 {strides = array<i32>} : memref<8x64x64xf32, #tpu.memory_space<vmem>>, vector<1x8x64xf32>,
    }
    %c8_i32_3 = arith.constant 8 : i32
    %c0_i32_4 = arith.constant 0 : i32
    %c3_i32 = arith.constant 3 : i32
    %2 = arith.addi %c0_i32_4, %c3_i32 : i32
    %c1_i32_5 = arith.constant 1 : i32
    scf.for %arg16 = %c0_i32_4 to %2 step %c1_i32_5  : i32 {
      %c2_i32 = arith.constant 2 : i32
      %79 = arith.muli %c2_i32, %arg16 : i32
      %c0_i32_84 = arith.constant 0 : i32
      %80 = arith.addi %79, %c0_i32_84 : i32
      %81 = arith.index_cast %80 : i32 to index
      %c0_85 = arith.constant 0 : index
      %c0_86 = arith.constant 0 : index
      %82 = vector.load %arg14[%81, %c0_85, %c0_86] : memref<8x64x64xf32, #tpu.memory_space<vmem>>, vector<1x64x64xf32>
      %83 = vector.shape_cast %82 : vector<1x64x64xf32> to vector<64x64xf32>
      %c2_i32_87 = arith.constant 2 : i32
      %84 = arith.muli %c2_i32_87, %arg16 : i32
      %c1_i32_88 = arith.constant 1 : i32
      %85 = arith.addi %84, %c1_i32_88 : i32
      %86 = arith.index_cast %85 : i32 to index
      %c0_89 = arith.constant 0 : index
      %c0_90 = arith.constant 0 : index
      %87 = vector.load %arg14[%86, %c0_89, %c0_90] : memref<8x64x64xf32, #tpu.memory_space<vmem>>, vector<1x64x64xf32>
      %88 = vector.shape_cast %87 : vector<1x64x64xf32> to vector<64x64xf32>
      %c2_i32_91 = arith.constant 2 : i32
      %89 = arith.muli %c2_i32_91, %arg16 : i32
      %c2_i32_92 = arith.constant 2 : i32
      %90 = arith.addi %89, %c2_i32_92 : i32
      %91 = arith.index_cast %90 : i32 to index
      %c0_93 = arith.constant 0 : index
      %c0_94 = arith.constant 0 : index
      %92 = vector.load %arg14[%91, %c0_93, %c0_94] : memref<8x64x64xf32, #tpu.memory_space<vmem>>, vector<1x64x64xf32>
      %93 = vector.shape_cast %92 : vector<1x64x64xf32> to vector<64x64xf32>
      %c2_i32_95 = arith.constant 2 : i32
      %94 = arith.muli %c2_i32_95, %arg16 : i32
      %c3_i32_96 = arith.constant 3 : i32
      %95 = arith.addi %94, %c3_i32_96 : i32
      %96 = arith.index_cast %95 : i32 to index
      %c0_97 = arith.constant 0 : index
      %c0_98 = arith.constant 0 : index
      %97 = vector.load %arg14[%96, %c0_97, %c0_98] : memref<8x64x64xf32, #tpu.memory_space<vmem>>, vector<1x64x64xf32>
      %98 = vector.shape_cast %97 : vector<1x64x64xf32> to vector<64x64xf32>
      %cst_99 = arith.constant 0.000000e+00 : f32
      %99 = vector.broadcast %cst_99 : f32 to vector<48x64xf32>
      %100 = vector.extract_strided_slice %83 {offsets = [0, 0], sizes = [48, 64], strides = [1, 1]} : vector<64x64xf32> to vector<48x64xf32>
      %101 = arith.truncf %100 : vector<48x64xf32> to vector<48x64xbf16>
      %c0_100 = arith.constant 0 : index
      %c0_101 = arith.constant 0 : index
      %c0_102 = arith.constant 0 : index
      %c0_103 = arith.constant 0 : index
      %102 = vector.load %arg6[%c0_100, %c0_101, %c0_102, %c0_103] : memref<3x3x64x64xbf16, #tpu.memory_space<vmem>>, vector<1x1x64x64xbf16>
      %103 = vector.shape_cast %102 : vector<1x1x64x64xbf16> to vector<64x64xbf16>
      %cst_104 = arith.constant dense<0.000000e+00> : vector<48x64xf32>
      %104 = tpu.matmul %101, %103, %cst_104 {dimension_numbers = #tpu.dot_dimension_numbers<[1], [0], [0], [1], [0, 0, 1, 1], [], []>} : vector<48x64xbf16>, vector<64x64xbf16>, vector<48x64xf32> -> vector<48x64xf32>
      %105 = arith.addf %99, %104 : vector<48x64xf32>
      %106 = vector.extract_strided_slice %83 {offsets = [8, 0], sizes = [48, 64], strides = [1, 1]} : vector<64x64xf32> to vector<48x64xf32>
      %107 = arith.truncf %106 : vector<48x64xf32> to vector<48x64xbf16>
      %c0_105 = arith.constant 0 : index
      %c1_106 = arith.constant 1 : index
      %c0_107 = arith.constant 0 : index
      %c0_108 = arith.constant 0 : index
      %108 = vector.load %arg6[%c0_105, %c1_106, %c0_107, %c0_108] : memref<3x3x64x64xbf16, #tpu.memory_space<vmem>>, vector<1x1x64x64xbf16>
      %109 = vector.shape_cast %108 : vector<1x1x64x64xbf16> to vector<64x64xbf16>
      %cst_109 = arith.constant dense<0.000000e+00> : vector<48x64xf32>
      %110 = tpu.matmul %107, %109, %cst_109 {dimension_numbers = #tpu.dot_dimension_numbers<[1], [0], [0], [1], [0, 0, 1, 1], [], []>} : vector<48x64xbf16>, vector<64x64xbf16>, vector<48x64xf32> -> vector<48x64xf32>
      %111 = arith.addf %105, %110 : vector<48x64xf32>
      %112 = vector.extract_strided_slice %83 {offsets = [16, 0], sizes = [48, 64], strides = [1, 1]} : vector<64x64xf32> to vector<48x64xf32>
      %113 = arith.truncf %112 : vector<48x64xf32> to vector<48x64xbf16>
      %c0_110 = arith.constant 0 : index
      %c2_111 = arith.constant 2 : index
      %c0_112 = arith.constant 0 : index
      %c0_113 = arith.constant 0 : index
      %114 = vector.load %arg6[%c0_110, %c2_111, %c0_112, %c0_113] : memref<3x3x64x64xbf16, #tpu.memory_space<vmem>>, vector<1x1x64x64xbf16>
      %115 = vector.shape_cast %114 : vector<1x1x64x64xbf16> to vector<64x64xbf16>
      %cst_114 = arith.constant dense<0.000000e+00> : vector<48x64xf32>
      %116 = tpu.matmul %113, %115, %cst_114 {dimension_numbers = #tpu.dot_dimension_numbers<[1], [0], [0], [1], [0, 0, 1, 1], [], []>} : vector<48x64xbf16>, vector<64x64xbf16>, vector<48x64xf32> -> vector<48x64xf32>
      %117 = arith.addf %111, %116 : vector<48x64xf32>
      %118 = vector.extract_strided_slice %88 {offsets = [0, 0], sizes = [48, 64], strides = [1, 1]} : vector<64x64xf32> to vector<48x64xf32>
      %119 = arith.truncf %118 : vector<48x64xf32> to vector<48x64xbf16>
      %c1_115 = arith.constant 1 : index
      %c0_116 = arith.constant 0 : index
      %c0_117 = arith.constant 0 : index
      %c0_118 = arith.constant 0 : index
      %120 = vector.load %arg6[%c1_115, %c0_116, %c0_117, %c0_118] : memref<3x3x64x64xbf16, #tpu.memory_space<vmem>>, vector<1x1x64x64xbf16>
      %121 = vector.shape_cast %120 : vector<1x1x64x64xbf16> to vector<64x64xbf16>
      %cst_119 = arith.constant dense<0.000000e+00> : vector<48x64xf32>
      %122 = tpu.matmul %119, %121, %cst_119 {dimension_numbers = #tpu.dot_dimension_numbers<[1], [0], [0], [1], [0, 0, 1, 1], [], []>} : vector<48x64xbf16>, vector<64x64xbf16>, vector<48x64xf32> -> vector<48x64xf32>
      %123 = arith.addf %117, %122 : vector<48x64xf32>
      %124 = vector.extract_strided_slice %88 {offsets = [8, 0], sizes = [48, 64], strides = [1, 1]} : vector<64x64xf32> to vector<48x64xf32>
      %125 = arith.truncf %124 : vector<48x64xf32> to vector<48x64xbf16>
      %c1_120 = arith.constant 1 : index
      %c1_121 = arith.constant 1 : index
      %c0_122 = arith.constant 0 : index
      %c0_123 = arith.constant 0 : index
      %126 = vector.load %arg6[%c1_120, %c1_121, %c0_122, %c0_123] : memref<3x3x64x64xbf16, #tpu.memory_space<vmem>>, vector<1x1x64x64xbf16>
      %127 = vector.shape_cast %126 : vector<1x1x64x64xbf16> to vector<64x64xbf16>
      %cst_124 = arith.constant dense<0.000000e+00> : vector<48x64xf32>
      %128 = tpu.matmul %125, %127, %cst_124 {dimension_numbers = #tpu.dot_dimension_numbers<[1], [0], [0], [1], [0, 0, 1, 1], [], []>} : vector<48x64xbf16>, vector<64x64xbf16>, vector<48x64xf32> -> vector<48x64xf32>
      %129 = arith.addf %123, %128 : vector<48x64xf32>
      %130 = vector.extract_strided_slice %88 {offsets = [16, 0], sizes = [48, 64], strides = [1, 1]} : vector<64x64xf32> to vector<48x64xf32>
      %131 = arith.truncf %130 : vector<48x64xf32> to vector<48x64xbf16>
      %c1_125 = arith.constant 1 : index
      %c2_126 = arith.constant 2 : index
      %c0_127 = arith.constant 0 : index
      %c0_128 = arith.constant 0 : index
      %132 = vector.load %arg6[%c1_125, %c2_126, %c0_127, %c0_128] : memref<3x3x64x64xbf16, #tpu.memory_space<vmem>>, vector<1x1x64x64xbf16>
      %133 = vector.shape_cast %132 : vector<1x1x64x64xbf16> to vector<64x64xbf16>
      %cst_129 = arith.constant dense<0.000000e+00> : vector<48x64xf32>
      %134 = tpu.matmul %131, %133, %cst_129 {dimension_numbers = #tpu.dot_dimension_numbers<[1], [0], [0], [1], [0, 0, 1, 1], [], []>} : vector<48x64xbf16>, vector<64x64xbf16>, vector<48x64xf32> -> vector<48x64xf32>
      %135 = arith.addf %129, %134 : vector<48x64xf32>
      %136 = vector.extract_strided_slice %93 {offsets = [0, 0], sizes = [48, 64], strides = [1, 1]} : vector<64x64xf32> to vector<48x64xf32>
      %137 = arith.truncf %136 : vector<48x64xf32> to vector<48x64xbf16>
      %c2_130 = arith.constant 2 : index
      %c0_131 = arith.constant 0 : index
      %c0_132 = arith.constant 0 : index
      %c0_133 = arith.constant 0 : index
      %138 = vector.load %arg6[%c2_130, %c0_131, %c0_132, %c0_133] : memref<3x3x64x64xbf16, #tpu.memory_space<vmem>>, vector<1x1x64x64xbf16>
      %139 = vector.shape_cast %138 : vector<1x1x64x64xbf16> to vector<64x64xbf16>
      %cst_134 = arith.constant dense<0.000000e+00> : vector<48x64xf32>
      %140 = tpu.matmul %137, %139, %cst_134 {dimension_numbers = #tpu.dot_dimension_numbers<[1], [0], [0], [1], [0, 0, 1, 1], [], []>} : vector<48x64xbf16>, vector<64x64xbf16>, vector<48x64xf32> -> vector<48x64xf32>
      %141 = arith.addf %135, %140 : vector<48x64xf32>
      %142 = vector.extract_strided_slice %93 {offsets = [8, 0], sizes = [48, 64], strides = [1, 1]} : vector<64x64xf32> to vector<48x64xf32>
      %143 = arith.truncf %142 : vector<48x64xf32> to vector<48x64xbf16>
      %c2_135 = arith.constant 2 : index
      %c1_136 = arith.constant 1 : index
      %c0_137 = arith.constant 0 : index
      %c0_138 = arith.constant 0 : index
      %144 = vector.load %arg6[%c2_135, %c1_136, %c0_137, %c0_138] : memref<3x3x64x64xbf16, #tpu.memory_space<vmem>>, vector<1x1x64x64xbf16>
      %145 = vector.shape_cast %144 : vector<1x1x64x64xbf16> to vector<64x64xbf16>
      %cst_139 = arith.constant dense<0.000000e+00> : vector<48x64xf32>
      %146 = tpu.matmul %143, %145, %cst_139 {dimension_numbers = #tpu.dot_dimension_numbers<[1], [0], [0], [1], [0, 0, 1, 1], [], []>} : vector<48x64xbf16>, vector<64x64xbf16>, vector<48x64xf32> -> vector<48x64xf32>
      %147 = arith.addf %141, %146 : vector<48x64xf32>
      %148 = vector.extract_strided_slice %93 {offsets = [16, 0], sizes = [48, 64], strides = [1, 1]} : vector<64x64xf32> to vector<48x64xf32>
      %149 = arith.truncf %148 : vector<48x64xf32> to vector<48x64xbf16>
      %c2_140 = arith.constant 2 : index
      %c2_141 = arith.constant 2 : index
      %c0_142 = arith.constant 0 : index
      %c0_143 = arith.constant 0 : index
      %150 = vector.load %arg6[%c2_140, %c2_141, %c0_142, %c0_143] : memref<3x3x64x64xbf16, #tpu.memory_space<vmem>>, vector<1x1x64x64xbf16>
      %151 = vector.shape_cast %150 : vector<1x1x64x64xbf16> to vector<64x64xbf16>
      %cst_144 = arith.constant dense<0.000000e+00> : vector<48x64xf32>
      %152 = tpu.matmul %149, %151, %cst_144 {dimension_numbers = #tpu.dot_dimension_numbers<[1], [0], [0], [1], [0, 0, 1, 1], [], []>} : vector<48x64xbf16>, vector<64x64xbf16>, vector<48x64xf32> -> vector<48x64xf32>
      %153 = arith.addf %147, %152 : vector<48x64xf32>
      %c0_145 = arith.constant 0 : index
      %c0_146 = arith.constant 0 : index
      %154 = vector.load %arg7[%c0_145, %c0_146] : memref<1x64xf32, #tpu.memory_space<vmem>>, vector<1x64xf32>
      %155 = vector.broadcast %154 : vector<1x64xf32> to vector<48x64xf32>
      %156 = arith.addf %153, %155 : vector<48x64xf32>
      %cst_147 = arith.constant 0.000000e+00 : f32
      %157 = vector.broadcast %cst_147 : f32 to vector<48x64xf32>
      %158 = arith.maximumf %156, %157 : vector<48x64xf32>
      %cst_148 = arith.constant 0.000000e+00 : f32
      %159 = vector.broadcast %cst_148 : f32 to vector<48x64xf32>
      %160 = vector.extract_strided_slice %88 {offsets = [0, 0], sizes = [48, 64], strides = [1, 1]} : vector<64x64xf32> to vector<48x64xf32>
      %161 = arith.truncf %160 : vector<48x64xf32> to vector<48x64xbf16>
      %c0_149 = arith.constant 0 : index
      %c0_150 = arith.constant 0 : index
      %c0_151 = arith.constant 0 : index
      %c0_152 = arith.constant 0 : index
      %162 = vector.load %arg6[%c0_149, %c0_150, %c0_151, %c0_152] : memref<3x3x64x64xbf16, #tpu.memory_space<vmem>>, vector<1x1x64x64xbf16>
      %163 = vector.shape_cast %162 : vector<1x1x64x64xbf16> to vector<64x64xbf16>
      %cst_153 = arith.constant dense<0.000000e+00> : vector<48x64xf32>
      %164 = tpu.matmul %161, %163, %cst_153 {dimension_numbers = #tpu.dot_dimension_numbers<[1], [0], [0], [1], [0, 0, 1, 1], [], []>} : vector<48x64xbf16>, vector<64x64xbf16>, vector<48x64xf32> -> vector<48x64xf32>
      %165 = arith.addf %159, %164 : vector<48x64xf32>
      %166 = vector.extract_strided_slice %88 {offsets = [8, 0], sizes = [48, 64], strides = [1, 1]} : vector<64x64xf32> to vector<48x64xf32>
      %167 = arith.truncf %166 : vector<48x64xf32> to vector<48x64xbf16>
      %c0_154 = arith.constant 0 : index
      %c1_155 = arith.constant 1 : index
      %c0_156 = arith.constant 0 : index
      %c0_157 = arith.constant 0 : index
      %168 = vector.load %arg6[%c0_154, %c1_155, %c0_156, %c0_157] : memref<3x3x64x64xbf16, #tpu.memory_space<vmem>>, vector<1x1x64x64xbf16>
      %169 = vector.shape_cast %168 : vector<1x1x64x64xbf16> to vector<64x64xbf16>
      %cst_158 = arith.constant dense<0.000000e+00> : vector<48x64xf32>
      %170 = tpu.matmul %167, %169, %cst_158 {dimension_numbers = #tpu.dot_dimension_numbers<[1], [0], [0], [1], [0, 0, 1, 1], [], []>} : vector<48x64xbf16>, vector<64x64xbf16>, vector<48x64xf32> -> vector<48x64xf32>
      %171 = arith.addf %165, %170 : vector<48x64xf32>
      %172 = vector.extract_strided_slice %88 {offsets = [16, 0], sizes = [48, 64], strides = [1, 1]} : vector<64x64xf32> to vector<48x64xf32>
      %173 = arith.truncf %172 : vector<48x64xf32> to vector<48x64xbf16>
      %c0_159 = arith.constant 0 : index
      %c2_160 = arith.constant 2 : index
      %c0_161 = arith.constant 0 : index
      %c0_162 = arith.constant 0 : index
      %174 = vector.load %arg6[%c0_159, %c2_160, %c0_161, %c0_162] : memref<3x3x64x64xbf16, #tpu.memory_space<vmem>>, vector<1x1x64x64xbf16>
      %175 = vector.shape_cast %174 : vector<1x1x64x64xbf16> to vector<64x64xbf16>
      %cst_163 = arith.constant dense<0.000000e+00> : vector<48x64xf32>
      %176 = tpu.matmul %173, %175, %cst_163 {dimension_numbers = #tpu.dot_dimension_numbers<[1], [0], [0], [1], [0, 0, 1, 1], [], []>} : vector<48x64xbf16>, vector<64x64xbf16>, vector<48x64xf32> -> vector<48x64xf32>
      %177 = arith.addf %171, %176 : vector<48x64xf32>
      %178 = vector.extract_strided_slice %93 {offsets = [0, 0], sizes = [48, 64], strides = [1, 1]} : vector<64x64xf32> to vector<48x64xf32>
      %179 = arith.truncf %178 : vector<48x64xf32> to vector<48x64xbf16>
      %c1_164 = arith.constant 1 : index
      %c0_165 = arith.constant 0 : index
      %c0_166 = arith.constant 0 : index
      %c0_167 = arith.constant 0 : index
      %180 = vector.load %arg6[%c1_164, %c0_165, %c0_166, %c0_167] : memref<3x3x64x64xbf16, #tpu.memory_space<vmem>>, vector<1x1x64x64xbf16>
      %181 = vector.shape_cast %180 : vector<1x1x64x64xbf16> to vector<64x64xbf16>
      %cst_168 = arith.constant dense<0.000000e+00> : vector<48x64xf32>
      %182 = tpu.matmul %179, %181, %cst_168 {dimension_numbers = #tpu.dot_dimension_numbers<[1], [0], [0], [1], [0, 0, 1, 1], [], []>} : vector<48x64xbf16>, vector<64x64xbf16>, vector<48x64xf32> -> vector<48x64xf32>
      %183 = arith.addf %177, %182 : vector<48x64xf32>
      %184 = vector.extract_strided_slice %93 {offsets = [8, 0], sizes = [48, 64], strides = [1, 1]} : vector<64x64xf32> to vector<48x64xf32>
      %185 = arith.truncf %184 : vector<48x64xf32> to vector<48x64xbf16>
      %c1_169 = arith.constant 1 : index
      %c1_170 = arith.constant 1 : index
      %c0_171 = arith.constant 0 : index
      %c0_172 = arith.constant 0 : index
      %186 = vector.load %arg6[%c1_169, %c1_170, %c0_171, %c0_172] : memref<3x3x64x64xbf16, #tpu.memory_space<vmem>>, vector<1x1x64x64xbf16>
      %187 = vector.shape_cast %186 : vector<1x1x64x64xbf16> to vector<64x64xbf16>
      %cst_173 = arith.constant dense<0.000000e+00> : vector<48x64xf32>
      %188 = tpu.matmul %185, %187, %cst_173 {dimension_numbers = #tpu.dot_dimension_numbers<[1], [0], [0], [1], [0, 0, 1, 1], [], []>} : vector<48x64xbf16>, vector<64x64xbf16>, vector<48x64xf32> -> vector<48x64xf32>
      %189 = arith.addf %183, %188 : vector<48x64xf32>
      %190 = vector.extract_strided_slice %93 {offsets = [16, 0], sizes = [48, 64], strides = [1, 1]} : vector<64x64xf32> to vector<48x64xf32>
      %191 = arith.truncf %190 : vector<48x64xf32> to vector<48x64xbf16>
      %c1_174 = arith.constant 1 : index
      %c2_175 = arith.constant 2 : index
      %c0_176 = arith.constant 0 : index
      %c0_177 = arith.constant 0 : index
      %192 = vector.load %arg6[%c1_174, %c2_175, %c0_176, %c0_177] : memref<3x3x64x64xbf16, #tpu.memory_space<vmem>>, vector<1x1x64x64xbf16>
      %193 = vector.shape_cast %192 : vector<1x1x64x64xbf16> to vector<64x64xbf16>
      %cst_178 = arith.constant dense<0.000000e+00> : vector<48x64xf32>
      %194 = tpu.matmul %191, %193, %cst_178 {dimension_numbers = #tpu.dot_dimension_numbers<[1], [0], [0], [1], [0, 0, 1, 1], [], []>} : vector<48x64xbf16>, vector<64x64xbf16>, vector<48x64xf32> -> vector<48x64xf32>
      %195 = arith.addf %189, %194 : vector<48x64xf32>
      %196 = vector.extract_strided_slice %98 {offsets = [0, 0], sizes = [48, 64], strides = [1, 1]} : vector<64x64xf32> to vector<48x64xf32>
      %197 = arith.truncf %196 : vector<48x64xf32> to vector<48x64xbf16>
      %c2_179 = arith.constant 2 : index
      %c0_180 = arith.constant 0 : index
      %c0_181 = arith.constant 0 : index
      %c0_182 = arith.constant 0 : index
      %198 = vector.load %arg6[%c2_179, %c0_180, %c0_181, %c0_182] : memref<3x3x64x64xbf16, #tpu.memory_space<vmem>>, vector<1x1x64x64xbf16>
      %199 = vector.shape_cast %198 : vector<1x1x64x64xbf16> to vector<64x64xbf16>
      %cst_183 = arith.constant dense<0.000000e+00> : vector<48x64xf32>
      %200 = tpu.matmul %197, %199, %cst_183 {dimension_numbers = #tpu.dot_dimension_numbers<[1], [0], [0], [1], [0, 0, 1, 1], [], []>} : vector<48x64xbf16>, vector<64x64xbf16>, vector<48x64xf32> -> vector<48x64xf32>
      %201 = arith.addf %195, %200 : vector<48x64xf32>
      %202 = vector.extract_strided_slice %98 {offsets = [8, 0], sizes = [48, 64], strides = [1, 1]} : vector<64x64xf32> to vector<48x64xf32>
      %203 = arith.truncf %202 : vector<48x64xf32> to vector<48x64xbf16>
      %c2_184 = arith.constant 2 : index
      %c1_185 = arith.constant 1 : index
      %c0_186 = arith.constant 0 : index
      %c0_187 = arith.constant 0 : index
      %204 = vector.load %arg6[%c2_184, %c1_185, %c0_186, %c0_187] : memref<3x3x64x64xbf16, #tpu.memory_space<vmem>>, vector<1x1x64x64xbf16>
      %205 = vector.shape_cast %204 : vector<1x1x64x64xbf16> to vector<64x64xbf16>
      %cst_188 = arith.constant dense<0.000000e+00> : vector<48x64xf32>
      %206 = tpu.matmul %203, %205, %cst_188 {dimension_numbers = #tpu.dot_dimension_numbers<[1], [0], [0], [1], [0, 0, 1, 1], [], []>} : vector<48x64xbf16>, vector<64x64xbf16>, vector<48x64xf32> -> vector<48x64xf32>
      %207 = arith.addf %201, %206 : vector<48x64xf32>
      %208 = vector.extract_strided_slice %98 {offsets = [16, 0], sizes = [48, 64], strides = [1, 1]} : vector<64x64xf32> to vector<48x64xf32>
      %209 = arith.truncf %208 : vector<48x64xf32> to vector<48x64xbf16>
      %c2_189 = arith.constant 2 : index
      %c2_190 = arith.constant 2 : index
      %c0_191 = arith.constant 0 : index
      %c0_192 = arith.constant 0 : index
      %210 = vector.load %arg6[%c2_189, %c2_190, %c0_191, %c0_192] : memref<3x3x64x64xbf16, #tpu.memory_space<vmem>>, vector<1x1x64x64xbf16>
      %211 = vector.shape_cast %210 : vector<1x1x64x64xbf16> to vector<64x64xbf16>
      %cst_193 = arith.constant dense<0.000000e+00> : vector<48x64xf32>
      %212 = tpu.matmul %209, %211, %cst_193 {dimension_numbers = #tpu.dot_dimension_numbers<[1], [0], [0], [1], [0, 0, 1, 1], [], []>} : vector<48x64xbf16>, vector<64x64xbf16>, vector<48x64xf32> -> vector<48x64xf32>
      %213 = arith.addf %207, %212 : vector<48x64xf32>
      %c0_194 = arith.constant 0 : index
      %c0_195 = arith.constant 0 : index
      %214 = vector.load %arg7[%c0_194, %c0_195] : memref<1x64xf32, #tpu.memory_space<vmem>>, vector<1x64xf32>
      %215 = vector.broadcast %214 : vector<1x64xf32> to vector<48x64xf32>
      %216 = arith.addf %213, %215 : vector<48x64xf32>
      %cst_196 = arith.constant 0.000000e+00 : f32
      %217 = vector.broadcast %cst_196 : f32 to vector<48x64xf32>
      %218 = arith.maximumf %216, %217 : vector<48x64xf32>
      %219 = arith.maximumf %158, %218 : vector<48x64xf32>
      %220 = vector.extract_strided_slice %219 {offsets = [0, 0], sizes = [8, 64], strides = [1, 1]} : vector<48x64xf32> to vector<8x64xf32>
      %221 = vector.extract_strided_slice %219 {offsets = [8, 0], sizes = [8, 64], strides = [1, 1]} : vector<48x64xf32> to vector<8x64xf32>
      %222 = arith.maximumf %220, %221 : vector<8x64xf32>
      %223 = arith.index_cast %arg16 : i32 to index
      %c0_197 = arith.constant 0 : index
      %c0_198 = arith.constant 0 : index
      %224 = vector.load %arg15[%223, %c0_197, %c0_198] : memref<3x24x64xf32, #tpu.memory_space<vmem>>, vector<1x8x64xf32>
      %225 = vector.shape_cast %224 : vector<1x8x64xf32> to vector<8x64xf32>
      %226 = vector.shape_cast %222 : vector<8x64xf32> to vector<1x8x64xf32>
      tpu.vector_store %arg15[%223, %c0_197, %c0_198], %226 {strides = array<i32>} : memref<3x24x64xf32, #tpu.memory_space<vmem>>, vector<1x8x64xf32>,
      %227 = vector.extract_strided_slice %219 {offsets = [16, 0], sizes = [8, 64], strides = [1, 1]} : vector<48x64xf32> to vector<8x64xf32>
      %228 = vector.extract_strided_slice %219 {offsets = [24, 0], sizes = [8, 64], strides = [1, 1]} : vector<48x64xf32> to vector<8x64xf32>
      %229 = arith.maximumf %227, %228 : vector<8x64xf32>
      %230 = arith.index_cast %arg16 : i32 to index
      %c8_199 = arith.constant 8 : index
      %c0_200 = arith.constant 0 : index
      %231 = vector.load %arg15[%230, %c8_199, %c0_200] : memref<3x24x64xf32, #tpu.memory_space<vmem>>, vector<1x8x64xf32>
      %232 = vector.shape_cast %231 : vector<1x8x64xf32> to vector<8x64xf32>
      %233 = vector.shape_cast %229 : vector<8x64xf32> to vector<1x8x64xf32>
      tpu.vector_store %arg15[%230, %c8_199, %c0_200], %233 {strides = array<i32>} : memref<3x24x64xf32, #tpu.memory_space<vmem>>, vector<1x8x64xf32>,
      %234 = vector.extract_strided_slice %219 {offsets = [32, 0], sizes = [8, 64], strides = [1, 1]} : vector<48x64xf32> to vector<8x64xf32>
      %235 = vector.extract_strided_slice %219 {offsets = [40, 0], sizes = [8, 64], strides = [1, 1]} : vector<48x64xf32> to vector<8x64xf32>
      %236 = arith.maximumf %234, %235 : vector<8x64xf32>
      %237 = arith.index_cast %arg16 : i32 to index
      %c16_201 = arith.constant 16 : index
      %c0_202 = arith.constant 0 : index
      %238 = vector.load %arg15[%237, %c16_201, %c0_202] : memref<3x24x64xf32, #tpu.memory_space<vmem>>, vector<1x8x64xf32>
      %239 = vector.shape_cast %238 : vector<1x8x64xf32> to vector<8x64xf32>
      %240 = vector.shape_cast %236 : vector<8x64xf32> to vector<1x8x64xf32>
      tpu.vector_store %arg15[%237, %c16_201, %c0_202], %240 {strides = array<i32>} : memref<3x24x64xf32, #tpu.memory_space<vmem>>, vector<1x8x64xf32>,
    }
    %c3_i32_6 = arith.constant 3 : i32
    %cst = arith.constant 0.000000e+00 : f32
    %3 = vector.broadcast %cst : f32 to vector<8x128xf32>
    %c0 = arith.constant 0 : index
    %c0_7 = arith.constant 0 : index
    %c0_8 = arith.constant 0 : index
    %4 = vector.load %arg15[%c0, %c0_7, %c0_8] : memref<3x24x64xf32, #tpu.memory_space<vmem>>, vector<1x8x64xf32>
    %5 = vector.shape_cast %4 : vector<1x8x64xf32> to vector<8x64xf32>
    %6 = arith.truncf %5 : vector<8x64xf32> to vector<8x64xbf16>
    %c0_9 = arith.constant 0 : index
    %c0_10 = arith.constant 0 : index
    %c0_11 = arith.constant 0 : index
    %c0_12 = arith.constant 0 : index
    %7 = vector.load %arg8[%c0_9, %c0_10, %c0_11, %c0_12] : memref<3x3x64x128xbf16, #tpu.memory_space<vmem>>, vector<1x1x64x128xbf16>
    %8 = vector.shape_cast %7 : vector<1x1x64x128xbf16> to vector<64x128xbf16>
    %cst_13 = arith.constant dense<0.000000e+00> : vector<8x128xf32>
    %9 = tpu.matmul %6, %8, %cst_13 {dimension_numbers = #tpu.dot_dimension_numbers<[1], [0], [0], [1], [0, 0, 1, 1], [], []>} : vector<8x64xbf16>, vector<64x128xbf16>, vector<8x128xf32> -> vector<8x128xf32>
    %10 = arith.addf %3, %9 : vector<8x128xf32>
    %c0_14 = arith.constant 0 : index
    %c8 = arith.constant 8 : index
    %c0_15 = arith.constant 0 : index
    %11 = vector.load %arg15[%c0_14, %c8, %c0_15] : memref<3x24x64xf32, #tpu.memory_space<vmem>>, vector<1x8x64xf32>
    %12 = vector.shape_cast %11 : vector<1x8x64xf32> to vector<8x64xf32>
    %13 = arith.truncf %12 : vector<8x64xf32> to vector<8x64xbf16>
    %c0_16 = arith.constant 0 : index
    %c1 = arith.constant 1 : index
    %c0_17 = arith.constant 0 : index
    %c0_18 = arith.constant 0 : index
    %14 = vector.load %arg8[%c0_16, %c1, %c0_17, %c0_18] : memref<3x3x64x128xbf16, #tpu.memory_space<vmem>>, vector<1x1x64x128xbf16>
    %15 = vector.shape_cast %14 : vector<1x1x64x128xbf16> to vector<64x128xbf16>
    %cst_19 = arith.constant dense<0.000000e+00> : vector<8x128xf32>
    %16 = tpu.matmul %13, %15, %cst_19 {dimension_numbers = #tpu.dot_dimension_numbers<[1], [0], [0], [1], [0, 0, 1, 1], [], []>} : vector<8x64xbf16>, vector<64x128xbf16>, vector<8x128xf32> -> vector<8x128xf32>
    %17 = arith.addf %10, %16 : vector<8x128xf32>
    %c0_20 = arith.constant 0 : index
    %c16 = arith.constant 16 : index
    %c0_21 = arith.constant 0 : index
    %18 = vector.load %arg15[%c0_20, %c16, %c0_21] : memref<3x24x64xf32, #tpu.memory_space<vmem>>, vector<1x8x64xf32>
    %19 = vector.shape_cast %18 : vector<1x8x64xf32> to vector<8x64xf32>
    %20 = arith.truncf %19 : vector<8x64xf32> to vector<8x64xbf16>
    %c0_22 = arith.constant 0 : index
    %c2 = arith.constant 2 : index
    %c0_23 = arith.constant 0 : index
    %c0_24 = arith.constant 0 : index
    %21 = vector.load %arg8[%c0_22, %c2, %c0_23, %c0_24] : memref<3x3x64x128xbf16, #tpu.memory_space<vmem>>, vector<1x1x64x128xbf16>
    %22 = vector.shape_cast %21 : vector<1x1x64x128xbf16> to vector<64x128xbf16>
    %cst_25 = arith.constant dense<0.000000e+00> : vector<8x128xf32>
    %23 = tpu.matmul %20, %22, %cst_25 {dimension_numbers = #tpu.dot_dimension_numbers<[1], [0], [0], [1], [0, 0, 1, 1], [], []>} : vector<8x64xbf16>, vector<64x128xbf16>, vector<8x128xf32> -> vector<8x128xf32>
    %24 = arith.addf %17, %23 : vector<8x128xf32>
    %c1_26 = arith.constant 1 : index
    %c0_27 = arith.constant 0 : index
    %c0_28 = arith.constant 0 : index
    %25 = vector.load %arg15[%c1_26, %c0_27, %c0_28] : memref<3x24x64xf32, #tpu.memory_space<vmem>>, vector<1x8x64xf32>
    %26 = vector.shape_cast %25 : vector<1x8x64xf32> to vector<8x64xf32>
    %27 = arith.truncf %26 : vector<8x64xf32> to vector<8x64xbf16>
    %c1_29 = arith.constant 1 : index
    %c0_30 = arith.constant 0 : index
    %c0_31 = arith.constant 0 : index
    %c0_32 = arith.constant 0 : index
    %28 = vector.load %arg8[%c1_29, %c0_30, %c0_31, %c0_32] : memref<3x3x64x128xbf16, #tpu.memory_space<vmem>>, vector<1x1x64x128xbf16>
    %29 = vector.shape_cast %28 : vector<1x1x64x128xbf16> to vector<64x128xbf16>
    %cst_33 = arith.constant dense<0.000000e+00> : vector<8x128xf32>
    %30 = tpu.matmul %27, %29, %cst_33 {dimension_numbers = #tpu.dot_dimension_numbers<[1], [0], [0], [1], [0, 0, 1, 1], [], []>} : vector<8x64xbf16>, vector<64x128xbf16>, vector<8x128xf32> -> vector<8x128xf32>
    %31 = arith.addf %24, %30 : vector<8x128xf32>
    %c1_34 = arith.constant 1 : index
    %c8_35 = arith.constant 8 : index
    %c0_36 = arith.constant 0 : index
    %32 = vector.load %arg15[%c1_34, %c8_35, %c0_36] : memref<3x24x64xf32, #tpu.memory_space<vmem>>, vector<1x8x64xf32>
    %33 = vector.shape_cast %32 : vector<1x8x64xf32> to vector<8x64xf32>
    %34 = arith.truncf %33 : vector<8x64xf32> to vector<8x64xbf16>
    %c1_37 = arith.constant 1 : index
    %c1_38 = arith.constant 1 : index
    %c0_39 = arith.constant 0 : index
    %c0_40 = arith.constant 0 : index
    %35 = vector.load %arg8[%c1_37, %c1_38, %c0_39, %c0_40] : memref<3x3x64x128xbf16, #tpu.memory_space<vmem>>, vector<1x1x64x128xbf16>
    %36 = vector.shape_cast %35 : vector<1x1x64x128xbf16> to vector<64x128xbf16>
    %cst_41 = arith.constant dense<0.000000e+00> : vector<8x128xf32>
    %37 = tpu.matmul %34, %36, %cst_41 {dimension_numbers = #tpu.dot_dimension_numbers<[1], [0], [0], [1], [0, 0, 1, 1], [], []>} : vector<8x64xbf16>, vector<64x128xbf16>, vector<8x128xf32> -> vector<8x128xf32>
    %38 = arith.addf %31, %37 : vector<8x128xf32>
    %c1_42 = arith.constant 1 : index
    %c16_43 = arith.constant 16 : index
    %c0_44 = arith.constant 0 : index
    %39 = vector.load %arg15[%c1_42, %c16_43, %c0_44] : memref<3x24x64xf32, #tpu.memory_space<vmem>>, vector<1x8x64xf32>
    %40 = vector.shape_cast %39 : vector<1x8x64xf32> to vector<8x64xf32>
    %41 = arith.truncf %40 : vector<8x64xf32> to vector<8x64xbf16>
    %c1_45 = arith.constant 1 : index
    %c2_46 = arith.constant 2 : index
    %c0_47 = arith.constant 0 : index
    %c0_48 = arith.constant 0 : index
    %42 = vector.load %arg8[%c1_45, %c2_46, %c0_47, %c0_48] : memref<3x3x64x128xbf16, #tpu.memory_space<vmem>>, vector<1x1x64x128xbf16>
    %43 = vector.shape_cast %42 : vector<1x1x64x128xbf16> to vector<64x128xbf16>
    %cst_49 = arith.constant dense<0.000000e+00> : vector<8x128xf32>
    %44 = tpu.matmul %41, %43, %cst_49 {dimension_numbers = #tpu.dot_dimension_numbers<[1], [0], [0], [1], [0, 0, 1, 1], [], []>} : vector<8x64xbf16>, vector<64x128xbf16>, vector<8x128xf32> -> vector<8x128xf32>
    %45 = arith.addf %38, %44 : vector<8x128xf32>
    %c2_50 = arith.constant 2 : index
    %c0_51 = arith.constant 0 : index
    %c0_52 = arith.constant 0 : index
    %46 = vector.load %arg15[%c2_50, %c0_51, %c0_52] : memref<3x24x64xf32, #tpu.memory_space<vmem>>, vector<1x8x64xf32>
    %47 = vector.shape_cast %46 : vector<1x8x64xf32> to vector<8x64xf32>
    %48 = arith.truncf %47 : vector<8x64xf32> to vector<8x64xbf16>
    %c2_53 = arith.constant 2 : index
    %c0_54 = arith.constant 0 : index
    %c0_55 = arith.constant 0 : index
    %c0_56 = arith.constant 0 : index
    %49 = vector.load %arg8[%c2_53, %c0_54, %c0_55, %c0_56] : memref<3x3x64x128xbf16, #tpu.memory_space<vmem>>, vector<1x1x64x128xbf16>
    %50 = vector.shape_cast %49 : vector<1x1x64x128xbf16> to vector<64x128xbf16>
    %cst_57 = arith.constant dense<0.000000e+00> : vector<8x128xf32>
    %51 = tpu.matmul %48, %50, %cst_57 {dimension_numbers = #tpu.dot_dimension_numbers<[1], [0], [0], [1], [0, 0, 1, 1], [], []>} : vector<8x64xbf16>, vector<64x128xbf16>, vector<8x128xf32> -> vector<8x128xf32>
    %52 = arith.addf %45, %51 : vector<8x128xf32>
    %c2_58 = arith.constant 2 : index
    %c8_59 = arith.constant 8 : index
    %c0_60 = arith.constant 0 : index
    %53 = vector.load %arg15[%c2_58, %c8_59, %c0_60] : memref<3x24x64xf32, #tpu.memory_space<vmem>>, vector<1x8x64xf32>
    %54 = vector.shape_cast %53 : vector<1x8x64xf32> to vector<8x64xf32>
    %55 = arith.truncf %54 : vector<8x64xf32> to vector<8x64xbf16>
    %c2_61 = arith.constant 2 : index
    %c1_62 = arith.constant 1 : index
    %c0_63 = arith.constant 0 : index
    %c0_64 = arith.constant 0 : index
    %56 = vector.load %arg8[%c2_61, %c1_62, %c0_63, %c0_64] : memref<3x3x64x128xbf16, #tpu.memory_space<vmem>>, vector<1x1x64x128xbf16>
    %57 = vector.shape_cast %56 : vector<1x1x64x128xbf16> to vector<64x128xbf16>
    %cst_65 = arith.constant dense<0.000000e+00> : vector<8x128xf32>
    %58 = tpu.matmul %55, %57, %cst_65 {dimension_numbers = #tpu.dot_dimension_numbers<[1], [0], [0], [1], [0, 0, 1, 1], [], []>} : vector<8x64xbf16>, vector<64x128xbf16>, vector<8x128xf32> -> vector<8x128xf32>
    %59 = arith.addf %52, %58 : vector<8x128xf32>
    %c2_66 = arith.constant 2 : index
    %c16_67 = arith.constant 16 : index
    %c0_68 = arith.constant 0 : index
    %60 = vector.load %arg15[%c2_66, %c16_67, %c0_68] : memref<3x24x64xf32, #tpu.memory_space<vmem>>, vector<1x8x64xf32>
    %61 = vector.shape_cast %60 : vector<1x8x64xf32> to vector<8x64xf32>
    %62 = arith.truncf %61 : vector<8x64xf32> to vector<8x64xbf16>
    %c2_69 = arith.constant 2 : index
    %c2_70 = arith.constant 2 : index
    %c0_71 = arith.constant 0 : index
    %c0_72 = arith.constant 0 : index
    %63 = vector.load %arg8[%c2_69, %c2_70, %c0_71, %c0_72] : memref<3x3x64x128xbf16, #tpu.memory_space<vmem>>, vector<1x1x64x128xbf16>
    %64 = vector.shape_cast %63 : vector<1x1x64x128xbf16> to vector<64x128xbf16>
    %cst_73 = arith.constant dense<0.000000e+00> : vector<8x128xf32>
    %65 = tpu.matmul %62, %64, %cst_73 {dimension_numbers = #tpu.dot_dimension_numbers<[1], [0], [0], [1], [0, 0, 1, 1], [], []>} : vector<8x64xbf16>, vector<64x128xbf16>, vector<8x128xf32> -> vector<8x128xf32>
    %66 = arith.addf %59, %65 : vector<8x128xf32>
    %c0_74 = arith.constant 0 : index
    %c0_75 = arith.constant 0 : index
    %67 = vector.load %arg9[%c0_74, %c0_75] : memref<1x128xf32, #tpu.memory_space<vmem>>, vector<1x128xf32>
    %68 = vector.broadcast %67 : vector<1x128xf32> to vector<8x128xf32>
    %69 = arith.addf %66, %68 : vector<8x128xf32>
    %cst_76 = arith.constant 0.000000e+00 : f32
    %70 = vector.broadcast %cst_76 : f32 to vector<8x128xf32>
    %71 = arith.maximumf %69, %70 : vector<8x128xf32>
    %72 = arith.truncf %71 : vector<8x128xf32> to vector<8x128xbf16>
    %c0_77 = arith.constant 0 : index
    %c0_78 = arith.constant 0 : index
    %73 = vector.load %arg10[%c0_77, %c0_78] : memref<128x128xbf16, #tpu.memory_space<vmem>>, vector<128x128xbf16>
    %cst_79 = arith.constant dense<0.000000e+00> : vector<8x128xf32>
    %74 = tpu.matmul %72, %73, %cst_79 {dimension_numbers = #tpu.dot_dimension_numbers<[1], [0], [0], [1], [0, 0, 1, 1], [], []>} : vector<8x128xbf16>, vector<128x128xbf16>, vector<8x128xf32> -> vector<8x128xf32>
    %c0_80 = arith.constant 0 : index
    %c0_81 = arith.constant 0 : index
    %75 = vector.load %arg11[%c0_80, %c0_81] : memref<1x128xf32, #tpu.memory_space<vmem>>, vector<1x128xf32>
    %76 = vector.broadcast %75 : vector<1x128xf32> to vector<8x128xf32>
    %77 = arith.addf %74, %76 : vector<8x128xf32>
    %c0_82 = arith.constant 0 : index
    %c0_83 = arith.constant 0 : index
    %78 = vector.load %arg12[%c0_82, %c0_83] : memref<8x128xf32, #tpu.memory_space<vmem>>, vector<8x128xf32>
    tpu.vector_store %arg12[%c0_82, %c0_83], %77 {strides = array<i32>} : memref<8x128xf32, #tpu.memory_space<vmem>>, vector<8x128xf32>,
    return
  }
  func.func @transform_0(%arg0: i32) -> (i32, i32, i32, i32) {
    %c0_i32 = arith.constant 0 : i32
    %c0_i32_0 = arith.constant 0 : i32
    %c0_i32_1 = arith.constant 0 : i32
    %c0_i32_2 = arith.constant 0 : i32
    return %arg0, %c0_i32, %c0_i32_0, %c0_i32_1 : i32, i32, i32, i32
  }
  func.func @transform_1(%arg0: i32) -> (i32, i32, i32, i32) {
    %c0_i32 = arith.constant 0 : i32
    %c0_i32_0 = arith.constant 0 : i32
    %c0_i32_1 = arith.constant 0 : i32
    %c0_i32_2 = arith.constant 0 : i32
    %c0_i32_3 = arith.constant 0 : i32
    return %c0_i32, %c0_i32_0, %c0_i32_1, %c0_i32_2 : i32, i32, i32, i32
  }
  func.func @transform_2(%arg0: i32) -> (i32, i32) {
    %c0_i32 = arith.constant 0 : i32
    %c0_i32_0 = arith.constant 0 : i32
    %c0_i32_1 = arith.constant 0 : i32
    return %c0_i32, %c0_i32_0 : i32, i32
  }
  func.func @transform_3(%arg0: i32) -> (i32, i32, i32, i32) {
    %c0_i32 = arith.constant 0 : i32
    %c0_i32_0 = arith.constant 0 : i32
    %c0_i32_1 = arith.constant 0 : i32
    %c0_i32_2 = arith.constant 0 : i32
    %c0_i32_3 = arith.constant 0 : i32
    return %c0_i32, %c0_i32_0, %c0_i32_1, %c0_i32_2 : i32, i32, i32, i32
  }
  func.func @transform_4(%arg0: i32) -> (i32, i32) {
    %c0_i32 = arith.constant 0 : i32
    %c0_i32_0 = arith.constant 0 : i32
    %c0_i32_1 = arith.constant 0 : i32
    return %c0_i32, %c0_i32_0 : i32, i32
  }
  func.func @transform_5(%arg0: i32) -> (i32, i32, i32, i32) {
    %c0_i32 = arith.constant 0 : i32
    %c0_i32_0 = arith.constant 0 : i32
    %c0_i32_1 = arith.constant 0 : i32
    %c0_i32_2 = arith.constant 0 : i32
    %c0_i32_3 = arith.constant 0 : i32
    return %c0_i32, %c0_i32_0, %c0_i32_1, %c0_i32_2 : i32, i32, i32, i32
  }
  func.func @transform_6(%arg0: i32) -> (i32, i32) {
    %c0_i32 = arith.constant 0 : i32
    %c0_i32_0 = arith.constant 0 : i32
    %c0_i32_1 = arith.constant 0 : i32
    return %c0_i32, %c0_i32_0 : i32, i32
  }
  func.func @transform_7(%arg0: i32) -> (i32, i32, i32, i32) {
    %c0_i32 = arith.constant 0 : i32
    %c0_i32_0 = arith.constant 0 : i32
    %c0_i32_1 = arith.constant 0 : i32
    %c0_i32_2 = arith.constant 0 : i32
    %c0_i32_3 = arith.constant 0 : i32
    return %c0_i32, %c0_i32_0, %c0_i32_1, %c0_i32_2 : i32, i32, i32, i32
  }
  func.func @transform_8(%arg0: i32) -> (i32, i32) {
    %c0_i32 = arith.constant 0 : i32
    %c0_i32_0 = arith.constant 0 : i32
    %c0_i32_1 = arith.constant 0 : i32
    return %c0_i32, %c0_i32_0 : i32, i32
  }
  func.func @transform_9(%arg0: i32) -> (i32, i32) {
    %c0_i32 = arith.constant 0 : i32
    %c0_i32_0 = arith.constant 0 : i32
    %c0_i32_1 = arith.constant 0 : i32
    return %c0_i32, %c0_i32_0 : i32, i32
  }
  func.func @transform_10(%arg0: i32) -> (i32, i32) {
    %c0_i32 = arith.constant 0 : i32
    %c0_i32_0 = arith.constant 0 : i32
    %c0_i32_1 = arith.constant 0 : i32
    return %c0_i32, %c0_i32_0 : i32, i32
  }
  func.func @transform_11(%arg0: i32) -> (i32, i32) {
    %c0_i32 = arith.constant 0 : i32
    %c0_i32_0 = arith.constant 0 : i32
    return %arg0, %c0_i32 : i32, i32
  }
}

</mosaic_0001>

<bundles_post_ra>
// kernel: gesture_predictor_forward.1
= control target key start
LH: loop header
LB: loop body
LE: loop exit
PB: predicated region body
PF: predicated region fallthrough
CT: control target
= control target key end

     0   :  { %s11829_s17 = smov 0   ;;  %s17156_s0 = inlined_call_operand.vmem [shape: bf16[1,40,320,1], index: 0, kind: input, shape index: {}]   ;;  %s17157_s1 = inlined_call_operand.vmem [shape: f32[3,3,1,64], index: 1, kind: input, shape index: {}]   ;;  %s17158_s2 = inlined_call_operand.vmem [shape: f32[1,64], index: 2, kind: input, shape index: {}]   ;;  %s17159_s3 = inlined_call_operand.vmem [shape: bf16[3,3,64,64], index: 3, kind: input, shape index: {}]   ;;  %s17160_s4 = inlined_call_operand.vmem [shape: f32[1,64], index: 4, kind: input, shape index: {}]   ;;  %s17161_s5 = inlined_call_operand.vmem [shape: bf16[3,3,64,64], index: 5, kind: input, shape index: {}]   ;;  %s17162_s6 = inlined_call_operand.vmem [shape: f32[1,64], index: 6, kind: input, shape index: {}]   ;;  %s17163_s7 = inlined_call_operand.vmem [shape: bf16[3,3,64,128], index: 7, kind: input, shape index: {}]   ;;  %s17164_s8 = inlined_call_operand.vmem [shape: f32[1,128], index: 8, kind: input, shape index: {}]   ;;  %s17165_s9 = inlined_call_operand.vmem [shape: bf16[128,128], index: 9, kind: input, shape index: {}]   ;;  %s17166_s10 = inlined_call_operand.vmem [shape: f32[1,128], index: 10, kind: input, shape index: {}]   ;;  %s17167_s11 = inlined_call_operand.vmem [shape: f32[8,128], index: 11, kind: output, shape index: {}]  }
   0x1 LB: > { %v11762_v0 = vmov 0   ;;  %s9048_s18 = smul.u32 320, %s11752_s17  ;;  %vm2820_vm0 = vcmask 523264   ;;  %s11752_s17 = sphi %s11829_s17, %s44_s17  }
   0x2   : > { %11188 = vset.pattern.permute.xlu1 %v11762_v0  ;;  %11177 = vset.pattern.permute.xlu0 %v11762_v0 }
   0x3   : > { %s11838_s21 = scalar_lea.vmem %s17156_s0, %s9048_s18  ;;  %s2818_s18 = smul.u32 152, %s11752_s17 }
   0x4   : > { %v9374_v1 = vld [vmem:[%s11838_s21 + $0x10] sm:$0xff]   ;;  %v9054_v2 = vld [vmem:[%s11838_s21] sm:$0xff]   ;;  %v9375_v3 = vld [vmem:[%s11838_s21 + $0x18] sm:$0xff]   ;;  %s44_s17 = sadd.s32 1, %s11752_s17  }
   0x5   : > { %v9063_v4 = vunpack.c.l.bf16 %v9374_v1  ;;  %v9064_v5 = vunpack.c.h.bf16 %v9374_v1  ;;  %v9055_v6 = vunpack.c.l.bf16 %v9054_v2  ;;  %v9056_v7 = vunpack.c.h.bf16 %v9054_v2  ;;  %v9373_v8 = vld [vmem:[%s11838_s21 + $0x8] sm:$0xff]   ;;  %v9376_v14 = vld [vmem:[%s11838_s21 + $0x20] sm:$0xff]   ;;  %v9379_v23 = vld [vmem:[%s11838_s21 + $0x38] sm:$0xff]   ;;  %s13655_s19 = scalar_lea.vmem [#allocation2], %s2818_s18  ;;  %p41_p0 = scmp.ge.s32.totalorder %s44_s17, 19  }
   0x6   : > { %v9377_v9 = vld [vmem:[%s11838_s21 + $0x28] sm:$0xff]   ;;  %v9067_v10 = vunpack.c.l.bf16 %v9375_v3  ;;  %v9068_v11 = vunpack.c.h.bf16 %v9375_v3  ;;  %v9059_v12 = vunpack.c.l.bf16 %v9373_v8  ;;  %v9060_v13 = vunpack.c.h.bf16 %v9373_v8  ;;  %v9378_v24 = vld [vmem:[%s11838_s21 + $0x30] sm:$0xff]   ;;  %v9380_v32 = vld [vmem:[%s11838_s21 + $0x40] sm:$0xff]   ;;  %s14547_s12 = smov (%p41_p0), 0  }
   0x7   : > { %v11189_v15 = vpack.i.bf16 %v9064_v5, %v9063_v4  ;;  %v11178_v16 = vpack.i.bf16 %v9056_v7, %v9055_v6  ;;  %v9075_v17 = vunpack.c.l.bf16 %v9377_v9  ;;  %v9076_v18 = vunpack.c.h.bf16 %v9377_v9  ;;  %v9381_v31 = vld [vmem:[%s11838_s21 + $0x48] sm:$0xff]   ;;  %v9383_v39 = vld [vmem:[%s11838_s21 + $0x58] sm:$0xff]   ;;  %v9382_v40 = vld [vmem:[%s11838_s21 + $0x50] sm:$0xff]  }
   0x8   : > { %v11194_v19 = vpack.i.bf16 %v9068_v11, %v9067_v10  ;;  %v11183_v20 = vpack.i.bf16 %v9060_v13, %v9059_v12  ;;  %v9071_v21 = vunpack.c.l.bf16 %v9376_v14  ;;  %v9072_v22 = vunpack.c.h.bf16 %v9376_v14  ;;  %v9385_v47 = vld [vmem:[%s11838_s21 + $0x68] sm:$0xff]   ;;  %v9384_v48 = vld [vmem:[%s11838_s21 + $0x60] sm:$0xff]   ;;  %v9387_v55 = vld [vmem:[%s11838_s21 + $0x78] sm:$0xff]  }
   0x9   : > { %11190 = vperm.xlu1 %11188, %v11189_v15   ;;  %11179 = vperm.xlu0 %11177, %v11178_v16   ;;  %v11204_v25 = vpack.i.bf16 %v9076_v18, %v9075_v17  ;;  %v9083_v26 = vunpack.c.l.bf16 %v9379_v23  ;;  %v9084_v28 = vunpack.c.h.bf16 %v9379_v23  ;;  %v9079_v29 = vunpack.c.l.bf16 %v9378_v24  ;;  %v9386_v56 = vld [vmem:[%s11838_s21 + $0x70] sm:$0xff]   ;;  %v9389_v63 = vld [vmem:[%s11838_s21 + $0x88] sm:$0xff]   ;;  %v9388_v0 = vld [vmem:[%s11838_s21 + $0x80] sm:$0xff]  }
   0xa   : > { %v11199_v27 = vpack.i.bf16 %v9072_v22, %v9071_v21  ;;  %v9080_v30 = vunpack.c.h.bf16 %v9378_v24  ;;  %v9091_v33 = vunpack.c.l.bf16 %v9381_v31  ;;  %v9092_v34 = vunpack.c.h.bf16 %v9381_v31  ;;  %v9391_v7 = vld [vmem:[%s11838_s21 + $0x98] sm:$0xff]   ;;  %v9390_v8 = vld [vmem:[%s11838_s21 + $0x90] sm:$0xff]   ;;  %v9393_v15 = vld [vmem:[%s11838_s21 + $0xa8] sm:$0xff]  }
   0xb   : > { %v11214_v35 = vpack.i.bf16 %v9084_v28, %v9083_v26  ;;  %v9087_v37 = vunpack.c.l.bf16 %v9380_v32  ;;  %v9088_v38 = vunpack.c.h.bf16 %v9380_v32  ;;  %v9099_v42 = vunpack.c.l.bf16 %v9383_v39  ;;  %v9392_v16 = vld [vmem:[%s11838_s21 + $0xa0] sm:$0xff]   ;;  %v9395_v23 = vld [vmem:[%s11838_s21 + $0xb8] sm:$0xff]   ;;  %v9394_v24 = vld [vmem:[%s11838_s21 + $0xb0] sm:$0xff]  }
   0xc   : > { %v11209_v36 = vpack.i.bf16 %v9080_v30, %v9079_v29  ;;  %v11224_v41 = vpack.i.bf16 %v9092_v34, %v9091_v33  ;;  %v9100_v44 = vunpack.c.h.bf16 %v9383_v39  ;;  %v9095_v45 = vunpack.c.l.bf16 %v9382_v40  ;;  %v9397_v31 = vld [vmem:[%s11838_s21 + $0xc8] sm:$0xff]   ;;  %v9396_v32 = vld [vmem:[%s11838_s21 + $0xc0] sm:$0xff]   ;;  %v9399_v39 = vld [vmem:[%s11838_s21 + $0xd8] sm:$0xff]  }
   0xd   : > { %11195 = vperm.xlu1 %11188, %v11194_v19   ;;  %11184 = vperm.xlu0 %11177, %v11183_v20   ;;  %v11219_v43 = vpack.i.bf16 %v9088_v38, %v9087_v37  ;;  %v9096_v46 = vunpack.c.h.bf16 %v9382_v40  ;;  %v9107_v49 = vunpack.c.l.bf16 %v9385_v47  ;;  %v9108_v50 = vunpack.c.h.bf16 %v9385_v47  ;;  %v9398_v40 = vld [vmem:[%s11838_s21 + $0xd0] sm:$0xff]   ;;  %v9401_v47 = vld [vmem:[%s11838_s21 + $0xe8] sm:$0xff]  }
   0xe   : > { %v11234_v51 = vpack.i.bf16 %v9100_v44, %v9099_v42  ;;  %v9103_v53 = vunpack.c.l.bf16 %v9384_v48  ;;  %v9104_v54 = vunpack.c.h.bf16 %v9384_v48  ;;  %v9115_v58 = vunpack.c.l.bf16 %v9387_v55  ;;  %v9400_v48 = vld [vmem:[%s11838_s21 + $0xe0] sm:$0xff]  }
   0xf   : > { %v11229_v52 = vpack.i.bf16 %v9096_v46, %v9095_v45  ;;  %v11244_v57 = vpack.i.bf16 %v9108_v50, %v9107_v49  ;;  %v9116_v60 = vunpack.c.h.bf16 %v9387_v55  ;;  %v9111_v61 = vunpack.c.l.bf16 %v9386_v56  ;;  %v9403_v55 = vld [vmem:[%s11838_s21 + $0xf8] sm:$0xff]  }
  0x10   : > { %v11239_v59 = vpack.i.bf16 %v9104_v54, %v9103_v53  ;;  %v9112_v62 = vunpack.c.h.bf16 %v9386_v56  ;;  %v9123_v1 = vunpack.c.l.bf16 %v9389_v63  ;;  %v9124_v2 = vunpack.c.h.bf16 %v9389_v63  ;;  %v9402_v56 = vld [vmem:[%s11838_s21 + $0xf0] sm:$0xff]   ;;  %v9405_v63 = vld [vmem:[%s11838_s21 + $0x108] sm:$0xff]  }
  0x11   : > { %11205 = vperm.xlu1 %11188, %v11204_v25   ;;  %11200 = vperm.xlu0 %11177, %v11199_v27   ;;  %v11254_v3 = vpack.i.bf16 %v9116_v60, %v9115_v58  ;;  %v9119_v5 = vunpack.c.l.bf16 %v9388_v0  ;;  %v9120_v6 = vunpack.c.h.bf16 %v9388_v0  ;;  %v9131_v10 = vunpack.c.l.bf16 %v9391_v7  ;;  %v9404_v0 = vld [vmem:[%s11838_s21 + $0x100] sm:$0xff]  }
  0x12   : > { %v11249_v4 = vpack.i.bf16 %v9112_v62, %v9111_v61  ;;  %v11264_v9 = vpack.i.bf16 %v9124_v2, %v9123_v1  ;;  %v9132_v12 = vunpack.c.h.bf16 %v9391_v7  ;;  %v9127_v13 = vunpack.c.l.bf16 %v9390_v8  ;;  %v9407_v7 = vld [vmem:[%s11838_s21 + $0x118] sm:$0xff]  }
  0x13   : > { %v11259_v11 = vpack.i.bf16 %v9120_v6, %v9119_v5  ;;  %v9128_v14 = vunpack.c.h.bf16 %v9390_v8  ;;  %v9139_v17 = vunpack.c.l.bf16 %v9393_v15  ;;  %v9140_v18 = vunpack.c.h.bf16 %v9393_v15  ;;  %v9406_v8 = vld [vmem:[%s11838_s21 + $0x110] sm:$0xff]   ;;  %v9409_v15 = vld [vmem:[%s11838_s21 + $0x128] sm:$0xff]  }
  0x14   : > { %v11274_v19 = vpack.i.bf16 %v9132_v12, %v9131_v10  ;;  %v9135_v21 = vunpack.c.l.bf16 %v9392_v16  ;;  %v9136_v22 = vunpack.c.h.bf16 %v9392_v16  ;;  %v9147_v26 = vunpack.c.l.bf16 %v9395_v23  ;;  %v9408_v16 = vld [vmem:[%s11838_s21 + $0x120] sm:$0xff]  }
  0x15   : > { %11215 = vperm.xlu1 %11188, %v11214_v35   ;;  %11210 = vperm.xlu0 %11177, %v11209_v36   ;;  %v11269_v20 = vpack.i.bf16 %v9128_v14, %v9127_v13  ;;  %v11284_v25 = vpack.i.bf16 %v9140_v18, %v9139_v17  ;;  %v9148_v28 = vunpack.c.h.bf16 %v9395_v23  ;;  %v9143_v29 = vunpack.c.l.bf16 %v9394_v24  ;;  %v9411_v23 = vld [vmem:[%s11838_s21 + $0x138] sm:$0xff]  }
  0x16   : > { %v11279_v27 = vpack.i.bf16 %v9136_v22, %v9135_v21  ;;  %v9144_v30 = vunpack.c.h.bf16 %v9394_v24  ;;  %v9155_v33 = vunpack.c.l.bf16 %v9397_v31  ;;  %v9156_v34 = vunpack.c.h.bf16 %v9397_v31  ;;  %v9410_v24 = vld [vmem:[%s11838_s21 + $0x130] sm:$0xff]   ;;  %v9413_v31 = vld [vmem:[%s11838_s21 + $0x148] sm:$0xff]  }
  0x17   : > { %v11294_v35 = vpack.i.bf16 %v9148_v28, %v9147_v26  ;;  %v9151_v37 = vunpack.c.l.bf16 %v9396_v32  ;;  %v9152_v38 = vunpack.c.h.bf16 %v9396_v32  ;;  %v9163_v42 = vunpack.c.l.bf16 %v9399_v39  ;;  %v9412_v32 = vld [vmem:[%s11838_s21 + $0x140] sm:$0xff]  }
  0x18   : > { %v11289_v36 = vpack.i.bf16 %v9144_v30, %v9143_v29  ;;  %v9164_v44 = vunpack.c.h.bf16 %v9399_v39  ;;  %v9159_v45 = vunpack.c.l.bf16 %v9398_v40  ;;  %v9160_v46 = vunpack.c.h.bf16 %v9398_v40  ;;  %v9415_v39 = vld [vmem:[%s11838_s21 + $0x158] sm:$0xff]   ;;  %v9414_v40 = vld [vmem:[%s11838_s21 + $0x150] sm:$0xff]  }
  0x19   : > { %11225 = vperm.xlu1 %11188, %v11224_v41   ;;  %11220 = vperm.xlu0 %11177, %v11219_v43   ;;  %v11304_v41 = vpack.i.bf16 %v9156_v34, %v9155_v33  ;;  %v11299_v43 = vpack.i.bf16 %v9152_v38, %v9151_v37  ;;  %v9171_v49 = vunpack.c.l.bf16 %v9401_v47  ;;  %v9172_v50 = vunpack.c.h.bf16 %v9401_v47  ;;  %v9417_v47 = vld [vmem:[%s11838_s21 + $0x168] sm:$0xff]  }
  0x1a   : > { %v9167_v53 = vunpack.c.l.bf16 %v9400_v48  ;;  %v9168_v54 = vunpack.c.h.bf16 %v9400_v48  ;;  %v9179_v58 = vunpack.c.l.bf16 %v9403_v55  ;;  %v9180_v60 = vunpack.c.h.bf16 %v9403_v55  ;;  %v9416_v48 = vld [vmem:[%s11838_s21 + $0x160] sm:$0xff]   ;;  %v9419_v55 = vld [vmem:[%s11838_s21 + $0x178] sm:$0xff]  }
  0x1b   : > { %v9175_v61 = vunpack.c.l.bf16 %v9402_v56  ;;  %v9176_v62 = vunpack.c.h.bf16 %v9402_v56  ;;  %v9187_v1 = vunpack.c.l.bf16 %v9405_v63  ;;  %v9188_v2 = vunpack.c.h.bf16 %v9405_v63  ;;  %v9418_v56 = vld [vmem:[%s11838_s21 + $0x170] sm:$0xff]   ;;  %v9421_v63 = vld [vmem:[%s11838_s21 + $0x188] sm:$0xff]  }
  0x1c   : > { %v9183_v5 = vunpack.c.l.bf16 %v9404_v0  ;;  %v9184_v6 = vunpack.c.h.bf16 %v9404_v0  ;;  %v9195_v10 = vunpack.c.l.bf16 %v9407_v7  ;;  %v9196_v12 = vunpack.c.h.bf16 %v9407_v7  ;;  %v9420_v0 = vld [vmem:[%s11838_s21 + $0x180] sm:$0xff]   ;;  %v9423_v7 = vld [vmem:[%s11838_s21 + $0x198] sm:$0xff]  }
  0x1d   : > { %11235 = vperm.xlu1 %11188, %v11234_v51   ;;  %11230 = vperm.xlu0 %11177, %v11229_v52   ;;  %v11314_v51 = vpack.i.bf16 %v9164_v44, %v9163_v42  ;;  %v11309_v52 = vpack.i.bf16 %v9160_v46, %v9159_v45  ;;  %v9191_v13 = vunpack.c.l.bf16 %v9406_v8  ;;  %v9192_v14 = vunpack.c.h.bf16 %v9406_v8  ;;  %v9422_v8 = vld [vmem:[%s11838_s21 + $0x190] sm:$0xff]  }
  0x1e   : > { %v9203_v17 = vunpack.c.l.bf16 %v9409_v15  ;;  %v9204_v18 = vunpack.c.h.bf16 %v9409_v15  ;;  %v9199_v21 = vunpack.c.l.bf16 %v9408_v16  ;;  %v9200_v22 = vunpack.c.h.bf16 %v9408_v16  ;;  %v9425_v15 = vld [vmem:[%s11838_s21 + $0x1a8] sm:$0xff]   ;;  %v9424_v16 = vld [vmem:[%s11838_s21 + $0x1a0] sm:$0xff]  }
  0x1f   : > { %v9211_v26 = vunpack.c.l.bf16 %v9411_v23  ;;  %v9212_v28 = vunpack.c.h.bf16 %v9411_v23  ;;  %v9207_v29 = vunpack.c.l.bf16 %v9410_v24  ;;  %v9208_v30 = vunpack.c.h.bf16 %v9410_v24  ;;  %v9427_v23 = vld [vmem:[%s11838_s21 + $0x1b8] sm:$0xff]   ;;  %v9426_v24 = vld [vmem:[%s11838_s21 + $0x1b0] sm:$0xff]  }
  0x20   : > { %v9219_v33 = vunpack.c.l.bf16 %v9413_v31  ;;  %v9220_v34 = vunpack.c.h.bf16 %v9413_v31  ;;  %v9215_v37 = vunpack.c.l.bf16 %v9412_v32  ;;  %v9216_v38 = vunpack.c.h.bf16 %v9412_v32  ;;  %v9429_v31 = vld [vmem:[%s11838_s21 + $0x1c8] sm:$0xff]   ;;  %v9428_v32 = vld [vmem:[%s11838_s21 + $0x1c0] sm:$0xff]  }
  0x21   : > { %11245 = vperm.xlu1 %11188, %v11244_v57   ;;  %11240 = vperm.xlu0 %11177, %v11239_v59   ;;  %v11324_v57 = vpack.i.bf16 %v9172_v50, %v9171_v49  ;;  %v11319_v59 = vpack.i.bf16 %v9168_v54, %v9167_v53  ;;  %v9227_v42 = vunpack.c.l.bf16 %v9415_v39  ;;  %v9228_v44 = vunpack.c.h.bf16 %v9415_v39  ;;  %v9431_v39 = vld [vmem:[%s11838_s21 + $0x1d8] sm:$0xff]  }
  0x22   : > { %v9223_v45 = vunpack.c.l.bf16 %v9414_v40  ;;  %v9224_v46 = vunpack.c.h.bf16 %v9414_v40  ;;  %v9235_v49 = vunpack.c.l.bf16 %v9417_v47  ;;  %v9236_v50 = vunpack.c.h.bf16 %v9417_v47  ;;  %v9430_v40 = vld [vmem:[%s11838_s21 + $0x1d0] sm:$0xff]   ;;  %v9433_v47 = vld [vmem:[%s11838_s21 + $0x1e8] sm:$0xff]  }
  0x23   : > { %v9231_v53 = vunpack.c.l.bf16 %v9416_v48  ;;  %v9232_v54 = vunpack.c.h.bf16 %v9416_v48  ;;  %v9432_v48 = vld [vmem:[%s11838_s21 + $0x1e0] sm:$0xff]  }
  0x25   : > { %11255 = vperm.xlu1 %11188, %v11254_v3   ;;  %11250 = vperm.xlu0 %11177, %v11249_v4   ;;  %v11334_v3 = vpack.i.bf16 %v9180_v60, %v9179_v58  ;;  %v11329_v4 = vpack.i.bf16 %v9176_v62, %v9175_v61  ;;  %v9243_v58 = vunpack.c.l.bf16 %v9419_v55  ;;  %v9244_v60 = vunpack.c.h.bf16 %v9419_v55  ;;  %v9435_v55 = vld [vmem:[%s11838_s21 + $0x1f8] sm:$0xff]  }
  0x26   : > { %v9239_v61 = vunpack.c.l.bf16 %v9418_v56  ;;  %v9240_v62 = vunpack.c.h.bf16 %v9418_v56  ;;  %v9434_v56 = vld [vmem:[%s11838_s21 + $0x1f0] sm:$0xff]  }
  0x29   : > { %11265 = vperm.xlu1 %11188, %v11264_v9   ;;  %11260 = vperm.xlu0 %11177, %v11259_v11   ;;  %v11344_v9 = vpack.i.bf16 %v9188_v2, %v9187_v1  ;;  %v11339_v11 = vpack.i.bf16 %v9184_v6, %v9183_v5  ;;  %v9251_v1 = vunpack.c.l.bf16 %v9421_v63  ;;  %v9252_v2 = vunpack.c.h.bf16 %v9421_v63 }
  0x2a   : > { %v9247_v5 = vunpack.c.l.bf16 %v9420_v0  ;;  %v9248_v6 = vunpack.c.h.bf16 %v9420_v0  ;;  %v9303_v63 = vunpack.c.l.bf16 %v9434_v56 }
  0x2d   : > { %11275 = vperm.xlu1 %11188, %v11274_v19   ;;  %11270 = vperm.xlu0 %11177, %v11269_v20   ;;  %v11354_v19 = vpack.i.bf16 %v9196_v12, %v9195_v10  ;;  %v11349_v20 = vpack.i.bf16 %v9192_v14, %v9191_v13  ;;  %v9259_v10 = vunpack.c.l.bf16 %v9423_v7  ;;  %v9260_v12 = vunpack.c.h.bf16 %v9423_v7 }
  0x2e   : > { %v9255_v13 = vunpack.c.l.bf16 %v9422_v8  ;;  %v9256_v14 = vunpack.c.h.bf16 %v9422_v8 }
  0x31   : > { %11285 = vperm.xlu1 %11188, %v11284_v25   ;;  %11280 = vperm.xlu0 %11177, %v11279_v27   ;;  %v11364_v25 = vpack.i.bf16 %v9204_v18, %v9203_v17  ;;  %v11359_v27 = vpack.i.bf16 %v9200_v22, %v9199_v21  ;;  %v9267_v17 = vunpack.c.l.bf16 %v9425_v15  ;;  %v9268_v18 = vunpack.c.h.bf16 %v9425_v15  ;;  %v9443_v15 = vld [vmem:[%s11838_s21 + $0x238] sm:$0xff]  }
  0x32   : > { %v9263_v21 = vunpack.c.l.bf16 %v9424_v16  ;;  %v9264_v22 = vunpack.c.h.bf16 %v9424_v16 }
  0x35   : > { %11295 = vperm.xlu1 %11188, %v11294_v35   ;;  %11290 = vperm.xlu0 %11177, %v11289_v36   ;;  %v11374_v35 = vpack.i.bf16 %v9212_v28, %v9211_v26  ;;  %v11369_v36 = vpack.i.bf16 %v9208_v30, %v9207_v29  ;;  %v9275_v26 = vunpack.c.l.bf16 %v9427_v23  ;;  %v9276_v28 = vunpack.c.h.bf16 %v9427_v23  ;;  %v9444_v23 = vld [vmem:[%s11838_s21 + $0x240] sm:$0xff]  }
  0x36   : > { %v9271_v29 = vunpack.c.l.bf16 %v9426_v24  ;;  %v9272_v30 = vunpack.c.h.bf16 %v9426_v24 }
  0x39   : > { %11305 = vperm.xlu1 %11188, %v11304_v41   ;;  %11300 = vperm.xlu0 %11177, %v11299_v43   ;;  %v11384_v41 = vpack.i.bf16 %v9220_v34, %v9219_v33  ;;  %v11379_v43 = vpack.i.bf16 %v9216_v38, %v9215_v37  ;;  %v9283_v33 = vunpack.c.l.bf16 %v9429_v31  ;;  %v9284_v34 = vunpack.c.h.bf16 %v9429_v31 }
  0x3a   : > { %v9279_v37 = vunpack.c.l.bf16 %v9428_v32  ;;  %v9280_v38 = vunpack.c.h.bf16 %v9428_v32 }
  0x3d   : > { %11315 = vperm.xlu1 %11188, %v11314_v51   ;;  %11310 = vperm.xlu0 %11177, %v11309_v52   ;;  %v11394_v51 = vpack.i.bf16 %v9228_v44, %v9227_v42  ;;  %v11389_v52 = vpack.i.bf16 %v9224_v46, %v9223_v45  ;;  %v9291_v42 = vunpack.c.l.bf16 %v9431_v39  ;;  %v9292_v44 = vunpack.c.h.bf16 %v9431_v39  ;;  %v9448_v39 = vld [vmem:[%s11838_s21 + $0x260] sm:$0xff]  }
  0x3e   : > { %v9287_v45 = vunpack.c.l.bf16 %v9430_v40  ;;  %v9288_v46 = vunpack.c.h.bf16 %v9430_v40  ;;  %v9450_v40 = vld [vmem:[%s11838_s21 + $0x270] sm:$0xff]  }
  0x41   : > { %11325 = vperm.xlu1 %11188, %v11324_v57   ;;  %11320 = vperm.xlu0 %11177, %v11319_v59   ;;  %v11404_v57 = vpack.i.bf16 %v9236_v50, %v9235_v49  ;;  %v11399_v59 = vpack.i.bf16 %v9232_v54, %v9231_v53  ;;  %v9299_v49 = vunpack.c.l.bf16 %v9433_v47  ;;  %v9300_v50 = vunpack.c.h.bf16 %v9433_v47 }
  0x42   : > { %v9295_v53 = vunpack.c.l.bf16 %v9432_v48  ;;  %v9296_v54 = vunpack.c.h.bf16 %v9432_v48 }
  0x44   : > { %v11479_v0 = vpack.i.bf16 %v9296_v54, %v9295_v53  ;;  %v9360_v53 = vunpack.c.h.bf16 %v9448_v39  ;;  %v9367_v54 = vunpack.c.l.bf16 %v9450_v40 }
  0x45   : > { %11335 = vperm.xlu1 %11188, %v11334_v3   ;;  %11330 = vperm.xlu0 %11177, %v11329_v4   ;;  %v11414_v3 = vpack.i.bf16 %v9244_v60, %v9243_v58  ;;  %v11409_v4 = vpack.i.bf16 %v9240_v62, %v9239_v61  ;;  %v9436_v58 = vld [vmem:[%s11838_s21 + $0x200] sm:$0xff]   ;;  %v11484_v60 = vpack.i.bf16 %v9300_v50, %v9299_v49  ;;  %v9307_v61 = vunpack.c.l.bf16 %v9435_v55  ;;  %v11928_v49 = vld [vmem:[%s11838_s21 + $0x278] sm:$0xff]  }
  0x46   : > { %v9308_v62 = vunpack.c.h.bf16 %v9435_v55  ;;  %v9312_v7 = vunpack.c.h.bf16 %v9436_v58  ;;  %v9368_v55 = vunpack.c.h.bf16 %v9450_v40 }
  0x48   : > { %v11494_v16 = vpack.i.bf16 %v9308_v62, %v9307_v61  ;;  %v11942_v61 = vld [vmem:[%s17157_s1 + $0x1] ss:$0 sm:$0xff]  ;;  %v11947_v62 = vld [vmem:[%s17157_s1 + $0x2] ss:$0 sm:$0xff] }
  0x49   : > { %11345 = vperm.xlu1 %11188, %v11344_v9   ;;  %11340 = vperm.xlu0 %11177, %v11339_v11   ;;  %v11424_v9 = vpack.i.bf16 %v9252_v2, %v9251_v1  ;;  %v11419_v11 = vpack.i.bf16 %v9248_v6, %v9247_v5  ;;  %v9304_v1 = vunpack.c.h.bf16 %v9434_v56  ;;  %v9441_v5 = vld [vmem:[%s11838_s21 + $0x228] sm:$0xff]   ;;  %v9311_v6 = vunpack.c.l.bf16 %v9436_v58 }
  0x4d   : > { %11355 = vperm.xlu1 %11188, %v11354_v19   ;;  %11350 = vperm.xlu0 %11177, %v11349_v20   ;;  %v11434_v19 = vpack.i.bf16 %v9260_v12, %v9259_v10  ;;  %v11429_v20 = vpack.i.bf16 %v9256_v14, %v9255_v13  ;;  %v9331_v12 = vunpack.c.l.bf16 %v9441_v5  ;;  %v9332_v13 = vunpack.c.h.bf16 %v9441_v5  ;;  %v9440_v14 = vld [vmem:[%s11838_s21 + $0x220] sm:$0xff]  }
  0x4e   : > { %v9327_v24 = vunpack.c.l.bf16 %v9440_v14 }
  0x4f   : > { %v11918_v31 = vpack.i.bf16 %v9332_v13, %v9331_v12  ;;  %v9372_v12 = vunpack.c.h.bf16 %v11928_v49 }
  0x51   : > { %11365 = vperm.xlu1 %11188, %v11364_v25   ;;  %11360 = vperm.xlu0 %11177, %v11359_v27   ;;  %v11444_v25 = vpack.i.bf16 %v9268_v18, %v9267_v17  ;;  %v11439_v27 = vpack.i.bf16 %v9264_v22, %v9263_v21  ;;  %v11489_v17 = vpack.i.bf16 %v9304_v1, %v9303_v63  ;;  %v9442_v18 = vld [vmem:[%s11838_s21 + $0x230] sm:$0xff]   ;;  %v9445_v22 = vld [vmem:[%s11838_s21 + $0x248] sm:$0xff]  }
  0x52   : > { %v9335_v32 = vunpack.c.l.bf16 %v9442_v18 }
  0x55   : > { %11375 = vperm.xlu1 %11188, %v11374_v35   ;;  %11370 = vperm.xlu0 %11177, %v11369_v36   ;;  %v11454_v35 = vpack.i.bf16 %v9276_v28, %v9275_v26  ;;  %v11449_v36 = vpack.i.bf16 %v9272_v30, %v9271_v29  ;;  %v9339_v26 = vunpack.c.l.bf16 %v9443_v15  ;;  %v9447_v28 = vld [vmem:[%s11838_s21 + $0x258] sm:$0xff]   ;;  %v9446_v29 = vld [vmem:[%s11838_s21 + $0x250] sm:$0xff]  }
  0x59   : > { %11385 = vperm.xlu1 %11188, %v11384_v41   ;;  %11380 = vperm.xlu0 %11177, %v11379_v43   ;;  %v11464_v41 = vpack.i.bf16 %v9284_v34, %v9283_v33  ;;  %v11459_v43 = vpack.i.bf16 %v9280_v38, %v9279_v37  ;;  %v9336_v33 = vunpack.c.h.bf16 %v9442_v18  ;;  %v9449_v34 = vld [vmem:[%s11838_s21 + $0x268] sm:$0xff]   ;;  %v9343_v37 = vunpack.c.l.bf16 %v9444_v23 }
  0x5a   : > { %v9344_v38 = vunpack.c.h.bf16 %v9444_v23  ;;  %v9363_v47 = vunpack.c.l.bf16 %v9449_v34  ;;  %v9364_v48 = vunpack.c.h.bf16 %v9449_v34 }
  0x5b   : > { %v11930_v58 = vpack.i.bf16 %v9336_v33, %v9335_v32 }
  0x5c   : > { %v11949_v63 = vpack.i.bf16 %v9344_v38, %v9343_v37 }
  0x5d   : > { %11395 = vperm.xlu1 %11188, %v11394_v51   ;;  %11390 = vperm.xlu0 %11177, %v11389_v52   ;;  %v11474_v51 = vpack.i.bf16 %v9292_v44, %v9291_v42  ;;  %v11469_v52 = vpack.i.bf16 %v9288_v46, %v9287_v45  ;;  %v9356_v42 = vunpack.c.h.bf16 %v9447_v28  ;;  %v9352_v44 = vunpack.c.h.bf16 %v9446_v29 }
  0x61   : > { %11405 = vperm.xlu1 %11188, %v11404_v57   ;;  %11400 = vperm.xlu0 %11177, %v11399_v59   ;;  %v9437_v57 = vld [vmem:[%s11838_s21 + $0x208] sm:$0xff]   ;;  %v9439_v59 = vld [vmem:[%s11838_s21 + $0x218] sm:$0xff]  }
  0x62   : > { %v9315_v2 = vunpack.c.l.bf16 %v9437_v57  ;;  %v9323_v8 = vunpack.c.l.bf16 %v9439_v59 }
  0x65   : > { %11415 = vperm.xlu1 %11188, %v11414_v3   ;;  %11410 = vperm.xlu0 %11177, %v11409_v4   ;;  %v9316_v3 = vunpack.c.h.bf16 %v9437_v57  ;;  %v9438_v4 = vld [vmem:[%s11838_s21 + $0x210] sm:$0xff]  }
  0x66   : > { %v9319_v10 = vunpack.c.l.bf16 %v9438_v4 }
  0x69   : > { %11425 = vperm.xlu1 %11188, %v11424_v9   ;;  %11420 = vperm.xlu0 %11177, %v11419_v11   ;;  %v9324_v9 = vunpack.c.h.bf16 %v9439_v59  ;;  %v9320_v11 = vunpack.c.h.bf16 %v9438_v4 }
  0x6b   : > { %v11912_v21 = vpack.i.bf16 %v9324_v9, %v9323_v8  ;;  %v11509_v30 = vpack.i.bf16 %v9320_v11, %v9319_v10  ;;  %v11958_v9 = vpack.i.bf16 %v9364_v48, %v9363_v47  ;;  %v11962_v11 = vpack.i.bf16 %v9368_v55, %v9367_v54 }
  0x6d   : > { %11435 = vperm.xlu1 %11188, %v11434_v19   ;;  %11430 = vperm.xlu0 %11177, %v11429_v20   ;;  %v11504_v19 = vpack.i.bf16 %v9316_v3, %v9315_v2  ;;  %v11499_v20 = vpack.i.bf16 %v9312_v7, %v9311_v6  ;;  %v9371_v2 = vunpack.c.l.bf16 %v11928_v49 }
  0x71   : > { %11445 = vperm.xlu1 %11188, %v11444_v25   ;;  %11440 = vperm.xlu0 %11177, %v11439_v27   ;;  %v9328_v25 = vunpack.c.h.bf16 %v9440_v14  ;;  %v9340_v27 = vunpack.c.h.bf16 %v9443_v15 }
  0x73   : > { %v11923_v45 = vpack.i.bf16 %v9328_v25, %v9327_v24  ;;  %v11925_v46 = vpack.i.bf16 %v9340_v27, %v9339_v26 }
  0x75   : > { %11455 = vperm.xlu1 %11188, %v11454_v35   ;;  %11450 = vperm.xlu0 %11177, %v11449_v36   ;;  %v9347_v35 = vunpack.c.l.bf16 %v9445_v22  ;;  %v9348_v36 = vunpack.c.h.bf16 %v9445_v22 }
  0x77   : > { %v11932_v59 = vpack.i.bf16 %v9348_v36, %v9347_v35 }
  0x79   : > { %11465 = vperm.xlu1 %11188, %v11464_v41   ;;  %11460 = vperm.xlu0 %11177, %v11459_v43   ;;  %v9355_v41 = vunpack.c.l.bf16 %v9447_v28  ;;  %v9351_v43 = vunpack.c.l.bf16 %v9446_v29 }
  0x7b   : > { %v11953_v1 = vpack.i.bf16 %v9352_v44, %v9351_v43 }
  0x7d   : > { %11475 = vperm.xlu1 %11188, %v11474_v51   ;;  %11470 = vperm.xlu0 %11177, %v11469_v52   ;;  %v9359_v52 = vunpack.c.l.bf16 %v9448_v39 }
  0x7f   : > { %v11960_v10 = vpack.i.bf16 %v9360_v53, %v9359_v52 }
  0x81   : > { %11485 = vperm.xlu1 %11188, %v11484_v60   ;;  %11480 = vperm.xlu0 %11177, %v11479_v0   ;;  %v11937_v60 = vld [vmem:[%s17157_s1] ss:$0 sm:$0xff]  ;;  %v11951_v0 = vpack.i.bf16 %v9356_v42, %v9355_v41 }
  0x85   : > { %11495 = vperm.xlu1 %11188, %v11494_v16   ;;  %11490 = vperm.xlu0 %11177, %v11489_v17  }
  0x88   : > { %v11191_v50 = vpop.permute.xlu1 %11190  ;;  %v11180_v51 = vpop.permute.xlu0 %11179 }
  0x89   : > { %v11193_v56 = vunpack.i.h.bf16 %v11191_v50  ;;  %v11192_v57 = vunpack.i.l.bf16 %v11191_v50  ;;  %11505 = vperm.xlu1 %11188, %v11504_v19   ;;  %11500 = vperm.xlu0 %11177, %v11499_v20   ;;  %v11182_v5 = vunpack.i.h.bf16 %v11180_v51  ;;  %v11181_v6 = vunpack.i.l.bf16 %v11180_v51 }
  0x8b   : > { %v671_v3 = vmul.f32 %v11193_v56, %v11942_v61  ;;  %v582_v4 = vmul.f32 %v11192_v57, %v11937_v60  ;;  %v583_v13 = vmul.f32 %v11193_v56, %v11937_v60  ;;  %v759_v14 = vmul.f32 %v11193_v56, %v11947_v62 }
  0x8c   : > { %v11196_v7 = vpop.permute.xlu1 %11195  ;;  %v11185_v8 = vpop.permute.xlu0 %11184  ;;  %v670_v17 = vmul.f32 %v11192_v57, %v11942_v61  ;;  %v758_v22 = vmul.f32 %v11192_v57, %v11947_v62  ;;  %v579_v23 = vmul.f32 %v11182_v5, %v11937_v60  ;;  %v11974_v24 = vmul.f32 %v11182_v5, %v11942_v61 }
  0x8d   : > { %v11198_v15 = vunpack.i.h.bf16 %v11196_v7  ;;  %v11197_v16 = vunpack.i.l.bf16 %v11196_v7  ;;  %11515 = vperm.xlu1 %11188, %v11912_v21   ;;  %11510 = vperm.xlu0 %11177, %v11509_v30   ;;  %v709_v18 = vadd.f32 %v671_v3, %v582_v4  ;;  %v11187_v19 = vunpack.i.h.bf16 %v11185_v8 }
  0x8e   : > { %v11969_v20 = vunpack.i.l.bf16 %v11185_v8  ;;  %v11977_v25 = vmul.f32 %v11181_v6, %v11937_v60 }
  0x8f   : > { %v673_v26 = vmul.f32 %v11198_v15, %v11942_v61  ;;  %v672_v21 = vmul.f32 %v11197_v16, %v11942_v61  ;;  %v760_v27 = vmul.f32 %v11197_v16, %v11947_v62  ;;  %v581_v28 = vmul.f32 %v11187_v19, %v11937_v60 }
  0x90   : > { %v11206_v29 = vpop.permute.xlu1 %11205  ;;  %v11201_v30 = vpop.permute.xlu0 %11200  ;;  %v584_v32 = vmul.f32 %v11197_v16, %v11937_v60  ;;  %v669_v33 = vmul.f32 %v11187_v19, %v11942_v61  ;;  %v580_v34 = vmul.f32 %v11969_v20, %v11937_v60  ;;  %v668_v35 = vmul.f32 %v11969_v20, %v11942_v61 }
  0x91   : > { %11525 = vperm.xlu1 %11188, %v11918_v31   ;;  %v761_v36 = vmul.f32 %v11198_v15, %v11947_v62  ;;  %v710_v37 = vadd.f32 %v672_v21, %v583_v13  ;;  %v11991_v38 = vadd.f32 %v760_v27, %v709_v18  ;;  %v708_v39 = vadd.f32 %v670_v17, %v581_v28 }
  0x92   : > { %11520 = vperm.xlu0 %11177, %v11923_v45   ;;  %v757_v40 = vmul.f32 %v11187_v19, %v11947_v62  ;;  %v706_v41 = vadd.f32 %v668_v35, %v579_v23  ;;  %v707_v42 = vadd.f32 %v669_v33, %v580_v34  ;;  %v11208_v43 = vunpack.i.h.bf16 %v11206_v29 }
  0x93   : > { %v11995_v44 = vadd.f32 %v761_v36, %v710_v37  ;;  %v11997_v47 = vadd.f32 %v759_v14, %v708_v39  ;;  %v11207_v48 = vunpack.i.l.bf16 %v11206_v29  ;;  %v11203_v50 = vunpack.i.h.bf16 %v11201_v30 }
  0x94   : > { %v11216_v31 = vpop.permute.xlu1 %11215  ;;  %v585_v51 = vmul.f32 %v11198_v15, %v11937_v60  ;;  %v711_v52 = vadd.f32 %v673_v26, %v584_v32  ;;  %v12000_v53 = vadd.f32 %v757_v40, %v706_v41  ;;  %v12002_v54 = vadd.f32 %v758_v22, %v707_v42  ;;  %v11211_v45 = vpop.permute.xlu0 %11210 }
  0x95   : > { %11535 = vperm.xlu1 %11188, %v11925_v46   ;;  %v589_v55 = vmul.f32 %v11208_v43, %v11937_v60  ;;  %v677_v56 = vmul.f32 %v11208_v43, %v11942_v61  ;;  %v588_v57 = vmul.f32 %v11207_v48, %v11937_v60  ;;  %v676_v3 = vmul.f32 %v11207_v48, %v11942_v61 }
  0x96   : > { %11530 = vperm.xlu0 %11177, %v11930_v58   ;;  %v765_v4 = vmul.f32 %v11208_v43, %v11947_v62  ;;  %v587_v5 = vmul.f32 %v11203_v50, %v11937_v60  ;;  %v675_v6 = vmul.f32 %v11203_v50, %v11942_v61  ;;  %v11202_v7 = vunpack.i.l.bf16 %v11201_v30 }
  0x97   : > { %v764_v8 = vmul.f32 %v11207_v48, %v11947_v62  ;;  %v11218_v46 = vunpack.i.h.bf16 %v11216_v31  ;;  %v11217_v13 = vunpack.i.l.bf16 %v11216_v31  ;;  %v11213_v14 = vunpack.i.h.bf16 %v11211_v45 }
  0x98   : > { %v11226_v15 = vpop.permute.xlu1 %11225  ;;  %v714_v16 = vadd.f32 %v676_v3, %v587_v5  ;;  %v586_v17 = vmul.f32 %v11202_v7, %v11937_v60  ;;  %v674_v18 = vmul.f32 %v11202_v7, %v11942_v61  ;;  %v762_v58 = vmul.f32 %v11202_v7, %v11947_v62  ;;  %v11221_v30 = vpop.permute.xlu0 %11220 }
  0x99   : > { %11545 = vperm.xlu1 %11188, %v11932_v59   ;;  %v715_v19 = vadd.f32 %v677_v56, %v588_v57  ;;  %v763_v22 = vmul.f32 %v11203_v50, %v11947_v62  ;;  %v681_v23 = vmul.f32 %v11218_v46, %v11942_v61  ;;  %v592_v26 = vmul.f32 %v11217_v13, %v11937_v60 }
  0x9a   : > { %11540 = vperm.xlu0 %11177, %v11949_v63   ;;  %v12022_v21 = vadd.f32 %v765_v4, %v714_v16  ;;  %v712_v27 = vadd.f32 %v674_v18, %v585_v51  ;;  %v713_v28 = vadd.f32 %v675_v6, %v586_v17  ;;  %v12024_v29 = vadd.f32 %v762_v58, %v711_v52 }
  0x9b   : > { %v593_v32 = vmul.f32 %v11218_v46, %v11937_v60  ;;  %v769_v59 = vmul.f32 %v11218_v46, %v11947_v62  ;;  %v680_v33 = vmul.f32 %v11217_v13, %v11942_v61  ;;  %v591_v34 = vmul.f32 %v11213_v14, %v11937_v60 }
  0x9c   : > { %v12030_v35 = vadd.f32 %v763_v22, %v712_v27  ;;  %v12032_v36 = vadd.f32 %v764_v8, %v713_v28  ;;  %v719_v63 = vadd.f32 %v681_v23, %v592_v26  ;;  %v679_v37 = vmul.f32 %v11213_v14, %v11942_v61  ;;  %v11236_v43 = vpop.permute.xlu1 %11235  ;;  %v11231_v5 = vpop.permute.xlu0 %11230 }
  0x9d   : > { %11555 = vperm.xlu1 %11188, %v11951_v0   ;;  %v718_v39 = vadd.f32 %v680_v33, %v591_v34  ;;  %v11212_v40 = vunpack.i.l.bf16 %v11211_v45  ;;  %v11228_v41 = vunpack.i.h.bf16 %v11226_v15  ;;  %v11227_v42 = vunpack.i.l.bf16 %v11226_v15 }
  0x9e   : > { %11550 = vperm.xlu0 %11177, %v11953_v1   ;;  %v768_v48 = vmul.f32 %v11217_v13, %v11947_v62  ;;  %v767_v50 = vmul.f32 %v11213_v14, %v11947_v62  ;;  %v11223_v31 = vunpack.i.h.bf16 %v11221_v30  ;;  %v11222_v51 = vunpack.i.l.bf16 %v11221_v30 }
  0x9f   : > { %v12039_v52 = vadd.f32 %v769_v59, %v718_v39  ;;  %v590_v56 = vmul.f32 %v11212_v40, %v11937_v60  ;;  %v678_v57 = vmul.f32 %v11212_v40, %v11942_v61  ;;  %v766_v0 = vmul.f32 %v11212_v40, %v11947_v62 }
  0xa0   : > { %v685_v45 = vmul.f32 %v11228_v41, %v11942_v61  ;;  %v596_v3 = vmul.f32 %v11227_v42, %v11937_v60  ;;  %v11238_v4 = vunpack.i.h.bf16 %v11236_v43  ;;  %v11237_v1 = vunpack.i.l.bf16 %v11236_v43  ;;  %v11246_v58 = vpop.permute.xlu1 %11245  ;;  %v11241_v39 = vpop.permute.xlu0 %11240 }
  0xa1   : > { %11565 = vperm.xlu1 %11188, %v11958_v9   ;;  %v716_v6 = vadd.f32 %v678_v57, %v589_v55  ;;  %v717_v7 = vadd.f32 %v679_v37, %v590_v56  ;;  %v12047_v8 = vadd.f32 %v766_v0, %v715_v19  ;;  %v684_v46 = vmul.f32 %v11227_v42, %v11942_v61 }
  0xa2   : > { %11560 = vperm.xlu0 %11177, %v11960_v10   ;;  %v597_v13 = vmul.f32 %v11228_v41, %v11937_v60  ;;  %v773_v14 = vmul.f32 %v11228_v41, %v11947_v62  ;;  %v595_v15 = vmul.f32 %v11223_v31, %v11937_v60  ;;  %v683_v16 = vmul.f32 %v11223_v31, %v11942_v61 }
  0xa3   : > { %v12055_v17 = vadd.f32 %v767_v50, %v716_v6  ;;  %v12057_v18 = vadd.f32 %v768_v48, %v717_v7  ;;  %v723_v9 = vadd.f32 %v685_v45, %v596_v3  ;;  %v594_v55 = vmul.f32 %v11222_v51, %v11937_v60 }
  0xa4   : > { %v772_v19 = vmul.f32 %v11227_v42, %v11947_v62  ;;  %v722_v22 = vadd.f32 %v684_v46, %v595_v15  ;;  %v682_v10 = vmul.f32 %v11222_v51, %v11942_v61  ;;  %v770_v23 = vmul.f32 %v11222_v51, %v11947_v62  ;;  %v11256_v56 = vpop.permute.xlu1 %11255 }
  0xa5   : > { %2543 = vperm.xlu1 %11188, %v9371_v2   ;;  %v771_v26 = vmul.f32 %v11223_v31, %v11947_v62  ;;  %v721_v27 = vadd.f32 %v683_v16, %v594_v55  ;;  %v689_v28 = vmul.f32 %v11238_v4, %v11942_v61  ;;  %v600_v30 = vmul.f32 %v11237_v1, %v11937_v60 }
  0xa6   : > { %11570 = vperm.xlu0 %11177, %v11962_v11   ;;  %v12069_v59 = vadd.f32 %v773_v14, %v722_v22  ;;  %v720_v33 = vadd.f32 %v682_v10, %v593_v32  ;;  %v12071_v34 = vadd.f32 %v770_v23, %v719_v63  ;;  %v601_v37 = vmul.f32 %v11238_v4, %v11937_v60 }
  0xa7   : > { %v12074_v40 = vadd.f32 %v772_v19, %v721_v27  ;;  %v777_v2 = vmul.f32 %v11238_v4, %v11947_v62  ;;  %v688_v41 = vmul.f32 %v11237_v1, %v11942_v61  ;;  %v11233_v42 = vunpack.i.h.bf16 %v11231_v5 }
  0xa8   : > { %v12078_v43 = vadd.f32 %v771_v26, %v720_v33  ;;  %v11232_v48 = vunpack.i.l.bf16 %v11231_v5  ;;  %v11248_v50 = vunpack.i.h.bf16 %v11246_v58  ;;  %v11247_v11 = vunpack.i.l.bf16 %v11246_v58 }
  0xa9   : > { %v727_v31 = vadd.f32 %v689_v28, %v600_v30  ;;  %v599_v32 = vmul.f32 %v11233_v42, %v11937_v60  ;;  %v687_v63 = vmul.f32 %v11233_v42, %v11942_v61  ;;  %v11243_v51 = vunpack.i.h.bf16 %v11241_v39  ;;  %v11266_v28 = vpop.permute.xlu1 %11265 }
  0xaa   : > { %2624 = vperm.xlu0 %11177, %v9372_v12   ;;  %v776_v57 = vmul.f32 %v11237_v1, %v11947_v62  ;;  %v598_v0 = vmul.f32 %v11232_v48, %v11937_v60  ;;  %v686_v45 = vmul.f32 %v11232_v48, %v11942_v61  ;;  %v774_v3 = vmul.f32 %v11232_v48, %v11947_v62  ;;  %v11251_v12 = vpop.permute.xlu0 %11250 }
  0xab   : > { %v726_v4 = vadd.f32 %v688_v41, %v599_v32  ;;  %v775_v5 = vmul.f32 %v11233_v42, %v11947_v62  ;;  %v693_v6 = vmul.f32 %v11248_v50, %v11942_v61  ;;  %v604_v7 = vmul.f32 %v11247_v11, %v11937_v60 }
  0xac   : > { %v724_v46 = vadd.f32 %v686_v45, %v597_v13  ;;  %v725_v14 = vadd.f32 %v687_v63, %v598_v0  ;;  %v12091_v15 = vadd.f32 %v774_v3, %v723_v9  ;;  %v692_v49 = vmul.f32 %v11247_v11, %v11942_v61 }
  0xad   : > { %v12094_v1 = vadd.f32 %v777_v2, %v726_v4  ;;  %v605_v16 = vmul.f32 %v11248_v50, %v11937_v60  ;;  %v781_v55 = vmul.f32 %v11248_v50, %v11947_v62  ;;  %v603_v58 = vmul.f32 %v11243_v51, %v11937_v60 }
  0xae   : > { %v12099_v19 = vadd.f32 %v775_v5, %v724_v46  ;;  %v12101_v22 = vadd.f32 %v776_v57, %v725_v14  ;;  %v731_v10 = vadd.f32 %v693_v6, %v604_v7  ;;  %v691_v13 = vmul.f32 %v11243_v51, %v11942_v61  ;;  %v11261_v0 = vpop.permute.xlu0 %11260 }
  0xaf   : > { %v730_v9 = vadd.f32 %v692_v49, %v603_v58  ;;  %v11242_v23 = vunpack.i.l.bf16 %v11241_v39  ;;  %v11258_v26 = vunpack.i.h.bf16 %v11256_v56  ;;  %v11257_v27 = vunpack.i.l.bf16 %v11256_v56 }
  0xb0   : > { %v780_v30 = vmul.f32 %v11247_v11, %v11947_v62  ;;  %v779_v33 = vmul.f32 %v11243_v51, %v11947_v62  ;;  %v11253_v2 = vunpack.i.h.bf16 %v11251_v12  ;;  %v11252_v41 = vunpack.i.l.bf16 %v11251_v12 }
  0xb1   : > { %v12106_v42 = vadd.f32 %v781_v55, %v730_v9  ;;  %v602_v48 = vmul.f32 %v11242_v23, %v11937_v60  ;;  %v690_v50 = vmul.f32 %v11242_v23, %v11942_v61  ;;  %v778_v32 = vmul.f32 %v11242_v23, %v11947_v62 }
  0xb2   : > { %v697_v63 = vmul.f32 %v11258_v26, %v11942_v61  ;;  %v608_v39 = vmul.f32 %v11257_v27, %v11937_v60  ;;  %v11268_v56 = vunpack.i.h.bf16 %v11266_v28  ;;  %v11267_v57 = vunpack.i.l.bf16 %v11266_v28  ;;  %v11276_v28 = vpop.permute.xlu1 %11275 }
  0xb3   : > { %v728_v11 = vadd.f32 %v690_v50, %v601_v37  ;;  %v729_v45 = vadd.f32 %v691_v13, %v602_v48  ;;  %v12113_v51 = vadd.f32 %v778_v32, %v727_v31  ;;  %v696_v3 = vmul.f32 %v11257_v27, %v11942_v61  ;;  %v11271_v50 = vpop.permute.xlu0 %11270 }
  0xb4   : > { %v609_v4 = vmul.f32 %v11258_v26, %v11937_v60  ;;  %v785_v5 = vmul.f32 %v11258_v26, %v11947_v62  ;;  %v607_v6 = vmul.f32 %v11253_v2, %v11937_v60  ;;  %v695_v7 = vmul.f32 %v11253_v2, %v11942_v61 }
  0xb5   : > { %v12120_v46 = vadd.f32 %v779_v33, %v728_v11  ;;  %v12122_v14 = vadd.f32 %v780_v30, %v729_v45  ;;  %v735_v49 = vadd.f32 %v697_v63, %v608_v39  ;;  %v606_v37 = vmul.f32 %v11252_v41, %v11937_v60 }
  0xb6   : > { %v784_v31 = vmul.f32 %v11257_v27, %v11947_v62  ;;  %v734_v12 = vadd.f32 %v696_v3, %v607_v6  ;;  %v694_v55 = vmul.f32 %v11252_v41, %v11942_v61  ;;  %v782_v58 = vmul.f32 %v11252_v41, %v11947_v62 }
  0xb7   : > { %v783_v13 = vmul.f32 %v11253_v2, %v11947_v62  ;;  %v733_v9 = vadd.f32 %v695_v7, %v606_v37  ;;  %v701_v23 = vmul.f32 %v11268_v56, %v11942_v61  ;;  %v612_v26 = vmul.f32 %v11267_v57, %v11937_v60 }
  0xb8   : > { %v12131_v30 = vadd.f32 %v785_v5, %v734_v12  ;;  %v732_v33 = vadd.f32 %v694_v55, %v605_v16  ;;  %v12133_v48 = vadd.f32 %v782_v58, %v731_v10  ;;  %v613_v27 = vmul.f32 %v11268_v56, %v11937_v60 }
  0xb9   : > { %v12136_v32 = vadd.f32 %v784_v31, %v733_v9  ;;  %v789_v41 = vmul.f32 %v11268_v56, %v11947_v62  ;;  %v700_v2 = vmul.f32 %v11267_v57, %v11942_v61  ;;  %v11263_v63 = vunpack.i.h.bf16 %v11261_v0 }
  0xba   : > { %v12140_v39 = vadd.f32 %v783_v13, %v732_v33  ;;  %v11262_v11 = vunpack.i.l.bf16 %v11261_v0  ;;  %v11278_v45 = vunpack.i.h.bf16 %v11276_v28  ;;  %v11277_v3 = vunpack.i.l.bf16 %v11276_v28  ;;  %v11286_v13 = vpop.permute.xlu1 %11285 }
  0xbb   : > { %17263 = vst [vmem:[#allocation5_spill] sm:$0xff] %v12136_v32  ;;  %v739_v5 = vadd.f32 %v701_v23, %v612_v26  ;;  %v611_v16 = vmul.f32 %v11263_v63, %v11937_v60  ;;  %v699_v10 = vmul.f32 %v11263_v63, %v11942_v61  ;;  %v11273_v6 = vunpack.i.h.bf16 %v11271_v50 }
  0xbc   : > { %v788_v7 = vmul.f32 %v11267_v57, %v11947_v62  ;;  %v610_v37 = vmul.f32 %v11262_v11, %v11937_v60  ;;  %v698_v56 = vmul.f32 %v11262_v11, %v11942_v61  ;;  %v786_v31 = vmul.f32 %v11262_v11, %v11947_v62 }
  0xbd   : > { %v738_v12 = vadd.f32 %v700_v2, %v611_v16  ;;  %v787_v55 = vmul.f32 %v11263_v63, %v11947_v62  ;;  %v704_v0 = vmul.f32 %v11277_v3, %v11942_v61  ;;  %v615_v58 = vmul.f32 %v11273_v6, %v11937_v60  ;;  %v12160_v2 = vld [vmem:[%s17157_s1 + $0x3] ss:$0 sm:$0xff] }
  0xbe   : > { %v736_v9 = vadd.f32 %v698_v56, %v609_v4  ;;  %v737_v23 = vadd.f32 %v699_v10, %v610_v37  ;;  %v12151_v26 = vadd.f32 %v786_v31, %v735_v49  ;;  %v793_v57 = vmul.f32 %v11278_v45, %v11947_v62  ;;  %v12178_v37 = vld [vmem:[%s17157_s1 + $0x4] ss:$0 sm:$0xff] }
  0xbf   : > { %v12154_v28 = vadd.f32 %v789_v41, %v738_v12  ;;  %v703_v33 = vmul.f32 %v11273_v6, %v11942_v61  ;;  %v742_v32 = vadd.f32 %v704_v0, %v615_v58  ;;  %v11272_v11 = vunpack.i.l.bf16 %v11271_v50  ;;  %v11281_v12 = vpop.permute.xlu0 %11280 }
  0xc0   : > { %v12162_v63 = vadd.f32 %v787_v55, %v736_v9  ;;  %v12164_v16 = vadd.f32 %v788_v7, %v737_v23  ;;  %v12166_v4 = vunpack.i.h.bf16 %v11286_v13  ;;  %v12168_v49 = vunpack.i.l.bf16 %v11286_v13  ;;  %v11296_v9 = vpop.permute.xlu1 %11295 }
  0xc1   : > { %v12170_v45 = vadd.f32 %v793_v57, %v742_v32  ;;  %v614_v41 = vmul.f32 %v11272_v11, %v11937_v60  ;;  %v702_v10 = vmul.f32 %v11272_v11, %v11942_v61  ;;  %v790_v50 = vmul.f32 %v11272_v11, %v11947_v62 }
  0xc2   : > { %17264 = vst [vmem:[#allocation6_spill] sm:$0xff] %v12166_v4  ;;  %v756_v7 = vmul.f32 %v11969_v20, %v11947_v62  ;;  %v792_v56 = vmul.f32 %v11277_v3, %v11947_v62  ;;  %v791_v31 = vmul.f32 %v11273_v6, %v11947_v62  ;;  %v1033_v32 = vmul.f32 %v12166_v4, %v12160_v2 }
  0xc3   : > { %17265 = vst [vmem:[#allocation7_spill] sm:$0xff] %v12170_v45  ;;  %v740_v55 = vadd.f32 %v702_v10, %v613_v27  ;;  %v741_v0 = vadd.f32 %v703_v33, %v614_v41  ;;  %v12186_v58 = vadd.f32 %v790_v50, %v739_v5  ;;  %v1032_v13 = vmul.f32 %v12168_v49, %v12160_v2 }
  0xc4   : > { %v705_v23 = vadd.f32 %v11974_v24, %v11977_v25  ;;  %v1121_v20 = vmul.f32 %v12166_v4, %v12178_v37  ;;  %v1071_v62 = vadd.f32 %v1033_v32, %v11997_v47  ;;  %v1896_v3 = vmul.f32 %v12168_v49, %v11942_v61 }
  0xc5   : > { %v12197_v6 = vadd.f32 %v791_v31, %v740_v55  ;;  %v12199_v27 = vadd.f32 %v792_v56, %v741_v0  ;;  %v1070_v5 = vadd.f32 %v1032_v13, %v12002_v54  ;;  %v11283_v57 = vunpack.i.h.bf16 %v11281_v12  ;;  %v11291_v31 = vpop.permute.xlu0 %11290 }
  0xc6   : > { %v11282_v33 = vunpack.i.l.bf16 %v11281_v12  ;;  %v794_v11 = vadd.f32 %v756_v7, %v705_v23  ;;  %v12202_v41 = vunpack.i.h.bf16 %v11296_v9  ;;  %v12206_v47 = vunpack.i.l.bf16 %v11296_v9 }
  0xc7   : > { %v1159_v24 = vadd.f32 %v1121_v20, %v1070_v5  ;;  %v1031_v25 = vmul.f32 %v11283_v57, %v12160_v2  ;;  %v1820_v10 = vmul.f32 %v11283_v57, %v11937_v60  ;;  %v1120_v54 = vmul.f32 %v12168_v49, %v12178_v37 }
  0xc8   : > { %17266 = vst [vmem:[#allocation8_spill] sm:$0xff] %v12202_v41  ;;  %17267 = vst [vmem:[#allocation9_spill] sm:$0xff] %v12206_v47  ;;  %v1030_v50 = vmul.f32 %v11282_v33, %v12160_v2  ;;  %v1037_v56 = vmul.f32 %v12202_v41, %v12160_v2  ;;  %v1119_v12 = vmul.f32 %v11283_v57, %v12178_v37 }
  0xc9   : > { %v12213_v32 = vadd.f32 %v1896_v3, %v1820_v10  ;;  %v1069_v7 = vadd.f32 %v1031_v25, %v12000_v53  ;;  %v1895_v55 = vmul.f32 %v11283_v57, %v11942_v61  ;;  %v1819_v13 = vmul.f32 %v11282_v33, %v11937_v60  ;;  %v11306_v53 = vpop.permute.xlu1 %11305  ;;  %v11301_v45 = vpop.permute.xlu0 %11300 }
  0xca   : > { %v1068_v0 = vadd.f32 %v1030_v50, %v794_v11  ;;  %v12221_v9 = vmul.f32 %v12166_v4, %v11937_v60  ;;  %v1036_v20 = vmul.f32 %v12206_v47, %v12160_v2  ;;  %v12228_v3 = vadd.f32 %v1037_v56, %v12030_v35  ;;  %v12243_v11 = vld [vmem:[%s17157_s1 + $0x5] ss:$0 sm:$0xff] }
  0xcb   : > { %17268 = vst [vmem:[#allocation10_spill] sm:$0xff] %v12213_v32  ;;  %v12223_v23 = vadd.f32 %v1120_v54, %v1069_v7  ;;  %v12232_v5 = vmul.f32 %v12166_v4, %v11942_v61  ;;  %v12236_v57 = vmul.f32 %v12168_v49, %v11937_v60  ;;  %v1125_v35 = vmul.f32 %v12202_v41, %v12178_v37 }
  0xcc   : > { %17269 = vst [vmem:[#allocation11_spill] sm:$0xff] %v12221_v9  ;;  %v12238_v33 = vadd.f32 %v1119_v12, %v1068_v0  ;;  %v12249_v25 = vmul.f32 %v12202_v41, %v12243_v11  ;;  %v1074_v10 = vadd.f32 %v1036_v20, %v12024_v29  ;;  %v12252_v50 = vunpack.i.h.bf16 %v11291_v31 }
  0xcd   : > { %17270 = vst [vmem:[#allocation12_spill] sm:$0xff] %v12223_v23  ;;  %17271 = vst [vmem:[#allocation13_spill] sm:$0xff] %v12232_v5  ;;  %v12254_v56 = vunpack.i.l.bf16 %v11291_v31  ;;  %v12256_v54 = vadd.f32 %v1895_v55, %v1819_v13  ;;  %v12260_v7 = vmul.f32 %v12202_v41, %v11937_v60  ;;  %v12264_v12 = vmul.f32 %v12202_v41, %v11942_v61  ;;  %v11316_v5 = vpop.permute.xlu1 %11315 }
  0xce   : > { %17272 = vst [vmem:[#allocation14_spill] sm:$0xff] %v12236_v57  ;;  %17273 = vst [vmem:[#allocation15_spill] sm:$0xff] %v12238_v33  ;;  %v12266_v0 = vunpack.i.h.bf16 %v11306_v53  ;;  %v1124_v29 = vmul.f32 %v12206_v47, %v12178_v37  ;;  %v1163_v20 = vadd.f32 %v1125_v35, %v1074_v10  ;;  %v12272_v31 = vmul.f32 %v12206_v47, %v12243_v11 }
  0xcf   : > { %17274 = vst [vmem:[#allocation16_spill] sm:$0xff] %v12249_v25  ;;  %17275 = vst [vmem:[#allocation17_spill] sm:$0xff] %v12252_v50  ;;  %v1035_v55 = vmul.f32 %v12252_v50, %v12160_v2  ;;  %v12278_v13 = vmul.f32 %v12206_v47, %v11937_v60  ;;  %v1034_v41 = vmul.f32 %v12254_v56, %v12160_v2  ;;  %v12291_v9 = vunpack.i.h.bf16 %v11301_v45 }
  0xd0   : > { %17276 = vst [vmem:[#allocation18_spill] sm:$0xff] %v12254_v56  ;;  %17277 = vst [vmem:[#allocation19_spill] sm:$0xff] %v12256_v54  ;;  %v1123_v10 = vmul.f32 %v12252_v50, %v12178_v37  ;;  %v1210_v32 = vmul.f32 %v12254_v56, %v12243_v11  ;;  %v12306_v54 = vunpack.i.l.bf16 %v11301_v45  ;;  %v12326_v45 = vmul.f32 %v12254_v56, %v11937_v60 }
  0xd1   : > { %17278 = vst [vmem:[#allocation20_spill] sm:$0xff] %v12260_v7  ;;  %17279 = vst [vmem:[#allocation21_spill] sm:$0xff] %v12264_v12  ;;  %v1122_v12 = vmul.f32 %v12254_v56, %v12178_v37  ;;  %v12284_v7 = vunpack.i.l.bf16 %v11306_v53  ;;  %v1073_v35 = vadd.f32 %v1035_v55, %v11995_v44  ;;  %v1072_v57 = vadd.f32 %v1034_v41, %v11991_v38 }
  0xd2   : > { %17280 = vst [vmem:[#allocation22_spill] sm:$0xff] %v12266_v0  ;;  %17281 = vst [vmem:[#allocation23_spill] sm:$0xff] %v12272_v31  ;;  %v1041_v53 = vmul.f32 %v12266_v0, %v12160_v2  ;;  %v12300_v44 = vmul.f32 %v12206_v47, %v11942_v61  ;;  %v12304_v31 = vadd.f32 %v1210_v32, %v1159_v24 }
  0xd3   : > { %17282 = vst [vmem:[#allocation24_spill] sm:$0xff] %v12278_v13  ;;  %17283 = vst [vmem:[#allocation25_spill] sm:$0xff] %v12284_v7  ;;  %v1211_v13 = vmul.f32 %v12252_v50, %v12243_v11  ;;  %v1160_v25 = vadd.f32 %v1122_v12, %v1071_v62  ;;  %v12302_v55 = vadd.f32 %v1124_v29, %v1073_v35  ;;  %v12314_v62 = vunpack.i.h.bf16 %v11316_v5 }
  0xd4   : > { %17284 = vst [vmem:[#allocation26_spill] sm:$0xff] %v12291_v9  ;;  %17285 = vst [vmem:[#allocation27_spill] sm:$0xff] %v12300_v44  ;;  %v12308_v23 = vadd.f32 %v1123_v10, %v1072_v57  ;;  %v1040_v38 = vmul.f32 %v12284_v7, %v12160_v2  ;;  %v12318_v41 = vmul.f32 %v12252_v50, %v11937_v60 }
  0xd5   : > { %17286 = vst [vmem:[#allocation28_spill] sm:$0xff] %v12304_v31  ;;  %17287 = vst [vmem:[#allocation29_spill] sm:$0xff] %v12306_v54  ;;  %v12310_v33 = vadd.f32 %v1211_v13, %v1160_v25  ;;  %v12322_v12 = vmul.f32 %v12252_v50, %v11942_v61  ;;  %v1079_v24 = vadd.f32 %v1041_v53, %v12055_v17  ;;  %v11311_v53 = vpop.permute.xlu0 %11310  ;;  %v11326_v31 = vpop.permute.xlu1 %11325 }
  0xd6   : > { %17289 = vst [vmem:[#allocation31_spill] sm:$0xff] %v12314_v62  ;;  %17290 = vst [vmem:[#allocation32_spill] sm:$0xff] %v12318_v41  ;;  %v12331_v32 = vmul.f32 %v12254_v56, %v11942_v61  ;;  %v1129_v57 = vmul.f32 %v12266_v0, %v12178_v37  ;;  %v1078_v25 = vadd.f32 %v1040_v38, %v12047_v8 }
  0xd7   : > { %17288 = vst [vmem:[#allocation30_spill] sm:$0xff] %v12310_v33  ;;  %17291 = vst [vmem:[#allocation33_spill] sm:$0xff] %v12322_v12  ;;  %v1039_v29 = vmul.f32 %v12291_v9, %v12160_v2  ;;  %v12340_v13 = vmul.f32 %v12266_v0, %v12243_v11  ;;  %v12344_v35 = vmul.f32 %v12266_v0, %v11937_v60 }
  0xd8   : > { %17292 = vst [vmem:[#allocation34_spill] sm:$0xff] %v12326_v45  ;;  %17293 = vst [vmem:[#allocation35_spill] sm:$0xff] %v12331_v32  ;;  %v1128_v17 = vmul.f32 %v12284_v7, %v12178_v37  ;;  %v1038_v10 = vmul.f32 %v12306_v54, %v12160_v2  ;;  %v1167_v44 = vadd.f32 %v1129_v57, %v1078_v25 }
  0xd9   : > { %17294 = vst [vmem:[#allocation36_spill] sm:$0xff] %v12344_v35  ;;  %v1077_v8 = vadd.f32 %v1039_v29, %v12022_v21  ;;  %v1126_v38 = vmul.f32 %v12306_v54, %v12178_v37  ;;  %v1214_v41 = vmul.f32 %v12306_v54, %v12243_v11  ;;  %v12357_v12 = vmul.f32 %v12266_v0, %v11942_v61 }
  0xda   : > { %v1127_v35 = vmul.f32 %v12291_v9, %v12178_v37  ;;  %v1076_v45 = vadd.f32 %v1038_v10, %v12032_v36  ;;  %v1045_v57 = vmul.f32 %v12314_v62, %v12160_v2  ;;  %v1215_v21 = vmul.f32 %v12291_v9, %v12243_v11 }
  0xdb   : > { %17295 = vst [vmem:[#allocation37_spill] sm:$0xff] %v12357_v12  ;;  %v1164_v25 = vadd.f32 %v1126_v38, %v12228_v3  ;;  %v12367_v29 = vadd.f32 %v1128_v17, %v1077_v8  ;;  %v12369_v33 = vadd.f32 %v1214_v41, %v1163_v20  ;;  %v12373_v0 = vmul.f32 %v12284_v7, %v12243_v11 }
  0xdc   : > { %v12377_v12 = vmul.f32 %v12284_v7, %v11937_v60  ;;  %v12381_v36 = vmul.f32 %v12284_v7, %v11942_v61  ;;  %v12383_v10 = vadd.f32 %v1127_v35, %v1076_v45  ;;  %v12387_v17 = vunpack.i.l.bf16 %v11316_v5  ;;  %v11321_v5 = vpop.permute.xlu0 %11320 }
  0xdd   : > { %17296 = vst [vmem:[#allocation38_spill] sm:$0xff] %v12369_v33  ;;  %v12385_v3 = vadd.f32 %v1215_v21, %v1164_v25  ;;  %v12390_v20 = vadd.f32 %v1045_v57, %v12078_v43  ;;  %v12392_v41 = vunpack.i.h.bf16 %v11311_v53  ;;  %v12396_v8 = vmul.f32 %v12291_v9, %v11937_v60 }
  0xde   : > { %17297 = vst [vmem:[#allocation39_spill] sm:$0xff] %v12377_v12  ;;  %17298 = vst [vmem:[#allocation40_spill] sm:$0xff] %v12381_v36  ;;  %v12400_v38 = vmul.f32 %v12291_v9, %v11942_v61  ;;  %v12404_v45 = vmul.f32 %v12306_v54, %v11937_v60  ;;  %v12406_v35 = vunpack.i.l.bf16 %v11311_v53  ;;  %v12410_v43 = vmul.f32 %v12306_v54, %v11942_v61 }
  0xdf   : > { %17299 = vst [vmem:[#allocation41_spill] sm:$0xff] %v12385_v3  ;;  %17300 = vst [vmem:[#allocation42_spill] sm:$0xff] %v12387_v17  ;;  %v1133_v57 = vmul.f32 %v12314_v62, %v12178_v37  ;;  %v1044_v21 = vmul.f32 %v12387_v17, %v12160_v2  ;;  %v12416_v25 = vunpack.i.h.bf16 %v11326_v31  ;;  %v12420_v36 = vmul.f32 %v12314_v62, %v12243_v11 }
  0xe0   : > { %17301 = vst [vmem:[#allocation43_spill] sm:$0xff] %v12392_v41  ;;  %17302 = vst [vmem:[#allocation44_spill] sm:$0xff] %v12396_v8  ;;  %v12424_v53 = vmul.f32 %v12314_v62, %v11937_v60  ;;  %v12428_v8 = vmul.f32 %v12314_v62, %v11942_v61  ;;  %v1042_v3 = vmul.f32 %v12406_v35, %v12160_v2  ;;  %v12435_v33 = vunpack.i.l.bf16 %v11326_v31 }
  0xe1   : > { %17303 = vst [vmem:[#allocation45_spill] sm:$0xff] %v12400_v38  ;;  %17304 = vst [vmem:[#allocation46_spill] sm:$0xff] %v12404_v45  ;;  %v1043_v38 = vmul.f32 %v12392_v41, %v12160_v2  ;;  %v1082_v45 = vadd.f32 %v1044_v21, %v12071_v34  ;;  %v12437_v7 = vunpack.i.h.bf16 %v11321_v5  ;;  %v1132_v12 = vmul.f32 %v12387_v17, %v12178_v37 }
  0xe2   : > { %17305 = vst [vmem:[#allocation47_spill] sm:$0xff] %v12406_v35  ;;  %17306 = vst [vmem:[#allocation48_spill] sm:$0xff] %v12410_v43  ;;  %v1130_v62 = vmul.f32 %v12406_v35, %v12178_v37  ;;  %v1131_v34 = vmul.f32 %v12392_v41, %v12178_v37  ;;  %v1080_v31 = vadd.f32 %v1042_v3, %v12057_v18 }
  0xe3   : > { %17307 = vst [vmem:[#allocation49_spill] sm:$0xff] %v12416_v25  ;;  %17308 = vst [vmem:[#allocation50_spill] sm:$0xff] %v12424_v53  ;;  %v1081_v53 = vadd.f32 %v1043_v38, %v12039_v52  ;;  %v1171_v47 = vadd.f32 %v1133_v57, %v1082_v45  ;;  %v1049_v21 = vmul.f32 %v12416_v25, %v12160_v2 }
  0xe4   : > { %17309 = vst [vmem:[#allocation51_spill] sm:$0xff] %v12428_v8  ;;  %17310 = vst [vmem:[#allocation52_spill] sm:$0xff] %v12435_v33  ;;  %v1218_v8 = vmul.f32 %v12406_v35, %v12243_v11  ;;  %v1219_v9 = vmul.f32 %v12392_v41, %v12243_v11  ;;  %v1168_v54 = vadd.f32 %v1130_v62, %v1079_v24 }
  0xe5   : > { %17311 = vst [vmem:[#allocation53_spill] sm:$0xff] %v12437_v7  ;;  %v12453_v52 = vadd.f32 %v1132_v12, %v1081_v53  ;;  %v12459_v43 = vmul.f32 %v12387_v17, %v12243_v11  ;;  %v12463_v45 = vmul.f32 %v12387_v17, %v11937_v60  ;;  %v12467_v18 = vmul.f32 %v12387_v17, %v11942_v61 }
  0xe6   : > { %v12455_v38 = vadd.f32 %v1218_v8, %v1167_v44  ;;  %v12469_v3 = vadd.f32 %v1131_v34, %v1080_v31  ;;  %v12473_v62 = vmul.f32 %v12392_v41, %v11937_v60  ;;  %v12475_v44 = vadd.f32 %v1219_v9, %v1168_v54  ;;  %v11336_v8 = vpop.permute.xlu1 %11335 }
  0xe7   : > { %17313 = vst [vmem:[#allocation55_spill] sm:$0xff] %v12463_v45  ;;  %17314 = vst [vmem:[#allocation56_spill] sm:$0xff] %v12467_v18  ;;  %v1048_v12 = vmul.f32 %v12435_v33, %v12160_v2  ;;  %v1087_v24 = vadd.f32 %v1049_v21, %v12099_v19  ;;  %v12482_v57 = vmul.f32 %v12392_v41, %v11942_v61 }
  0xe8   : > { %17312 = vst [vmem:[#allocation54_spill] sm:$0xff] %v12455_v38  ;;  %17315 = vst [vmem:[#allocation57_spill] sm:$0xff] %v12473_v62  ;;  %v12486_v53 = vmul.f32 %v12406_v35, %v11937_v60  ;;  %v12490_v34 = vmul.f32 %v12406_v35, %v11942_v61  ;;  %v1047_v9 = vmul.f32 %v12437_v7, %v12160_v2  ;;  %v12507_v62 = vunpack.i.l.bf16 %v11321_v5 }
  0xe9   : > { %17316 = vst [vmem:[#allocation58_spill] sm:$0xff] %v12475_v44  ;;  %17317 = vst [vmem:[#allocation59_spill] sm:$0xff] %v12482_v57  ;;  %v1137_v54 = vmul.f32 %v12416_v25, %v12178_v37  ;;  %v12498_v19 = vmul.f32 %v12416_v25, %v12243_v11  ;;  %v12502_v31 = vmul.f32 %v12416_v25, %v11937_v60  ;;  %v11331_v44 = vpop.permute.xlu0 %11330 }
  0xea   : > { %17318 = vst [vmem:[#allocation60_spill] sm:$0xff] %v12486_v53  ;;  %17319 = vst [vmem:[#allocation61_spill] sm:$0xff] %v12490_v34  ;;  %v1086_v21 = vadd.f32 %v1048_v12, %v12091_v15  ;;  %v1136_v18 = vmul.f32 %v12435_v33, %v12178_v37  ;;  %v1085_v57 = vadd.f32 %v1047_v9, %v12069_v59  ;;  %v12510_v53 = vunpack.i.h.bf16 %v11336_v8 }
  0xeb   : > { %17320 = vst [vmem:[#allocation62_spill] sm:$0xff] %v12502_v31  ;;  %17321 = vst [vmem:[#allocation63_spill] sm:$0xff] %v12507_v62  ;;  %v12514_v38 = vmul.f32 %v12416_v25, %v11942_v61  ;;  %v12518_v31 = vmul.f32 %v12435_v33, %v12243_v11  ;;  %v12520_v15 = vunpack.i.l.bf16 %v11336_v8  ;;  %v1046_v5 = vmul.f32 %v12507_v62, %v12160_v2 }
  0xec   : > { %17322 = vst [vmem:[#allocation64_spill] sm:$0xff] %v12510_v53  ;;  %v1175_v17 = vadd.f32 %v1137_v54, %v1086_v21  ;;  %v1134_v59 = vmul.f32 %v12507_v62, %v12178_v37  ;;  %v12526_v12 = vadd.f32 %v1136_v18, %v1085_v57  ;;  %v1222_v9 = vmul.f32 %v12507_v62, %v12243_v11 }
  0xed   : > { %17323 = vst [vmem:[#allocation65_spill] sm:$0xff] %v12514_v38  ;;  %17324 = vst [vmem:[#allocation66_spill] sm:$0xff] %v12520_v15  ;;  %v12532_v54 = vmul.f32 %v12435_v33, %v11937_v60  ;;  %v1135_v21 = vmul.f32 %v12437_v7, %v12178_v37  ;;  %v1053_v8 = vmul.f32 %v12510_v53, %v12160_v2  ;;  %v12538_v25 = vunpack.i.h.bf16 %v11331_v44  ;;  %v11346_v38 = vpop.permute.xlu1 %11345 }
  0xee   : > { %v1223_v18 = vmul.f32 %v12437_v7, %v12243_v11  ;;  %v1084_v57 = vadd.f32 %v1046_v5, %v12074_v40  ;;  %v1172_v45 = vadd.f32 %v1134_v59, %v12390_v20  ;;  %v12544_v41 = vadd.f32 %v1222_v9, %v1171_v47  ;;  %v11341_v9 = vpop.permute.xlu0 %11340 }
  0xef   : > { %17325 = vst [vmem:[#allocation67_spill] sm:$0xff] %v12532_v54  ;;  %17326 = vst [vmem:[#allocation68_spill] sm:$0xff] %v12538_v25  ;;  %v12548_v54 = vmul.f32 %v12435_v33, %v11942_v61  ;;  %v1052_v35 = vmul.f32 %v12520_v15, %v12160_v2  ;;  %v12553_v34 = vadd.f32 %v1053_v8, %v12120_v46  ;;  %v12555_v50 = vunpack.i.l.bf16 %v11331_v44 }
  0xf0   : > { %17327 = vst [vmem:[#allocation69_spill] sm:$0xff] %v12544_v41  ;;  %v12559_v56 = vmul.f32 %v12437_v7, %v11937_v60  ;;  %v12563_v40 = vmul.f32 %v12437_v7, %v11942_v61  ;;  %v12565_v47 = vadd.f32 %v1135_v21, %v1084_v57  ;;  %v12567_v20 = vadd.f32 %v1223_v18, %v1172_v45 }
  0xf1   : > { %17328 = vst [vmem:[#allocation70_spill] sm:$0xff] %v12548_v54  ;;  %17329 = vst [vmem:[#allocation71_spill] sm:$0xff] %v12555_v50  ;;  %v12571_v5 = vmul.f32 %v12507_v62, %v11937_v60  ;;  %v1141_v46 = vmul.f32 %v12510_v53, %v12178_v37  ;;  %v1090_v44 = vadd.f32 %v1052_v35, %v12113_v51 }
  0xf2   : > { %17330 = vst [vmem:[#allocation72_spill] sm:$0xff] %v12559_v56  ;;  %17331 = vst [vmem:[#allocation73_spill] sm:$0xff] %v12563_v40  ;;  %v1051_v59 = vmul.f32 %v12538_v25, %v12160_v2  ;;  %v12580_v8 = vmul.f32 %v12507_v62, %v11942_v61  ;;  %v12584_v45 = vmul.f32 %v12510_v53, %v12243_v11  ;;  %v11356_v56 = vpop.permute.xlu1 %11355 }
  0xf3   : > { %17332 = vst [vmem:[#allocation74_spill] sm:$0xff] %v12567_v20  ;;  %17333 = vst [vmem:[#allocation75_spill] sm:$0xff] %v12571_v5  ;;  %v12588_v21 = vmul.f32 %v12510_v53, %v11937_v60  ;;  %v1140_v18 = vmul.f32 %v12520_v15, %v12178_v37  ;;  %v1179_v51 = vadd.f32 %v1141_v46, %v1090_v44  ;;  %v12603_v20 = vunpack.i.h.bf16 %v11346_v38 }
  0xf4   : > { %17334 = vst [vmem:[#allocation76_spill] sm:$0xff] %v12580_v8  ;;  %v1050_v35 = vmul.f32 %v12555_v50, %v12160_v2  ;;  %v1089_v57 = vadd.f32 %v1051_v59, %v12094_v1  ;;  %v1138_v54 = vmul.f32 %v12555_v50, %v12178_v37  ;;  %v1139_v40 = vmul.f32 %v12538_v25, %v12178_v37 }
  0xf5   : > { %17335 = vst [vmem:[#allocation77_spill] sm:$0xff] %v12588_v21  ;;  %v1227_v5 = vmul.f32 %v12538_v25, %v12243_v11  ;;  %v1226_v21 = vmul.f32 %v12555_v50, %v12243_v11  ;;  %17336 = vst [vmem:[#allocation78_spill] sm:$0xff] %v12603_v20  ;;  %v12608_v1 = vunpack.i.l.bf16 %v11346_v38  ;;  %v12612_v59 = vmul.f32 %v12510_v53, %v11942_v61 }
  0xf6   : > { %v1088_v46 = vadd.f32 %v1050_v35, %v12101_v22  ;;  %v1176_v44 = vadd.f32 %v1138_v54, %v1087_v24  ;;  %v12606_v41 = vadd.f32 %v1140_v18, %v1089_v57  ;;  %v12616_v33 = vmul.f32 %v12520_v15, %v12243_v11  ;;  %v11351_v18 = vpop.permute.xlu0 %11350 }
  0xf7   : > { %17337 = vst [vmem:[#allocation79_spill] sm:$0xff] %v12608_v1  ;;  %17338 = vst [vmem:[#allocation80_spill] sm:$0xff] %v12612_v59  ;;  %v12618_v7 = vadd.f32 %v1226_v21, %v1175_v17  ;;  %v1057_v62 = vmul.f32 %v12603_v20, %v12160_v2  ;;  %v12624_v22 = vmul.f32 %v12520_v15, %v11937_v60 }
  0xf8   : > { %v12628_v38 = vmul.f32 %v12520_v15, %v11942_v61  ;;  %v12630_v24 = vadd.f32 %v1139_v40, %v1088_v46  ;;  %v12632_v54 = vadd.f32 %v1227_v5, %v1176_v44  ;;  %v12636_v17 = vmul.f32 %v12538_v25, %v11937_v60 }
  0xf9   : > { %17339 = vst [vmem:[#allocation81_spill] sm:$0xff] %v12618_v7  ;;  %17340 = vst [vmem:[#allocation82_spill] sm:$0xff] %v12624_v22  ;;  %v12640_v21 = vmul.f32 %v12538_v25, %v11942_v61  ;;  %v1056_v35 = vmul.f32 %v12608_v1, %v12160_v2  ;;  %v12645_v57 = vadd.f32 %v1057_v62, %v12140_v39  ;;  %v12655_v46 = vunpack.i.h.bf16 %v11341_v9 }
  0xfa   : > { %17341 = vst [vmem:[#allocation83_spill] sm:$0xff] %v12628_v38  ;;  %17342 = vst [vmem:[#allocation84_spill] sm:$0xff] %v12632_v54  ;;  %v12649_v40 = vmul.f32 %v12555_v50, %v11937_v60  ;;  %v12653_v5 = vmul.f32 %v12555_v50, %v11942_v61  ;;  %v12657_v44 = vunpack.i.l.bf16 %v11341_v9  ;;  %v11366_v38 = vpop.permute.xlu1 %11365  ;;  %v12663_v39 = vmul.f32 %v12603_v20, %v12243_v11 }
  0xfb   : > { %17343 = vst [vmem:[#allocation85_spill] sm:$0xff] %v12636_v17  ;;  %17344 = vst [vmem:[#allocation86_spill] sm:$0xff] %v12640_v21  ;;  %v1145_v17 = vmul.f32 %v12603_v20, %v12178_v37  ;;  %v1094_v62 = vadd.f32 %v1056_v35, %v12133_v48  ;;  %v12666_v21 = vunpack.i.h.bf16 %v11356_v56  ;;  %v12674_v9 = vmul.f32 %v12603_v20, %v11942_v61 }
  0xfc   : > { %17345 = vst [vmem:[#allocation87_spill] sm:$0xff] %v12649_v40  ;;  %17346 = vst [vmem:[#allocation88_spill] sm:$0xff] %v12653_v5  ;;  %v12670_v40 = vmul.f32 %v12603_v20, %v11937_v60  ;;  %v1144_v54 = vmul.f32 %v12608_v1, %v12178_v37  ;;  %v1055_v7 = vmul.f32 %v12655_v46, %v12160_v2  ;;  %v12684_v15 = vunpack.i.l.bf16 %v11356_v56 }
  0xfd   : > { %17347 = vst [vmem:[#allocation89_spill] sm:$0xff] %v12655_v46  ;;  %17348 = vst [vmem:[#allocation90_spill] sm:$0xff] %v12657_v44  ;;  %v1183_v53 = vadd.f32 %v1145_v17, %v1094_v62  ;;  %v1054_v48 = vmul.f32 %v12657_v44, %v12160_v2  ;;  %v1142_v35 = vmul.f32 %v12657_v44, %v12178_v37 }
  0xfe   : > { %17349 = vst [vmem:[#allocation91_spill] sm:$0xff] %v12666_v21  ;;  %17350 = vst [vmem:[#allocation92_spill] sm:$0xff] %v12670_v40  ;;  %v1143_v60 = vmul.f32 %v12655_v46, %v12178_v37  ;;  %v1093_v61 = vadd.f32 %v1055_v7, %v12106_v42  ;;  %v1230_v20 = vmul.f32 %v12657_v44, %v12243_v11  ;;  %v12691_v40 = vunpack.i.h.bf16 %v11351_v18  ;;  %v12706_v42 = vld [vmem:[%s17157_s1] ss:$0 sm:$0xff] }
  0xff   : > { %17351 = vst [vmem:[#allocation93_spill] sm:$0xff] %v12674_v9  ;;  %17352 = vst [vmem:[#allocation94_spill] sm:$0xff] %v12684_v15  ;;  %v11361_v9 = vpop.permute.xlu0 %11360  ;;  %v1231_v17 = vmul.f32 %v12655_v46, %v12243_v11  ;;  %v1092_v62 = vadd.f32 %v1054_v48, %v12122_v14  ;;  %v1180_v59 = vadd.f32 %v1142_v35, %v12553_v34  ;;  %v12716_v34 = vpop.permute.xlu1 %11375  ;;  %v12721_v48 = vld [vmem:[%s17157_s1 + $0x1] ss:$0 sm:$0xff] }
 0x100   : > { %17353 = vst [vmem:[#allocation95_spill] sm:$0xff] %v12691_v40  ;;  %v1061_v56 = vmul.f32 %v12666_v21, %v12160_v2  ;;  %v12701_v22 = vmul.f32 %v12608_v1, %v12243_v11  ;;  %v12710_v7 = vmul.f32 %v12706_v42, %v12608_v1  ;;  %v12712_v25 = vadd.f32 %v1144_v54, %v1093_v61 }
 0x101   : > { %v12714_v14 = vadd.f32 %v1230_v20, %v1179_v51  ;;  %v12725_v35 = vmul.f32 %v12721_v48, %v12608_v1  ;;  %v12727_v50 = vadd.f32 %v1143_v60, %v1092_v62  ;;  %v12729_v5 = vadd.f32 %v1231_v17, %v1180_v59 }
 0x102   : > { %17354 = vst [vmem:[#allocation96_spill] sm:$0xff] %v12710_v7  ;;  %v1060_v54 = vmul.f32 %v12684_v15, %v12160_v2  ;;  %v12735_v20 = vmul.f32 %v12706_v42, %v12655_v46  ;;  %v12739_v51 = vmul.f32 %v12721_v48, %v12655_v46  ;;  %v12743_v61 = vmul.f32 %v12706_v42, %v12657_v44 }
 0x103   : > { %17355 = vst [vmem:[#allocation97_spill] sm:$0xff] %v12714_v14  ;;  %17356 = vst [vmem:[#allocation98_spill] sm:$0xff] %v12725_v35  ;;  %v1099_v60 = vadd.f32 %v1061_v56, %v12162_v63  ;;  %v12748_v59 = vmul.f32 %v12721_v48, %v12657_v44  ;;  %v1149_v17 = vmul.f32 %v12666_v21, %v12178_v37  ;;  %v12765_v56 = vunpack.i.l.bf16 %v11351_v18 }
 0x104   : > { %17357 = vst [vmem:[#allocation99_spill] sm:$0xff] %v12729_v5  ;;  %17358 = vst [vmem:[#allocation100_spill] sm:$0xff] %v12735_v20  ;;  %v1098_v62 = vadd.f32 %v1060_v54, %v12151_v26  ;;  %v1059_v35 = vmul.f32 %v12691_v40, %v12160_v2  ;;  %v12757_v20 = vmul.f32 %v12666_v21, %v12243_v11  ;;  %v12770_v54 = vunpack.i.h.bf16 %v11366_v38 }
 0x105   : > { %17359 = vst [vmem:[#allocation101_spill] sm:$0xff] %v12739_v51  ;;  %17360 = vst [vmem:[#allocation102_spill] sm:$0xff] %v12743_v61  ;;  %v12761_v51 = vmul.f32 %v12706_v42, %v12666_v21  ;;  %v1148_v63 = vmul.f32 %v12684_v15, %v12178_v37  ;;  %v12767_v61 = vpop.permute.xlu0 %11370  ;;  %v12772_v14 = vunpack.i.l.bf16 %v11366_v38  ;;  %v12776_v1 = vmul.f32 %v12721_v48, %v12666_v21 }
 0x106   : > { %17361 = vst [vmem:[#allocation103_spill] sm:$0xff] %v12748_v59  ;;  %17363 = vst [vmem:[#allocation105_spill] sm:$0xff] %v12765_v56  ;;  %v1187_v5 = vadd.f32 %v1149_v17, %v1098_v62  ;;  %v1097_v26 = vadd.f32 %v1059_v35, %v12131_v30  ;;  %v1146_v18 = vmul.f32 %v12765_v56, %v12178_v37  ;;  %v12784_v17 = vpop.permute.xlu1 %11385 }
 0x107   : > { %17362 = vst [vmem:[#allocation104_spill] sm:$0xff] %v12761_v51  ;;  %17364 = vst [vmem:[#allocation106_spill] sm:$0xff] %v12770_v54  ;;  %v1058_v51 = vmul.f32 %v12765_v56, %v12160_v2  ;;  %v1234_v7 = vmul.f32 %v12765_v56, %v12243_v11  ;;  %v12788_v30 = vmul.f32 %v12684_v15, %v12243_v11 }
 0x108   : > { %17365 = vst [vmem:[#allocation107_spill] sm:$0xff] %v12772_v14  ;;  %17366 = vst [vmem:[#allocation108_spill] sm:$0xff] %v12776_v1  ;;  %v1147_v38 = vmul.f32 %v12691_v40, %v12178_v37  ;;  %v12792_v35 = vadd.f32 %v1148_v63, %v1097_v26  ;;  %v1065_v62 = vmul.f32 %v12770_v54, %v12160_v2  ;;  %v17367_v1 = vld [vmem:[#allocation5_spill] sm:$0xff] }
 0x109   : > { %v1235_v21 = vmul.f32 %v12691_v40, %v12243_v11  ;;  %v1096_v46 = vadd.f32 %v1058_v51, %v17367_v1  ;;  %v1184_v44 = vadd.f32 %v1146_v18, %v12645_v57  ;;  %v12800_v59 = vadd.f32 %v1234_v7, %v1183_v53  ;;  %v12827_v51 = vpop.permute.xlu0 %11380 }
 0x10a   : > { %v12804_v8 = vmul.f32 %v12706_v42, %v12684_v15  ;;  %v12808_v63 = vmul.f32 %v12721_v48, %v12684_v15  ;;  %v1064_v26 = vmul.f32 %v12772_v14, %v12160_v2  ;;  %v12813_v32 = vadd.f32 %v1065_v62, %v12197_v6 }
 0x10b   : > { %17368 = vst [vmem:[#allocation5_spill] sm:$0xff] %v12800_v59  ;;  %v12817_v1 = vmul.f32 %v12706_v42, %v12691_v40  ;;  %v12821_v53 = vmul.f32 %v12721_v48, %v12691_v40  ;;  %v12823_v57 = vadd.f32 %v1147_v38, %v1096_v46  ;;  %v12825_v7 = vadd.f32 %v1235_v21, %v1184_v44  ;;  %v12852_v38 = vpop.permute.xlu1 %11395 }
 0x10c   : > { %17369 = vst [vmem:[#allocation109_spill] sm:$0xff] %v12804_v8  ;;  %17370 = vst [vmem:[#allocation110_spill] sm:$0xff] %v12808_v63  ;;  %v12831_v18 = vmul.f32 %v12706_v42, %v12765_v56  ;;  %v1153_v6 = vmul.f32 %v12770_v54, %v12178_v37  ;;  %v1102_v62 = vadd.f32 %v1064_v26, %v12186_v58  ;;  %v12836_v63 = vunpack.i.h.bf16 %v11361_v9 }
 0x10d   : > { %17371 = vst [vmem:[#allocation111_spill] sm:$0xff] %v12817_v1  ;;  %17372 = vst [vmem:[#allocation112_spill] sm:$0xff] %v12821_v53  ;;  %v12840_v1 = vmul.f32 %v12721_v48, %v12765_v56  ;;  %v12844_v21 = vmul.f32 %v12770_v54, %v12243_v11  ;;  %v12848_v46 = vmul.f32 %v12706_v42, %v12770_v54  ;;  %v12850_v44 = vunpack.i.l.bf16 %v11361_v9  ;;  %v12884_v56 = vpop.permute.xlu0 %11390 }
 0x10e   : > { %17373 = vst [vmem:[#allocation113_spill] sm:$0xff] %v12825_v7  ;;  %17374 = vst [vmem:[#allocation114_spill] sm:$0xff] %v12831_v18  ;;  %v12856_v58 = vmul.f32 %v12721_v48, %v12770_v54  ;;  %v1152_v26 = vmul.f32 %v12772_v14, %v12178_v37  ;;  %v1191_v53 = vadd.f32 %v1153_v6, %v1102_v62  ;;  %v11378_v62 = vunpack.i.h.bf16 %v12716_v34 }
 0x10f   : > { %17375 = vst [vmem:[#allocation115_spill] sm:$0xff] %v12836_v63  ;;  %17376 = vst [vmem:[#allocation116_spill] sm:$0xff] %v12840_v1  ;;  %v1063_v18 = vmul.f32 %v12836_v63, %v12160_v2  ;;  %v12864_v7 = vmul.f32 %v12772_v14, %v12243_v11  ;;  %v12868_v9 = vmul.f32 %v12706_v42, %v12772_v14  ;;  %v11377_v59 = vunpack.i.l.bf16 %v12716_v34 }
 0x110   : > { %17377 = vst [vmem:[#allocation117_spill] sm:$0xff] %v12844_v21  ;;  %17378 = vst [vmem:[#allocation118_spill] sm:$0xff] %v12848_v46  ;;  %v1062_v46 = vmul.f32 %v12850_v44, %v12160_v2  ;;  %v1150_v54 = vmul.f32 %v12850_v44, %v12178_v37  ;;  %v1238_v6 = vmul.f32 %v12850_v44, %v12243_v11  ;;  %v12895_v34 = vunpack.i.h.bf16 %v12767_v61 }
 0x111   : > { %17379 = vst [vmem:[#allocation119_spill] sm:$0xff] %v12850_v44  ;;  %17380 = vst [vmem:[#allocation120_spill] sm:$0xff] %v12856_v58  ;;  %v1101_v58 = vadd.f32 %v1063_v18, %v12154_v28  ;;  %v1151_v15 = vmul.f32 %v12836_v63, %v12178_v37  ;;  %v12888_v28 = vmul.f32 %v12721_v48, %v12772_v14 }
 0x112   : > { %17381 = vst [vmem:[#allocation121_spill] sm:$0xff] %v12868_v9  ;;  %v1239_v9 = vmul.f32 %v12836_v63, %v12243_v11  ;;  %v1100_v8 = vadd.f32 %v1062_v46, %v12164_v16  ;;  %v1188_v40 = vadd.f32 %v1150_v54, %v1099_v60  ;;  %v12892_v1 = vadd.f32 %v1238_v6, %v1187_v5  ;;  %v12909_v46 = vpop.permute.xlu1 %11405 }
 0x113   : > { %17382 = vst [vmem:[#allocation122_spill] sm:$0xff] %v12888_v28  ;;  %v12890_v18 = vadd.f32 %v1152_v26, %v1101_v58  ;;  %17384 = vst [vmem:[#allocation124_spill] sm:$0xff] %v12895_v34  ;;  %v12899_v21 = vmul.f32 %v12706_v42, %v12836_v63  ;;  %v12903_v16 = vmul.f32 %v12721_v48, %v12836_v63  ;;  %v12940_v28 = vunpack.i.l.bf16 %v12767_v61 }
 0x114   : > { %17383 = vst [vmem:[#allocation123_spill] sm:$0xff] %v12892_v1  ;;  %v12905_v60 = vadd.f32 %v1151_v15, %v1100_v8  ;;  %v12907_v54 = vadd.f32 %v1239_v9, %v1188_v40  ;;  %v12913_v5 = vmul.f32 %v12706_v42, %v12850_v44  ;;  %v12917_v58 = vmul.f32 %v12721_v48, %v12850_v44  ;;  %v12925_v15 = vld [vmem:[%s17157_s1 + $0x2] ss:$0 sm:$0xff] }
 0x115   : > { %17385 = vst [vmem:[#allocation125_spill] sm:$0xff] %v12899_v21  ;;  %17386 = vst [vmem:[#allocation126_spill] sm:$0xff] %v12903_v16  ;;  %v12920_v26 = vmul.f32 %v11378_v62, %v12243_v11  ;;  %v12928_v8 = vmul.f32 %v12925_v15, %v11378_v62  ;;  %v12931_v40 = vmul.f32 %v11377_v59, %v12178_v37 }
 0x116   : > { %17387 = vst [vmem:[#allocation127_spill] sm:$0xff] %v12907_v54  ;;  %17388 = vst [vmem:[#allocation128_spill] sm:$0xff] %v12913_v5  ;;  %v12934_v9 = vmul.f32 %v11377_v59, %v12243_v11  ;;  %v12937_v6 = vmul.f32 %v12721_v48, %v11377_v59  ;;  %v12947_v21 = vmul.f32 %v12895_v34, %v12160_v2  ;;  %v12973_v5 = vunpack.i.l.bf16 %v12784_v17 }
 0x117   : > { %17389 = vst [vmem:[#allocation129_spill] sm:$0xff] %v12917_v58  ;;  %17390 = vst [vmem:[#allocation130_spill] sm:$0xff] %v12920_v26  ;;  %v12943_v26 = vmul.f32 %v12925_v15, %v11377_v59  ;;  %v1155_v62 = vmul.f32 %v12895_v34, %v12178_v37  ;;  %v1242_v61 = vmul.f32 %v12940_v28, %v12243_v11  ;;  %v12961_v59 = vld [vmem:[%s17157_s1 + $0x6] ss:$0 sm:$0xff]  ;;  %v11382_v54 = vunpack.i.l.bf16 %v12827_v51  ;;  %v12982_v58 = vpop.permute.xlu1 %11415 }
 0x118   : > { %17391 = vst [vmem:[#allocation131_spill] sm:$0xff] %v12928_v8  ;;  %17392 = vst [vmem:[#allocation132_spill] sm:$0xff] %v12931_v40  ;;  %v11383_v8 = vunpack.i.h.bf16 %v12827_v51  ;;  %v1066_v40 = vmul.f32 %v12940_v28, %v12160_v2  ;;  %v12970_v16 = vmul.f32 %v12721_v48, %v12895_v34  ;;  %v1208_v44 = vmul.f32 %v12168_v49, %v12243_v11 }
 0x119   : > { %17393 = vst [vmem:[#allocation133_spill] sm:$0xff] %v12934_v9  ;;  %17394 = vst [vmem:[#allocation134_spill] sm:$0xff] %v12937_v6  ;;  %v1154_v6 = vmul.f32 %v12940_v28, %v12178_v37  ;;  %v12964_v9 = vunpack.i.h.bf16 %v12784_v17  ;;  %v12978_v63 = vadd.f32 %v1242_v61, %v1191_v53  ;;  %v12991_v17 = vld [vmem:[%s17157_s1 + $0x7] ss:$0 sm:$0xff] }
 0x11a   : > { %17395 = vst [vmem:[#allocation135_spill] sm:$0xff] %v12940_v28  ;;  %17396 = vst [vmem:[#allocation136_spill] sm:$0xff] %v12943_v26  ;;  %v1243_v26 = vmul.f32 %v12895_v34, %v12243_v11  ;;  %v1104_v1 = vadd.f32 %v1066_v40, %v12199_v27  ;;  %v12986_v34 = vmul.f32 %v12706_v42, %v12940_v28  ;;  %v17406_v61 = vld [vmem:[#allocation15_spill] sm:$0xff] }
 0x11b   : > { %17397 = vst [vmem:[#allocation137_spill] sm:$0xff] %v12947_v21  ;;  %17398 = vst [vmem:[#allocation138_spill] sm:$0xff] %v12964_v9  ;;  %v11401_v21 = vpop.permute.xlu0 %11400  ;;  %v1192_v14 = vadd.f32 %v1154_v6, %v12813_v32  ;;  %v1209_v27 = vmul.f32 %v12166_v4, %v12243_v11  ;;  %v1971_v32 = vmul.f32 %v12925_v15, %v12168_v49  ;;  %v17407_v11 = vld [vmem:[#allocation12_spill] sm:$0xff] }
 0x11c   : > { %17399 = vst [vmem:[#allocation139_spill] sm:$0xff] %v12970_v16  ;;  %17400 = vst [vmem:[#allocation140_spill] sm:$0xff] %v12978_v63  ;;  %v1483_v53 = vmul.f32 %v11383_v8, %v12961_v59  ;;  %v12998_v51 = vadd.f32 %v1155_v62, %v1104_v1  ;;  %v13004_v42 = vmul.f32 %v12721_v48, %v12940_v28  ;;  %v17408_v63 = vld [vmem:[#allocation19_spill] sm:$0xff]  ;;  %v13021_v48 = vld [vmem:[%s17157_s1 + $0x8] ss:$0 sm:$0xff]  ;;  %v13043_v28 = vunpack.i.h.bf16 %v12884_v56 }
 0x11d   : > { %17401 = vst [vmem:[#allocation141_spill] sm:$0xff] %v12986_v34  ;;  %v13000_v40 = vadd.f32 %v1243_v26, %v1192_v14  ;;  %v13008_v6 = vmul.f32 %v12964_v9, %v12961_v59  ;;  %v1246_v16 = vadd.f32 %v1208_v44, %v17406_v61  ;;  %v1247_v34 = vadd.f32 %v1209_v27, %v17407_v11 }
 0x11e   : > { %17402 = vst [vmem:[#allocation142_spill] sm:$0xff] %v12998_v51  ;;  %17404 = vst [vmem:[#allocation144_spill] sm:$0xff] %v13004_v42  ;;  %v1482_v49 = vmul.f32 %v11382_v54, %v12961_v59  ;;  %v2009_v4 = vadd.f32 %v1971_v32, %v17408_v63  ;;  %v13016_v14 = vmul.f32 %v12964_v9, %v12991_v17  ;;  %v13026_v44 = vunpack.i.h.bf16 %v12852_v38  ;;  %v17410_v32 = vld [vmem:[#allocation23_spill] sm:$0xff] }
 0x11f   : > { %17403 = vst [vmem:[#allocation143_spill] sm:$0xff] %v13000_v40  ;;  %17405 = vst [vmem:[#allocation145_spill] sm:$0xff] %v13008_v6  ;;  %v1571_v1 = vmul.f32 %v11383_v8, %v12991_v17  ;;  %v2047_v26 = vmul.f32 %v11382_v54, %v12160_v2  ;;  %v11411_v62 = vpop.permute.xlu0 %11410  ;;  %v1521_v61 = vadd.f32 %v1483_v53, %v1247_v34  ;;  %v13029_v63 = vunpack.i.l.bf16 %v12884_v56  ;;  %v13045_v34 = vpop.permute.xlu1 %11425 }
 0x120   : > { %17409 = vst [vmem:[#allocation15_spill] sm:$0xff] %v13016_v14  ;;  %v1520_v27 = vadd.f32 %v1482_v49, %v1246_v16  ;;  %v1250_v11 = vadd.f32 %v17410_v32, %v12308_v23  ;;  %v13035_v51 = vmul.f32 %v12973_v5, %v12961_v59  ;;  %v1572_v40 = vmul.f32 %v12973_v5, %v12991_v17 }
 0x121   : > { %v13040_v54 = vunpack.i.l.bf16 %v12852_v38  ;;  %v1660_v16 = vmul.f32 %v12973_v5, %v13021_v48  ;;  %v1661_v23 = vmul.f32 %v12964_v9, %v13021_v48  ;;  %v2085_v49 = vadd.f32 %v2047_v26, %v2009_v4 }
 0x122   : > { %17411 = vst [vmem:[#allocation12_spill] sm:$0xff] %v13035_v51  ;;  %v1609_v53 = vadd.f32 %v1571_v1, %v1520_v27  ;;  %v13052_v32 = vmul.f32 %v11383_v8, %v12160_v2  ;;  %v2123_v42 = vmul.f32 %v11383_v8, %v12178_v37  ;;  %v1610_v38 = vadd.f32 %v1572_v40, %v1521_v61  ;;  %v17414_v51 = vld [vmem:[#allocation16_spill] sm:$0xff]  ;;  %v13070_v2 = vld [vmem:[%s17158_s2] ss:$0 sm:$0xff] }
 0x123   : > { %v13057_v56 = vmul.f32 %v13026_v44, %v12961_v59  ;;  %v13061_v6 = vmul.f32 %v13026_v44, %v12991_v17  ;;  %v1251_v9 = vadd.f32 %v17414_v51, %v12302_v55  ;;  %v1486_v4 = vmul.f32 %v13029_v63, %v12961_v59  ;;  %v11421_v51 = vpop.permute.xlu0 %11420 }
 0x124   : > { %v1698_v14 = vadd.f32 %v1660_v16, %v1609_v53  ;;  %v13074_v37 = vmul.f32 %v13026_v44, %v13021_v48  ;;  %v13078_v8 = vmul.f32 %v13040_v54, %v12961_v59  ;;  %v1487_v40 = vmul.f32 %v13043_v28, %v12961_v59 }
 0x125   : > { %17412 = vst [vmem:[#allocation19_spill] sm:$0xff] %v13057_v56  ;;  %17413 = vst [vmem:[#allocation23_spill] sm:$0xff] %v13061_v6  ;;  %v13082_v55 = vunpack.i.h.bf16 %v11401_v21  ;;  %v13084_v1 = vadd.f32 %v2123_v42, %v2085_v49  ;;  %v13088_v26 = vmul.f32 %v13040_v54, %v12991_v17  ;;  %v13091_v27 = vunpack.i.h.bf16 %v12909_v46  ;;  %v13109_v49 = vpop.permute.xlu1 %11435 }
 0x126   : > { %17415 = vst [vmem:[#allocation16_spill] sm:$0xff] %v13074_v37  ;;  %17416 = vst [vmem:[#allocation146_spill] sm:$0xff] %v13078_v8  ;;  %v13093_v61 = vunpack.i.l.bf16 %v11401_v21  ;;  %v13095_v16 = vadd.f32 %v1661_v23, %v1610_v38  ;;  %v13099_v53 = vmul.f32 %v13040_v54, %v13021_v48  ;;  %v13103_v6 = vmul.f32 %v13043_v28, %v12991_v17 }
 0x127   : > { %v13107_v42 = vmul.f32 %v13029_v63, %v12991_v17  ;;  %v13112_v56 = vadd.f32 %v13070_v2, %v1698_v14  ;;  %v13114_v21 = vadd.f32 %v1486_v4, %v1250_v11  ;;  %v13117_v23 = vunpack.i.l.bf16 %v12909_v46 }
 0x128   : > { %17417 = vst [vmem:[#allocation147_spill] sm:$0xff] %v13099_v53  ;;  %v1491_v38 = vmul.f32 %v13082_v55, %v12961_v59  ;;  %v13121_v8 = vadd.f32 %v1487_v40, %v1251_v9  ;;  %v1254_v37 = vadd.f32 %v12373_v0, %v12383_v10  ;;  %v1255_v53 = vadd.f32 %v12340_v13, %v12367_v29  ;;  %v11431_v40 = vpop.permute.xlu0 %11430 }
 0x129   : > { %17418 = vst [vmem:[#allocation148_spill] sm:$0xff] %v13107_v42  ;;  %v1490_v14 = vmul.f32 %v13093_v61, %v12961_v59  ;;  %v13131_v11 = vmul.f32 %v13091_v27, %v12961_v59  ;;  %v13135_v46 = vmul.f32 %v13091_v27, %v12991_v17  ;;  %v13138_v9 = vunpack.i.h.bf16 %v12982_v58 }
 0x12a   : > { %v13140_v4 = vunpack.i.h.bf16 %v11411_v62  ;;  %v13144_v10 = vadd.f32 %v1491_v38, %v1255_v53  ;;  %v13146_v13 = vunpack.i.l.bf16 %v11411_v62  ;;  %v1258_v29 = vadd.f32 %v12459_v43, %v12469_v3  ;;  %v11446_v38 = vpop.permute.xlu1 %11445 }
 0x12b   : > { %17419 = vst [vmem:[#allocation149_spill] sm:$0xff] %v13131_v11  ;;  %17420 = vst [vmem:[#allocation150_spill] sm:$0xff] %v13135_v46  ;;  %v13142_v0 = vadd.f32 %v1490_v14, %v1254_v37  ;;  %v13153_v46 = vmul.f32 %v13091_v27, %v13021_v48  ;;  %v13157_v42 = vmul.f32 %v13117_v23, %v12961_v59  ;;  %v13172_v3 = vunpack.i.l.bf16 %v12982_v58 }
 0x12c   : > { %17421 = vst [vmem:[#allocation151_spill] sm:$0xff] %v13144_v10  ;;  %v13161_v37 = vmul.f32 %v13117_v23, %v12991_v17  ;;  %v13165_v62 = vmul.f32 %v13117_v23, %v13021_v48  ;;  %v13169_v43 = vmul.f32 %v13082_v55, %v12991_v17  ;;  %v1495_v53 = vmul.f32 %v13140_v4, %v12961_v59 }
 0x12d   : > { %17422 = vst [vmem:[#allocation152_spill] sm:$0xff] %v13153_v46  ;;  %17423 = vst [vmem:[#allocation153_spill] sm:$0xff] %v13157_v42  ;;  %v13178_v14 = vmul.f32 %v13093_v61, %v12991_v17  ;;  %v13182_v11 = vmul.f32 %v13138_v9, %v12961_v59  ;;  %v1259_v42 = vadd.f32 %v12420_v36, %v12453_v52  ;;  %v13189_v58 = vunpack.i.h.bf16 %v13045_v34 }
 0x12e   : > { %17424 = vst [vmem:[#allocation154_spill] sm:$0xff] %v13161_v37  ;;  %17425 = vst [vmem:[#allocation155_spill] sm:$0xff] %v13165_v62  ;;  %v1494_v46 = vmul.f32 %v13146_v13, %v12961_v59  ;;  %v13191_v62 = vunpack.i.h.bf16 %v11421_v51  ;;  %v13193_v37 = vunpack.i.l.bf16 %v11421_v51  ;;  %v13199_v10 = vmul.f32 %v13138_v9, %v12991_v17 }
 0x12f   : > { %17426 = vst [vmem:[#allocation156_spill] sm:$0xff] %v13169_v43  ;;  %17427 = vst [vmem:[#allocation157_spill] sm:$0xff] %v13178_v14  ;;  %v1262_v14 = vadd.f32 %v12518_v31, %v12565_v47  ;;  %v13203_v36 = vmul.f32 %v13138_v9, %v13021_v48  ;;  %v13211_v43 = vmul.f32 %v13172_v3, %v12961_v59  ;;  %v13222_v47 = vunpack.i.l.bf16 %v13045_v34 }
 0x130   : > { %17428 = vst [vmem:[#allocation158_spill] sm:$0xff] %v13182_v11  ;;  %17429 = vst [vmem:[#allocation159_spill] sm:$0xff] %v13189_v58  ;;  %v13205_v52 = vadd.f32 %v1494_v46, %v1258_v29  ;;  %v13207_v11 = vadd.f32 %v1495_v53, %v1259_v42  ;;  %v13215_v51 = vmul.f32 %v13172_v3, %v12991_v17 }
 0x131   : > { %17430 = vst [vmem:[#allocation160_spill] sm:$0xff] %v13191_v62  ;;  %17431 = vst [vmem:[#allocation161_spill] sm:$0xff] %v13193_v37  ;;  %v13219_v31 = vmul.f32 %v13172_v3, %v13021_v48  ;;  %v13226_v42 = vmul.f32 %v13140_v4, %v12991_v17  ;;  %v1499_v46 = vmul.f32 %v13191_v62, %v12961_v59 }
 0x132   : > { %17432 = vst [vmem:[#allocation162_spill] sm:$0xff] %v13199_v10  ;;  %17433 = vst [vmem:[#allocation163_spill] sm:$0xff] %v13203_v36  ;;  %v11441_v10 = vpop.permute.xlu0 %11440  ;;  %v1263_v29 = vadd.f32 %v12498_v19, %v12526_v12  ;;  %v1498_v53 = vmul.f32 %v13193_v37, %v12961_v59  ;;  %v13240_v34 = vmul.f32 %v13189_v58, %v12961_v59  ;;  %v13243_v36 = vunpack.i.h.bf16 %v13109_v49 }
 0x133   : > { %17434 = vst [vmem:[#allocation164_spill] sm:$0xff] %v13205_v52  ;;  %17435 = vst [vmem:[#allocation165_spill] sm:$0xff] %v13207_v11  ;;  %v13251_v12 = vunpack.i.l.bf16 %v11431_v40  ;;  %v13265_v52 = vmul.f32 %v13222_v47, %v12961_v59 }
 0x134   : > { %17436 = vst [vmem:[#allocation166_spill] sm:$0xff] %v13211_v43  ;;  %17437 = vst [vmem:[#allocation167_spill] sm:$0xff] %v13215_v51  ;;  %v13236_v43 = vmul.f32 %v13146_v13, %v12991_v17  ;;  %v11456_v51 = vpop.permute.xlu1 %11455  ;;  %v13247_v11 = vadd.f32 %v1498_v53, %v1262_v14  ;;  %v13249_v19 = vadd.f32 %v1499_v46, %v1263_v29 }
 0x135   : > { %17438 = vst [vmem:[#allocation168_spill] sm:$0xff] %v13219_v31  ;;  %17439 = vst [vmem:[#allocation169_spill] sm:$0xff] %v13222_v47  ;;  %v13245_v31 = vunpack.i.h.bf16 %v11431_v40  ;;  %v13269_v14 = vmul.f32 %v13222_v47, %v12991_v17  ;;  %v13273_v40 = vmul.f32 %v13222_v47, %v13021_v48  ;;  %v13286_v29 = vmul.f32 %v13193_v37, %v12991_v17  ;;  %v17530_v47 = vld [vmem:[#allocation21_spill] sm:$0xff] }
 0x136   : > { %17440 = vst [vmem:[#allocation170_spill] sm:$0xff] %v13226_v42  ;;  %17441 = vst [vmem:[#allocation171_spill] sm:$0xff] %v13236_v43  ;;  %v1266_v42 = vadd.f32 %v12616_v33, %v12630_v24  ;;  %v13257_v43 = vmul.f32 %v13189_v58, %v12991_v17  ;;  %v13277_v33 = vmul.f32 %v13191_v62, %v12991_v17  ;;  %v13280_v24 = vunpack.i.l.bf16 %v13109_v49 }
 0x137   : > { %17442 = vst [vmem:[#allocation172_spill] sm:$0xff] %v13240_v34  ;;  %17443 = vst [vmem:[#allocation173_spill] sm:$0xff] %v13243_v36  ;;  %v13261_v34 = vmul.f32 %v13189_v58, %v13021_v48  ;;  %v1503_v46 = vmul.f32 %v13245_v31, %v12961_v59  ;;  %v13290_v53 = vmul.f32 %v13243_v36, %v12961_v59  ;;  %v13296_v49 = vunpack.i.h.bf16 %v11446_v38 }
 0x138   : > { %17444 = vst [vmem:[#allocation174_spill] sm:$0xff] %v13245_v31  ;;  %17445 = vst [vmem:[#allocation175_spill] sm:$0xff] %v13247_v11  ;;  %v17528_v11 = vld [vmem:[#allocation48_spill] sm:$0xff] }
 0x139   : > { %17446 = vst [vmem:[#allocation176_spill] sm:$0xff] %v13249_v19  ;;  %17447 = vst [vmem:[#allocation177_spill] sm:$0xff] %v13251_v12  ;;  %v13306_v19 = vmul.f32 %v13243_v36, %v12991_v17 }
 0x13a   : > { %17448 = vst [vmem:[#allocation178_spill] sm:$0xff] %v13257_v43  ;;  %17449 = vst [vmem:[#allocation179_spill] sm:$0xff] %v13261_v34  ;;  %v1267_v43 = vadd.f32 %v12584_v45, %v12606_v41  ;;  %v11451_v34 = vpop.permute.xlu0 %11450  ;;  %v13310_v41 = vmul.f32 %v13243_v36, %v13021_v48 }
 0x13b   : > { %17450 = vst [vmem:[#allocation180_spill] sm:$0xff] %v13265_v52  ;;  %17451 = vst [vmem:[#allocation181_spill] sm:$0xff] %v13269_v14  ;;  %v1502_v52 = vmul.f32 %v13251_v12, %v12961_v59  ;;  %v13300_v14 = vunpack.i.l.bf16 %v11441_v10 }
 0x13c   : > { %17452 = vst [vmem:[#allocation182_spill] sm:$0xff] %v13273_v40  ;;  %17453 = vst [vmem:[#allocation183_spill] sm:$0xff] %v13277_v33  ;;  %v13298_v40 = vunpack.i.h.bf16 %v11441_v10  ;;  %v11466_v33 = vpop.permute.xlu1 %11465  ;;  %v13318_v10 = vmul.f32 %v13280_v24, %v12961_v59 }
 0x13d   : > { %17454 = vst [vmem:[#allocation184_spill] sm:$0xff] %v13280_v24  ;;  %17455 = vst [vmem:[#allocation185_spill] sm:$0xff] %v13286_v29  ;;  %v1270_v29 = vadd.f32 %v12701_v22, %v12727_v50  ;;  %v13312_v45 = vadd.f32 %v1502_v52, %v1266_v42  ;;  %v13322_v50 = vmul.f32 %v13280_v24, %v12991_v17 }
 0x13e   : > { %17456 = vst [vmem:[#allocation186_spill] sm:$0xff] %v13290_v53  ;;  %17457 = vst [vmem:[#allocation187_spill] sm:$0xff] %v13296_v49  ;;  %v13314_v53 = vadd.f32 %v1503_v46, %v1267_v43  ;;  %v13326_v22 = vmul.f32 %v13280_v24, %v13021_v48  ;;  %v13332_v52 = vmul.f32 %v13245_v31, %v12991_v17 }
 0x13f   : > { %17458 = vst [vmem:[#allocation188_spill] sm:$0xff] %v13298_v40  ;;  %17459 = vst [vmem:[#allocation189_spill] sm:$0xff] %v13300_v14  ;;  %v1507_v43 = vmul.f32 %v13298_v40, %v12961_v59  ;;  %v1271_v42 = vadd.f32 %v12663_v39, %v12712_v25  ;;  %v1506_v46 = vmul.f32 %v13300_v14, %v12961_v59  ;;  %v13356_v25 = vunpack.i.l.bf16 %v11451_v34 }
 0x140   : > { %17460 = vst [vmem:[#allocation190_spill] sm:$0xff] %v13306_v19  ;;  %17461 = vst [vmem:[#allocation191_spill] sm:$0xff] %v13310_v41  ;;  %v13328_v19 = vunpack.i.l.bf16 %v11446_v38  ;;  %v13346_v38 = vmul.f32 %v13296_v49, %v12961_v59  ;;  %v13348_v41 = vunpack.i.h.bf16 %v11456_v51  ;;  %v1274_v39 = vadd.f32 %v12788_v30, %v12823_v57 }
 0x141   : > { %17462 = vst [vmem:[#allocation192_spill] sm:$0xff] %v13312_v45  ;;  %17463 = vst [vmem:[#allocation193_spill] sm:$0xff] %v13314_v53  ;;  %v13354_v53 = vadd.f32 %v1507_v43, %v1271_v42  ;;  %v13382_v57 = vmul.f32 %v13298_v40, %v12991_v17  ;;  %v13384_v43 = vunpack.i.l.bf16 %v11456_v51  ;;  %v1510_v51 = vmul.f32 %v13356_v25, %v12961_v59 }
 0x142   : > { %17464 = vst [vmem:[#allocation194_spill] sm:$0xff] %v13318_v10  ;;  %17465 = vst [vmem:[#allocation195_spill] sm:$0xff] %v13322_v50  ;;  %v13342_v10 = vmul.f32 %v13251_v12, %v12991_v17  ;;  %v13352_v50 = vadd.f32 %v1506_v46, %v1270_v29  ;;  %v13370_v29 = vmul.f32 %v13328_v19, %v12961_v59  ;;  %v13388_v46 = vpop.permute.xlu1 %11475 }
 0x143   : > { %17466 = vst [vmem:[#allocation196_spill] sm:$0xff] %v13326_v22  ;;  %17467 = vst [vmem:[#allocation197_spill] sm:$0xff] %v13328_v19  ;;  %v13350_v22 = vunpack.i.h.bf16 %v11451_v34  ;;  %v13374_v34 = vmul.f32 %v13328_v19, %v12991_v17  ;;  %v13378_v30 = vmul.f32 %v13328_v19, %v13021_v48 }
 0x144   : > { %17468 = vst [vmem:[#allocation198_spill] sm:$0xff] %v13332_v52  ;;  %17469 = vst [vmem:[#allocation199_spill] sm:$0xff] %v13342_v10  ;;  %v11461_v52 = vpop.permute.xlu0 %11460  ;;  %v13362_v10 = vmul.f32 %v13296_v49, %v12991_v17 }
 0x145   : > { %17470 = vst [vmem:[#allocation200_spill] sm:$0xff] %v13346_v38  ;;  %17471 = vst [vmem:[#allocation201_spill] sm:$0xff] %v13348_v41  ;;  %v13366_v38 = vmul.f32 %v13296_v49, %v13021_v48  ;;  %v1511_v42 = vmul.f32 %v13350_v22, %v12961_v59 }
 0x146   : > { %17472 = vst [vmem:[#allocation202_spill] sm:$0xff] %v13350_v22  ;;  %17473 = vst [vmem:[#allocation203_spill] sm:$0xff] %v13352_v50  ;;  %v13424_v50 = vmul.f32 %v13384_v43, %v12961_v59 }
 0x147   : > { %17474 = vst [vmem:[#allocation204_spill] sm:$0xff] %v13354_v53  ;;  %17475 = vst [vmem:[#allocation205_spill] sm:$0xff] %v13356_v25  ;;  %v13406_v53 = vunpack.i.l.bf16 %v11461_v52 }
 0x148   : > { %17476 = vst [vmem:[#allocation206_spill] sm:$0xff] %v13362_v10  ;;  %17477 = vst [vmem:[#allocation207_spill] sm:$0xff] %v13366_v38  ;;  %v13392_v10 = vmul.f32 %v13300_v14, %v12991_v17  ;;  %v1275_v38 = vadd.f32 %v12757_v20, %v12792_v35  ;;  %v13418_v20 = vadd.f32 %v1510_v51, %v1274_v39 }
 0x149   : > { %17478 = vst [vmem:[#allocation208_spill] sm:$0xff] %v13370_v29  ;;  %17479 = vst [vmem:[#allocation209_spill] sm:$0xff] %v13374_v34  ;;  %v13396_v29 = vmul.f32 %v13348_v41, %v12961_v59  ;;  %v13404_v34 = vunpack.i.h.bf16 %v11461_v52  ;;  %v13428_v52 = vmul.f32 %v13384_v43, %v12991_v17  ;;  %v13438_v39 = vmul.f32 %v13350_v22, %v12991_v17 }
 0x14a   : > { %17480 = vst [vmem:[#allocation210_spill] sm:$0xff] %v13378_v30  ;;  %17481 = vst [vmem:[#allocation211_spill] sm:$0xff] %v13382_v57  ;;  %v13402_v30 = vunpack.i.h.bf16 %v11466_v33  ;;  %v1278_v57 = vadd.f32 %v12864_v7, %v12905_v60  ;;  %v13420_v35 = vadd.f32 %v1511_v42, %v1275_v38  ;;  %v13432_v7 = vmul.f32 %v13384_v43, %v13021_v48  ;;  %v17498_v42 = vld [vmem:[#allocation117_spill] sm:$0xff] }
 0x14b   : > { %17482 = vst [vmem:[#allocation212_spill] sm:$0xff] %v13384_v43  ;;  %17483 = vst [vmem:[#allocation213_spill] sm:$0xff] %v13388_v46  ;;  %v13434_v60 = vunpack.i.l.bf16 %v11466_v33  ;;  %v1515_v38 = vmul.f32 %v13404_v34, %v12961_v59  ;;  %v1279_v51 = vadd.f32 %v17498_v42, %v12890_v18  ;;  %v17525_v43 = vld [vmem:[#allocation6_spill] sm:$0xff]  ;;  %v13559_v14 = vadd.f32 %v13070_v2, %v13095_v16 }
 0x14c   : > { %17484 = vst [vmem:[#allocation214_spill] sm:$0xff] %v13392_v10  ;;  %17485 = vst [vmem:[#allocation215_spill] sm:$0xff] %v13396_v29  ;;  %v13412_v10 = vmul.f32 %v13348_v41, %v12991_v17  ;;  %v13416_v29 = vmul.f32 %v13348_v41, %v13021_v48  ;;  %v13452_v33 = vmul.f32 %v13402_v30, %v12961_v59 }
 0x14d   : > { %17486 = vst [vmem:[#allocation216_spill] sm:$0xff] %v13402_v30  ;;  %17487 = vst [vmem:[#allocation217_spill] sm:$0xff] %v13404_v34  ;;  %v13463_v18 = vmul.f32 %v13402_v30, %v13021_v48  ;;  %v1972_v22 = vmul.f32 %v12925_v15, %v17525_v43 }
 0x14e   : > { %17488 = vst [vmem:[#allocation218_spill] sm:$0xff] %v13406_v53  ;;  %17489 = vst [vmem:[#allocation219_spill] sm:$0xff] %v13412_v10  ;;  %v11471_v10 = vpop.permute.xlu0 %11470 }
 0x14f   : > { %17490 = vst [vmem:[#allocation220_spill] sm:$0xff] %v13416_v29  ;;  %17491 = vst [vmem:[#allocation221_spill] sm:$0xff] %v13418_v20  ;;  %v13448_v29 = vmul.f32 %v13356_v25, %v12991_v17  ;;  %v13481_v20 = vmul.f32 %v13434_v60, %v13021_v48 }
 0x150   : > { %17492 = vst [vmem:[#allocation222_spill] sm:$0xff] %v13420_v35  ;;  %17493 = vst [vmem:[#allocation223_spill] sm:$0xff] %v13424_v50  ;;  %v1514_v50 = vmul.f32 %v13406_v53, %v12961_v59  ;;  %v11486_v35 = vpop.permute.xlu1 %11485 }
 0x151   : > { %17494 = vst [vmem:[#allocation224_spill] sm:$0xff] %v13428_v52  ;;  %17495 = vst [vmem:[#allocation225_spill] sm:$0xff] %v13432_v7  ;;  %v13456_v7 = vmul.f32 %v13402_v30, %v12991_v17  ;;  %v13459_v52 = vunpack.i.l.bf16 %v13388_v46  ;;  %v17518_v46 = vld [vmem:[#allocation13_spill] sm:$0xff] }
 0x152   : > { %17496 = vst [vmem:[#allocation226_spill] sm:$0xff] %v13434_v60  ;;  %17497 = vst [vmem:[#allocation227_spill] sm:$0xff] %v13438_v39  ;;  %v13465_v42 = vadd.f32 %v1514_v50, %v1278_v57  ;;  %v13467_v39 = vadd.f32 %v1515_v38, %v1279_v51  ;;  %v13485_v50 = vmul.f32 %v13404_v34, %v12991_v17  ;;  %v13492_v51 = vunpack.i.h.bf16 %v11471_v10  ;;  %v17517_v38 = vld [vmem:[#allocation14_spill] sm:$0xff]  ;;  %v17522_v30 = vld [vmem:[#allocation17_spill] sm:$0xff] }
 0x153   : > { %17499 = vst [vmem:[#allocation117_spill] sm:$0xff] %v13448_v29  ;;  %17500 = vst [vmem:[#allocation228_spill] sm:$0xff] %v13452_v33  ;;  %v13469_v29 = vunpack.i.l.bf16 %v11471_v10  ;;  %v13473_v33 = vmul.f32 %v13434_v60, %v12961_v59  ;;  %v13489_v57 = vmul.f32 %v13406_v53, %v12991_v17 }
 0x154   : > { %17501 = vst [vmem:[#allocation229_spill] sm:$0xff] %v13456_v7  ;;  %17502 = vst [vmem:[#allocation230_spill] sm:$0xff] %v13459_v52  ;;  %v13477_v7 = vmul.f32 %v13434_v60, %v12991_v17  ;;  %v1974_v60 = vmul.f32 %v12925_v15, %v17522_v30 }
 0x155   : > { %17503 = vst [vmem:[#allocation231_spill] sm:$0xff] %v13463_v18  ;;  %17504 = vst [vmem:[#allocation232_spill] sm:$0xff] %v13465_v42  ;;  %v13496_v18 = vmul.f32 %v13459_v52, %v12991_v17  ;;  %v13513_v10 = vmul.f32 %v13469_v29, %v12961_v59 }
 0x156   : > { %17505 = vst [vmem:[#allocation233_spill] sm:$0xff] %v13467_v39  ;;  %17506 = vst [vmem:[#allocation234_spill] sm:$0xff] %v13469_v29  ;;  %v17519_v39 = vld [vmem:[#allocation11_spill] sm:$0xff] }
 0x157   : > { %17507 = vst [vmem:[#allocation235_spill] sm:$0xff] %v13473_v33  ;;  %17508 = vst [vmem:[#allocation236_spill] sm:$0xff] %v13477_v7  ;;  %v11488_v33 = vunpack.i.h.bf16 %v11486_v35  ;;  %v13505_v7 = vld [vmem:[%s17157_s1 + $0x5] ss:$0 sm:$0xff] }
 0x158   : > { %17509 = vst [vmem:[#allocation237_spill] sm:$0xff] %v13481_v20  ;;  %17510 = vst [vmem:[#allocation238_spill] sm:$0xff] %v13485_v50  ;;  %v13500_v20 = vmul.f32 %v13459_v52, %v13021_v48  ;;  %v17520_v50 = vld [vmem:[#allocation35_spill] sm:$0xff]  ;;  %v2199_v49 = vmul.f32 %v13505_v7, %v12973_v5 }
 0x159   : > { %17511 = vst [vmem:[#allocation239_spill] sm:$0xff] %v13489_v57  ;;  %17512 = vst [vmem:[#allocation240_spill] sm:$0xff] %v13492_v51  ;;  %v13509_v57 = vmul.f32 %v13505_v7, %v13459_v52  ;;  %v1936_v42 = vadd.f32 %v17520_v50, %v17519_v39  ;;  %v13525_v52 = vmul.f32 %v13469_v29, %v12991_v17  ;;  %v17524_v39 = vld [vmem:[#allocation138_spill] sm:$0xff]  ;;  %v11481_v29 = vpop.permute.xlu0 %11480 }
 0x15a   : > { %17513 = vst [vmem:[#allocation241_spill] sm:$0xff] %v13496_v18  ;;  %17514 = vst [vmem:[#allocation242_spill] sm:$0xff] %v13500_v20  ;;  %v1935_v18 = vadd.f32 %v17518_v46, %v17517_v38  ;;  %v17521_v20 = vld [vmem:[#allocation18_spill] sm:$0xff]  ;;  %v2548_v34 = vmul.f32 %v11488_v33, %v12991_v17  ;;  %v2628_v53 = vmul.f32 %v11488_v33, %v13021_v48  ;;  %v11482_v19 = vunpack.i.l.bf16 %v11481_v29 }
 0x15b   : > { %17515 = vst [vmem:[#allocation243_spill] sm:$0xff] %v13509_v57  ;;  %17516 = vst [vmem:[#allocation244_spill] sm:$0xff] %v13513_v10  ;;  %v1973_v51 = vmul.f32 %v12925_v15, %v17521_v20  ;;  %v11487_v57 = vunpack.i.l.bf16 %v11486_v35  ;;  %v13530_v10 = vld [vmem:[%s17157_s1 + $0x3] ss:$0 sm:$0xff]  ;;  %v2468_v20 = vmul.f32 %v11488_v33, %v12961_v59  ;;  %v2012_v30 = vadd.f32 %v1974_v60, %v1936_v42 }
 0x15c   : > { %17523 = vst [vmem:[#allocation14_spill] sm:$0xff] %v13525_v52  ;;  %v2049_v46 = vmul.f32 %v13530_v10, %v12973_v5  ;;  %v2050_v50 = vmul.f32 %v13530_v10, %v17524_v39  ;;  %v13540_v52 = vld [vmem:[%s17157_s1 + $0x4] ss:$0 sm:$0xff]  ;;  %v11483_v33 = vunpack.i.h.bf16 %v11481_v29  ;;  %v2237_v36 = vadd.f32 %v2199_v49, %v13084_v1 }
 0x15d   : > { %v2011_v38 = vadd.f32 %v1973_v51, %v1935_v18  ;;  %v2126_v35 = vmul.f32 %v13540_v52, %v13029_v63  ;;  %v2125_v41 = vmul.f32 %v13540_v52, %v17524_v39  ;;  %v2201_v18 = vmul.f32 %v13505_v7, %v13029_v63 }
 0x15e   : > { %v2088_v42 = vadd.f32 %v2050_v50, %v2012_v30  ;;  %v2202_v51 = vmul.f32 %v13505_v7, %v13043_v28  ;;  %v2467_v25 = vmul.f32 %v11487_v57, %v12961_v59  ;;  %v2547_v30 = vmul.f32 %v11487_v57, %v12991_v17 }
 0x15f   : > { %v2087_v60 = vadd.f32 %v2049_v46, %v2011_v38  ;;  %v17526_v46 = vld [vmem:[#allocation10_spill] sm:$0xff]  ;;  %v11496_v38 = vpop.permute.xlu1 %11495  ;;  %v2627_v43 = vmul.f32 %v11487_v57, %v13021_v48  ;;  %v2465_v24 = vmul.f32 %v11482_v19, %v12961_v59  ;;  %v2124_v29 = vmul.f32 %v13540_v52, %v12973_v5  ;;  %v17527_v19 = vld [vmem:[#allocation20_spill] sm:$0xff] }
 0x160   : > { %v2164_v40 = vadd.f32 %v2126_v35, %v2088_v42  ;;  %v2010_v50 = vadd.f32 %v1972_v22, %v17526_v46  ;;  %v2466_v16 = vmul.f32 %v11483_v33, %v12961_v59  ;;  %v11498_v46 = vunpack.i.h.bf16 %v11496_v38 }
 0x161   : > { %v2163_v45 = vadd.f32 %v2125_v41, %v2087_v60  ;;  %v2200_v41 = vmul.f32 %v13505_v7, %v17524_v39  ;;  %v2546_v60 = vmul.f32 %v11483_v33, %v12991_v17  ;;  %v2503_v42 = vadd.f32 %v2465_v24, %v2237_v36  ;;  %v17529_v39 = vld [vmem:[#allocation24_spill] sm:$0xff]  ;;  %v17532_v24 = vld [vmem:[#allocation26_spill] sm:$0xff] }
 0x162   : > { %v2086_v35 = vadd.f32 %v13052_v32, %v2010_v50  ;;  %v2240_v57 = vadd.f32 %v2202_v51, %v2164_v40  ;;  %v1782_v1 = vmax.f32 %v13559_v14, 0.0  ;;  %v1940_v31 = vadd.f32 %v17528_v11, %v17527_v19 }
 0x163   : > { %v2239_v22 = vadd.f32 %v2201_v18, %v2163_v45  ;;  %v2584_v12 = vadd.f32 %v2546_v60, %v2503_v42  ;;  %v11497_v58 = vunpack.i.l.bf16 %v11496_v38  ;;  %v1939_v62 = vadd.f32 %v17530_v47, %v17529_v39  ;;  %v17531_v45 = vld [vmem:[#allocation29_spill] sm:$0xff] }
 0x164   : > { %v2162_v49 = vadd.f32 %v2124_v29, %v2086_v35  ;;  %v13578_v37 = vadd.f32 %v2468_v20, %v2240_v57  ;;  %v1977_v36 = vmul.f32 %v12925_v15, %v17531_v45  ;;  %v1978_v40 = vmul.f32 %v12925_v15, %v17532_v24 }
 0x165   : > { %v2505_v5 = vadd.f32 %v2467_v25, %v2239_v22  ;;  %v2665_v14 = vadd.f32 %v2627_v43, %v2584_v12  ;;  %v13585_v18 = vmul.f32 %v11498_v46, %v12961_v59  ;;  %v2053_v11 = vmul.f32 %v13530_v10, %v13040_v54 }
 0x166   : > { %v2238_v32 = vadd.f32 %v2200_v41, %v2162_v49  ;;  %v2054_v25 = vmul.f32 %v13530_v10, %v13026_v44  ;;  %v2015_v20 = vadd.f32 %v1977_v36, %v1939_v62  ;;  %v2016_v51 = vadd.f32 %v1978_v40, %v1940_v31  ;;  %v11491_v31 = vpop.permute.xlu0 %11490 }
 0x167   : > { %v2130_v33 = vmul.f32 %v13540_v52, %v13093_v61  ;;  %v2703_v50 = vadd.f32 %v13070_v2, %v2665_v14  ;;  %v2552_v38 = vmul.f32 %v11498_v46, %v12991_v17  ;;  %v13596_v12 = vmul.f32 %v11498_v46, %v13021_v48 }
 0x168   : > { %v2504_v47 = vadd.f32 %v2466_v16, %v2238_v32  ;;  %v2129_v43 = vmul.f32 %v13540_v52, %v13026_v44  ;;  %v2091_v41 = vadd.f32 %v2053_v11, %v2015_v20  ;;  %v2092_v35 = vadd.f32 %v2054_v25, %v2016_v51  ;;  %v17536_v25 = vld [vmem:[#allocation28_spill] sm:$0xff] }
 0x169   : > { %v2205_v62 = vmul.f32 %v13505_v7, %v13093_v61  ;;  %v13602_v16 = vadd.f32 %v2548_v34, %v2505_v5  ;;  %v2741_v22 = vmax.f32 %v2703_v50, 0.0  ;;  %v2206_v60 = vmul.f32 %v13505_v7, %v13082_v55  ;;  %v17534_v5 = vld [vmem:[#allocation9_spill] sm:$0xff] }
 0x16a   : > { %v2585_v29 = vadd.f32 %v2547_v30, %v2504_v47  ;;  %v2471_v42 = vmul.f32 %v11497_v58, %v12961_v59  ;;  %v2167_v57 = vadd.f32 %v2129_v43, %v2091_v41  ;;  %v2168_v49 = vadd.f32 %v2130_v33, %v2092_v35  ;;  %v17537_v47 = vld [vmem:[#allocation12_spill] sm:$0xff]  ;;  %v17538_v43 = vld [vmem:[#allocation30_spill] sm:$0xff]  ;;  %v17540_v35 = vld [vmem:[#allocation15_spill] sm:$0xff] }
 0x16b   : > { %v13608_v30 = vmul.f32 %v11497_v58, %v12991_v17  ;;  %v17533_v19 = vmax.f32 %v13112_v56, 0.0  ;;  %v13613_v34 = vmul.f32 %v11497_v58, %v13021_v48  ;;  %v1975_v32 = vmul.f32 %v12925_v15, %v17534_v5  ;;  %v17542_v5 = vld [vmem:[#allocation147_spill] sm:$0xff] }
 0x16c   : > { %v2666_v46 = vadd.f32 %v2628_v53, %v2585_v29  ;;  %v11493_v45 = vunpack.i.h.bf16 %v11491_v31  ;;  %v2243_v24 = vadd.f32 %v2205_v62, %v2167_v57  ;;  %v2244_v40 = vadd.f32 %v2206_v60, %v2168_v49  ;;  %v17535_v53 = vld [vmem:[#allocation8_spill] sm:$0xff]  ;;  %v17539_v29 = vld [vmem:[#allocation145_spill] sm:$0xff] }
 0x16d   : > { %v2779_v39 = vmax.f32 %v17533_v19, %v2741_v22  ;;  %v1976_v14 = vmul.f32 %v12925_v15, %v17535_v53  ;;  %v2128_v11 = vmul.f32 %v13540_v52, %v13040_v54  ;;  %v2203_v56 = vmul.f32 %v13505_v7, %v13040_v54  ;;  %v17541_v57 = vld [vmem:[#allocation148_spill] sm:$0xff] }
 0x16e   : > { %v2704_v36 = vadd.f32 %v13070_v2, %v2666_v46  ;;  %v2204_v58 = vmul.f32 %v13505_v7, %v13026_v44  ;;  %v1522_v20 = vadd.f32 %v17537_v47, %v17536_v25  ;;  %v2470_v33 = vmul.f32 %v11493_v45, %v12961_v59  ;;  %v17543_v53 = vld [vmem:[#allocation16_spill] sm:$0xff]  ;;  %v17544_v47 = vld [vmem:[#allocation34_spill] sm:$0xff] }
 0x16f   : > { %v11492_v50 = vunpack.i.l.bf16 %v11491_v31  ;;  %v1523_v41 = vadd.f32 %v17539_v29, %v17538_v43  ;;  %v1613_v22 = vadd.f32 %v13103_v6, %v13114_v21  ;;  %v1614_v54 = vadd.f32 %v13088_v26, %v13121_v8  ;;  %v17545_v6 = vld [vmem:[#allocation33_spill] sm:$0xff]  ;;  %v17546_v26 = vld [vmem:[#allocation32_spill] sm:$0xff]  ;;  %v17547_v43 = vld [vmem:[#allocation27_spill] sm:$0xff] }
 0x170   : > { %v2742_v51 = vmax.f32 %v2704_v36, 0.0  ;;  %v1611_v62 = vadd.f32 %v17540_v35, %v1522_v20  ;;  %v1662_v44 = vmul.f32 %v13029_v63, %v13021_v48  ;;  %v2509_v46 = vadd.f32 %v2471_v42, %v2243_v24 }
 0x171   : > { %v1612_v49 = vadd.f32 %v17541_v57, %v1523_v41  ;;  %v1663_v31 = vmul.f32 %v13043_v28, %v13021_v48  ;;  %v1702_v36 = vadd.f32 %v17542_v5, %v1613_v22  ;;  %v1703_v25 = vadd.f32 %v17543_v53, %v1614_v54 }
 0x172   : > { %v2780_v60 = vmax.f32 %v1782_v1, %v2742_v51  ;;  %v1700_v19 = vadd.f32 %v1662_v44, %v1611_v62  ;;  %v1937_v21 = vadd.f32 %v17545_v6, %v17544_v47  ;;  %v1938_v29 = vadd.f32 %v17547_v43, %v17546_v26  ;;  %v17550_v26 = vld [vmem:[#allocation39_spill] sm:$0xff]  ;;  %v17551_v43 = vld [vmem:[#allocation37_spill] sm:$0xff] }
 0x173   : > { %v1701_v8 = vadd.f32 %v1663_v31, %v1612_v49  ;;  %v2051_v1 = vmul.f32 %v13530_v10, %v13029_v63  ;;  %v2550_v42 = vmul.f32 %v11493_v45, %v12991_v17  ;;  %v13653_v51 = vadd.f32 %v13070_v2, %v1702_v36  ;;  %v17549_v36 = vld [vmem:[#allocation61_spill] sm:$0xff] }
 0x174   : > { %v2817_v20 = vmax.f32 %v2779_v39, %v2780_v60  ;;  %v1745_v24 = vadd.f32 %v13070_v2, %v1700_v19  ;;  %v2013_v41 = vadd.f32 %v1975_v32, %v1937_v21  ;;  %v2630_v39 = vmul.f32 %v11493_v45, %v13021_v48 }
 0x175   : > { %v1746_v35 = vadd.f32 %v13070_v2, %v1701_v8  ;;  %v2014_v62 = vadd.f32 %v1976_v14, %v1938_v29  ;;  %v2052_v63 = vmul.f32 %v13530_v10, %v13043_v28  ;;  %v13664_v22 = vadd.f32 %v13585_v18, %v2244_v40  ;;  %v11506_v14 = vpop.permute.xlu1 %11505 }
 0x176   : > { %2821 = vst.msk [vmem:[%s13655_s19] sm:$0xff] %vm2820_vm0, %v2817_v20  ;;  %v13666_v54 = vadd.f32 %v2552_v38, %v2509_v46  ;;  %v2089_v44 = vadd.f32 %v2051_v1, %v2013_v41  ;;  %v2127_v32 = vmul.f32 %v13540_v52, %v13043_v28  ;;  %v13671_v60 = vadd.f32 %v13070_v2, %v1703_v25  ;;  %v17548_v28 = vld [vmem:[#allocation36_spill] sm:$0xff]  ;;  %v17552_v1 = vld [vmem:[#allocation47_spill] sm:$0xff] }
 0x177   : > { %v1783_v57 = vmax.f32 %v1745_v24, 0.0  ;;  %v2090_v45 = vadd.f32 %v2052_v63, %v2014_v62  ;;  %v2549_v49 = vmul.f32 %v11492_v50, %v12991_v17  ;;  %v1785_v31 = vmax.f32 %v13653_v51, 0.0 }
 0x178   : > { %v2165_v19 = vadd.f32 %v2127_v32, %v2089_v44  ;;  %v2469_v18 = vmul.f32 %v11492_v50, %v12961_v59  ;;  %v2629_v38 = vmul.f32 %v11492_v50, %v13021_v48  ;;  %v1784_v40 = vmax.f32 %v1746_v35, 0.0 }
 0x179   : > { %v2166_v46 = vadd.f32 %v2128_v11, %v2090_v45  ;;  %v2587_v5 = vadd.f32 %v2549_v49, %v13578_v37  ;;  %v1944_v53 = vadd.f32 %v17549_v36, %v17548_v28  ;;  %v11508_v6 = vunpack.i.h.bf16 %v11506_v14  ;;  %v17553_v37 = vld [vmem:[#allocation43_spill] sm:$0xff] }
 0x17a   : > { %v2241_v25 = vadd.f32 %v2203_v56, %v2165_v19  ;;  %v2667_v47 = vadd.f32 %v2629_v38, %v13602_v16  ;;  %v11507_v21 = vunpack.i.l.bf16 %v11506_v14  ;;  %v1943_v29 = vadd.f32 %v17551_v43, %v17550_v26 }
 0x17b   : > { %v2242_v20 = vadd.f32 %v2204_v58, %v2166_v46  ;;  %v2668_v8 = vadd.f32 %v2630_v39, %v2587_v5  ;;  %v1981_v50 = vmul.f32 %v12925_v15, %v17552_v1  ;;  %v1982_v51 = vmul.f32 %v12925_v15, %v17553_v37  ;;  %v17554_v1 = vld [vmem:[#allocation25_spill] sm:$0xff] }
 0x17c   : > { %v2507_v24 = vadd.f32 %v2469_v18, %v2241_v25  ;;  %v2705_v11 = vadd.f32 %v13070_v2, %v2667_v47  ;;  %v2057_v56 = vmul.f32 %v13530_v10, %v13117_v23  ;;  %v2058_v39 = vmul.f32 %v13530_v10, %v13091_v27 }
 0x17d   : > { %v2508_v16 = vadd.f32 %v2470_v33, %v2242_v20  ;;  %v2706_v41 = vadd.f32 %v13070_v2, %v2668_v8  ;;  %v2019_v58 = vadd.f32 %v1981_v50, %v1943_v29  ;;  %v2020_v63 = vadd.f32 %v1982_v51, %v1944_v53  ;;  %v17555_v51 = vld [vmem:[#allocation22_spill] sm:$0xff] }
 0x17e   : > { %v2588_v35 = vadd.f32 %v2550_v42, %v2507_v24  ;;  %v2743_v62 = vmax.f32 %v2705_v11, 0.0  ;;  %v2133_v44 = vmul.f32 %v13540_v52, %v13091_v27  ;;  %v2134_v14 = vmul.f32 %v13540_v52, %v13146_v13  ;;  %v11501_v24 = vpop.permute.xlu0 %11500 }
 0x17f   : > { %v2589_v32 = vadd.f32 %v13608_v30, %v2508_v16  ;;  %v2744_v45 = vmax.f32 %v2706_v41, 0.0  ;;  %v2095_v49 = vadd.f32 %v2057_v56, %v2019_v58  ;;  %v2096_v18 = vadd.f32 %v2058_v39, %v2020_v63  ;;  %v17556_v58 = vld [vmem:[#allocation38_spill] sm:$0xff] }
 0x180   : > { %v2669_v33 = vadd.f32 %v13613_v34, %v2588_v35  ;;  %v2781_v19 = vmax.f32 %v1783_v57, %v2743_v62  ;;  %v2209_v38 = vmul.f32 %v13505_v7, %v13146_v13  ;;  %v1786_v42 = vmax.f32 %v13671_v60, 0.0  ;;  %v17557_v39 = vld [vmem:[#allocation146_spill] sm:$0xff] }
 0x181   : > { %v2670_v46 = vadd.f32 %v13596_v12, %v2589_v32  ;;  %v2782_v5 = vmax.f32 %v1784_v40, %v2744_v45  ;;  %v2171_v28 = vadd.f32 %v2133_v44, %v2095_v49  ;;  %v2172_v36 = vadd.f32 %v2134_v14, %v2096_v18  ;;  %v17558_v44 = vld [vmem:[#allocation41_spill] sm:$0xff]  ;;  %v17559_v32 = vld [vmem:[#allocation19_spill] sm:$0xff] }
 0x182   : > { %v2707_v30 = vadd.f32 %v13070_v2, %v2669_v33  ;;  %v2210_v53 = vmul.f32 %v13505_v7, %v13140_v4  ;;  %v2475_v34 = vmul.f32 %v11507_v21, %v12961_v59  ;;  %v2476_v47 = vmul.f32 %v11508_v6, %v12961_v59  ;;  %v17560_v14 = vld [vmem:[#allocation23_spill] sm:$0xff] }
 0x183   : > { %v2708_v57 = vadd.f32 %v13070_v2, %v2670_v46  ;;  %v2822_v25 = vmax.f32 %v2781_v19, %v2782_v5  ;;  %v2247_v20 = vadd.f32 %v2209_v38, %v2171_v28  ;;  %v2556_v12 = vmul.f32 %v11508_v6, %v12991_v17  ;;  %v17561_v19 = vld [vmem:[#allocation156_spill] sm:$0xff]  ;;  %v17562_v38 = vld [vmem:[#allocation151_spill] sm:$0xff]  ;;  %v17564_v46 = vld [vmem:[#allocation157_spill] sm:$0xff] }
 0x184   : > { %v2745_v60 = vmax.f32 %v2707_v30, 0.0  ;;  %v13711_v40 = vmul.f32 %v11508_v6, %v13021_v48  ;;  %v2248_v8 = vadd.f32 %v2210_v53, %v2172_v36  ;;  %v13716_v43 = vmul.f32 %v11507_v21, %v12991_v17  ;;  %v17565_v30 = vld [vmem:[#allocation46_spill] sm:$0xff]  ;;  %v17566_v36 = vld [vmem:[#allocation45_spill] sm:$0xff] }
 0x185   : > { %v2746_v26 = vmax.f32 %v2708_v57, 0.0  ;;  %2823 = vst.msk [vmem:[%s13655_s19 + $0x8] sm:$0xff] %vm2820_vm0, %v2822_v25  ;;  %v13719_v29 = vmul.f32 %v11507_v21, %v13021_v48  ;;  %v1979_v50 = vmul.f32 %v12925_v15, %v17554_v1  ;;  %v2513_v37 = vadd.f32 %v2475_v34, %v2247_v20  ;;  %v17567_v34 = vld [vmem:[#allocation155_spill] sm:$0xff]  ;;  %v17568_v25 = vld [vmem:[#allocation152_spill] sm:$0xff] }
 0x186   : > { %v2783_v11 = vmax.f32 %v1785_v31, %v2745_v60  ;;  %v1980_v6 = vmul.f32 %v12925_v15, %v17555_v51  ;;  %v2132_v56 = vmul.f32 %v13540_v52, %v13117_v23  ;;  %v13727_v41 = vadd.f32 %v2476_v47, %v2248_v8  ;;  %v17569_v47 = vld [vmem:[#allocation44_spill] sm:$0xff] }
 0x187   : > { %v2784_v16 = vmax.f32 %v1786_v42, %v2746_v26  ;;  %v2207_v21 = vmul.f32 %v13505_v7, %v13117_v23  ;;  %v1526_v35 = vadd.f32 %v17557_v39, %v17556_v58  ;;  %v2208_v31 = vmul.f32 %v13505_v7, %v13091_v27  ;;  %v17563_v42 = vld [vmem:[#allocation154_spill] sm:$0xff]  ;;  %v17570_v20 = vld [vmem:[#allocation40_spill] sm:$0xff] }
 0x188   : > { %v11503_v62 = vunpack.i.h.bf16 %v11501_v24  ;;  %v11502_v63 = vunpack.i.l.bf16 %v11501_v24  ;;  %v1527_v45 = vadd.f32 %v17559_v32, %v17558_v44  ;;  %v1617_v18 = vadd.f32 %v17561_v19, %v13142_v0  ;;  %v11516_v19 = vpop.permute.xlu1 %11515 }
 0x189   : > { %v2824_v49 = vmax.f32 %v2783_v11, %v2784_v16  ;;  %v1615_v33 = vadd.f32 %v17560_v14, %v1526_v35  ;;  %v1618_v23 = vadd.f32 %v17563_v42, %v17562_v38  ;;  %v1666_v28 = vmul.f32 %v13093_v61, %v13021_v48 }
 0x18a   : > { %v1616_v5 = vadd.f32 %v17564_v46, %v1527_v45  ;;  %v1667_v27 = vmul.f32 %v13082_v55, %v13021_v48  ;;  %v1941_v53 = vadd.f32 %v17566_v36, %v17565_v30  ;;  %v1706_v57 = vadd.f32 %v17567_v34, %v1617_v18 }
 0x18b   : > { %2825 = vst.msk [vmem:[%s13655_s19 + $0x10] sm:$0xff] %vm2820_vm0, %v2824_v49  ;;  %v1707_v0 = vadd.f32 %v17568_v25, %v1618_v23  ;;  %v1942_v60 = vadd.f32 %v17570_v20, %v17569_v47  ;;  %v2055_v8 = vmul.f32 %v13530_v10, %v13093_v61  ;;  %v1704_v26 = vadd.f32 %v1666_v28, %v1615_v33  ;;  %v17572_v28 = vld [vmem:[#allocation76_spill] sm:$0xff]  ;;  %v17573_v25 = vld [vmem:[#allocation55_spill] sm:$0xff] }
 0x18c   : > { %v1705_v1 = vadd.f32 %v1667_v27, %v1616_v5  ;;  %v2017_v24 = vadd.f32 %v1979_v50, %v1941_v53  ;;  %v2056_v11 = vmul.f32 %v13530_v10, %v13082_v55  ;;  %v13759_v51 = vadd.f32 %v2556_v12, %v2513_v37  ;;  %v17571_v5 = vld [vmem:[#allocation50_spill] sm:$0xff] }
 0x18d   : > { %v2474_v16 = vmul.f32 %v11503_v62, %v12961_v59  ;;  %v13763_v58 = vadd.f32 %v13070_v2, %v1706_v57  ;;  %v2018_v39 = vadd.f32 %v1980_v6, %v1942_v60  ;;  %v1749_v35 = vadd.f32 %v13070_v2, %v1704_v26 }
 0x18e   : > { %v1750_v44 = vadd.f32 %v13070_v2, %v1705_v1  ;;  %v2093_v32 = vadd.f32 %v2055_v8, %v2017_v24  ;;  %v2131_v61 = vmul.f32 %v13540_v52, %v13082_v55  ;;  %v2554_v50 = vmul.f32 %v11503_v62, %v12991_v17 }
 0x18f   : > { %v2634_v45 = vmul.f32 %v11503_v62, %v13021_v48  ;;  %v2094_v12 = vadd.f32 %v2056_v11, %v2018_v39  ;;  %v2553_v37 = vmul.f32 %v11502_v63, %v12991_v17  ;;  %v13773_v49 = vadd.f32 %v13070_v2, %v1707_v0  ;;  %v17574_v0 = vld [vmem:[#allocation51_spill] sm:$0xff] }
 0x190   : > { %v2169_v14 = vadd.f32 %v2131_v61, %v2093_v32  ;;  %v2473_v6 = vmul.f32 %v11502_v63, %v12961_v59  ;;  %v2633_v33 = vmul.f32 %v11502_v63, %v13021_v48  ;;  %v1787_v18 = vmax.f32 %v1749_v35, 0.0  ;;  %v17577_v32 = vld [vmem:[#allocation161_spill] sm:$0xff] }
 0x191   : > { %v1789_v38 = vmax.f32 %v13763_v58, 0.0  ;;  %v2170_v55 = vadd.f32 %v2132_v56, %v2094_v12  ;;  %v2591_v42 = vadd.f32 %v2553_v37, %v13664_v22  ;;  %v1788_v23 = vmax.f32 %v1750_v44, 0.0  ;;  %v17575_v56 = vld [vmem:[#allocation63_spill] sm:$0xff] }
 0x192   : > { %v2245_v62 = vadd.f32 %v2207_v21, %v2169_v14  ;;  %v2671_v46 = vadd.f32 %v2633_v33, %v13666_v54  ;;  %v1948_v27 = vadd.f32 %v17572_v28, %v17571_v5  ;;  %v11518_v53 = vunpack.i.h.bf16 %v11516_v19  ;;  %v17576_v54 = vld [vmem:[#allocation53_spill] sm:$0xff]  ;;  %v17578_v33 = vld [vmem:[#allocation160_spill] sm:$0xff] }
 0x193   : > { %v2246_v30 = vadd.f32 %v2208_v31, %v2170_v55  ;;  %v2672_v36 = vadd.f32 %v2634_v45, %v2591_v42  ;;  %v11517_v34 = vunpack.i.l.bf16 %v11516_v19  ;;  %v1947_v47 = vadd.f32 %v17574_v0, %v17573_v25  ;;  %v17580_v25 = vld [vmem:[#allocation31_spill] sm:$0xff]  ;;  %v11511_v0 = vpop.permute.xlu0 %11510 }
 0x194   : > { %v2511_v57 = vadd.f32 %v2473_v6, %v2245_v62  ;;  %v2709_v63 = vadd.f32 %v13070_v2, %v2671_v46  ;;  %v1985_v22 = vmul.f32 %v12925_v15, %v17575_v56  ;;  %v1986_v60 = vmul.f32 %v12925_v15, %v17576_v54  ;;  %v17583_v54 = vld [vmem:[#allocation58_spill] sm:$0xff] }
 0x195   : > { %v2512_v20 = vadd.f32 %v2474_v16, %v2246_v30  ;;  %v2710_v21 = vadd.f32 %v13070_v2, %v2672_v36  ;;  %v2061_v31 = vmul.f32 %v13530_v10, %v13172_v3  ;;  %v2062_v24 = vmul.f32 %v13530_v10, %v13138_v9 }
 0x196   : > { %v2592_v8 = vadd.f32 %v2554_v50, %v2511_v57  ;;  %v2747_v26 = vmax.f32 %v2709_v63, 0.0  ;;  %v2023_v1 = vadd.f32 %v1985_v22, %v1947_v47  ;;  %v2024_v39 = vadd.f32 %v1986_v60, %v1948_v27  ;;  %v17579_v57 = vld [vmem:[#allocation42_spill] sm:$0xff]  ;;  %v17584_v60 = vld [vmem:[#allocation149_spill] sm:$0xff] }
 0x197   : > { %v2593_v11 = vadd.f32 %v13716_v43, %v2512_v20  ;;  %v2748_v58 = vmax.f32 %v2710_v21, 0.0  ;;  %v2137_v16 = vmul.f32 %v13540_v52, %v13138_v9  ;;  %v2138_v61 = vmul.f32 %v13540_v52, %v17577_v32  ;;  %v17581_v22 = vld [vmem:[#allocation54_spill] sm:$0xff]  ;;  %v17582_v20 = vld [vmem:[#allocation153_spill] sm:$0xff] }
 0x198   : > { %v2673_v35 = vadd.f32 %v13719_v29, %v2592_v8  ;;  %v2785_v44 = vmax.f32 %v1787_v18, %v2747_v26  ;;  %v2099_v15 = vadd.f32 %v2061_v31, %v2023_v1  ;;  %v2100_v12 = vadd.f32 %v2062_v24, %v2024_v39  ;;  %v17585_v8 = vld [vmem:[#allocation164_spill] sm:$0xff]  ;;  %v17586_v26 = vld [vmem:[#allocation170_spill] sm:$0xff] }
 0x199   : > { %v2674_v50 = vadd.f32 %v13711_v40, %v2593_v11  ;;  %v2786_v45 = vmax.f32 %v1788_v23, %v2748_v58  ;;  %v2213_v43 = vmul.f32 %v13505_v7, %v17577_v32  ;;  %v1790_v37 = vmax.f32 %v13773_v49, 0.0 }
 0x19a   : > { %v2711_v14 = vadd.f32 %v13070_v2, %v2673_v35  ;;  %v2175_v6 = vadd.f32 %v2137_v16, %v2099_v15  ;;  %v2214_v29 = vmul.f32 %v13505_v7, %v17578_v33  ;;  %v2176_v55 = vadd.f32 %v2138_v61, %v2100_v12  ;;  %v17587_v16 = vld [vmem:[#allocation150_spill] sm:$0xff]  ;;  %v17589_v15 = vld [vmem:[#allocation165_spill] sm:$0xff]  ;;  %v17591_v12 = vld [vmem:[#allocation168_spill] sm:$0xff] }
 0x19b   : > { %v2712_v19 = vadd.f32 %v13070_v2, %v2674_v50  ;;  %v2826_v18 = vmax.f32 %v2785_v44, %v2786_v45  ;;  %v2479_v40 = vmul.f32 %v11517_v34, %v12961_v59  ;;  %v2480_v23 = vmul.f32 %v11518_v53, %v12961_v59  ;;  %v13825_v59 = vld [vmem:[%s17157_s1 + $0x2] ss:$0 sm:$0xff] }
 0x19c   : > { %v2749_v42 = vmax.f32 %v2711_v14, 0.0  ;;  %v2560_v62 = vmul.f32 %v11518_v53, %v12991_v17  ;;  %v2251_v46 = vadd.f32 %v2213_v43, %v2175_v6  ;;  %v13814_v49 = vmul.f32 %v11518_v53, %v13021_v48  ;;  %v17593_v14 = vld [vmem:[#allocation59_spill] sm:$0xff] }
 0x19d   : > { %v2750_v5 = vmax.f32 %v2712_v19, 0.0  ;;  %2827 = vst.msk [vmem:[%s13655_s19 + $0x18] sm:$0xff] %vm2820_vm0, %v2826_v18  ;;  %v2252_v28 = vadd.f32 %v2214_v29, %v2176_v55  ;;  %v13817_v27 = vmul.f32 %v11517_v34, %v12991_v17  ;;  %v13820_v36 = vmul.f32 %v11517_v34, %v13021_v48  ;;  %v17594_v29 = vld [vmem:[#allocation57_spill] sm:$0xff]  ;;  %v17595_v19 = vld [vmem:[#allocation56_spill] sm:$0xff] }
 0x19e   : > { %v2787_v30 = vmax.f32 %v1789_v38, %v2749_v42  ;;  %v1983_v63 = vmul.f32 %v13825_v59, %v17579_v57  ;;  %v1984_v53 = vmul.f32 %v13825_v59, %v17580_v25  ;;  %v2517_v17 = vadd.f32 %v2479_v40, %v2251_v46  ;;  %v17596_v40 = vld [vmem:[#allocation163_spill] sm:$0xff] }
 0x19f   : > { %v2788_v47 = vmax.f32 %v1790_v37, %v2750_v5  ;;  %v2136_v38 = vmul.f32 %v13540_v52, %v13172_v3  ;;  %v2211_v34 = vmul.f32 %v13505_v7, %v13172_v3  ;;  %v2212_v56 = vmul.f32 %v13505_v7, %v13138_v9  ;;  %v17588_v3 = vld [vmem:[#allocation171_spill] sm:$0xff]  ;;  %v17592_v37 = vld [vmem:[#allocation60_spill] sm:$0xff] }
 0x1a0   : > { %v1530_v21 = vadd.f32 %v17582_v20, %v17581_v22  ;;  %v1531_v31 = vadd.f32 %v17584_v60, %v17583_v54  ;;  %v1621_v1 = vadd.f32 %v17586_v26, %v17585_v8  ;;  %v13843_v11 = vadd.f32 %v2480_v23, %v2252_v28  ;;  %v17590_v9 = vld [vmem:[#allocation167_spill] sm:$0xff]  ;;  %v13889_v20 = vld [vmem:[%s17157_s1 + $0x8] ss:$0 sm:$0xff]  ;;  %v11526_v8 = vpop.permute.xlu1 %11525 }
 0x1a1   : > { %v2828_v24 = vmax.f32 %v2787_v30, %v2788_v47  ;;  %v11513_v58 = vunpack.i.h.bf16 %v11511_v0  ;;  %v11512_v39 = vunpack.i.l.bf16 %v11511_v0  ;;  %v1622_v61 = vadd.f32 %v17590_v9, %v17589_v15  ;;  %v13873_v25 = vld [vmem:[%s17157_s1 + $0x6] ss:$0 sm:$0xff] }
 0x1a2   : > { %v1619_v35 = vadd.f32 %v17587_v16, %v1530_v21  ;;  %v1620_v44 = vadd.f32 %v17588_v3, %v1531_v31  ;;  %v1670_v50 = vmul.f32 %v13146_v13, %v13021_v48  ;;  %v1671_v45 = vmul.f32 %v13140_v4, %v13021_v48 }
 0x1a3   : > { %2829 = vst.msk [vmem:[%s13655_s19 + $0x20] sm:$0xff] %vm2820_vm0, %v2828_v24  ;;  %v1710_v43 = vadd.f32 %v17591_v12, %v1621_v1  ;;  %v1945_v6 = vadd.f32 %v17593_v14, %v17592_v37  ;;  %v1946_v18 = vadd.f32 %v17595_v19, %v17594_v29  ;;  %v1711_v42 = vadd.f32 %v17596_v40, %v1622_v61  ;;  %v17597_v12 = vld [vmem:[#allocation67_spill] sm:$0xff]  ;;  %v17599_v14 = vld [vmem:[#allocation62_spill] sm:$0xff] }
 0x1a4   : > { %v1708_v55 = vadd.f32 %v1670_v50, %v1619_v35  ;;  %v2059_v23 = vmul.f32 %v13530_v10, %v13146_v13  ;;  %v2060_v46 = vmul.f32 %v13530_v10, %v13140_v4  ;;  %v1709_v5 = vadd.f32 %v1671_v45, %v1620_v44  ;;  %v13879_v13 = vld [vmem:[%s17157_s1 + $0x7] ss:$0 sm:$0xff] }
 0x1a5   : > { %v13866_v48 = vadd.f32 %v13070_v2, %v1710_v43  ;;  %v2021_v28 = vadd.f32 %v1983_v63, %v1945_v6  ;;  %v2022_v30 = vadd.f32 %v1984_v53, %v1946_v18  ;;  %v13868_v57 = vadd.f32 %v2560_v62, %v2517_v17  ;;  %v17598_v43 = vld [vmem:[#allocation65_spill] sm:$0xff]  ;;  %v17601_v19 = vld [vmem:[#allocation71_spill] sm:$0xff]  ;;  %v17602_v18 = vld [vmem:[#allocation68_spill] sm:$0xff] }
 0x1a6   : > { %v2478_v0 = vmul.f32 %v13873_v25, %v11513_v58  ;;  %v2558_v47 = vmul.f32 %v13879_v13, %v11513_v58  ;;  %v1753_v22 = vadd.f32 %v13070_v2, %v1708_v55  ;;  %v1754_v63 = vadd.f32 %v13070_v2, %v1709_v5  ;;  %v17603_v55 = vld [vmem:[#allocation169_spill] sm:$0xff] }
 0x1a7   : > { %v2097_v62 = vadd.f32 %v2059_v23, %v2021_v28  ;;  %v2098_v53 = vadd.f32 %v2060_v46, %v2022_v30  ;;  %v2135_v17 = vmul.f32 %v13540_v52, %v13140_v4  ;;  %v2638_v21 = vmul.f32 %v13889_v20, %v11513_v58 }
 0x1a8   : > { %v13893_v54 = vadd.f32 %v13070_v2, %v1711_v42  ;;  %v2557_v60 = vmul.f32 %v13879_v13, %v11512_v39  ;;  %v2637_v31 = vmul.f32 %v13889_v20, %v11512_v39  ;;  %v1793_v26 = vmax.f32 %v13866_v48, 0.0  ;;  %v17604_v42 = vld [vmem:[#allocation159_spill] sm:$0xff] }
 0x1a9   : > { %v2173_v1 = vadd.f32 %v2135_v17, %v2097_v62  ;;  %v2174_v24 = vadd.f32 %v2136_v38, %v2098_v53  ;;  %v2477_v4 = vmul.f32 %v13873_v25, %v11512_v39  ;;  %v1791_v16 = vmax.f32 %v1753_v22, 0.0  ;;  %v17600_v38 = vld [vmem:[#allocation88_spill] sm:$0xff] }
 0x1aa   : > { %v1792_v35 = vmax.f32 %v1754_v63, 0.0  ;;  %v2595_v3 = vadd.f32 %v2557_v60, %v13727_v41  ;;  %v2675_v58 = vadd.f32 %v2637_v31, %v13759_v51  ;;  %v11528_v9 = vunpack.i.h.bf16 %v11526_v8  ;;  %v17605_v63 = vld [vmem:[#allocation177_spill] sm:$0xff] }
 0x1ab   : > { %v2249_v44 = vadd.f32 %v2211_v34, %v2173_v1  ;;  %v2250_v15 = vadd.f32 %v2212_v56, %v2174_v24  ;;  %v11527_v61 = vunpack.i.l.bf16 %v11526_v8  ;;  %v1951_v37 = vadd.f32 %v17598_v43, %v17597_v12  ;;  %v13913_v34 = vld [vmem:[%s17158_s2] ss:$0 sm:$0xff]  ;;  %v17606_v8 = vld [vmem:[#allocation174_spill] sm:$0xff] }
 0x1ac   : > { %v2676_v50 = vadd.f32 %v2638_v21, %v2595_v3  ;;  %v2713_v45 = vadd.f32 %v13070_v2, %v2675_v58  ;;  %v1952_v6 = vadd.f32 %v17600_v38, %v17599_v14  ;;  %v1989_v41 = vmul.f32 %v13825_v59, %v17601_v19 }
 0x1ad   : > { %v2515_v39 = vadd.f32 %v2477_v4, %v2249_v44  ;;  %v2516_v29 = vadd.f32 %v2478_v0, %v2250_v15  ;;  %v1990_v51 = vmul.f32 %v13825_v59, %v17602_v18  ;;  %v2065_v40 = vmul.f32 %v13530_v10, %v17603_v55  ;;  %v17609_v18 = vld [vmem:[#allocation69_spill] sm:$0xff] }
 0x1ae   : > { %v2714_v2 = vadd.f32 %v13913_v34, %v2676_v50  ;;  %v2751_v56 = vmax.f32 %v2713_v45, 0.0  ;;  %v2066_v23 = vmul.f32 %v13530_v10, %v17604_v42  ;;  %v2027_v48 = vadd.f32 %v1989_v41, %v1951_v37  ;;  %v17607_v37 = vld [vmem:[#allocation52_spill] sm:$0xff] }
 0x1af   : > { %v2596_v46 = vadd.f32 %v2558_v47, %v2515_v39  ;;  %v2597_v5 = vadd.f32 %v13817_v27, %v2516_v29  ;;  %v2028_v28 = vadd.f32 %v1990_v51, %v1952_v6  ;;  %v2141_v22 = vmul.f32 %v13540_v52, %v17604_v42  ;;  %v17608_v39 = vld [vmem:[#allocation49_spill] sm:$0xff]  ;;  %v17610_v51 = vld [vmem:[#allocation166_spill] sm:$0xff] }
 0x1b0   : > { %v2752_v30 = vmax.f32 %v2714_v2, 0.0  ;;  %v2789_v0 = vmax.f32 %v1791_v16, %v2751_v56  ;;  %v2142_v62 = vmul.f32 %v13540_v52, %v17605_v63  ;;  %v2103_v21 = vadd.f32 %v2065_v40, %v2027_v48  ;;  %v17611_v56 = vld [vmem:[#allocation74_spill] sm:$0xff]  ;;  %v17614_v48 = vld [vmem:[#allocation183_spill] sm:$0xff] }
 0x1b1   : > { %v2677_v53 = vadd.f32 %v13820_v36, %v2596_v46  ;;  %v2678_v17 = vadd.f32 %v13814_v49, %v2597_v5  ;;  %v2104_v60 = vadd.f32 %v2066_v23, %v2028_v28  ;;  %v1794_v47 = vmax.f32 %v13893_v54, 0.0  ;;  %v17613_v5 = vld [vmem:[#allocation175_spill] sm:$0xff] }
 0x1b2   : > { %v2790_v27 = vmax.f32 %v1792_v35, %v2752_v30  ;;  %v2217_v31 = vmul.f32 %v13505_v7, %v17605_v63  ;;  %v2218_v1 = vmul.f32 %v13505_v7, %v17606_v8  ;;  %v2179_v16 = vadd.f32 %v2141_v22, %v2103_v21  ;;  %v17615_v30 = vld [vmem:[#allocation176_spill] sm:$0xff]  ;;  %v17618_v21 = vld [vmem:[#allocation185_spill] sm:$0xff] }
 0x1b3   : > { %v2715_v24 = vadd.f32 %v13913_v34, %v2677_v53  ;;  %v2716_v4 = vadd.f32 %v13913_v34, %v2678_v17  ;;  %v2180_v36 = vadd.f32 %v2142_v62, %v2104_v60  ;;  %v2484_v49 = vmul.f32 %v13873_v25, %v11528_v9  ;;  %v17617_v17 = vld [vmem:[#allocation162_spill] sm:$0xff] }
 0x1b4   : > { %v2830_v3 = vmax.f32 %v2789_v0, %v2790_v27  ;;  %v2564_v58 = vmul.f32 %v13879_v13, %v11528_v9  ;;  %v2483_v54 = vmul.f32 %v13873_v25, %v11527_v61  ;;  %v2255_v15 = vadd.f32 %v2217_v31, %v2179_v16  ;;  %v17616_v0 = vld [vmem:[#allocation181_spill] sm:$0xff]  ;;  %v17619_v31 = vld [vmem:[#allocation182_spill] sm:$0xff]  ;;  %v17621_v16 = vld [vmem:[#allocation75_spill] sm:$0xff] }
 0x1b5   : > { %v2753_v35 = vmax.f32 %v2715_v24, 0.0  ;;  %v2754_v44 = vmax.f32 %v2716_v4, 0.0  ;;  %v2256_v50 = vadd.f32 %v2218_v1, %v2180_v36  ;;  %v13940_v45 = vmul.f32 %v13889_v20, %v11528_v9  ;;  %v11521_v9 = vpop.permute.xlu0 %11520  ;;  %v17620_v24 = vld [vmem:[#allocation179_spill] sm:$0xff]  ;;  %v17622_v36 = vld [vmem:[#allocation73_spill] sm:$0xff] }
 0x1b6   : > { %2831 = vst.msk [vmem:[%s13655_s19 + $0x28] sm:$0xff] %vm2820_vm0, %v2830_v3  ;;  %v13943_v12 = vmul.f32 %v13879_v13, %v11527_v61  ;;  %v13946_v43 = vmul.f32 %v13889_v20, %v11527_v61  ;;  %v1987_v14 = vmul.f32 %v13825_v59, %v17607_v37  ;;  %v1988_v29 = vmul.f32 %v13825_v59, %v17608_v39 }
 0x1b7   : > { %v2791_v38 = vmax.f32 %v1793_v26, %v2753_v35  ;;  %v2792_v6 = vmax.f32 %v1794_v47, %v2754_v44  ;;  %v2140_v19 = vmul.f32 %v13540_v52, %v17603_v55  ;;  %v2215_v41 = vmul.f32 %v13505_v7, %v17603_v55  ;;  %v17612_v26 = vld [vmem:[#allocation158_spill] sm:$0xff] }
 0x1b8   : > { %v2216_v61 = vmul.f32 %v13505_v7, %v17604_v42  ;;  %v1534_v2 = vadd.f32 %v17610_v51, %v17609_v18  ;;  %v1535_v40 = vadd.f32 %v17612_v26, %v17611_v56  ;;  %v2521_v46 = vadd.f32 %v2483_v54, %v2255_v15  ;;  %v17624_v54 = vld [vmem:[#allocation70_spill] sm:$0xff] }
 0x1b9   : > { %v2832_v23 = vmax.f32 %v2791_v38, %v2792_v6  ;;  %v1625_v28 = vadd.f32 %v17614_v48, %v17613_v5  ;;  %v1626_v22 = vadd.f32 %v17616_v0, %v17615_v30  ;;  %v13966_v62 = vadd.f32 %v2484_v49, %v2256_v50  ;;  %v17623_v49 = vld [vmem:[#allocation72_spill] sm:$0xff] }
 0x1ba   : > { %v11523_v55 = vunpack.i.h.bf16 %v11521_v9  ;;  %v11522_v53 = vunpack.i.l.bf16 %v11521_v9  ;;  %v1623_v42 = vadd.f32 %v17617_v17, %v1534_v2  ;;  %v1624_v60 = vadd.f32 %v17618_v21, %v1535_v40 }
 0x1bb   : > { %2833 = vst.msk [vmem:[%s13655_s19 + $0x30] sm:$0xff] %vm2820_vm0, %v2832_v23  ;;  %v1674_v47 = vmul.f32 %v13889_v20, %v17577_v32  ;;  %v1675_v27 = vmul.f32 %v13889_v20, %v17578_v33  ;;  %v1714_v1 = vadd.f32 %v17619_v31, %v1625_v28  ;;  %v1715_v4 = vadd.f32 %v17620_v24, %v1626_v22  ;;  %v17626_v31 = vld [vmem:[#allocation80_spill] sm:$0xff] }
 0x1bc   : > { %v1949_v3 = vadd.f32 %v17622_v36, %v17621_v16  ;;  %v1950_v35 = vadd.f32 %v17624_v54, %v17623_v49  ;;  %v2063_v44 = vmul.f32 %v13530_v10, %v17577_v32  ;;  %v2064_v38 = vmul.f32 %v13530_v10, %v17578_v33  ;;  %v17629_v36 = vld [vmem:[#allocation90_spill] sm:$0xff] }
 0x1bd   : > { %v1712_v15 = vadd.f32 %v1674_v47, %v1623_v42  ;;  %v1713_v50 = vadd.f32 %v1675_v27, %v1624_v60  ;;  %v13985_v37 = vadd.f32 %v13913_v34, %v1714_v1  ;;  %v13989_v6 = vadd.f32 %v2564_v58, %v2521_v46  ;;  %v11536_v46 = vpop.permute.xlu1 %11535  ;;  %v17625_v27 = vld [vmem:[#allocation82_spill] sm:$0xff] }
 0x1be   : > { %v2482_v39 = vmul.f32 %v13873_v25, %v11523_v55  ;;  %v2025_v9 = vadd.f32 %v1987_v14, %v1949_v3  ;;  %v2026_v18 = vadd.f32 %v1988_v29, %v1950_v35  ;;  %v2562_v51 = vmul.f32 %v13879_v13, %v11523_v55 }
 0x1bf   : > { %v2642_v2 = vmul.f32 %v13889_v20, %v11523_v55  ;;  %v1757_v32 = vadd.f32 %v13913_v34, %v1712_v15  ;;  %v1758_v56 = vadd.f32 %v13913_v34, %v1713_v50  ;;  %v2139_v23 = vmul.f32 %v13540_v52, %v17578_v33  ;;  %v17632_v50 = vld [vmem:[#allocation173_spill] sm:$0xff] }
 0x1c0   : > { %v2101_v26 = vadd.f32 %v2063_v44, %v2025_v9  ;;  %v2102_v40 = vadd.f32 %v2064_v38, %v2026_v18  ;;  %v2561_v58 = vmul.f32 %v13879_v13, %v11522_v53  ;;  %v14000_v5 = vadd.f32 %v13913_v34, %v1715_v4  ;;  %v17627_v4 = vld [vmem:[#allocation77_spill] sm:$0xff] }
 0x1c1   : > { %v1797_v14 = vmax.f32 %v13985_v37, 0.0  ;;  %v2481_v29 = vmul.f32 %v13873_v25, %v11522_v53  ;;  %v2641_v48 = vmul.f32 %v13889_v20, %v11522_v53  ;;  %v1795_v28 = vmax.f32 %v1757_v32, 0.0  ;;  %v17628_v53 = vld [vmem:[#allocation103_spill] sm:$0xff] }
 0x1c2   : > { %v2177_v30 = vadd.f32 %v2139_v23, %v2101_v26  ;;  %v2178_v0 = vadd.f32 %v2140_v19, %v2102_v40  ;;  %v2599_v22 = vadd.f32 %v2561_v58, %v13843_v11  ;;  %v1796_v55 = vmax.f32 %v1758_v56, 0.0  ;;  %v17630_v11 = vld [vmem:[#allocation89_spill] sm:$0xff] }
 0x1c3   : > { %v2679_v33 = vadd.f32 %v2641_v48, %v13868_v57  ;;  %v11538_v17 = vunpack.i.h.bf16 %v11536_v46  ;;  %v11537_v42 = vunpack.i.l.bf16 %v11536_v46  ;;  %v1955_v1 = vadd.f32 %v17626_v31, %v17625_v27  ;;  %v17633_v26 = vld [vmem:[#allocation189_spill] sm:$0xff]  ;;  %v17634_v48 = vld [vmem:[#allocation188_spill] sm:$0xff] }
 0x1c4   : > { %v2253_v21 = vadd.f32 %v2215_v41, %v2177_v30  ;;  %v2254_v60 = vadd.f32 %v2216_v61, %v2178_v0  ;;  %v2680_v47 = vadd.f32 %v2642_v2, %v2599_v22  ;;  %v1956_v16 = vadd.f32 %v17628_v53, %v17627_v4  ;;  %v17631_v61 = vld [vmem:[#allocation184_spill] sm:$0xff] }
 0x1c5   : > { %v2717_v24 = vadd.f32 %v13913_v34, %v2679_v33  ;;  %v1993_v19 = vmul.f32 %v13825_v59, %v17629_v36  ;;  %v1994_v3 = vmul.f32 %v13825_v59, %v17630_v11  ;;  %v2069_v54 = vmul.f32 %v13530_v10, %v17631_v61  ;;  %v17636_v4 = vld [vmem:[#allocation64_spill] sm:$0xff]  ;;  %v11531_v36 = vpop.permute.xlu0 %11530 }
 0x1c6   : > { %v2519_v57 = vadd.f32 %v2481_v29, %v2253_v21  ;;  %v2520_v49 = vadd.f32 %v2482_v39, %v2254_v60  ;;  %v2718_v41 = vadd.f32 %v13913_v34, %v2680_v47  ;;  %v2070_v37 = vmul.f32 %v13530_v10, %v17632_v50 }
 0x1c7   : > { %v2755_v35 = vmax.f32 %v2717_v24, 0.0  ;;  %v2031_v44 = vadd.f32 %v1993_v19, %v1955_v1  ;;  %v2032_v15 = vadd.f32 %v1994_v3, %v1956_v16  ;;  %v2145_v2 = vmul.f32 %v13540_v52, %v17632_v50  ;;  %v17635_v24 = vld [vmem:[#allocation66_spill] sm:$0xff] }
 0x1c8   : > { %v2600_v38 = vadd.f32 %v2562_v51, %v2519_v57  ;;  %v2601_v9 = vadd.f32 %v13943_v12, %v2520_v49  ;;  %v2756_v18 = vmax.f32 %v2718_v41, 0.0  ;;  %v2146_v40 = vmul.f32 %v13540_v52, %v17633_v26  ;;  %v17637_v57 = vld [vmem:[#allocation81_spill] sm:$0xff]  ;;  %v17638_v49 = vld [vmem:[#allocation180_spill] sm:$0xff] }
 0x1c9   : > { %v2793_v32 = vmax.f32 %v1795_v28, %v2755_v35  ;;  %v2107_v39 = vadd.f32 %v2069_v54, %v2031_v44  ;;  %v2108_v56 = vadd.f32 %v2070_v37, %v2032_v15  ;;  %v2221_v10 = vmul.f32 %v13505_v7, %v17633_v26  ;;  %v17639_v54 = vld [vmem:[#allocation84_spill] sm:$0xff]  ;;  %v17642_v37 = vld [vmem:[#allocation198_spill] sm:$0xff] }
 0x1ca   : > { %v2681_v23 = vadd.f32 %v13946_v43, %v2600_v38  ;;  %v2682_v58 = vadd.f32 %v13940_v45, %v2601_v9  ;;  %v2794_v46 = vmax.f32 %v1796_v55, %v2756_v18  ;;  %v2488_v12 = vmul.f32 %v13873_v25, %v11538_v17  ;;  %v17640_v35 = vld [vmem:[#allocation172_spill] sm:$0xff] }
 0x1cb   : > { %v2183_v51 = vadd.f32 %v2145_v2, %v2107_v39  ;;  %v2184_v29 = vadd.f32 %v2146_v40, %v2108_v56  ;;  %v2222_v28 = vmul.f32 %v13505_v7, %v17634_v48  ;;  %v2487_v43 = vmul.f32 %v13873_v25, %v11537_v42  ;;  %v17641_v15 = vld [vmem:[#allocation192_spill] sm:$0xff]  ;;  %v17643_v2 = vld [vmem:[#allocation178_spill] sm:$0xff]  ;;  %v17644_v39 = vld [vmem:[#allocation199_spill] sm:$0xff] }
 0x1cc   : > { %v2719_v30 = vadd.f32 %v13913_v34, %v2681_v23  ;;  %v2720_v0 = vadd.f32 %v13913_v34, %v2682_v58  ;;  %v2834_v22 = vmax.f32 %v2793_v32, %v2794_v46  ;;  %v1798_v45 = vmax.f32 %v14000_v5, 0.0  ;;  %v17646_v40 = vld [vmem:[#allocation195_spill] sm:$0xff] }
 0x1cd   : > { %v2568_v55 = vmul.f32 %v13879_v13, %v11538_v17  ;;  %v2259_v33 = vadd.f32 %v2221_v10, %v2183_v51  ;;  %v2260_v21 = vadd.f32 %v2222_v28, %v2184_v29  ;;  %v14041_v27 = vmul.f32 %v13889_v20, %v11538_v17  ;;  %v17647_v10 = vld [vmem:[#allocation196_spill] sm:$0xff]  ;;  %v17650_v29 = vld [vmem:[#allocation85_spill] sm:$0xff]  ;;  %v17651_v28 = vld [vmem:[#allocation83_spill] sm:$0xff] }
 0x1ce   : > { %v2757_v60 = vmax.f32 %v2719_v30, 0.0  ;;  %v2758_v47 = vmax.f32 %v2720_v0, 0.0  ;;  %2835 = vst.msk [vmem:[%s13655_s19 + $0x38] sm:$0xff] %vm2820_vm0, %v2834_v22  ;;  %v14044_v31 = vmul.f32 %v13879_v13, %v11537_v42  ;;  %v14047_v1 = vmul.f32 %v13889_v20, %v11537_v42  ;;  %v17652_v22 = vld [vmem:[#allocation191_spill] sm:$0xff] }
 0x1cf   : > { %v1991_v5 = vmul.f32 %v13825_v59, %v17635_v24  ;;  %v1992_v53 = vmul.f32 %v13825_v59, %v17636_v4  ;;  %v2144_v16 = vmul.f32 %v13540_v52, %v17631_v61  ;;  %v2525_v11 = vadd.f32 %v2487_v43, %v2259_v33 }
 0x1d0   : > { %v2795_v19 = vmax.f32 %v1797_v14, %v2757_v60  ;;  %v2796_v17 = vmax.f32 %v1798_v45, %v2758_v47  ;;  %v14055_v3 = vadd.f32 %v2488_v12, %v2260_v21  ;;  %v2219_v42 = vmul.f32 %v13505_v7, %v17631_v61  ;;  %v17645_v61 = vld [vmem:[#allocation193_spill] sm:$0xff]  ;;  %v14086_v45 = vld [vmem:[%s17157_s1 + $0x3] ss:$0 sm:$0xff] }
 0x1d1   : > { %v1538_v41 = vadd.f32 %v17638_v49, %v17637_v57  ;;  %v1539_v44 = vadd.f32 %v17640_v35, %v17639_v54  ;;  %v1629_v38 = vadd.f32 %v17642_v37, %v17641_v15  ;;  %v2220_v14 = vmul.f32 %v13505_v7, %v17632_v50  ;;  %v17648_v7 = vld [vmem:[#allocation87_spill] sm:$0xff]  ;;  %v17649_v50 = vld [vmem:[#allocation86_spill] sm:$0xff] }
 0x1d2   : > { %v2836_v52 = vmax.f32 %v2795_v19, %v2796_v17  ;;  %v11533_v9 = vunpack.i.h.bf16 %v11531_v36  ;;  %v11532_v18 = vunpack.i.l.bf16 %v11531_v36  ;;  %v1630_v23 = vadd.f32 %v17646_v40, %v17645_v61  ;;  %v14104_v54 = vld [vmem:[%s17157_s1 + $0x4] ss:$0 sm:$0xff] }
 0x1d3   : > { %v1627_v32 = vadd.f32 %v17643_v2, %v1538_v41  ;;  %v1628_v56 = vadd.f32 %v17644_v39, %v1539_v44  ;;  %v1678_v58 = vmul.f32 %v13889_v20, %v17605_v63  ;;  %v1679_v46 = vmul.f32 %v13889_v20, %v17606_v8  ;;  %v11546_v44 = vpop.permute.xlu1 %11545 }
 0x1d4   : > { %2837 = vst.msk [vmem:[%s13655_s19 + $0x40] sm:$0xff] %vm2820_vm0, %v2836_v52  ;;  %v1718_v12 = vadd.f32 %v17647_v10, %v1629_v38  ;;  %v1953_v51 = vadd.f32 %v17649_v50, %v17648_v7  ;;  %v1954_v30 = vadd.f32 %v17651_v28, %v17650_v29  ;;  %v1719_v43 = vadd.f32 %v17652_v22, %v1630_v23  ;;  %v17654_v10 = vld [vmem:[#allocation93_spill] sm:$0xff]  ;;  %v17655_v7 = vld [vmem:[#allocation92_spill] sm:$0xff]  ;;  %v17658_v28 = vld [vmem:[#allocation95_spill] sm:$0xff] }
 0x1d5   : > { %v1716_v0 = vadd.f32 %v1678_v58, %v1627_v32  ;;  %v2067_v33 = vmul.f32 %v14086_v45, %v17605_v63  ;;  %v2068_v21 = vmul.f32 %v14086_v45, %v17606_v8  ;;  %v1717_v60 = vadd.f32 %v1679_v46, %v1628_v56  ;;  %v17653_v46 = vld [vmem:[#allocation96_spill] sm:$0xff]  ;;  %v17657_v29 = vld [vmem:[#allocation105_spill] sm:$0xff]  ;;  %v17660_v22 = vld [vmem:[#allocation187_spill] sm:$0xff] }
 0x1d6   : > { %v14093_v47 = vadd.f32 %v13913_v34, %v1718_v12  ;;  %v2029_v24 = vadd.f32 %v1991_v5, %v1953_v51  ;;  %v2030_v4 = vadd.f32 %v1992_v53, %v1954_v30  ;;  %v14095_v36 = vadd.f32 %v2568_v55, %v2525_v11  ;;  %v17659_v30 = vld [vmem:[#allocation197_spill] sm:$0xff] }
 0x1d7   : > { %v2486_v19 = vmul.f32 %v13873_v25, %v11533_v9  ;;  %v2566_v17 = vmul.f32 %v13879_v13, %v11533_v9  ;;  %v1761_v57 = vadd.f32 %v13913_v34, %v1716_v0  ;;  %v1762_v49 = vadd.f32 %v13913_v34, %v1717_v60 }
 0x1d8   : > { %v2105_v63 = vadd.f32 %v2067_v33, %v2029_v24  ;;  %v2106_v41 = vadd.f32 %v2068_v21, %v2030_v4  ;;  %v2143_v5 = vmul.f32 %v14104_v54, %v17606_v8  ;;  %v2646_v55 = vmul.f32 %v13889_v20, %v11533_v9 }
 0x1d9   : > { %v14110_v53 = vadd.f32 %v13913_v34, %v1719_v43  ;;  %v2565_v11 = vmul.f32 %v13879_v13, %v11532_v18  ;;  %v2645_v35 = vmul.f32 %v13889_v20, %v11532_v18  ;;  %v1801_v15 = vmax.f32 %v14093_v47, 0.0 }
 0x1da   : > { %v2181_v37 = vadd.f32 %v2143_v5, %v2105_v63  ;;  %v2182_v38 = vadd.f32 %v2144_v16, %v2106_v41  ;;  %v2485_v52 = vmul.f32 %v13873_v25, %v11532_v18  ;;  %v1799_v2 = vmax.f32 %v1761_v57, 0.0  ;;  %v17656_v16 = vld [vmem:[#allocation116_spill] sm:$0xff]  ;;  %v17661_v57 = vld [vmem:[#allocation205_spill] sm:$0xff] }
 0x1db   : > { %v1800_v32 = vmax.f32 %v1762_v49, 0.0  ;;  %v2603_v8 = vadd.f32 %v2565_v11, %v13966_v62  ;;  %v2683_v9 = vadd.f32 %v2645_v35, %v13989_v6  ;;  %v11548_v61 = vunpack.i.h.bf16 %v11546_v44 }
 0x1dc   : > { %v2257_v39 = vadd.f32 %v2219_v42, %v2181_v37  ;;  %v2258_v56 = vadd.f32 %v2220_v14, %v2182_v38  ;;  %v11547_v40 = vunpack.i.l.bf16 %v11546_v44  ;;  %v1959_v12 = vadd.f32 %v17654_v10, %v17653_v46  ;;  %v17662_v44 = vld [vmem:[#allocation202_spill] sm:$0xff] }
 0x1dd   : > { %v2684_v23 = vadd.f32 %v2646_v55, %v2603_v8  ;;  %v2721_v58 = vadd.f32 %v13913_v34, %v2683_v9  ;;  %v1960_v50 = vadd.f32 %v17656_v16, %v17655_v7  ;;  %v1997_v62 = vmul.f32 %v13825_v59, %v17657_v29 }
 0x1de   : > { %v2523_v18 = vadd.f32 %v2485_v52, %v2257_v39  ;;  %v2524_v51 = vadd.f32 %v2486_v19, %v2258_v56  ;;  %v1998_v6 = vmul.f32 %v13825_v59, %v17658_v28  ;;  %v2073_v0 = vmul.f32 %v14086_v45, %v17659_v30  ;;  %v17665_v28 = vld [vmem:[#allocation97_spill] sm:$0xff] }
 0x1df   : > { %v2722_v42 = vadd.f32 %v13913_v34, %v2684_v23  ;;  %v2759_v14 = vmax.f32 %v2721_v58, 0.0  ;;  %v2074_v43 = vmul.f32 %v14086_v45, %v17660_v22  ;;  %v2035_v60 = vadd.f32 %v1997_v62, %v1959_v12  ;;  %v17663_v12 = vld [vmem:[#allocation79_spill] sm:$0xff] }
 0x1e0   : > { %v2604_v33 = vadd.f32 %v2566_v17, %v2523_v18  ;;  %v2605_v21 = vadd.f32 %v14044_v31, %v2524_v51  ;;  %v2036_v47 = vadd.f32 %v1998_v6, %v1960_v50  ;;  %v2149_v19 = vmul.f32 %v14104_v54, %v17660_v22  ;;  %v14143_v31 = vld [vmem:[%s17157_s1 + $0x5] ss:$0 sm:$0xff]  ;;  %v17664_v18 = vld [vmem:[#allocation78_spill] sm:$0xff] }
 0x1e1   : > { %v2760_v24 = vmax.f32 %v2722_v42, 0.0  ;;  %v2797_v4 = vmax.f32 %v1799_v2, %v2759_v14  ;;  %v2150_v49 = vmul.f32 %v14104_v54, %v17661_v57  ;;  %v2111_v5 = vadd.f32 %v2073_v0, %v2035_v60  ;;  %v17666_v6 = vld [vmem:[#allocation194_spill] sm:$0xff]  ;;  %v17667_v14 = vld [vmem:[#allocation99_spill] sm:$0xff] }
 0x1e2   : > { %v2685_v63 = vadd.f32 %v14047_v1, %v2604_v33  ;;  %v2686_v41 = vadd.f32 %v14041_v27, %v2605_v21  ;;  %v2112_v55 = vadd.f32 %v2074_v43, %v2036_v47  ;;  %v1802_v17 = vmax.f32 %v14110_v53, 0.0  ;;  %v17669_v21 = vld [vmem:[#allocation203_spill] sm:$0xff] }
 0x1e3   : > { %v2798_v11 = vmax.f32 %v1800_v32, %v2760_v24  ;;  %v2225_v35 = vmul.f32 %v14143_v31, %v17661_v57  ;;  %v2226_v37 = vmul.f32 %v14143_v31, %v17662_v44  ;;  %v2187_v38 = vadd.f32 %v2149_v19, %v2111_v5  ;;  %v17670_v60 = vld [vmem:[#allocation211_spill] sm:$0xff]  ;;  %v17671_v24 = vld [vmem:[#allocation204_spill] sm:$0xff]  ;;  %v17674_v5 = vld [vmem:[#allocation214_spill] sm:$0xff] }
 0x1e4   : > { %v2723_v1 = vadd.f32 %v13913_v34, %v2685_v63  ;;  %v2724_v27 = vadd.f32 %v13913_v34, %v2686_v41  ;;  %v2188_v52 = vadd.f32 %v2150_v49, %v2112_v55  ;;  %v2492_v2 = vmul.f32 %v13873_v25, %v11548_v61  ;;  %v17673_v41 = vld [vmem:[#allocation190_spill] sm:$0xff] }
 0x1e5   : > { %v2838_v53 = vmax.f32 %v2797_v4, %v2798_v11  ;;  %v2572_v32 = vmul.f32 %v13879_v13, %v11548_v61  ;;  %v2491_v8 = vmul.f32 %v13873_v25, %v11547_v40  ;;  %v2263_v56 = vadd.f32 %v2225_v35, %v2187_v38  ;;  %v17672_v4 = vld [vmem:[#allocation209_spill] sm:$0xff]  ;;  %v17675_v35 = vld [vmem:[#allocation210_spill] sm:$0xff] }
 0x1e6   : > { %v2761_v9 = vmax.f32 %v2723_v1, 0.0  ;;  %v2762_v39 = vmax.f32 %v2724_v27, 0.0  ;;  %v2264_v23 = vadd.f32 %v2226_v37, %v2188_v52  ;;  %v14157_v58 = vmul.f32 %v13889_v20, %v11548_v61  ;;  %v11541_v61 = vpop.permute.xlu0 %11540  ;;  %v17676_v1 = vld [vmem:[#allocation207_spill] sm:$0xff]  ;;  %v17677_v38 = vld [vmem:[#allocation102_spill] sm:$0xff]  ;;  %v17678_v52 = vld [vmem:[#allocation101_spill] sm:$0xff] }
 0x1e7   : > { %2839 = vst.msk [vmem:[%s13655_s19 + $0x48] sm:$0xff] %vm2820_vm0, %v2838_v53  ;;  %v14160_v46 = vmul.f32 %v13879_v13, %v11547_v40  ;;  %v14163_v10 = vmul.f32 %v13889_v20, %v11547_v40  ;;  %v1995_v7 = vmul.f32 %v13825_v59, %v17663_v12  ;;  %v1996_v51 = vmul.f32 %v13825_v59, %v17664_v18 }
 0x1e8   : > { %v2799_v16 = vmax.f32 %v1801_v15, %v2761_v9  ;;  %v2800_v50 = vmax.f32 %v1802_v17, %v2762_v39  ;;  %v2148_v29 = vmul.f32 %v14104_v54, %v17659_v30  ;;  %v2223_v62 = vmul.f32 %v14143_v31, %v17659_v30  ;;  %v17668_v15 = vld [vmem:[#allocation186_spill] sm:$0xff] }
 0x1e9   : > { %v2224_v40 = vmul.f32 %v14143_v31, %v17660_v22  ;;  %v1542_v42 = vadd.f32 %v17666_v6, %v17665_v28  ;;  %v1543_v0 = vadd.f32 %v17668_v15, %v17667_v14  ;;  %v2529_v33 = vadd.f32 %v2491_v8, %v2263_v56  ;;  %v17680_v8 = vld [vmem:[#allocation98_spill] sm:$0xff] }
 0x1ea   : > { %v2840_v43 = vmax.f32 %v2799_v16, %v2800_v50  ;;  %v1633_v47 = vadd.f32 %v17670_v60, %v17669_v21  ;;  %v1634_v19 = vadd.f32 %v17672_v4, %v17671_v24  ;;  %v14183_v49 = vadd.f32 %v2492_v2, %v2264_v23  ;;  %v17679_v2 = vld [vmem:[#allocation100_spill] sm:$0xff] }
 0x1eb   : > { %v11543_v30 = vunpack.i.h.bf16 %v11541_v61  ;;  %v11542_v63 = vunpack.i.l.bf16 %v11541_v61  ;;  %v1631_v22 = vadd.f32 %v17673_v41, %v1542_v42  ;;  %v1632_v55 = vadd.f32 %v17674_v5, %v1543_v0 }
 0x1ec   : > { %2841 = vst.msk [vmem:[%s13655_s19 + $0x50] sm:$0xff] %vm2820_vm0, %v2840_v43  ;;  %v1682_v17 = vmul.f32 %v13889_v20, %v17633_v26  ;;  %v1683_v11 = vmul.f32 %v13889_v20, %v17634_v48  ;;  %v1722_v37 = vadd.f32 %v17675_v35, %v1633_v47  ;;  %v1723_v27 = vadd.f32 %v17676_v1, %v1634_v19  ;;  %v17682_v35 = vld [vmem:[#allocation108_spill] sm:$0xff] }
 0x1ed   : > { %v1957_v53 = vadd.f32 %v17678_v52, %v17677_v38  ;;  %v1958_v9 = vadd.f32 %v17680_v8, %v17679_v2  ;;  %v2071_v39 = vmul.f32 %v14086_v45, %v17633_v26  ;;  %v2072_v16 = vmul.f32 %v14086_v45, %v17634_v48  ;;  %v17685_v52 = vld [vmem:[#allocation119_spill] sm:$0xff] }
 0x1ee   : > { %v1720_v56 = vadd.f32 %v1682_v17, %v1631_v22  ;;  %v1721_v23 = vadd.f32 %v1683_v11, %v1632_v55  ;;  %v14202_v12 = vadd.f32 %v13913_v34, %v1722_v37  ;;  %v14206_v50 = vadd.f32 %v2572_v32, %v2529_v33  ;;  %v11556_v33 = vpop.permute.xlu1 %11555  ;;  %v17681_v11 = vld [vmem:[#allocation109_spill] sm:$0xff] }
 0x1ef   : > { %v2490_v18 = vmul.f32 %v13873_v25, %v11543_v30  ;;  %v2033_v61 = vadd.f32 %v1995_v7, %v1957_v53  ;;  %v2034_v28 = vadd.f32 %v1996_v51, %v1958_v9  ;;  %v2570_v6 = vmul.f32 %v13879_v13, %v11543_v30 }
 0x1f0   : > { %v2650_v42 = vmul.f32 %v13889_v20, %v11543_v30  ;;  %v1765_v26 = vadd.f32 %v13913_v34, %v1720_v56  ;;  %v1766_v14 = vadd.f32 %v13913_v34, %v1721_v23  ;;  %v2147_v43 = vmul.f32 %v14104_v54, %v17634_v48  ;;  %v17688_v23 = vld [vmem:[#allocation201_spill] sm:$0xff] }
 0x1f1   : > { %v2109_v15 = vadd.f32 %v2071_v39, %v2033_v61  ;;  %v2110_v0 = vadd.f32 %v2072_v16, %v2034_v28  ;;  %v2569_v32 = vmul.f32 %v13879_v13, %v11542_v63  ;;  %v14217_v21 = vadd.f32 %v13913_v34, %v1723_v27  ;;  %v17683_v27 = vld [vmem:[#allocation104_spill] sm:$0xff] }
 0x1f2   : > { %v1805_v7 = vmax.f32 %v14202_v12, 0.0  ;;  %v2489_v51 = vmul.f32 %v13873_v25, %v11542_v63  ;;  %v2649_v60 = vmul.f32 %v13889_v20, %v11542_v63  ;;  %v1803_v47 = vmax.f32 %v1765_v26, 0.0  ;;  %v17684_v63 = vld [vmem:[#allocation129_spill] sm:$0xff] }
 0x1f3   : > { %v2185_v24 = vadd.f32 %v2147_v43, %v2109_v15  ;;  %v2186_v4 = vadd.f32 %v2148_v29, %v2110_v0  ;;  %v2607_v19 = vadd.f32 %v2569_v32, %v14055_v3  ;;  %v1804_v30 = vmax.f32 %v1766_v14, 0.0  ;;  %v17686_v3 = vld [vmem:[#allocation115_spill] sm:$0xff]  ;;  %v17689_v15 = vld [vmem:[#allocation218_spill] sm:$0xff] }
 0x1f4   : > { %v2687_v48 = vadd.f32 %v2649_v60, %v14095_v36  ;;  %v11558_v41 = vunpack.i.h.bf16 %v11556_v33  ;;  %v11557_v22 = vunpack.i.l.bf16 %v11556_v33  ;;  %v1963_v37 = vadd.f32 %v17682_v35, %v17681_v11 }
 0x1f5   : > { %v2261_v5 = vadd.f32 %v2223_v62, %v2185_v24  ;;  %v2262_v55 = vadd.f32 %v2224_v40, %v2186_v4  ;;  %v2688_v17 = vadd.f32 %v2650_v42, %v2607_v19  ;;  %v1964_v38 = vadd.f32 %v17684_v63, %v17683_v27  ;;  %v17687_v40 = vld [vmem:[#allocation212_spill] sm:$0xff]  ;;  %v17690_v24 = vld [vmem:[#allocation217_spill] sm:$0xff]  ;;  %v17691_v27 = vld [vmem:[#allocation94_spill] sm:$0xff] }
 0x1f6   : > { %v2725_v1 = vadd.f32 %v13913_v34, %v2687_v48  ;;  %v2001_v29 = vmul.f32 %v13825_v59, %v17685_v52  ;;  %v2002_v53 = vmul.f32 %v13825_v59, %v17686_v3  ;;  %v2077_v8 = vmul.f32 %v14086_v45, %v17687_v40  ;;  %v17692_v63 = vld [vmem:[#allocation91_spill] sm:$0xff] }
 0x1f7   : > { %v2527_v36 = vadd.f32 %v2489_v51, %v2261_v5  ;;  %v2528_v2 = vadd.f32 %v2490_v18, %v2262_v55  ;;  %v2726_v62 = vadd.f32 %v13913_v34, %v2688_v17  ;;  %v2078_v12 = vmul.f32 %v14086_v45, %v17688_v23 }
 0x1f8   : > { %v2763_v9 = vmax.f32 %v2725_v1, 0.0  ;;  %v2039_v39 = vadd.f32 %v2001_v29, %v1963_v37  ;;  %v2040_v56 = vadd.f32 %v2002_v53, %v1964_v38  ;;  %v2153_v42 = vmul.f32 %v14104_v54, %v17688_v23  ;;  %v11551_v29 = vpop.permute.xlu0 %11550 }
 0x1f9   : > { %v2608_v16 = vadd.f32 %v2570_v6, %v2527_v36  ;;  %v2609_v61 = vadd.f32 %v14160_v46, %v2528_v2  ;;  %v2764_v28 = vmax.f32 %v2726_v62, 0.0  ;;  %v2154_v0 = vmul.f32 %v14104_v54, %v17689_v15  ;;  %v17693_v2 = vld [vmem:[#allocation5_spill] sm:$0xff]  ;;  %v17694_v62 = vld [vmem:[#allocation208_spill] sm:$0xff] }
 0x1fa   : > { %v2801_v26 = vmax.f32 %v1803_v47, %v2763_v9  ;;  %v2115_v18 = vadd.f32 %v2077_v8, %v2039_v39  ;;  %v2116_v14 = vadd.f32 %v2078_v12, %v2040_v56  ;;  %v2229_v6 = vmul.f32 %v14143_v31, %v17689_v15  ;;  %v17695_v9 = vld [vmem:[#allocation113_spill] sm:$0xff]  ;;  %v17696_v39 = vld [vmem:[#allocation200_spill] sm:$0xff] }
 0x1fb   : > { %v2689_v43 = vadd.f32 %v14163_v10, %v2608_v16  ;;  %v2690_v32 = vadd.f32 %v14157_v58, %v2609_v61  ;;  %v2802_v33 = vmax.f32 %v1804_v30, %v2764_v28  ;;  %v2496_v46 = vmul.f32 %v13873_v25, %v11558_v41  ;;  %v17697_v12 = vld [vmem:[#allocation221_spill] sm:$0xff]  ;;  %v17698_v16 = vld [vmem:[#allocation227_spill] sm:$0xff] }
 0x1fc   : > { %v2191_v51 = vadd.f32 %v2153_v42, %v2115_v18  ;;  %v2192_v60 = vadd.f32 %v2154_v0, %v2116_v14  ;;  %v2230_v47 = vmul.f32 %v14143_v31, %v17690_v24  ;;  %v2495_v10 = vmul.f32 %v13873_v25, %v11557_v22  ;;  %v17699_v18 = vld [vmem:[#allocation206_spill] sm:$0xff]  ;;  %v17700_v0 = vld [vmem:[#allocation117_spill] sm:$0xff] }
 0x1fd   : > { %v2727_v4 = vadd.f32 %v13913_v34, %v2689_v43  ;;  %v2728_v19 = vadd.f32 %v13913_v34, %v2690_v32  ;;  %v2842_v48 = vmax.f32 %v2801_v26, %v2802_v33  ;;  %v1806_v58 = vmax.f32 %v14217_v21, 0.0  ;;  %v17702_v32 = vld [vmem:[#allocation224_spill] sm:$0xff] }
 0x1fe   : > { %v2576_v30 = vmul.f32 %v13879_v13, %v11558_v41  ;;  %v2267_v5 = vadd.f32 %v2229_v6, %v2191_v51  ;;  %v2268_v55 = vadd.f32 %v2230_v47, %v2192_v60  ;;  %v14258_v35 = vmul.f32 %v13889_v20, %v11558_v41  ;;  %v17703_v51 = vld [vmem:[#allocation225_spill] sm:$0xff]  ;;  %v17705_v47 = vld [vmem:[#allocation112_spill] sm:$0xff] }
 0x1ff   : > { %v2765_v17 = vmax.f32 %v2727_v4, 0.0  ;;  %v2766_v11 = vmax.f32 %v2728_v19, 0.0  ;;  %2843 = vst.msk [vmem:[%s13655_s19 + $0x58] sm:$0xff] %vm2820_vm0, %v2842_v48  ;;  %v14261_v37 = vmul.f32 %v13879_v13, %v11557_v22  ;;  %v14264_v1 = vmul.f32 %v13889_v20, %v11557_v22  ;;  %v17706_v19 = vld [vmem:[#allocation111_spill] sm:$0xff]  ;;  %v17707_v48 = vld [vmem:[#allocation110_spill] sm:$0xff] }
 0x200   : > { %v1999_v21 = vmul.f32 %v13825_v59, %v17691_v27  ;;  %v2000_v38 = vmul.f32 %v13825_v59, %v17692_v63  ;;  %v2152_v52 = vmul.f32 %v14104_v54, %v17687_v40  ;;  %v2533_v53 = vadd.f32 %v2495_v10, %v2267_v5  ;;  %v17708_v5 = vld [vmem:[#allocation220_spill] sm:$0xff] }
 0x201   : > { %v2803_v3 = vmax.f32 %v1805_v7, %v2765_v17  ;;  %v2804_v41 = vmax.f32 %v1806_v58, %v2766_v11  ;;  %v14272_v36 = vadd.f32 %v2496_v46, %v2268_v55  ;;  %v2227_v22 = vmul.f32 %v14143_v31, %v17687_v40  ;;  %v17701_v40 = vld [vmem:[#allocation222_spill] sm:$0xff] }
 0x202   : > { %v1546_v8 = vadd.f32 %v17694_v62, %v17693_v2  ;;  %v1547_v56 = vadd.f32 %v17696_v39, %v17695_v9  ;;  %v1637_v61 = vadd.f32 %v17698_v16, %v17697_v12  ;;  %v2228_v7 = vmul.f32 %v14143_v31, %v17688_v23  ;;  %v17704_v23 = vld [vmem:[#allocation114_spill] sm:$0xff] }
 0x203   : > { %v2844_v28 = vmax.f32 %v2803_v3, %v2804_v41  ;;  %v11553_v42 = vunpack.i.h.bf16 %v11551_v29  ;;  %v11552_v26 = vunpack.i.l.bf16 %v11551_v29  ;;  %v1638_v33 = vadd.f32 %v17702_v32, %v17701_v40 }
 0x204   : > { %v1635_v14 = vadd.f32 %v17699_v18, %v1546_v8  ;;  %v1636_v43 = vadd.f32 %v17700_v0, %v1547_v56  ;;  %v1686_v6 = vmul.f32 %v13889_v20, %v17661_v57  ;;  %v1687_v46 = vmul.f32 %v13889_v20, %v17662_v44 }
 0x205   : > { %2845 = vst.msk [vmem:[%s13655_s19 + $0x60] sm:$0xff] %vm2820_vm0, %v2844_v28  ;;  %v1726_v60 = vadd.f32 %v17703_v51, %v1637_v61  ;;  %v1961_v4 = vadd.f32 %v17705_v47, %v17704_v23  ;;  %v1962_v10 = vadd.f32 %v17707_v48, %v17706_v19  ;;  %v1727_v55 = vadd.f32 %v17708_v5, %v1638_v33  ;;  %v17709_v51 = vld [vmem:[#allocation121_spill] sm:$0xff]  ;;  %v17711_v47 = vld [vmem:[#allocation118_spill] sm:$0xff]  ;;  %v17713_v48 = vld [vmem:[#allocation135_spill] sm:$0xff] }
 0x206   : > { %v1724_v58 = vadd.f32 %v1686_v6, %v1635_v14  ;;  %v2075_v17 = vmul.f32 %v14086_v45, %v17661_v57  ;;  %v2076_v11 = vmul.f32 %v14086_v45, %v17662_v44  ;;  %v1725_v27 = vadd.f32 %v1687_v46, %v1636_v43 }
 0x207   : > { %v14305_v63 = vadd.f32 %v13913_v34, %v1726_v60  ;;  %v2037_v29 = vadd.f32 %v1999_v21, %v1961_v4  ;;  %v2038_v3 = vadd.f32 %v2000_v38, %v1962_v10  ;;  %v14307_v41 = vadd.f32 %v2576_v30, %v2533_v53  ;;  %v11566_v53 = vpop.permute.xlu1 %11565  ;;  %v17710_v60 = vld [vmem:[#allocation120_spill] sm:$0xff] }
 0x208   : > { %v2494_v2 = vmul.f32 %v13873_v25, %v11553_v42  ;;  %v2574_v62 = vmul.f32 %v13879_v13, %v11553_v42  ;;  %v1769_v8 = vadd.f32 %v13913_v34, %v1724_v58  ;;  %v1770_v9 = vadd.f32 %v13913_v34, %v1725_v27  ;;  %v17714_v10 = vld [vmem:[#allocation124_spill] sm:$0xff]  ;;  %v17715_v58 = vld [vmem:[#allocation226_spill] sm:$0xff] }
 0x209   : > { %v2113_v57 = vadd.f32 %v2075_v17, %v2037_v29  ;;  %v2114_v39 = vadd.f32 %v2076_v11, %v2038_v3  ;;  %v2151_v56 = vmul.f32 %v14104_v54, %v17662_v44  ;;  %v2654_v12 = vmul.f32 %v13889_v20, %v11553_v42 }
 0x20a   : > { %v14317_v21 = vadd.f32 %v13913_v34, %v1727_v55  ;;  %v2573_v30 = vmul.f32 %v13879_v13, %v11552_v26  ;;  %v2653_v38 = vmul.f32 %v13889_v20, %v11552_v26  ;;  %v1809_v16 = vmax.f32 %v14305_v63, 0.0  ;;  %v17716_v55 = vld [vmem:[#allocation216_spill] sm:$0xff] }
 0x20b   : > { %v2189_v61 = vadd.f32 %v2151_v56, %v2113_v57  ;;  %v2190_v28 = vadd.f32 %v2152_v52, %v2114_v39  ;;  %v2493_v18 = vmul.f32 %v13873_v25, %v11552_v26  ;;  %v1807_v14 = vmax.f32 %v1769_v8, 0.0  ;;  %v17712_v52 = vld [vmem:[#allocation144_spill] sm:$0xff] }
 0x20c   : > { %v1808_v0 = vmax.f32 %v1770_v9, 0.0  ;;  %v2611_v44 = vadd.f32 %v2573_v30, %v14183_v49  ;;  %v2691_v42 = vadd.f32 %v2653_v38, %v14206_v50  ;;  %v11568_v32 = vunpack.i.h.bf16 %v11566_v53  ;;  %v17717_v9 = vld [vmem:[#allocation234_spill] sm:$0xff] }
 0x20d   : > { %v2265_v43 = vadd.f32 %v2227_v22, %v2189_v61  ;;  %v2266_v40 = vadd.f32 %v2228_v7, %v2190_v28  ;;  %v11567_v33 = vunpack.i.l.bf16 %v11566_v53  ;;  %v1967_v23 = vadd.f32 %v17710_v60, %v17709_v51 }
 0x20e   : > { %v2692_v6 = vadd.f32 %v2654_v12, %v2611_v44  ;;  %v2729_v46 = vadd.f32 %v13913_v34, %v2691_v42  ;;  %v1968_v4 = vadd.f32 %v17712_v52, %v17711_v47  ;;  %v2005_v49 = vmul.f32 %v13825_v59, %v17713_v48 }
 0x20f   : > { %v2531_v26 = vadd.f32 %v2493_v18, %v2265_v43  ;;  %v2532_v19 = vadd.f32 %v2494_v2, %v2266_v40  ;;  %v2006_v50 = vmul.f32 %v13825_v59, %v17714_v10  ;;  %v2081_v5 = vmul.f32 %v14086_v45, %v17715_v58 }
 0x210   : > { %v2730_v22 = vadd.f32 %v13913_v34, %v2692_v6  ;;  %v2767_v7 = vmax.f32 %v2729_v46, 0.0  ;;  %v2082_v17 = vmul.f32 %v14086_v45, %v17716_v55  ;;  %v2043_v63 = vadd.f32 %v2005_v49, %v1967_v23  ;;  %v17719_v23 = vld [vmem:[#allocation107_spill] sm:$0xff]  ;;  %v11561_v49 = vpop.permute.xlu0 %11560 }
 0x211   : > { %v2612_v11 = vadd.f32 %v2574_v62, %v2531_v26  ;;  %v2613_v27 = vadd.f32 %v14261_v37, %v2532_v19  ;;  %v2044_v29 = vadd.f32 %v2006_v50, %v1968_v4  ;;  %v2157_v8 = vmul.f32 %v14104_v54, %v17716_v55  ;;  %v11588_v4 = vld [vmem:[%s17157_s1 + $0x2] ss:$0 sm:$0xff]  ;;  %v17720_v26 = vld [vmem:[#allocation106_spill] sm:$0xff] }
 0x212   : > { %v2768_v3 = vmax.f32 %v2730_v22, 0.0  ;;  %v2805_v2 = vmax.f32 %v1807_v14, %v2767_v7  ;;  %v2158_v57 = vmul.f32 %v14104_v54, %v17717_v9  ;;  %v2119_v12 = vadd.f32 %v2081_v5, %v2043_v63  ;;  %v17723_v7 = vld [vmem:[#allocation127_spill] sm:$0xff]  ;;  %v17725_v63 = vld [vmem:[#allocation232_spill] sm:$0xff] }
 0x213   : > { %v2693_v39 = vadd.f32 %v14264_v1, %v2612_v11  ;;  %v2694_v56 = vadd.f32 %v14258_v35, %v2613_v27  ;;  %v2120_v30 = vadd.f32 %v2082_v17, %v2044_v29  ;;  %v1810_v62 = vmax.f32 %v14317_v21, 0.0  ;;  %v17718_v21 = vld [vmem:[#allocation240_spill] sm:$0xff]  ;;  %v17724_v5 = vld [vmem:[#allocation215_spill] sm:$0xff]  ;;  %v17726_v29 = vld [vmem:[#allocation238_spill] sm:$0xff] }
 0x214   : > { %v2806_v37 = vmax.f32 %v1808_v0, %v2768_v3  ;;  %v2500_v38 = vmul.f32 %v13873_v25, %v11568_v32  ;;  %v2233_v53 = vmul.f32 %v14143_v31, %v17717_v9  ;;  %v2195_v18 = vadd.f32 %v2157_v8, %v2119_v12  ;;  %v17728_v8 = vld [vmem:[#allocation236_spill] sm:$0xff]  ;;  %v17729_v12 = vld [vmem:[#allocation219_spill] sm:$0xff] }
 0x215   : > { %v2731_v61 = vadd.f32 %v13913_v34, %v2693_v39  ;;  %v2732_v28 = vadd.f32 %v13913_v34, %v2694_v56  ;;  %v2196_v14 = vadd.f32 %v2158_v57, %v2120_v30  ;;  %v2580_v35 = vmul.f32 %v13879_v13, %v11568_v32  ;;  %v17730_v30 = vld [vmem:[#allocation239_spill] sm:$0xff] }
 0x216   : > { %v2846_v1 = vmax.f32 %v2805_v2, %v2806_v37  ;;  %v14354_v44 = vmul.f32 %v13889_v20, %v11568_v32  ;;  %v2234_v0 = vmul.f32 %v14143_v31, %v17718_v21  ;;  %v2499_v40 = vmul.f32 %v13873_v25, %v11567_v33  ;;  %v17727_v2 = vld [vmem:[#allocation233_spill] sm:$0xff] }
 0x217   : > { %v2769_v42 = vmax.f32 %v2731_v61, 0.0  ;;  %v2770_v43 = vmax.f32 %v2732_v28, 0.0  ;;  %v14360_v6 = vmul.f32 %v13879_v13, %v11567_v33  ;;  %v2271_v46 = vadd.f32 %v2233_v53, %v2195_v18  ;;  %v17731_v61 = vld [vmem:[#allocation237_spill] sm:$0xff]  ;;  %v17732_v18 = vld [vmem:[#allocation231_spill] sm:$0xff] }
 0x218   : > { %2847 = vst.msk [vmem:[%s13655_s19 + $0x68] sm:$0xff] %vm2820_vm0, %v2846_v1  ;;  %v2272_v51 = vadd.f32 %v2234_v0, %v2196_v14  ;;  %v14365_v60 = vmul.f32 %v13889_v20, %v11567_v33  ;;  %v2003_v32 = vmul.f32 %v13825_v59, %v17719_v23  ;;  %v2004_v19 = vmul.f32 %v11588_v4, %v17720_v26  ;;  %v17721_v59 = vld [vmem:[#allocation123_spill] sm:$0xff]  ;;  %v17734_v1 = vld [vmem:[#allocation126_spill] sm:$0xff] }
 0x219   : > { %v2807_v47 = vmax.f32 %v1809_v16, %v2769_v42  ;;  %v2808_v52 = vmax.f32 %v1810_v62, %v2770_v43  ;;  %v2156_v48 = vmul.f32 %v14104_v54, %v17715_v58  ;;  %v2231_v33 = vmul.f32 %v14143_v31, %v17715_v58  ;;  %v17722_v16 = vld [vmem:[#allocation223_spill] sm:$0xff]  ;;  %v17735_v42 = vld [vmem:[#allocation125_spill] sm:$0xff]  ;;  %v17736_v43 = vld [vmem:[#allocation122_spill] sm:$0xff] }
 0x21a   : > { %v2232_v50 = vmul.f32 %v14143_v31, %v17716_v55  ;;  %v1550_v22 = vadd.f32 %v17722_v16, %v17721_v59  ;;  %v1551_v17 = vadd.f32 %v17724_v5, %v17723_v7  ;;  %v2537_v27 = vadd.f32 %v2499_v40, %v2271_v46 }
 0x21b   : > { %v2848_v11 = vmax.f32 %v2807_v47, %v2808_v52  ;;  %v1641_v3 = vadd.f32 %v17726_v29, %v17725_v63  ;;  %v1642_v57 = vadd.f32 %v17728_v8, %v17727_v2  ;;  %v14387_v39 = vadd.f32 %v2500_v38, %v2272_v51  ;;  %v17733_v38 = vld [vmem:[#allocation128_spill] sm:$0xff]  ;;  %v14443_v8 = vpop.permute.xlu1 %2543 }
 0x21c   : > { %v11563_v58 = vunpack.i.h.bf16 %v11561_v49  ;;  %v11562_v56 = vunpack.i.l.bf16 %v11561_v49  ;;  %v1639_v55 = vadd.f32 %v17729_v12, %v1550_v22  ;;  %v1640_v62 = vadd.f32 %v17730_v30, %v1551_v17  ;;  %v17737_v30 = vld [vmem:[#allocation140_spill] sm:$0xff] }
 0x21d   : > { %2849 = vst.msk [vmem:[%s13655_s19 + $0x70] sm:$0xff] %vm2820_vm0, %v2848_v11  ;;  %v1690_v37 = vmul.f32 %v13889_v20, %v17689_v15  ;;  %v1691_v53 = vmul.f32 %v13889_v20, %v17690_v24  ;;  %v1730_v28 = vadd.f32 %v17731_v61, %v1641_v3  ;;  %v1731_v14 = vadd.f32 %v17732_v18, %v1642_v57  ;;  %v11571_v57 = vpop.permute.xlu0 %11570  ;;  %v17740_v18 = vld [vmem:[#allocation228_spill] sm:$0xff] }
 0x21e   : > { %v1965_v0 = vadd.f32 %v17734_v1, %v17733_v38  ;;  %v1966_v40 = vadd.f32 %v17736_v43, %v17735_v42  ;;  %v2079_v46 = vmul.f32 %v14086_v45, %v17689_v15  ;;  %v2080_v20 = vmul.f32 %v14086_v45, %v17690_v24  ;;  %v17741_v43 = vld [vmem:[#allocation229_spill] sm:$0xff] }
 0x21f   : > { %v1728_v51 = vadd.f32 %v1690_v37, %v1639_v55  ;;  %v1729_v23 = vadd.f32 %v1691_v53, %v1640_v62  ;;  %v14406_v47 = vadd.f32 %v13913_v34, %v1730_v28  ;;  %v14410_v52 = vadd.f32 %v2580_v35, %v2537_v27  ;;  %v14424_v35 = vld [vmem:[%s17157_s1 + $0x7] ss:$0 sm:$0xff] }
 0x220   : > { %v14413_v4 = vadd.f32 %v13913_v34, %v1731_v14  ;;  %v2041_v26 = vadd.f32 %v2003_v32, %v1965_v0  ;;  %v2042_v49 = vadd.f32 %v2004_v19, %v1966_v40  ;;  %v2498_v59 = vmul.f32 %v13873_v25, %v11563_v58  ;;  %v14430_v25 = vld [vmem:[%s17157_s1 + $0x8] ss:$0 sm:$0xff]  ;;  %v17738_v62 = vld [vmem:[#allocation235_spill] sm:$0xff]  ;;  %v17742_v40 = vld [vmem:[#allocation14_spill] sm:$0xff] }
 0x221   : > { %v2578_v16 = vmul.f32 %v13879_v13, %v11563_v58  ;;  %v1773_v15 = vadd.f32 %v13913_v34, %v1728_v51  ;;  %v1774_v22 = vadd.f32 %v13913_v34, %v1729_v23  ;;  %v2155_v17 = vmul.f32 %v14104_v54, %v17690_v24  ;;  %v14437_v24 = vld [vmem:[%s17157_s1 + $0x6] ss:$0 sm:$0xff] }
 0x222   : > { %v2117_v7 = vadd.f32 %v2079_v46, %v2041_v26  ;;  %v2118_v5 = vadd.f32 %v2080_v20, %v2042_v49  ;;  %v2577_v32 = vmul.f32 %v14424_v35, %v11562_v56  ;;  %v2658_v13 = vmul.f32 %v14430_v25, %v11563_v58  ;;  %v17743_v49 = vld [vmem:[#allocation141_spill] sm:$0xff] }
 0x223   : > { %v1813_v19 = vmax.f32 %v14406_v47, 0.0  ;;  %v2497_v11 = vmul.f32 %v14437_v24, %v11562_v56  ;;  %v2657_v27 = vmul.f32 %v14430_v25, %v11562_v56  ;;  %v1814_v63 = vmax.f32 %v14413_v4, 0.0  ;;  %v17739_v56 = vld [vmem:[#allocation143_spill] sm:$0xff] }
 0x224   : > { %v2193_v29 = vadd.f32 %v2155_v17, %v2117_v7  ;;  %v2194_v3 = vadd.f32 %v2156_v48, %v2118_v5  ;;  %v2615_v2 = vadd.f32 %v2577_v32, %v14272_v36  ;;  %v1811_v58 = vmax.f32 %v1773_v15, 0.0  ;;  %v17744_v15 = vld [vmem:[#allocation139_spill] sm:$0xff] }
 0x225   : > { %v1812_v12 = vmax.f32 %v1774_v22, 0.0  ;;  %v2695_v55 = vadd.f32 %v2657_v27, %v14307_v41  ;;  %v1554_v37 = vadd.f32 %v17738_v62, %v17737_v30  ;;  %v1555_v14 = vadd.f32 %v17740_v18, %v17739_v56  ;;  %v11593_v47 = vld [vmem:[%s17157_s1] ss:$0 sm:$0xff] }
 0x226   : > { %v2269_v53 = vadd.f32 %v2231_v33, %v2193_v29  ;;  %v2270_v61 = vadd.f32 %v2232_v50, %v2194_v3  ;;  %v2696_v28 = vadd.f32 %v2658_v13, %v2615_v2  ;;  %v14453_v36 = vmul.f32 %v14430_v25, %v14443_v8  ;;  %v14479_v29 = vld [vmem:[%s17158_s2] ss:$0 sm:$0xff] }
 0x227   : > { %v2733_v48 = vadd.f32 %v13913_v34, %v2695_v55  ;;  %v14455_v38 = vunpack.i.h.bf16 %v11571_v57  ;;  %v11572_v1 = vunpack.i.l.bf16 %v11571_v57  ;;  %v1643_v33 = vadd.f32 %v17741_v43, %v1554_v37 }
 0x228   : > { %v2535_v0 = vadd.f32 %v2497_v11, %v2269_v53  ;;  %v2536_v41 = vadd.f32 %v2498_v59, %v2270_v61  ;;  %v2734_v42 = vadd.f32 %v13913_v34, %v2696_v28  ;;  %v1644_v46 = vadd.f32 %v17742_v40, %v1555_v14  ;;  %v17745_v11 = vld [vmem:[#allocation136_spill] sm:$0xff]  ;;  %v17746_v61 = vld [vmem:[#allocation7_spill] sm:$0xff]  ;;  %v17747_v28 = vld [vmem:[#allocation137_spill] sm:$0xff] }
 0x229   : > { %v2771_v50 = vmax.f32 %v2733_v48, 0.0  ;;  %v1694_v51 = vmul.f32 %v14430_v25, %v17717_v9  ;;  %v1695_v23 = vmul.f32 %v14430_v25, %v17718_v21  ;;  %v1969_v59 = vadd.f32 %v17744_v15, %v17743_v49  ;;  %v17748_v48 = vld [vmem:[#allocation142_spill] sm:$0xff]  ;;  %v17751_v40 = vld [vmem:[#allocation132_spill] sm:$0xff] }
 0x22a   : > { %v2616_v20 = vadd.f32 %v2578_v16, %v2535_v0  ;;  %v2617_v4 = vadd.f32 %v14360_v6, %v2536_v41  ;;  %v2772_v26 = vmax.f32 %v2734_v42, 0.0  ;;  %v2083_v5 = vmul.f32 %v14086_v45, %v17717_v9  ;;  %v17749_v0 = vld [vmem:[#allocation133_spill] sm:$0xff]  ;;  %v17753_v49 = vld [vmem:[#allocation130_spill] sm:$0xff] }
 0x22b   : > { %v2809_v22 = vmax.f32 %v1811_v58, %v2771_v50  ;;  %v1732_v34 = vadd.f32 %v1694_v51, %v1643_v33  ;;  %v1733_v7 = vadd.f32 %v1695_v23, %v1644_v46  ;;  %v2045_v27 = vadd.f32 %v17745_v11, %v1969_v59  ;;  %v17750_v33 = vld [vmem:[#allocation243_spill] sm:$0xff]  ;;  %v17752_v23 = vld [vmem:[#allocation244_spill] sm:$0xff] }
 0x22c   : > { %v2697_v17 = vadd.f32 %v14365_v60, %v2616_v20  ;;  %v2698_v32 = vadd.f32 %v14354_v44, %v2617_v4  ;;  %v2810_v13 = vmax.f32 %v1812_v12, %v2772_v26  ;;  %v2582_v6 = vmul.f32 %v14424_v35, %v14455_v38 }
 0x22d   : > { %v2662_v16 = vmul.f32 %v14430_v25, %v14455_v38  ;;  %v1777_v9 = vadd.f32 %v14479_v29, %v1732_v34  ;;  %v2159_v44 = vmul.f32 %v14104_v54, %v17718_v21  ;;  %v2121_v57 = vadd.f32 %v2083_v5, %v2045_v27 }
 0x22e   : > { %v2735_v60 = vadd.f32 %v14479_v29, %v2697_v17  ;;  %v2736_v3 = vadd.f32 %v14479_v29, %v2698_v32  ;;  %v2850_v2 = vmax.f32 %v2809_v22, %v2810_v13  ;;  %v1778_v58 = vadd.f32 %v14479_v29, %v1733_v7  ;;  %v17754_v17 = vld [vmem:[#allocation134_spill] sm:$0xff] }
 0x22f   : > { %v2501_v12 = vmul.f32 %v14437_v24, %v11572_v1  ;;  %v2581_v55 = vmul.f32 %v14424_v35, %v11572_v1  ;;  %v2661_v30 = vmul.f32 %v14430_v25, %v11572_v1  ;;  %v2197_v53 = vadd.f32 %v2159_v44, %v2121_v57  ;;  %v17755_v44 = vld [vmem:[#allocation242_spill] sm:$0xff]  ;;  %v17758_v57 = vld [vmem:[#allocation241_spill] sm:$0xff] }
 0x230   : > { %v2773_v62 = vmax.f32 %v2735_v60, 0.0  ;;  %v2774_v37 = vmax.f32 %v2736_v3, 0.0  ;;  %2851 = vst.msk [vmem:[%s13655_s19 + $0x78] sm:$0xff] %vm2820_vm0, %v2850_v2  ;;  %v1105_v56 = vadd.f32 %v17747_v28, %v17746_v61  ;;  %v1282_v41 = vadd.f32 %v17749_v0, %v17748_v48 }
 0x231   : > { %v2619_v18 = vadd.f32 %v2581_v55, %v14387_v39  ;;  %v2699_v14 = vadd.f32 %v2661_v30, %v14410_v52  ;;  %v1519_v42 = vmul.f32 %v14437_v24, %v17718_v21  ;;  %v2273_v50 = vadd.f32 %v17750_v33, %v2197_v53 }
 0x232   : > { %v2811_v1 = vmax.f32 %v1813_v19, %v2773_v62  ;;  %v2812_v43 = vmax.f32 %v1814_v63, %v2774_v37  ;;  %v1194_v46 = vadd.f32 %v17751_v40, %v1105_v56  ;;  %v1556_v52 = vadd.f32 %v17752_v23, %v1282_v41  ;;  %v2625_v41 = vpop.permute.xlu0 %2624 }
 0x233   : > { %v2700_v51 = vadd.f32 %v2662_v16, %v2619_v18  ;;  %v2737_v39 = vadd.f32 %v14479_v29, %v2699_v14  ;;  %v1607_v20 = vmul.f32 %v14424_v35, %v17718_v21  ;;  %v2539_v26 = vadd.f32 %v2501_v12, %v2273_v50  ;;  %v17759_v12 = vld [vmem:[#allocation131_spill] sm:$0xff] }
 0x234   : > { %v2852_v4 = vmax.f32 %v2811_v1, %v2812_v43  ;;  %v1283_v15 = vadd.f32 %v17753_v49, %v1194_v46  ;;  %v1856_v19 = vmul.f32 %v11593_v47, %v17714_v10  ;;  %v1815_v63 = vmax.f32 %v1777_v9, 0.0  ;;  %v17756_v10 = vld [vmem:[#allocation213_spill] sm:$0xff] }
 0x235   : > { %v2738_v59 = vadd.f32 %v14479_v29, %v2700_v51  ;;  %v2775_v22 = vmax.f32 %v2737_v39, 0.0  ;;  %v1645_v34 = vadd.f32 %v1607_v20, %v1556_v52  ;;  %v2620_v7 = vadd.f32 %v2582_v6, %v2539_v26 }
 0x236   : > { %2853 = vst.msk [vmem:[%s13655_s19 + $0x80] sm:$0xff] %vm2820_vm0, %v2852_v4  ;;  %v1557_v5 = vadd.f32 %v1519_v42, %v1283_v15  ;;  %v1970_v32 = vadd.f32 %v17754_v17, %v1856_v19  ;;  %v2084_v13 = vmul.f32 %v14086_v45, %v17718_v21  ;;  %v1816_v11 = vmax.f32 %v1778_v58, 0.0  ;;  %v17760_v45 = vld [vmem:[#allocation230_spill] sm:$0xff] }
 0x237   : > { %v2776_v27 = vmax.f32 %v2738_v59, 0.0  ;;  %v2813_v16 = vmax.f32 %v1815_v63, %v2775_v22  ;;  %v1734_v60 = vadd.f32 %v17755_v44, %v1645_v34  ;;  %v17757_v9 = vunpack.i.h.bf16 %v17756_v10 }
 0x238   : > { %v2701_v2 = vadd.f32 %v14453_v36, %v2620_v7  ;;  %v1646_v6 = vadd.f32 %v17758_v57, %v1557_v5  ;;  %v2046_v55 = vadd.f32 %v17759_v12, %v1970_v32  ;;  %v2160_v21 = vmul.f32 %v14104_v54, %v17760_v45 }
 0x239   : > { %v1697_v3 = vmul.f32 %v14430_v25, %v17757_v9  ;;  %v2814_v30 = vmax.f32 %v1816_v11, %v2776_v27  ;;  %v1779_v62 = vadd.f32 %v14479_v29, %v1734_v60  ;;  %v17761_v61 = vmov %v17757_v9 }
 0x23a   : > { %v2739_v58 = vadd.f32 %v14479_v29, %v2701_v2  ;;  %v2122_v53 = vadd.f32 %v2084_v13, %v2046_v55  ;;  %v2236_v28 = vmul.f32 %v14143_v31, %v17761_v61  ;;  %v2502_v36 = vmul.f32 %v14437_v24, %v14455_v38 }
 0x23b   : > { %v1735_v37 = vadd.f32 %v1697_v3, %v1646_v6  ;;  %v2854_v56 = vmax.f32 %v2813_v16, %v2814_v30  ;;  %v1817_v14 = vmax.f32 %v1779_v62, 0.0  ;;  %v2583_v42 = vmul.f32 %v14424_v35, %v14443_v8 }
 0x23c   : > { %v2777_v18 = vmax.f32 %v2739_v58, 0.0  ;;  %v2198_v48 = vadd.f32 %v2160_v21, %v2122_v53  ;;  %v2664_v31 = vmul.f32 %v14430_v25, %v2625_v41 }
 0x23d   : > { %2855 = vst.msk [vmem:[%s13655_s19 + $0x88] sm:$0xff] %vm2820_vm0, %v2854_v56  ;;  %v1780_v33 = vadd.f32 %v14479_v29, %v1735_v37 }
 0x23e   : > { %v2274_v0 = vadd.f32 %v2236_v28, %v2198_v48  ;;  %v2815_v54 = vmax.f32 %v1817_v14, %v2777_v18 }
 0x23f   : > { %v1818_v38 = vmax.f32 %v1780_v33, 0.0 }
 0x240   : > { %v2540_v1 = vadd.f32 %v2502_v36, %v2274_v0 }
 0x242   : > { %v2621_v43 = vadd.f32 %v2583_v42, %v2540_v1 }
 0x244   : > { %v2702_v50 = vadd.f32 %v2664_v31, %v2621_v43 }
 0x246   : > { %v2740_v24 = vadd.f32 %v14479_v29, %v2702_v50 }
 0x248   : > { %v2778_v40 = vmax.f32 %v2740_v24, 0.0  ;;  %43 = sbr.rel (!%p41_p0) target bundleno = 1 (0x1), region = 134 }
 0x24a   : > { %v2816_v46 = vmax.f32 %v1818_v38, %v2778_v40 }
 0x24c   : > { %v2856_v51 = vmax.f32 %v2815_v54, %v2816_v46 }
 0x24e   : > { %2857 = vst.msk [vmem:[%s13655_s19 + $0x90] sm:$0xff] %vm2820_vm0, %v2856_v51 }
 0x24f LB: > { %v14555_v35 = vld [vmem:[%s17159_s3 + $0x20] sm:$0xff]   ;;  %v17252_v25 = vmov 0.0   ;;  %v14566_v29 = vld [vmem:[%s17159_s3 + $0x28] sm:$0xff]   ;;  %vm11764_vm1 = vmmov 0   ;;  %s8414_s2 = smul.u32 304, %s11756_s12  ;;  %v14582_v23 = vld [vmem:[%s17159_s3 + $0x30] sm:$0xff]   ;;  %s11756_s12 = sphi %s14547_s12, %s2863_s12  }
 0x250   : > { %9866 = vmatprep.subr.bf16.mxu0 %v17252_v25  ;;  %9910 = vmatprep.subr.bf16.mxu1 %v17252_v25  ;;  %v11595_v8 = vld [vmem:[%s17159_s3] sm:$0xff]   ;;  %v11597_v39 = vld [vmem:[%s17159_s3 + $0x8] sm:$0xff]   ;;  %v11599_v52 = vld [vmem:[%s17159_s3 + $0x10] sm:$0xff]   ;;  %s8741_s20 = sshll.u32 %s11756_s12, 6  ;;  %s2863_s12 = sadd.s32 1, %s11756_s12  }
 0x251   : > { %9867 = vmatpush3.bf16.msra.mxu0 %v14555_v35  ;;  %9874 = vmatprep.mubr.msk.bf16.mxu0 %vm11764_vm1, %v17252_v25  ;;  %v14592_v20 = vld [vmem:[%s17159_s3 + $0x38] sm:$0xff]   ;;  %s14594_s25 = scalar_lea.vmem [#allocation2], %s8414_s2  ;;  %v14609_v63 = vld [vmem:[%s17159_s3 + $0x40] sm:$0xff]   ;;  %v14624_v7 = vld [vmem:[%s17159_s3 + $0x48] sm:$0xff]   ;;  %s16235_s21 = scalar_lea.vmem [#allocation3], %s8741_s20 }
 0x252   : > { %9911 = vmatpush3.bf16.msra.mxu1 %v11595_v8  ;;  %9868 = vmatprep.subr.bf16.mxu0 %v17252_v25  ;;  %v11601_v49 = vld [vmem:[%s17159_s3 + $0x18] sm:$0xff]   ;;  %v11603_v59 = vld [vmem:[%s17159_s3 + $0x60] sm:$0xff]   ;;  %v11605_v5 = vld [vmem:[%s17159_s3 + $0x68] sm:$0xff]   ;;  %p2860_p1 = scmp.ge.s32.totalorder %s2863_s12, 8  }
 0x253   : > { %9912 = vmatprep.subr.bf16.mxu1 %v17252_v25  ;;  %9918 = vmatprep.mubr.msk.bf16.mxu1 %vm11764_vm1, %v17252_v25  ;;  %v14650_v16 = vld [vmem:[%s17159_s3 + $0x50] sm:$0xff]   ;;  %v14669_v9 = vld [vmem:[%s17159_s3 + $0x58] sm:$0xff]   ;;  %v11610_v33 = vld [vmem:[%s17159_s3 + $0x80] sm:$0xff]   ;;  %s16305_s22 = smov (%p2860_p1), 0  }
 0x254   : > { %v11607_v44 = vld [vmem:[%s17159_s3 + $0x70] sm:$0xff]   ;;  %v11609_v3 = vld [vmem:[%s17159_s3 + $0x78] sm:$0xff]   ;;  %v11611_v50 = vld [vmem:[%s17159_s3 + $0xa0] sm:$0xff]  }
 0x255   : > { %9869 = vmatpush3.bf16.msra.mxu0 %v14566_v29  ;;  %v2868_v4 = vld [vmem:[%s14594_s25 + $0x8] sm:$0xff]  ;;  %v2869_v26 = vld [vmem:[%s14594_s25 + $0x10] sm:$0xff]  ;;  %v2867_v15 = vld [vmem:[%s14594_s25] sm:$0xff] }
 0x256   : > { %9913 = vmatpush3.bf16.msra.mxu1 %v11597_v39  ;;  %9870 = vmatprep.subr.bf16.mxu0 %v17252_v25  ;;  %v2969_v47 = vpack.c.bf16 %v2869_v26, %v2868_v4  ;;  %v2952_v19 = vpack.c.bf16 %v2868_v4, %v2867_v15  ;;  %v2870_v22 = vld [vmem:[%s14594_s25 + $0x18] sm:$0xff]  ;;  %v2871_v34 = vld [vmem:[%s14594_s25 + $0x20] sm:$0xff]  ;;  %v14639_v13 = vld [vmem:[%s14594_s25 + $0x88] sm:$0xff] }
 0x257   : > { %9914 = vmatprep.subr.bf16.mxu1 %v17252_v25  ;;  %v2970_v17 = vpack.c.bf16 %v2871_v34, %v2870_v22  ;;  %v14636_v32 = vld [vmem:[%s14594_s25 + $0x80] sm:$0xff]  ;;  %v14641_v11 = vpack.c.bf16 %v2870_v22, %v2869_v26  ;;  %v2872_v60 = vld [vmem:[%s14594_s25 + $0x28] sm:$0xff]  ;;  %v2873_v10 = vld [vmem:[%s14594_s25 + $0x30] sm:$0xff]  ;;  %v2977_v41 = vpack.c.bf16 %v14639_v13, %v14639_v13 }
 0x258   : > { %v3296_v27 = vpack.c.bf16 %v14639_v13, %v14636_v32  ;;  %v2971_v2 = vpack.c.bf16 %v2873_v10, %v2872_v60  ;;  %v14676_v57 = vpack.c.bf16 %v2872_v60, %v2871_v34  ;;  %v2874_v6 = vld [vmem:[%s14594_s25 + $0x38] sm:$0xff]  ;;  %v2875_v12 = vld [vmem:[%s14594_s25 + $0x40] sm:$0xff]  ;;  %v2876_v62 = vld [vmem:[%s14594_s25 + $0x48] sm:$0xff]  ;;  %v2960_v42 = vpack.c.bf16 %v14636_v32, %v14636_v32 }
 0x259   : > { %9871 = vmatpush3.bf16.msra.mxu0 %v14582_v23  ;;  %v2972_v55 = vpack.c.bf16 %v2875_v12, %v2874_v6  ;;  %v14690_v30 = vpack.c.bf16 %v2874_v6, %v2873_v10  ;;  %v2877_v45 = vld [vmem:[%s14594_s25 + $0x50] sm:$0xff]  ;;  %v14701_v58 = vpack.c.bf16 %v2876_v62, %v2875_v12  ;;  %v2878_v37 = vld [vmem:[%s14594_s25 + $0x58] sm:$0xff]  ;;  %v2879_v53 = vld [vmem:[%s14594_s25 + $0x60] sm:$0xff] }
 0x25a   : > { %9915 = vmatpush3.bf16.msra.mxu1 %v11599_v52  ;;  %9872 = vmatprep.subr.bf16.mxu0 %v17252_v25  ;;  %v2973_v21 = vpack.c.bf16 %v2877_v45, %v2876_v62  ;;  %v2974_v61 = vpack.c.bf16 %v2879_v53, %v2878_v37  ;;  %v14712_v28 = vpack.c.bf16 %v2878_v37, %v2877_v45  ;;  %v2880_v56 = vld [vmem:[%s14594_s25 + $0x68] sm:$0xff]  ;;  %v2881_v36 = vld [vmem:[%s14594_s25 + $0x70] sm:$0xff]  ;;  %v2882_v48 = vld [vmem:[%s14594_s25 + $0x78] sm:$0xff] }
 0x25b   : > { %9916 = vmatprep.subr.bf16.mxu1 %v17252_v25  ;;  %v2975_v18 = vpack.c.bf16 %v2881_v36, %v2880_v56  ;;  %v14723_v14 = vpack.c.bf16 %v2880_v56, %v2879_v53  ;;  %v2976_v0 = vpack.c.bf16 %v14636_v32, %v2882_v48  ;;  %v14734_v54 = vpack.c.bf16 %v2882_v48, %v2881_v36  ;;  %v8417_v1 = vld [vmem:[%s14594_s25 + $0x98] sm:$0xff]  ;;  %v14755_v43 = vld [vmem:[%s14594_s25 + $0xa0] sm:$0xff]  ;;  %v11612_v24 = vld [vmem:[%s17159_s3 + $0x88] sm:$0xff]  }
 0x25c   : > { %v14758_v31 = vpack.c.bf16 %v14755_v43, %v8417_v1  ;;  %v14776_v38 = vld [vmem:[%s14594_s25 + $0xa8] sm:$0xff]  ;;  %v14779_v40 = vld [vmem:[%s14594_s25 + $0xb0] sm:$0xff]  ;;  %v14809_v52 = vld [vmem:[%s14594_s25 + $0xb8] sm:$0xff] }
 0x25d   : > { %9873 = vmatpush3.bf16.msra.mxu0 %v14592_v20  ;;  %v11613_v46 = vld [vmem:[%s17159_s3 + $0xa8] sm:$0xff]   ;;  %v14790_v51 = vpack.c.bf16 %v14779_v40, %v14776_v38  ;;  %v11614_v8 = vld [vmem:[%s17159_s3 + $0x90] sm:$0xff]   ;;  %v14812_v4 = vld [vmem:[%s14594_s25 + $0xc0] sm:$0xff]  ;;  %v14945_v32 = vpack.c.bf16 %v14776_v38, %v14755_v43 }
 0x25e   : > { %9917 = vmatpush3.bf16.msra.mxu1 %v11601_v49  ;;  %9954 = vmatprep.subr.bf16.mxu0 %v17252_v25  ;;  %v11615_v39 = vld [vmem:[%s17159_s3 + $0xb0] sm:$0xff]   ;;  %v11616_v26 = vld [vmem:[%s17159_s3 + $0x98] sm:$0xff]   ;;  %v14824_v15 = vpack.c.bf16 %v14812_v4, %v14809_v52  ;;  %v14858_v34 = vld [vmem:[%s14594_s25 + $0xe0] sm:$0xff] }
 0x25f   : > { %9998 = vmatprep.subr.bf16.mxu1 %v17252_v25  ;;  %v11617_v49 = vld [vmem:[%s17159_s3 + $0xb8] sm:$0xff]   ;;  %v14894_v10 = vld [vmem:[%s14594_s25 + $0x100] sm:$0xff]  ;;  %v2885_v12 = vld [vmem:[%s14594_s25 + $0x90] sm:$0xff] }
 0x260   : > { %9875 = vmatmul.mubr.msk.bf16.vlgmr.msra.gmra.mrb[0].mxu0 %vm2820_vm0, %v2969_v47  ;;  %v14837_v47 = vld [vmem:[%s14594_s25 + $0xc8] sm:$0xff]  ;;  %v14855_v22 = vld [vmem:[%s14594_s25 + $0xd8] sm:$0xff]  ;;  %v11618_v13 = vld [vmem:[%s17159_s3 + $0xc0] sm:$0xff]  }
 0x261   : > { %9919 = vmatmul.mubr.msk.bf16.vlgmr.msra.gmra.mrb[0].mxu1 %vm2820_vm0, %v2952_v19  ;;  %9955 = vmatpush3.bf16.msra.mxu0 %v14609_v63  ;;  %v14840_v19 = vld [vmem:[%s14594_s25 + $0xd0] sm:$0xff]  ;;  %v14891_v60 = vld [vmem:[%s14594_s25 + $0xf8] sm:$0xff]  ;;  %v11620_v45 = vld [vmem:[%s17159_s3 + $0xc8] sm:$0xff]   ;;  %v14998_v56 = vpack.c.bf16 %v14837_v47, %v14812_v4 }
 0x262   : > { %9999 = vmatpush3.bf16.msra.mxu1 %v11603_v59  ;;  %9878 = vmatprep.mubr.msk.bf16.mxu0 %vm11764_vm1, %v17252_v25  ;;  %v14844_v59 = vpack.c.bf16 %v14840_v19, %v14837_v47  ;;  %v11622_v37 = vld [vmem:[%s17159_s3 + $0xd0] sm:$0xff]   ;;  %v15013_v36 = vpack.c.bf16 %v14855_v22, %v14840_v19 }
 0x263   : > { %9922 = vmatprep.mubr.msk.bf16.mxu1 %vm11764_vm1, %v17252_v25  ;;  %9956 = vmatprep.subr.bf16.mxu0 %v17252_v25  ;;  %v11623_v53 = vld [vmem:[%s17159_s3 + $0xf0] sm:$0xff]  }
 0x264   : > { %10000 = vmatprep.subr.bf16.mxu1 %v17252_v25 }
 0x265   : > { %9957 = vmatpush3.bf16.msra.mxu0 %v14624_v7 }
 0x266   : > { %10001 = vmatpush3.bf16.msra.mxu1 %v11605_v5  ;;  %9958 = vmatprep.subr.bf16.mxu0 %v17252_v25  ;;  %v14862_v5 = vpack.c.bf16 %v14858_v34, %v14855_v22 }
 0x267   : > { %10002 = vmatprep.subr.bf16.mxu1 %v17252_v25 }
 0x268   : > { %9879 = vmatmul.mubr.msk.bf16.gmra.mrb[4].mxu0 %vm2820_vm0, %v2970_v17  ;;  %v14873_v17 = vld [vmem:[%s14594_s25 + $0xe8] sm:$0xff] }
 0x269   : > { %9923 = vmatmul.mubr.msk.bf16.gmra.mrb[4].mxu1 %vm2820_vm0, %v14641_v11  ;;  %9882 = vmatprep.mubr.msk.bf16.mxu0 %vm11764_vm1, %v17252_v25 }
 0x26a   : > { %9926 = vmatprep.mubr.msk.bf16.mxu1 %vm11764_vm1, %v17252_v25  ;;  %9959 = vmatpush3.bf16.msra.mxu0 %v14650_v16 }
 0x26b   : > { %10003 = vmatpush3.bf16.msra.mxu1 %v11607_v44  ;;  %9960 = vmatprep.subr.bf16.mxu0 %v17252_v25 }
 0x26c   : > { %10004 = vmatprep.subr.bf16.mxu1 %v17252_v25 }
 0x26e   : > { %9961 = vmatpush3.bf16.msra.mxu0 %v14669_v9 }
 0x26f   : > { %10005 = vmatpush3.bf16.msra.mxu1 %v11609_v3  ;;  %10042 = vmatprep.subr.bf16.mxu0 %v17252_v25  ;;  %v14898_v3 = vpack.c.bf16 %v14894_v10, %v14891_v60 }
 0x270   : > { %9883 = vmatmul.mubr.msk.bf16.gmra.mrb[8].mxu0 %vm2820_vm0, %v2971_v2  ;;  %10086 = vmatprep.subr.bf16.mxu1 %v17252_v25  ;;  %v14909_v2 = vld [vmem:[%s14594_s25 + $0x108] sm:$0xff] }
 0x271   : > { %9927 = vmatmul.mubr.msk.bf16.gmra.mrb[8].mxu1 %vm2820_vm0, %v14676_v57  ;;  %9886 = vmatprep.mubr.msk.bf16.mxu0 %vm11764_vm1, %v17252_v25  ;;  %v15049_v48 = vpack.c.bf16 %v14909_v2, %v14894_v10 }
 0x272   : > { %9930 = vmatprep.mubr.msk.bf16.mxu1 %vm11764_vm1, %v17252_v25 }
 0x278   : > { %9887 = vmatmul.mubr.msk.bf16.gmra.mrb[12].mxu0 %vm2820_vm0, %v2972_v55  ;;  %v14930_v55 = vld [vmem:[%s14594_s25 + $0x118] sm:$0xff] }
 0x279   : > { %9931 = vmatmul.mubr.msk.bf16.gmra.mrb[12].mxu1 %vm2820_vm0, %v14690_v30  ;;  %9890 = vmatprep.mubr.msk.bf16.mxu0 %vm11764_vm1, %v17252_v25  ;;  %v14934_v62 = vpack.c.bf16 %v14930_v55, %v14930_v55 }
 0x27a   : > { %9934 = vmatprep.mubr.msk.bf16.mxu1 %vm11764_vm1, %v17252_v25 }
 0x280   : > { %9891 = vmatmul.mubr.msk.bf16.gmra.mrb[16].mxu0 %vm2820_vm0, %v2973_v21  ;;  %v11621_v21 = vld [vmem:[%s17159_s3 + $0xe8] sm:$0xff]  }
 0x281   : > { %9935 = vmatmul.mubr.msk.bf16.gmra.mrb[16].mxu1 %vm2820_vm0, %v14701_v58  ;;  %9894 = vmatprep.mubr.msk.bf16.mxu0 %vm11764_vm1, %v17252_v25 }
 0x282   : > { %9938 = vmatprep.mubr.msk.bf16.mxu1 %vm11764_vm1, %v17252_v25 }
 0x288   : > { %9895 = vmatmul.mubr.msk.bf16.gmra.mrb[20].mxu0 %vm2820_vm0, %v2974_v61  ;;  %v11624_v61 = vld [vmem:[%s17159_s3 + $0xd8] sm:$0xff]  }
 0x289   : > { %9939 = vmatmul.mubr.msk.bf16.gmra.mrb[20].mxu1 %vm2820_vm0, %v14712_v28  ;;  %9898 = vmatprep.mubr.msk.bf16.mxu0 %vm11764_vm1, %v17252_v25 }
 0x28a   : > { %9942 = vmatprep.mubr.msk.bf16.mxu1 %vm11764_vm1, %v17252_v25 }
 0x290   : > { %9899 = vmatmul.mubr.msk.bf16.gmra.mrb[24].mxu0 %vm2820_vm0, %v2975_v18  ;;  %v15025_v18 = vpack.c.bf16 %v14873_v17, %v14858_v34 }
 0x291   : > { %9943 = vmatmul.mubr.msk.bf16.gmra.mrb[24].mxu1 %vm2820_vm0, %v14723_v14  ;;  %9902 = vmatprep.mubr.msk.bf16.mxu0 %vm11764_vm1, %v17252_v25 }
 0x292   : > { %9946 = vmatprep.mubr.msk.bf16.mxu1 %vm11764_vm1, %v17252_v25 }
 0x298   : > { %9903 = vmatmul.mubr.msk.bf16.gmra.mrb[28].mxu0 %vm2820_vm0, %v2976_v0  ;;  %v8434_v0 = vld [vmem:[%s14594_s25 + $0x120] sm:$0xff] }
 0x299   : > { %9947 = vmatmul.mubr.msk.bf16.gmra.mrb[28].mxu1 %vm2820_vm0, %v14734_v54  ;;  %9906 = vmatprep.mubr.msk.bf16.mxu0 %vm11764_vm1, %v17252_v25  ;;  %v15076_v1 = vpack.c.bf16 %v8434_v0, %v8434_v0 }
 0x29a   : > { %9950 = vmatprep.mubr.msk.bf16.mxu1 %vm11764_vm1, %v17252_v25 }
 0x2a0   : > { %9907 = vmatmul.mubr.msk.bf16.gmra.mrb[32].mxu0 %vm2820_vm0, %v2977_v41  ;;  %v15065_v41 = vpack.c.bf16 %v8434_v0, %v14930_v55 }
 0x2a1   : > { %9951 = vmatmul.mubr.msk.bf16.gmra.mrb[32].mxu1 %vm2820_vm0, %v2960_v42  ;;  %9962 = vmatprep.mubr.msk.bf16.mxu0 %vm11764_vm1, %v17252_v25  ;;  %v8435_v42 = vld [vmem:[%s14594_s25 + $0x128] sm:$0xff] }
 0x2a2   : > { %10006 = vmatprep.mubr.msk.bf16.mxu1 %vm11764_vm1, %v17252_v25  ;;  %v15078_v43 = vpack.c.bf16 %v8435_v42, %v8435_v42 }
 0x2a8   : > { %9963 = vmatmul.mubr.msk.bf16.vlgmr.msra.gmra.mrb[36].mxu0 %vm2820_vm0, %v14641_v11  ;;  %v14876_v11 = vld [vmem:[%s14594_s25 + $0xf0] sm:$0xff] }
 0x2a9   : > { %10007 = vmatmul.mubr.msk.bf16.vlgmr.msra.gmra.mrb[36].mxu1 %vm2820_vm0, %v14758_v31  ;;  %10043 = vmatpush3.bf16.msra.mxu0 %v11610_v33  ;;  %v14880_v44 = vpack.c.bf16 %v14876_v11, %v14873_v17  ;;  %v8438_v33 = vld [vmem:[%s14594_s25 + $0x130] sm:$0xff]  ;;  %v8441_v17 = vld [vmem:[%s14594_s25 + $0x148] sm:$0xff] }
 0x2aa   : > { %10087 = vmatpush3.bf16.msra.mxu1 %v11611_v50  ;;  %9966 = vmatprep.mubr.msk.bf16.mxu0 %vm11764_vm1, %v17252_v25  ;;  %v8439_v50 = vld [vmem:[%s14594_s25 + $0x138] sm:$0xff] }
 0x2ab   : > { %10010 = vmatprep.mubr.msk.bf16.mxu1 %vm11764_vm1, %v17252_v25  ;;  %10044 = vmatprep.subr.bf16.mxu0 %v17252_v25 }
 0x2ac   : > { %10088 = vmatprep.subr.bf16.mxu1 %v17252_v25 }
 0x2ad   : > { %10045 = vmatpush3.bf16.msra.mxu0 %v11612_v24  ;;  %v8440_v24 = vld [vmem:[%s14594_s25 + $0x140] sm:$0xff] }
 0x2ae   : > { %10089 = vmatpush3.bf16.msra.mxu1 %v11613_v46  ;;  %10046 = vmatprep.subr.bf16.mxu0 %v17252_v25 }
 0x2af   : > { %10090 = vmatprep.subr.bf16.mxu1 %v17252_v25 }
 0x2b0   : > { %9967 = vmatmul.mubr.msk.bf16.gmra.mrb[40].mxu0 %vm2820_vm0, %v14676_v57  ;;  %v14912_v57 = vld [vmem:[%s14594_s25 + $0x110] sm:$0xff] }
 0x2b1   : > { %10011 = vmatmul.mubr.msk.bf16.gmra.mrb[40].mxu1 %vm2820_vm0, %v14790_v51  ;;  %9970 = vmatprep.mubr.msk.bf16.mxu0 %vm11764_vm1, %v17252_v25  ;;  %v14916_v6 = vpack.c.bf16 %v14912_v57, %v14909_v2 }
 0x2b2   : > { %10014 = vmatprep.mubr.msk.bf16.mxu1 %vm11764_vm1, %v17252_v25  ;;  %10047 = vmatpush3.bf16.msra.mxu0 %v11614_v8  ;;  %v15091_v8 = vpack.c.bf16 %v8439_v50, %v8438_v33 }
 0x2b3   : > { %10091 = vmatpush3.bf16.msra.mxu1 %v11615_v39  ;;  %10048 = vmatprep.subr.bf16.mxu0 %v17252_v25 }
 0x2b4   : > { %10092 = vmatprep.subr.bf16.mxu1 %v17252_v25 }
 0x2b6   : > { %10049 = vmatpush3.bf16.msra.mxu0 %v11616_v26  ;;  %v15095_v26 = vpack.c.bf16 %v8440_v24, %v8439_v50 }
 0x2b7   : > { %10093 = vmatpush3.bf16.msra.mxu1 %v11617_v49  ;;  %10130 = vmatprep.subr.bf16.mxu0 %v17252_v25  ;;  %v11626_v49 = vld [vmem:[%s17159_s3 + $0x100] sm:$0xff]  }
 0x2b8   : > { %9971 = vmatmul.mubr.msk.bf16.gmra.mrb[44].mxu0 %vm2820_vm0, %v14690_v30  ;;  %10174 = vmatprep.subr.bf16.mxu1 %v17252_v25  ;;  %v3297_v30 = vpack.c.bf16 %v2885_v12, %v2885_v12  ;;  %v15117_v12 = vpack.c.bf16 %v8441_v17, %v8440_v24 }
 0x2b9   : > { %10015 = vmatmul.mubr.msk.bf16.gmra.mrb[44].mxu1 %vm2820_vm0, %v14824_v15  ;;  %9974 = vmatprep.mubr.msk.bf16.mxu0 %vm11764_vm1, %v17252_v25 }
 0x2ba   : > { %10018 = vmatprep.mubr.msk.bf16.mxu1 %vm11764_vm1, %v17252_v25 }
 0x2c0   : > { %9975 = vmatmul.mubr.msk.bf16.gmra.mrb[48].mxu0 %vm2820_vm0, %v14701_v58  ;;  %v14970_v58 = vpack.c.bf16 %v14809_v52, %v14779_v40 }
 0x2c1   : > { %10019 = vmatmul.mubr.msk.bf16.gmra.mrb[48].mxu1 %vm2820_vm0, %v14844_v59  ;;  %9978 = vmatprep.mubr.msk.bf16.mxu0 %vm11764_vm1, %v17252_v25 }
 0x2c2   : > { %10022 = vmatprep.mubr.msk.bf16.mxu1 %vm11764_vm1, %v17252_v25 }
 0x2c8   : > { %9979 = vmatmul.mubr.msk.bf16.gmra.mrb[52].mxu0 %vm2820_vm0, %v14712_v28  ;;  %v11625_v28 = vld [vmem:[%s17159_s3 + $0xf8] sm:$0xff]  }
 0x2c9   : > { %10023 = vmatmul.mubr.msk.bf16.gmra.mrb[52].mxu1 %vm2820_vm0, %v14862_v5  ;;  %9982 = vmatprep.mubr.msk.bf16.mxu0 %vm11764_vm1, %v17252_v25 }
 0x2ca   : > { %10026 = vmatprep.mubr.msk.bf16.mxu1 %vm11764_vm1, %v17252_v25 }
 0x2d0   : > { %9983 = vmatmul.mubr.msk.bf16.gmra.mrb[56].mxu0 %vm2820_vm0, %v14723_v14  ;;  %v15037_v14 = vpack.c.bf16 %v14891_v60, %v14876_v11  ;;  %v11627_v11 = vld [vmem:[%s17159_s3 + $0x108] sm:$0xff]   ;;  %v8442_v60 = vld [vmem:[%s14594_s25 + $0x150] sm:$0xff] }
 0x2d1   : > { %10027 = vmatmul.mubr.msk.bf16.gmra.mrb[56].mxu1 %vm2820_vm0, %v14880_v44  ;;  %9986 = vmatprep.mubr.msk.bf16.mxu0 %vm11764_vm1, %v17252_v25 }
 0x2d2   : > { %10030 = vmatprep.mubr.msk.bf16.mxu1 %vm11764_vm1, %v17252_v25 }
 0x2d8   : > { %9987 = vmatmul.mubr.msk.bf16.gmra.mrb[60].mxu0 %vm2820_vm0, %v14734_v54  ;;  %v15062_v54 = vpack.c.bf16 %v14930_v55, %v14912_v57 }
 0x2d9   : > { %10031 = vmatmul.mubr.msk.bf16.gmra.mrb[60].mxu1 %vm2820_vm0, %v14898_v3  ;;  %9990 = vmatprep.mubr.msk.bf16.mxu0 %vm11764_vm1, %v17252_v25 }
 0x2da   : > { %10034 = vmatprep.mubr.msk.bf16.mxu1 %vm11764_vm1, %v17252_v25 }
 0x2e0   : > { %9991 = vmatmul.mubr.msk.bf16.gmra.mrb[64].mxu0 %vm2820_vm0, %v3296_v27  ;;  %v11619_v27 = vld [vmem:[%s17159_s3 + $0xe0] sm:$0xff]  }
 0x2e1   : > { %10035 = vmatmul.mubr.msk.bf16.gmra.mrb[64].mxu1 %vm2820_vm0, %v14916_v6  ;;  %9994 = vmatprep.mubr.msk.bf16.mxu0 %vm11764_vm1, %v17252_v25 }
 0x2e2   : > { %10038 = vmatprep.mubr.msk.bf16.mxu1 %vm11764_vm1, %v17252_v25 }
 0x2e8   : > { %9995 = vmatmul.mubr.msk.bf16.gmra.mrb[68].mxu0 %vm2820_vm0, %v3297_v30 }
 0x2e9   : > { %10039 = vmatmul.mubr.msk.bf16.gmra.mrb[68].mxu1 %vm2820_vm0, %v14934_v62  ;;  %10050 = vmatprep.mubr.msk.bf16.mxu0 %vm11764_vm1, %v17252_v25 }
 0x2ea   : > { %10094 = vmatprep.mubr.msk.bf16.mxu1 %vm11764_vm1, %v17252_v25 }
 0x2f0   : > { %10051 = vmatmul.mubr.msk.bf16.vlgmr.msra.gmra.mrb[72].mxu0 %vm2820_vm0, %v14945_v32 }
 0x2f1   : > { %10095 = vmatmul.mubr.msk.bf16.vlgmr.msra.gmra.mrb[72].mxu1 %vm2820_vm0, %v14790_v51  ;;  %10131 = vmatpush3.bf16.msra.mxu0 %v11618_v13  ;;  %v15122_v13 = vpack.c.bf16 %v8442_v60, %v8441_v17 }
 0x2f2   : > { %10175 = vmatpush3.bf16.msra.mxu1 %v11619_v27  ;;  %10054 = vmatprep.mubr.msk.bf16.mxu0 %vm11764_vm1, %v17252_v25 }
 0x2f3   : > { %10098 = vmatprep.mubr.msk.bf16.mxu1 %vm11764_vm1, %v17252_v25  ;;  %10132 = vmatprep.subr.bf16.mxu0 %v17252_v25  ;;  %17762 = vst [vmem:[#allocation245_spill] sm:$0xff] %v15122_v13 }
 0x2f4   : > { %10176 = vmatprep.subr.bf16.mxu1 %v17252_v25 }
 0x2f5   : > { %10133 = vmatpush3.bf16.msra.mxu0 %v11620_v45 }
 0x2f6   : > { %10177 = vmatpush3.bf16.msra.mxu1 %v11621_v21  ;;  %10134 = vmatprep.subr.bf16.mxu0 %v17252_v25  ;;  %v11628_v21 = vld [vmem:[%s17159_s3 + $0x110] sm:$0xff]  }
 0x2f7   : > { %10178 = vmatprep.subr.bf16.mxu1 %v17252_v25 }
 0x2f8   : > { %10055 = vmatmul.mubr.msk.bf16.gmra.mrb[76].mxu0 %vm2820_vm0, %v14970_v58 }
 0x2f9   : > { %10099 = vmatmul.mubr.msk.bf16.gmra.mrb[76].mxu1 %vm2820_vm0, %v14824_v15  ;;  %10058 = vmatprep.mubr.msk.bf16.mxu0 %vm11764_vm1, %v17252_v25 }
 0x2fa   : > { %10102 = vmatprep.mubr.msk.bf16.mxu1 %vm11764_vm1, %v17252_v25  ;;  %10135 = vmatpush3.bf16.msra.mxu0 %v11622_v37 }
 0x2fb   : > { %10179 = vmatpush3.bf16.msra.mxu1 %v11623_v53  ;;  %10136 = vmatprep.subr.bf16.mxu0 %v17252_v25 }
 0x2fc   : > { %10180 = vmatprep.subr.bf16.mxu1 %v17252_v25 }
 0x2fe   : > { %10137 = vmatpush3.bf16.msra.mxu0 %v11624_v61  ;;  %v8443_v61 = vld [vmem:[%s14594_s25 + $0x158] sm:$0xff] }
 0x2ff   : > { %10181 = vmatpush3.bf16.msra.mxu1 %v11625_v28  ;;  %10218 = vmatprep.subr.bf16.mxu0 %v17252_v25  ;;  %v11629_v28 = vld [vmem:[%s17159_s3 + $0x118] sm:$0xff]   ;;  %v15147_v42 = vpack.c.bf16 %v8443_v61, %v8442_v60 }
 0x300   : > { %10059 = vmatmul.mubr.msk.bf16.gmra.mrb[80].mxu0 %vm2820_vm0, %v14998_v56  ;;  %10262 = vmatprep.subr.bf16.mxu1 %v17252_v25 }
 0x301   : > { %10103 = vmatmul.mubr.msk.bf16.gmra.mrb[80].mxu1 %vm2820_vm0, %v14844_v59  ;;  %10062 = vmatprep.mubr.msk.bf16.mxu0 %vm11764_vm1, %v17252_v25 }
 0x302   : > { %10106 = vmatprep.mubr.msk.bf16.mxu1 %vm11764_vm1, %v17252_v25 }
 0x308   : > { %10063 = vmatmul.mubr.msk.bf16.gmra.mrb[84].mxu0 %vm2820_vm0, %v15013_v36 }
 0x309   : > { %10107 = vmatmul.mubr.msk.bf16.gmra.mrb[84].mxu1 %vm2820_vm0, %v14862_v5  ;;  %10066 = vmatprep.mubr.msk.bf16.mxu0 %vm11764_vm1, %v17252_v25 }
 0x30a   : > { %10110 = vmatprep.mubr.msk.bf16.mxu1 %vm11764_vm1, %v17252_v25 }
 0x310   : > { %10067 = vmatmul.mubr.msk.bf16.gmra.mrb[88].mxu0 %vm2820_vm0, %v15025_v18 }
 0x311   : > { %10111 = vmatmul.mubr.msk.bf16.gmra.mrb[88].mxu1 %vm2820_vm0, %v14880_v44  ;;  %10070 = vmatprep.mubr.msk.bf16.mxu0 %vm11764_vm1, %v17252_v25 }
 0x312   : > { %10114 = vmatprep.mubr.msk.bf16.mxu1 %vm11764_vm1, %v17252_v25 }
 0x318   : > { %10071 = vmatmul.mubr.msk.bf16.gmra.mrb[92].mxu0 %vm2820_vm0, %v15037_v14 }
 0x319   : > { %10115 = vmatmul.mubr.msk.bf16.gmra.mrb[92].mxu1 %vm2820_vm0, %v14898_v3  ;;  %10074 = vmatprep.mubr.msk.bf16.mxu0 %vm11764_vm1, %v17252_v25 }
 0x31a   : > { %10118 = vmatprep.mubr.msk.bf16.mxu1 %vm11764_vm1, %v17252_v25 }
 0x320   : > { %10075 = vmatmul.mubr.msk.bf16.gmra.mrb[96].mxu0 %vm2820_vm0, %v15049_v48 }
 0x321   : > { %10119 = vmatmul.mubr.msk.bf16.gmra.mrb[96].mxu1 %vm2820_vm0, %v14916_v6  ;;  %10078 = vmatprep.mubr.msk.bf16.mxu0 %vm11764_vm1, %v17252_v25 }
 0x322   : > { %10122 = vmatprep.mubr.msk.bf16.mxu1 %vm11764_vm1, %v17252_v25 }
 0x328   : > { %10079 = vmatmul.mubr.msk.bf16.gmra.mrb[100].mxu0 %vm2820_vm0, %v15062_v54 }
 0x329   : > { %10123 = vmatmul.mubr.msk.bf16.gmra.mrb[100].mxu1 %vm2820_vm0, %v15065_v41  ;;  %10082 = vmatprep.mubr.msk.bf16.mxu0 %vm11764_vm1, %v17252_v25 }
 0x32a   : > { %10126 = vmatprep.mubr.msk.bf16.mxu1 %vm11764_vm1, %v17252_v25 }
 0x330   : > { %10083 = vmatmul.mubr.msk.bf16.gmra.mrb[104].mxu0 %vm2820_vm0, %v15076_v1 }
 0x331   : > { %10127 = vmatmul.mubr.msk.bf16.gmra.mrb[104].mxu1 %vm2820_vm0, %v15078_v43  ;;  %10138 = vmatprep.mubr.msk.bf16.mxu0 %vm11764_vm1, %v17252_v25 }
 0x332   : > { %10182 = vmatprep.mubr.msk.bf16.mxu1 %vm11764_vm1, %v17252_v25 }
 0x333   : > { %v3073_v38 = vpop.f32.mrb[0].mxu0 }
 0x334   : > { %v3227_v40 = vpop.f32.mrb[0].mxu1  ;;  %v9876_v46 = vpop.f32.mrb[1].mxu0 }
 0x335   : > { %v15093_v39 = vadd.f32 %v3227_v40, %v3073_v38  ;;  %v9920_v52 = vpop.f32.mrb[1].mxu1  ;;  %v3076_v4 = vpop.f32.mrb[2].mxu0 }
 0x336   : > { %v3230_v47 = vpop.f32.mrb[2].mxu1  ;;  %v9877_v19 = vpop.f32.mrb[3].mxu0 }
 0x337   : > { %v15100_v22 = vadd.f32 %v3230_v47, %v3076_v4  ;;  %v9921_v34 = vpop.f32.mrb[3].mxu1  ;;  %v8445_v47 = vld [vmem:[%s14594_s25 + $0x168] sm:$0xff]  ;;  %v8446_v19 = vld [vmem:[%s14594_s25 + $0x170] sm:$0xff] }
 0x338   : > { %10139 = vmatmul.mubr.msk.bf16.vlgmr.msra.gmra.mrb[108].mxu0 %vm2820_vm0, %v15091_v8 }
 0x339   : > { %10183 = vmatmul.mubr.msk.bf16.vlgmr.msra.gmra.mrb[108].mxu1 %vm2820_vm0, %v15095_v26  ;;  %10219 = vmatpush3.bf16.msra.mxu0 %v11626_v49 }
 0x33a   : > { %10263 = vmatpush3.bf16.msra.mxu1 %v14555_v35  ;;  %10142 = vmatprep.mubr.msk.bf16.mxu0 %vm11764_vm1, %v17252_v25 }
 0x33b   : > { %v3081_v10 = vpop.f32.mrb[4].mxu0  ;;  %10186 = vmatprep.mubr.msk.bf16.mxu1 %vm11764_vm1, %v17252_v25  ;;  %10220 = vmatprep.subr.bf16.mxu0 %v17252_v25 }
 0x33c   : > { %v3235_v2 = vpop.f32.mrb[4].mxu1  ;;  %v9880_v57 = vpop.f32.mrb[5].mxu0  ;;  %10264 = vmatprep.subr.bf16.mxu1 %v17252_v25 }
 0x33d   : > { %v15120_v55 = vadd.f32 %v3235_v2, %v3081_v10  ;;  %v9924_v35 = vpop.f32.mrb[5].mxu1  ;;  %v3084_v30 = vpop.f32.mrb[6].mxu0  ;;  %10221 = vmatpush3.bf16.msra.mxu0 %v11627_v11  ;;  %v15173_v57 = vpack.c.bf16 %v8446_v19, %v8445_v47 }
 0x33e   : > { %v3238_v27 = vpop.f32.mrb[6].mxu1  ;;  %v9881_v45 = vpop.f32.mrb[7].mxu0  ;;  %10265 = vmatpush3.bf16.msra.mxu1 %v14566_v29  ;;  %10222 = vmatprep.subr.bf16.mxu0 %v17252_v25  ;;  %v8444_v29 = vld [vmem:[%s14594_s25 + $0x160] sm:$0xff] }
 0x33f   : > { %v15129_v37 = vadd.f32 %v3238_v27, %v3084_v30  ;;  %v9925_v53 = vpop.f32.mrb[7].mxu1  ;;  %10266 = vmatprep.subr.bf16.mxu1 %v17252_v25  ;;  %v15152_v46 = vpack.c.bf16 %v8444_v29, %v8443_v61  ;;  %v15169_v34 = vpack.c.bf16 %v8445_v47, %v8444_v29  ;;  %17764 = vst [vmem:[#allocation247_spill] sm:$0xff] %v15173_v57 }
 0x340   : > { %10143 = vmatmul.mubr.msk.bf16.gmra.mrb[112].mxu0 %vm2820_vm0, %v15117_v12  ;;  %v8448_v53 = vld [vmem:[%s14594_s25 + $0x180] sm:$0xff] }
 0x341   : > { %10187 = vmatmul.mubr.msk.bf16.gmra.mrb[112].mxu1 %vm2820_vm0, %v15122_v13  ;;  %10146 = vmatprep.mubr.msk.bf16.mxu0 %vm11764_vm1, %v17252_v25  ;;  %17763 = vst [vmem:[#allocation246_spill] sm:$0xff] %v15152_v46 }
 0x342   : > { %10190 = vmatprep.mubr.msk.bf16.mxu1 %vm11764_vm1, %v17252_v25  ;;  %10223 = vmatpush3.bf16.msra.mxu0 %v11628_v21  ;;  %v8447_v21 = vld [vmem:[%s14594_s25 + $0x178] sm:$0xff] }
 0x343   : > { %v3089_v0 = vpop.f32.mrb[8].mxu0  ;;  %10267 = vmatpush3.bf16.msra.mxu1 %v14582_v23  ;;  %10224 = vmatprep.subr.bf16.mxu0 %v17252_v25  ;;  %v15187_v29 = vpack.c.bf16 %v8447_v21, %v8446_v19  ;;  %v8450_v19 = vld [vmem:[%s14594_s25 + $0x190] sm:$0xff] }
 0x344   : > { %v3243_v33 = vpop.f32.mrb[8].mxu1  ;;  %v9884_v50 = vpop.f32.mrb[9].mxu0  ;;  %10268 = vmatprep.subr.bf16.mxu1 %v17252_v25 }
 0x345   : > { %v15150_v24 = vadd.f32 %v3243_v33, %v3089_v0  ;;  %v9928_v38 = vpop.f32.mrb[9].mxu1  ;;  %v3092_v40 = vpop.f32.mrb[10].mxu0 }
 0x346   : > { %v3246_v52 = vpop.f32.mrb[10].mxu1  ;;  %v9885_v4 = vpop.f32.mrb[11].mxu0  ;;  %10225 = vmatpush3.bf16.msra.mxu0 %v11629_v28 }
 0x347   : > { %v15154_v23 = vadd.f32 %v3246_v52, %v3092_v40  ;;  %v9929_v49 = vpop.f32.mrb[11].mxu1  ;;  %10269 = vmatpush3.bf16.msra.mxu1 %v14592_v20  ;;  %10306 = vmatprep.subr.bf16.mxu0 %v17252_v25  ;;  %v15191_v40 = vpack.c.bf16 %v8448_v53, %v8447_v21 }
 0x348   : > { %10147 = vmatmul.mubr.msk.bf16.gmra.mrb[116].mxu0 %vm2820_vm0, %v15147_v42  ;;  %10350 = vmatprep.subr.bf16.mxu1 %v17252_v25 }
 0x349   : > { %10191 = vmatmul.mubr.msk.bf16.gmra.mrb[116].mxu1 %vm2820_vm0, %v15152_v46  ;;  %10150 = vmatprep.mubr.msk.bf16.mxu0 %vm11764_vm1, %v17252_v25  ;;  %17765 = vst [vmem:[#allocation248_spill] sm:$0xff] %v15191_v40 }
 0x34a   : > { %10194 = vmatprep.mubr.msk.bf16.mxu1 %vm11764_vm1, %v17252_v25 }
 0x34b   : > { %v3097_v20 = vpop.f32.mrb[12].mxu0 }
 0x34c   : > { %v3251_v17 = vpop.f32.mrb[12].mxu1  ;;  %v9888_v11 = vpop.f32.mrb[13].mxu0 }
 0x34d   : > { %v15171_v60 = vadd.f32 %v3251_v17, %v3097_v20  ;;  %v9932_v10 = vpop.f32.mrb[13].mxu1  ;;  %v3100_v2 = vpop.f32.mrb[14].mxu0  ;;  %v8449_v20 = vld [vmem:[%s14594_s25 + $0x188] sm:$0xff] }
 0x34e   : > { %v3254_v35 = vpop.f32.mrb[14].mxu1  ;;  %v9889_v30 = vpop.f32.mrb[15].mxu0  ;;  %v15205_v11 = vpack.c.bf16 %v8449_v20, %v8448_v53  ;;  %v15209_v21 = vpack.c.bf16 %v8450_v19, %v8449_v20  ;;  %v8452_v53 = vld [vmem:[%s14594_s25 + $0x1a0] sm:$0xff] }
 0x34f   : > { %v15175_v27 = vadd.f32 %v3254_v35, %v3100_v2  ;;  %v9933_v45 = vpop.f32.mrb[15].mxu1 }
 0x350   : > { %10151 = vmatmul.mubr.msk.bf16.gmra.mrb[120].mxu0 %vm2820_vm0, %v15169_v34  ;;  %17766 = vst [vmem:[#allocation249_spill] sm:$0xff] %v15209_v21 }
 0x351   : > { %10195 = vmatmul.mubr.msk.bf16.gmra.mrb[120].mxu1 %vm2820_vm0, %v15173_v57  ;;  %10154 = vmatprep.mubr.msk.bf16.mxu0 %vm11764_vm1, %v17252_v25 }
 0x352   : > { %10198 = vmatprep.mubr.msk.bf16.mxu1 %vm11764_vm1, %v17252_v25 }
 0x353   : > { %v3105_v61 = vpop.f32.mrb[16].mxu0 }
 0x354   : > { %v3259_v28 = vpop.f32.mrb[16].mxu1  ;;  %v9892_v0 = vpop.f32.mrb[17].mxu0 }
 0x355   : > { %v15189_v33 = vadd.f32 %v3259_v28, %v3105_v61  ;;  %v9936_v50 = vpop.f32.mrb[17].mxu1  ;;  %v3108_v38 = vpop.f32.mrb[18].mxu0 }
 0x356   : > { %v3262_v52 = vpop.f32.mrb[18].mxu1  ;;  %v9893_v4 = vpop.f32.mrb[19].mxu0 }
 0x357   : > { %v15193_v49 = vadd.f32 %v3262_v52, %v3108_v38  ;;  %v9937_v47 = vpop.f32.mrb[19].mxu1  ;;  %v8451_v38 = vld [vmem:[%s14594_s25 + $0x198] sm:$0xff] }
 0x358   : > { %10155 = vmatmul.mubr.msk.bf16.gmra.mrb[124].mxu0 %vm2820_vm0, %v15187_v29  ;;  %v15223_v4 = vpack.c.bf16 %v8451_v38, %v8450_v19  ;;  %v17768_v19 = vmov 0.0  }
 0x359   : > { %10199 = vmatmul.mubr.msk.bf16.gmra.mrb[124].mxu1 %vm2820_vm0, %v15191_v40  ;;  %10158 = vmatprep.mubr.msk.bf16.mxu0 %vm11764_vm1, %v17252_v25 }
 0x35a   : > { %10202 = vmatprep.mubr.msk.bf16.mxu1 %vm11764_vm1, %v17252_v25 }
 0x35b   : > { %v3113_v17 = vpop.f32.mrb[20].mxu0 }
 0x35c   : > { %v3267_v10 = vpop.f32.mrb[20].mxu1  ;;  %v9896_v2 = vpop.f32.mrb[21].mxu0 }
 0x35d   : > { %v15207_v35 = vadd.f32 %v3267_v10, %v3113_v17  ;;  %v9940_v30 = vpop.f32.mrb[21].mxu1  ;;  %v3116_v45 = vpop.f32.mrb[22].mxu0 }
 0x35e   : > { %v3270_v61 = vpop.f32.mrb[22].mxu1  ;;  %v9897_v28 = vpop.f32.mrb[23].mxu0  ;;  %v15227_v30 = vpack.c.bf16 %v8452_v53, %v8451_v38  ;;  %v15241_v38 = vld [vmem:[%s14594_s25 + $0x1b0] sm:$0xff] }
 0x35f   : > { %v15211_v0 = vadd.f32 %v3270_v61, %v3116_v45  ;;  %v9941_v50 = vpop.f32.mrb[23].mxu1 }
 0x360   : > { %10159 = vmatmul.mubr.msk.bf16.gmra.mrb[128].mxu0 %vm2820_vm0, %v15205_v11  ;;  %17767 = vst [vmem:[#allocation250_spill] sm:$0xff] %v15227_v30 }
 0x361   : > { %10203 = vmatmul.mubr.msk.bf16.gmra.mrb[128].mxu1 %vm2820_vm0, %v15209_v21  ;;  %10162 = vmatprep.mubr.msk.bf16.mxu0 %vm11764_vm1, %v17252_v25 }
 0x362   : > { %10206 = vmatprep.mubr.msk.bf16.mxu1 %vm11764_vm1, %v17252_v25  ;;  %v8453_v25 = vld [vmem:[%s14594_s25 + $0x1a8] sm:$0xff] }
 0x363   : > { %v3121_v52 = vpop.f32.mrb[24].mxu0 }
 0x364   : > { %v3275_v47 = vpop.f32.mrb[24].mxu1  ;;  %v9900_v20 = vpop.f32.mrb[25].mxu0 }
 0x365   : > { %v15225_v17 = vadd.f32 %v3275_v47, %v3121_v52  ;;  %v9944_v10 = vpop.f32.mrb[25].mxu1  ;;  %v3124_v2 = vpop.f32.mrb[26].mxu0  ;;  %v15243_v47 = vpack.c.bf16 %v8453_v25, %v8452_v53  ;;  %v15261_v53 = vld [vmem:[%s14594_s25 + $0x1b8] sm:$0xff] }
 0x366   : > { %v3278_v45 = vpop.f32.mrb[26].mxu1  ;;  %v9901_v61 = vpop.f32.mrb[27].mxu0 }
 0x367   : > { %v15229_v28 = vadd.f32 %v3278_v45, %v3124_v2  ;;  %v9945_v50 = vpop.f32.mrb[27].mxu1 }
 0x368   : > { %10163 = vmatmul.mubr.msk.bf16.gmra.mrb[132].mxu0 %vm2820_vm0, %v15223_v4  ;;  %v15248_v50 = vpack.c.bf16 %v15241_v38, %v8453_v25 }
 0x369   : > { %10207 = vmatmul.mubr.msk.bf16.gmra.mrb[132].mxu1 %vm2820_vm0, %v15227_v30  ;;  %10166 = vmatprep.mubr.msk.bf16.mxu0 %vm11764_vm1, %v17768_v19 }
 0x36a   : > { %10210 = vmatprep.mubr.msk.bf16.mxu1 %vm11764_vm1, %v17768_v19  ;;  %17769 = vst [vmem:[#allocation251_spill] sm:$0xff] %v15248_v50 }
 0x36b   : > { %v3129_v52 = vpop.f32.mrb[28].mxu0 }
 0x36c   : > { %v3283_v20 = vpop.f32.mrb[28].mxu1  ;;  %v9904_v10 = vpop.f32.mrb[29].mxu0 }
 0x36d   : > { %v15245_v2 = vadd.f32 %v3283_v20, %v3129_v52  ;;  %v9948_v45 = vpop.f32.mrb[29].mxu1  ;;  %v3132_v61 = vpop.f32.mrb[30].mxu0  ;;  %v15269_v10 = vpack.c.bf16 %v15261_v53, %v15261_v53 }
 0x36e   : > { %v3286_v30 = vpop.f32.mrb[30].mxu1  ;;  %v9905_v21 = vpop.f32.mrb[31].mxu0 }
 0x36f   : > { %v15250_v40 = vadd.f32 %v3286_v30, %v3132_v61  ;;  %v9949_v57 = vpop.f32.mrb[31].mxu1  ;;  %17771 = vst [vmem:[#allocation253_spill] sm:$0xff] %v15269_v10 }
 0x370   : > { %10167 = vmatmul.mubr.msk.bf16.gmra.mrb[136].mxu0 %vm2820_vm0, %v15243_v47  ;;  %v15265_v57 = vpack.c.bf16 %v15241_v38, %v15241_v38 }
 0x371   : > { %10211 = vmatmul.mubr.msk.bf16.gmra.mrb[136].mxu1 %vm2820_vm0, %v15248_v50  ;;  %10170 = vmatprep.mubr.msk.bf16.mxu0 %vm11764_vm1, %v17768_v19 }
 0x372   : > { %10214 = vmatprep.mubr.msk.bf16.mxu1 %vm11764_vm1, %v17768_v19  ;;  %17770 = vst [vmem:[#allocation252_spill] sm:$0xff] %v15265_v57 }
 0x373   : > { %v3137_v25 = vpop.f32.mrb[32].mxu0 }
 0x374   : > { %v3291_v52 = vpop.f32.mrb[32].mxu1  ;;  %v9908_v21 = vpop.f32.mrb[33].mxu0 }
 0x375   : > { %v9952_v30 = vpop.f32.mrb[33].mxu1  ;;  %v3139_v20 = vpop.f32.mrb[34].mxu0 }
 0x376   : > { %v3293_v45 = vpop.f32.mrb[34].mxu1  ;;  %v9909_v61 = vpop.f32.mrb[35].mxu0 }
 0x377   : > { %v9953_v50 = vpop.f32.mrb[35].mxu1 }
 0x378   : > { %10171 = vmatmul.mubr.msk.bf16.gmra.mrb[140].mxu0 %vm2820_vm0, %v15265_v57 }
 0x379   : > { %10215 = vmatmul.mubr.msk.bf16.gmra.mrb[140].mxu1 %vm2820_vm0, %v15269_v10  ;;  %10226 = vmatprep.mubr.msk.bf16.mxu0 %vm11764_vm1, %v17768_v19 }
 0x37a   : > { %10270 = vmatprep.mubr.msk.bf16.mxu1 %vm11764_vm1, %v17768_v19 }
 0x37b   : > { %v3371_v25 = vpop.f32.mrb[36].mxu0 }
 0x37c   : > { %v3440_v52 = vadd.f32 %v3371_v25, %v15093_v39  ;;  %v3559_v21 = vpop.f32.mrb[36].mxu1  ;;  %v9964_v30 = vpop.f32.mrb[37].mxu0  ;;  %v11630_v39 = vld [vmem:[%s17159_s3] sm:$0xff]  }
 0x37d   : > { %v10008_v20 = vpop.f32.mrb[37].mxu1  ;;  %v3374_v45 = vpop.f32.mrb[38].mxu0 }
 0x37e   : > { %v3441_v50 = vadd.f32 %v3374_v45, %v15100_v22  ;;  %v3562_v61 = vpop.f32.mrb[38].mxu1  ;;  %v9965_v57 = vpop.f32.mrb[39].mxu0  ;;  %v15281_v46 = vadd.f32 %v3559_v21, %v3440_v52 }
 0x37f   : > { %v10009_v10 = vpop.f32.mrb[39].mxu1 }
 0x380   : > { %10227 = vmatmul.mubr.msk.bf16.vlgmr.msra.gmra.mrb[144].mxu0 %vm2820_vm0, %v15117_v12  ;;  %v15285_v13 = vadd.f32 %v3562_v61, %v3441_v50 }
 0x381   : > { %10271 = vmatmul.mubr.msk.bf16.vlgmr.msra.gmra.mrb[144].mxu1 %vm2820_vm0, %v14945_v32  ;;  %10307 = vmatpush3.bf16.msra.mxu0 %v11630_v39 }
 0x382   : > { %10351 = vmatpush3.bf16.msra.mxu1 %v14609_v63  ;;  %10230 = vmatprep.mubr.msk.bf16.mxu0 %vm11764_vm1, %v17768_v19  ;;  %v11631_v63 = vld [vmem:[%s17159_s3 + $0x8] sm:$0xff]  }
 0x383   : > { %v3379_v22 = vpop.f32.mrb[40].mxu0  ;;  %10274 = vmatprep.mubr.msk.bf16.mxu1 %vm11764_vm1, %v17768_v19  ;;  %10308 = vmatprep.subr.bf16.mxu0 %v17768_v19 }
 0x384   : > { %v3442_v57 = vadd.f32 %v3379_v22, %v15120_v55  ;;  %v3567_v10 = vpop.f32.mrb[40].mxu1  ;;  %v9968_v32 = vpop.f32.mrb[41].mxu0  ;;  %10352 = vmatprep.subr.bf16.mxu1 %v17768_v19 }
 0x385   : > { %v10012_v25 = vpop.f32.mrb[41].mxu1  ;;  %v3382_v52 = vpop.f32.mrb[42].mxu0  ;;  %10309 = vmatpush3.bf16.msra.mxu0 %v11631_v63 }
 0x386   : > { %v3443_v21 = vadd.f32 %v3382_v52, %v15129_v37  ;;  %v3570_v30 = vpop.f32.mrb[42].mxu1  ;;  %v9969_v20 = vpop.f32.mrb[43].mxu0  ;;  %10353 = vmatpush3.bf16.msra.mxu1 %v14624_v7  ;;  %10310 = vmatprep.subr.bf16.mxu0 %v17768_v19  ;;  %v15306_v55 = vadd.f32 %v3567_v10, %v3442_v57  ;;  %v11632_v7 = vld [vmem:[%s17159_s3 + $0x10] sm:$0xff]   ;;  %v11633_v52 = vld [vmem:[%s17159_s3 + $0x18] sm:$0xff]  }
 0x387   : > { %v10013_v45 = vpop.f32.mrb[43].mxu1  ;;  %10354 = vmatprep.subr.bf16.mxu1 %v17768_v19 }
 0x388   : > { %10231 = vmatmul.mubr.msk.bf16.gmra.mrb[148].mxu0 %vm2820_vm0, %v15147_v42  ;;  %v15311_v50 = vadd.f32 %v3570_v30, %v3443_v21 }
 0x389   : > { %10275 = vmatmul.mubr.msk.bf16.gmra.mrb[148].mxu1 %vm2820_vm0, %v14970_v58  ;;  %10234 = vmatprep.mubr.msk.bf16.mxu0 %vm11764_vm1, %v17768_v19 }
 0x38a   : > { %10278 = vmatprep.mubr.msk.bf16.mxu1 %vm11764_vm1, %v17768_v19  ;;  %10311 = vmatpush3.bf16.msra.mxu0 %v11632_v7 }
 0x38b   : > { %v3387_v37 = vpop.f32.mrb[44].mxu0  ;;  %10355 = vmatpush3.bf16.msra.mxu1 %v14650_v16  ;;  %10312 = vmatprep.subr.bf16.mxu0 %v17768_v19 }
 0x38c   : > { %v3444_v61 = vadd.f32 %v3387_v37, %v15150_v24  ;;  %v3575_v39 = vpop.f32.mrb[44].mxu1  ;;  %v9972_v58 = vpop.f32.mrb[45].mxu0  ;;  %10356 = vmatprep.subr.bf16.mxu1 %v17768_v19 }
 0x38d   : > { %v10016_v22 = vpop.f32.mrb[45].mxu1  ;;  %v3390_v57 = vpop.f32.mrb[46].mxu0 }
 0x38e   : > { %v3445_v10 = vadd.f32 %v3390_v57, %v15154_v23  ;;  %v3578_v32 = vpop.f32.mrb[46].mxu1  ;;  %v9973_v25 = vpop.f32.mrb[47].mxu0  ;;  %10313 = vmatpush3.bf16.msra.mxu0 %v11633_v52  ;;  %v15330_v16 = vadd.f32 %v3575_v39, %v3444_v61 }
 0x38f   : > { %v10017_v63 = vpop.f32.mrb[47].mxu1  ;;  %10357 = vmatpush3.bf16.msra.mxu1 %v14669_v9  ;;  %10394 = vmatprep.subr.bf16.mxu0 %v17768_v19 }
 0x390   : > { %10235 = vmatmul.mubr.msk.bf16.gmra.mrb[152].mxu0 %vm2820_vm0, %v15169_v34  ;;  %10438 = vmatprep.subr.bf16.mxu1 %v17768_v19  ;;  %v15337_v24 = vadd.f32 %v3578_v32, %v3445_v10 }
 0x391   : > { %10279 = vmatmul.mubr.msk.bf16.gmra.mrb[152].mxu1 %vm2820_vm0, %v14998_v56  ;;  %10238 = vmatprep.mubr.msk.bf16.mxu0 %vm11764_vm1, %v17768_v19 }
 0x392   : > { %10282 = vmatprep.mubr.msk.bf16.mxu1 %vm11764_vm1, %v17768_v19 }
 0x393   : > { %v3395_v23 = vpop.f32.mrb[48].mxu0 }
 0x394   : > { %v3446_v9 = vadd.f32 %v3395_v23, %v15171_v60  ;;  %v3583_v21 = vpop.f32.mrb[48].mxu1  ;;  %v9976_v30 = vpop.f32.mrb[49].mxu0 }
 0x395   : > { %v10020_v20 = vpop.f32.mrb[49].mxu1  ;;  %v3398_v45 = vpop.f32.mrb[50].mxu0 }
 0x396   : > { %v3447_v7 = vadd.f32 %v3398_v45, %v15175_v27  ;;  %v3586_v37 = vpop.f32.mrb[50].mxu1  ;;  %v9977_v61 = vpop.f32.mrb[51].mxu0  ;;  %v15347_v39 = vadd.f32 %v3583_v21, %v3446_v9 }
 0x397   : > { %v10021_v56 = vpop.f32.mrb[51].mxu1 }
 0x398   : > { %10239 = vmatmul.mubr.msk.bf16.gmra.mrb[156].mxu0 %vm2820_vm0, %v15187_v29  ;;  %v15351_v58 = vadd.f32 %v3586_v37, %v3447_v7 }
 0x399   : > { %10283 = vmatmul.mubr.msk.bf16.gmra.mrb[156].mxu1 %vm2820_vm0, %v15013_v36  ;;  %10242 = vmatprep.mubr.msk.bf16.mxu0 %vm11764_vm1, %v17768_v19 }
 0x39a   : > { %10286 = vmatprep.mubr.msk.bf16.mxu1 %vm11764_vm1, %v17768_v19 }
 0x39b   : > { %v3403_v60 = vpop.f32.mrb[52].mxu0 }
 0x39c   : > { %v3448_v27 = vadd.f32 %v3403_v60, %v15189_v33  ;;  %v3591_v22 = vpop.f32.mrb[52].mxu1  ;;  %v9980_v57 = vpop.f32.mrb[53].mxu0 }
 0x39d   : > { %v10024_v10 = vpop.f32.mrb[53].mxu1  ;;  %v3406_v32 = vpop.f32.mrb[54].mxu0 }
 0x39e   : > { %v3449_v25 = vadd.f32 %v3406_v32, %v15193_v49  ;;  %v3594_v52 = vpop.f32.mrb[54].mxu1  ;;  %v9981_v63 = vpop.f32.mrb[55].mxu0  ;;  %v15361_v23 = vadd.f32 %v3591_v22, %v3448_v27 }
 0x39f   : > { %v10025_v36 = vpop.f32.mrb[55].mxu1 }
 0x3a0   : > { %10243 = vmatmul.mubr.msk.bf16.gmra.mrb[160].mxu0 %vm2820_vm0, %v15205_v11  ;;  %v15365_v9 = vadd.f32 %v3594_v52, %v3449_v25 }
 0x3a1   : > { %10287 = vmatmul.mubr.msk.bf16.gmra.mrb[160].mxu1 %vm2820_vm0, %v15025_v18  ;;  %10246 = vmatprep.mubr.msk.bf16.mxu0 %vm11764_vm1, %v17768_v19 }
 0x3a2   : > { %10290 = vmatprep.mubr.msk.bf16.mxu1 %vm11764_vm1, %v17768_v19 }
 0x3a3   : > { %v3411_v33 = vpop.f32.mrb[56].mxu0 }
 0x3a4   : > { %v3450_v49 = vadd.f32 %v3411_v33, %v15207_v35  ;;  %v3599_v21 = vpop.f32.mrb[56].mxu1  ;;  %v9984_v30 = vpop.f32.mrb[57].mxu0 }
 0x3a5   : > { %v10028_v20 = vpop.f32.mrb[57].mxu1  ;;  %v3414_v45 = vpop.f32.mrb[58].mxu0 }
 0x3a6   : > { %v3451_v7 = vadd.f32 %v3414_v45, %v15211_v0  ;;  %v3602_v37 = vpop.f32.mrb[58].mxu1  ;;  %v9985_v61 = vpop.f32.mrb[59].mxu0  ;;  %v15375_v56 = vadd.f32 %v3599_v21, %v3450_v49  ;;  %v15404_v21 = vpack.c.bf16 %v15261_v53, %v15241_v38  ;;  %v8456_v38 = vld [vmem:[%s14594_s25 + $0x1c0] sm:$0xff] }
 0x3a7   : > { %v10029_v18 = vpop.f32.mrb[59].mxu1 }
 0x3a8   : > { %10247 = vmatmul.mubr.msk.bf16.gmra.mrb[164].mxu0 %vm2820_vm0, %v15223_v4  ;;  %v15379_v60 = vadd.f32 %v3602_v37, %v3451_v7 }
 0x3a9   : > { %10291 = vmatmul.mubr.msk.bf16.gmra.mrb[164].mxu1 %vm2820_vm0, %v15037_v14  ;;  %10250 = vmatprep.mubr.msk.bf16.mxu0 %vm11764_vm1, %v17768_v19 }
 0x3aa   : > { %10294 = vmatprep.mubr.msk.bf16.mxu1 %vm11764_vm1, %v17768_v19 }
 0x3ab   : > { %v3419_v35 = vpop.f32.mrb[60].mxu0 }
 0x3ac   : > { %v3452_v0 = vadd.f32 %v3419_v35, %v15225_v17  ;;  %v3607_v27 = vpop.f32.mrb[60].mxu1  ;;  %v9988_v22 = vpop.f32.mrb[61].mxu0  ;;  %v15420_v35 = vpack.c.bf16 %v8456_v38, %v8456_v38 }
 0x3ad   : > { %v10032_v57 = vpop.f32.mrb[61].mxu1  ;;  %v3422_v10 = vpop.f32.mrb[62].mxu0 }
 0x3ae   : > { %v3453_v32 = vadd.f32 %v3422_v10, %v15229_v28  ;;  %v3610_v25 = vpop.f32.mrb[62].mxu1  ;;  %v9989_v52 = vpop.f32.mrb[63].mxu0  ;;  %v15389_v63 = vadd.f32 %v3607_v27, %v3452_v0 }
 0x3af   : > { %v10033_v14 = vpop.f32.mrb[63].mxu1 }
 0x3b0   : > { %10251 = vmatmul.mubr.msk.bf16.gmra.mrb[168].mxu0 %vm2820_vm0, %v15243_v47  ;;  %v15393_v36 = vadd.f32 %v3610_v25, %v3453_v32 }
 0x3b1   : > { %10295 = vmatmul.mubr.msk.bf16.gmra.mrb[168].mxu1 %vm2820_vm0, %v15049_v48  ;;  %10254 = vmatprep.mubr.msk.bf16.mxu0 %vm11764_vm1, %v17768_v19 }
 0x3b2   : > { %10298 = vmatprep.mubr.msk.bf16.mxu1 %vm11764_vm1, %v17768_v19 }
 0x3b3   : > { %v3427_v17 = vpop.f32.mrb[64].mxu0 }
 0x3b4   : > { %v3454_v28 = vadd.f32 %v3427_v17, %v15245_v2  ;;  %v3615_v33 = vpop.f32.mrb[64].mxu1  ;;  %v9992_v49 = vpop.f32.mrb[65].mxu0 }
 0x3b5   : > { %v10036_v30 = vpop.f32.mrb[65].mxu1  ;;  %v3430_v20 = vpop.f32.mrb[66].mxu0 }
 0x3b6   : > { %v3455_v48 = vadd.f32 %v3430_v20, %v15250_v40  ;;  %v3618_v45 = vpop.f32.mrb[66].mxu1  ;;  %v9993_v7 = vpop.f32.mrb[67].mxu0  ;;  %v15407_v37 = vadd.f32 %v3615_v33, %v3454_v28 }
 0x3b7   : > { %v10037_v61 = vpop.f32.mrb[67].mxu1 }
 0x3b8   : > { %10255 = vmatmul.mubr.msk.bf16.gmra.mrb[172].mxu0 %vm2820_vm0, %v15404_v21  ;;  %v15411_v18 = vadd.f32 %v3618_v45, %v3455_v48 }
 0x3b9   : > { %10299 = vmatmul.mubr.msk.bf16.gmra.mrb[172].mxu1 %vm2820_vm0, %v15062_v54  ;;  %10258 = vmatprep.mubr.msk.bf16.mxu0 %vm11764_vm1, %v17768_v19 }
 0x3ba   : > { %10302 = vmatprep.mubr.msk.bf16.mxu1 %vm11764_vm1, %v17768_v19 }
 0x3bb   : > { %v3435_v40 = vpop.f32.mrb[68].mxu0 }
 0x3bc   : > { %v3623_v2 = vpop.f32.mrb[68].mxu1  ;;  %v9996_v53 = vpop.f32.mrb[69].mxu0  ;;  %v11636_v40 = vld [vmem:[%s17159_s3 + $0x68] sm:$0xff]  }
 0x3bd   : > { %v10040_v0 = vpop.f32.mrb[69].mxu1  ;;  %v3437_v27 = vpop.f32.mrb[70].mxu0 }
 0x3be   : > { %v3625_v22 = vpop.f32.mrb[70].mxu1  ;;  %v9997_v57 = vpop.f32.mrb[71].mxu0 }
 0x3bf   : > { %v10041_v10 = vpop.f32.mrb[71].mxu1 }
 0x3c0   : > { %10259 = vmatmul.mubr.msk.bf16.gmra.mrb[176].mxu0 %vm2820_vm0, %v15420_v35 }
 0x3c1   : > { %10303 = vmatmul.mubr.msk.bf16.gmra.mrb[176].mxu1 %vm2820_vm0, %v15076_v1  ;;  %10314 = vmatprep.mubr.msk.bf16.mxu0 %vm11764_vm1, %v17768_v19 }
 0x3c2   : > { %10358 = vmatprep.mubr.msk.bf16.mxu1 %vm11764_vm1, %v17768_v19 }
 0x3c3   : > { %v3747_v54 = vpop.f32.mrb[72].mxu0 }
 0x3c4   : > { %v3816_v32 = vadd.f32 %v3747_v54, %v15281_v46  ;;  %v3907_v25 = vpop.f32.mrb[72].mxu1  ;;  %v10052_v52 = vpop.f32.mrb[73].mxu0  ;;  %v11634_v46 = vld [vmem:[%s17159_s3 + $0x60] sm:$0xff]   ;;  %v11639_v54 = vld [vmem:[%s17159_s3 + $0x90] sm:$0xff]  }
 0x3c5   : > { %v10096_v14 = vpop.f32.mrb[73].mxu1  ;;  %v3750_v17 = vpop.f32.mrb[74].mxu0 }
 0x3c6   : > { %v15431_v28 = vadd.f32 %v3907_v25, %v3816_v32  ;;  %v3817_v33 = vadd.f32 %v3750_v17, %v15285_v13  ;;  %v3910_v49 = vpop.f32.mrb[74].mxu1  ;;  %v10053_v30 = vpop.f32.mrb[75].mxu0  ;;  %v11635_v13 = vld [vmem:[%s17159_s3 + $0x80] sm:$0xff]  }
 0x3c7   : > { %v10097_v1 = vpop.f32.mrb[75].mxu1 }
 0x3c8   : > { %v15434_v20 = vadd.f32 %v3910_v49, %v3817_v33  ;;  %10315 = vmatmul.mubr.msk.bf16.vlgmr.msra.gmra.mrb[180].mxu0 %vm2820_vm0, %v14758_v31  ;;  %v11640_v1 = vld [vmem:[%s17159_s3 + $0x78] sm:$0xff]  }
 0x3c9   : > { %10359 = vmatmul.mubr.msk.bf16.vlgmr.msra.gmra.mrb[180].mxu1 %vm2820_vm0, %v14790_v51  ;;  %10395 = vmatpush3.bf16.msra.mxu0 %v11634_v46 }
 0x3ca   : > { %10439 = vmatpush3.bf16.msra.mxu1 %v11635_v13  ;;  %10318 = vmatprep.mubr.msk.bf16.mxu0 %vm11764_vm1, %v17768_v19 }
 0x3cb   : > { %v3755_v48 = vpop.f32.mrb[76].mxu0  ;;  %10362 = vmatprep.mubr.msk.bf16.mxu1 %vm11764_vm1, %v17768_v19  ;;  %10396 = vmatprep.subr.bf16.mxu0 %v17768_v19 }
 0x3cc   : > { %v3818_v31 = vadd.f32 %v3755_v48, %v15306_v55  ;;  %v3915_v45 = vpop.f32.mrb[76].mxu1  ;;  %v10056_v7 = vpop.f32.mrb[77].mxu0  ;;  %10440 = vmatprep.subr.bf16.mxu1 %v17768_v19  ;;  %v11637_v55 = vld [vmem:[%s17159_s3 + $0x88] sm:$0xff]  }
 0x3cd   : > { %v10100_v61 = vpop.f32.mrb[77].mxu1  ;;  %v3758_v38 = vpop.f32.mrb[78].mxu0  ;;  %10397 = vmatpush3.bf16.msra.mxu0 %v11636_v40 }
 0x3ce   : > { %v15456_v2 = vadd.f32 %v3915_v45, %v3818_v31  ;;  %v3819_v53 = vadd.f32 %v3758_v38, %v15311_v50  ;;  %v3918_v0 = vpop.f32.mrb[78].mxu1  ;;  %v10057_v27 = vpop.f32.mrb[79].mxu0  ;;  %10441 = vmatpush3.bf16.msra.mxu1 %v11637_v55  ;;  %10398 = vmatprep.subr.bf16.mxu0 %v17768_v19  ;;  %v11638_v50 = vld [vmem:[%s17159_s3 + $0x70] sm:$0xff]  }
 0x3cf   : > { %v10101_v22 = vpop.f32.mrb[79].mxu1  ;;  %10442 = vmatprep.subr.bf16.mxu1 %v17768_v19 }
 0x3d0   : > { %v15464_v57 = vadd.f32 %v3918_v0, %v3819_v53  ;;  %10319 = vmatmul.mubr.msk.bf16.gmra.mrb[184].mxu0 %vm2820_vm0, %v14790_v51 }
 0x3d1   : > { %10363 = vmatmul.mubr.msk.bf16.gmra.mrb[184].mxu1 %vm2820_vm0, %v14824_v15  ;;  %10322 = vmatprep.mubr.msk.bf16.mxu0 %vm11764_vm1, %v17768_v19 }
 0x3d2   : > { %10366 = vmatprep.mubr.msk.bf16.mxu1 %vm11764_vm1, %v17768_v19  ;;  %10399 = vmatpush3.bf16.msra.mxu0 %v11638_v50 }
 0x3d3   : > { %v3763_v10 = vpop.f32.mrb[80].mxu0  ;;  %10443 = vmatpush3.bf16.msra.mxu1 %v11639_v54  ;;  %10400 = vmatprep.subr.bf16.mxu0 %v17768_v19 }
 0x3d4   : > { %v3820_v51 = vadd.f32 %v3763_v10, %v15330_v16  ;;  %v3923_v32 = vpop.f32.mrb[80].mxu1  ;;  %v10060_v25 = vpop.f32.mrb[81].mxu0  ;;  %10444 = vmatprep.subr.bf16.mxu1 %v17768_v19  ;;  %v11641_v16 = vld [vmem:[%s17159_s3 + $0x98] sm:$0xff]  }
 0x3d5   : > { %v10104_v52 = vpop.f32.mrb[81].mxu1  ;;  %v3766_v14 = vpop.f32.mrb[82].mxu0 }
 0x3d6   : > { %v15483_v17 = vadd.f32 %v3923_v32, %v3820_v51  ;;  %v3821_v33 = vadd.f32 %v3766_v14, %v15337_v24  ;;  %v3926_v49 = vpop.f32.mrb[82].mxu1  ;;  %v10061_v30 = vpop.f32.mrb[83].mxu0  ;;  %10401 = vmatpush3.bf16.msra.mxu0 %v11640_v1 }
 0x3d7   : > { %v10105_v46 = vpop.f32.mrb[83].mxu1  ;;  %10445 = vmatpush3.bf16.msra.mxu1 %v11641_v16  ;;  %10482 = vmatprep.subr.bf16.mxu0 %v17768_v19 }
 0x3d8   : > { %v15493_v13 = vadd.f32 %v3926_v49, %v3821_v33  ;;  %10323 = vmatmul.mubr.msk.bf16.gmra.mrb[188].mxu0 %vm2820_vm0, %v14824_v15  ;;  %10526 = vmatprep.subr.bf16.mxu1 %v17768_v19 }
 0x3d9   : > { %10367 = vmatmul.mubr.msk.bf16.gmra.mrb[188].mxu1 %vm2820_vm0, %v14844_v59  ;;  %10326 = vmatprep.mubr.msk.bf16.mxu0 %vm11764_vm1, %v17768_v19 }
 0x3da   : > { %10370 = vmatprep.mubr.msk.bf16.mxu1 %vm11764_vm1, %v17768_v19 }
 0x3db   : > { %v3771_v24 = vpop.f32.mrb[84].mxu0 }
 0x3dc   : > { %v3822_v48 = vadd.f32 %v3771_v24, %v15347_v39  ;;  %v3931_v31 = vpop.f32.mrb[84].mxu1  ;;  %v10064_v45 = vpop.f32.mrb[85].mxu0 }
 0x3dd   : > { %v10108_v7 = vpop.f32.mrb[85].mxu1  ;;  %v3774_v61 = vpop.f32.mrb[86].mxu0 }
 0x3de   : > { %v15505_v38 = vadd.f32 %v3931_v31, %v3822_v48  ;;  %v3823_v15 = vadd.f32 %v3774_v61, %v15351_v58  ;;  %v3934_v40 = vpop.f32.mrb[86].mxu1  ;;  %v10065_v53 = vpop.f32.mrb[87].mxu0 }
 0x3df   : > { %v10109_v0 = vpop.f32.mrb[87].mxu1 }
 0x3e0   : > { %v15508_v27 = vadd.f32 %v3934_v40, %v3823_v15  ;;  %10327 = vmatmul.mubr.msk.bf16.gmra.mrb[192].mxu0 %vm2820_vm0, %v14844_v59 }
 0x3e1   : > { %10371 = vmatmul.mubr.msk.bf16.gmra.mrb[192].mxu1 %vm2820_vm0, %v14862_v5  ;;  %10330 = vmatprep.mubr.msk.bf16.mxu0 %vm11764_vm1, %v17768_v19 }
 0x3e2   : > { %10374 = vmatprep.mubr.msk.bf16.mxu1 %vm11764_vm1, %v17768_v19 }
 0x3e3   : > { %v3779_v39 = vpop.f32.mrb[88].mxu0 }
 0x3e4   : > { %v3824_v58 = vadd.f32 %v3779_v39, %v15361_v23  ;;  %v3939_v55 = vpop.f32.mrb[88].mxu1  ;;  %v10068_v22 = vpop.f32.mrb[89].mxu0 }
 0x3e5   : > { %v10112_v50 = vpop.f32.mrb[89].mxu1  ;;  %v3782_v10 = vpop.f32.mrb[90].mxu0 }
 0x3e6   : > { %v15519_v54 = vadd.f32 %v3939_v55, %v3824_v58  ;;  %v3825_v59 = vadd.f32 %v3782_v10, %v15365_v9  ;;  %v3942_v51 = vpop.f32.mrb[90].mxu1  ;;  %v10069_v32 = vpop.f32.mrb[91].mxu0 }
 0x3e7   : > { %v10113_v25 = vpop.f32.mrb[91].mxu1 }
 0x3e8   : > { %v15522_v52 = vadd.f32 %v3942_v51, %v3825_v59  ;;  %10331 = vmatmul.mubr.msk.bf16.gmra.mrb[196].mxu0 %vm2820_vm0, %v14862_v5 }
 0x3e9   : > { %10375 = vmatmul.mubr.msk.bf16.gmra.mrb[196].mxu1 %vm2820_vm0, %v14880_v44  ;;  %10334 = vmatprep.mubr.msk.bf16.mxu0 %vm11764_vm1, %v17768_v19 }
 0x3ea   : > { %10378 = vmatprep.mubr.msk.bf16.mxu1 %vm11764_vm1, %v17768_v19 }
 0x3eb   : > { %v3787_v23 = vpop.f32.mrb[92].mxu0 }
 0x3ec   : > { %v3826_v9 = vadd.f32 %v3787_v23, %v15375_v56  ;;  %v3947_v14 = vpop.f32.mrb[92].mxu1  ;;  %v10072_v33 = vpop.f32.mrb[93].mxu0 }
 0x3ed   : > { %v10116_v49 = vpop.f32.mrb[93].mxu1  ;;  %v3790_v30 = vpop.f32.mrb[94].mxu0 }
 0x3ee   : > { %v15533_v1 = vadd.f32 %v3947_v14, %v3826_v9  ;;  %v3827_v5 = vadd.f32 %v3790_v30, %v15379_v60  ;;  %v3950_v46 = vpop.f32.mrb[94].mxu1  ;;  %v10073_v16 = vpop.f32.mrb[95].mxu0 }
 0x3ef   : > { %v10117_v24 = vpop.f32.mrb[95].mxu1 }
 0x3f0   : > { %v15536_v48 = vadd.f32 %v3950_v46, %v3827_v5  ;;  %10335 = vmatmul.mubr.msk.bf16.gmra.mrb[200].mxu0 %vm2820_vm0, %v14880_v44 }
 0x3f1   : > { %10379 = vmatmul.mubr.msk.bf16.gmra.mrb[200].mxu1 %vm2820_vm0, %v14898_v3  ;;  %10338 = vmatprep.mubr.msk.bf16.mxu0 %vm11764_vm1, %v17768_v19 }
 0x3f2   : > { %10382 = vmatprep.mubr.msk.bf16.mxu1 %vm11764_vm1, %v17768_v19 }
 0x3f3   : > { %v3795_v56 = vpop.f32.mrb[96].mxu0 }
 0x3f4   : > { %v3828_v60 = vadd.f32 %v3795_v56, %v15389_v63  ;;  %v3955_v31 = vpop.f32.mrb[96].mxu1  ;;  %v10076_v45 = vpop.f32.mrb[97].mxu0 }
 0x3f5   : > { %v10120_v7 = vpop.f32.mrb[97].mxu1  ;;  %v3798_v61 = vpop.f32.mrb[98].mxu0 }
 0x3f6   : > { %v15547_v15 = vadd.f32 %v3955_v31, %v3828_v60  ;;  %v3829_v44 = vadd.f32 %v3798_v61, %v15393_v36  ;;  %v3958_v40 = vpop.f32.mrb[98].mxu1  ;;  %v10077_v53 = vpop.f32.mrb[99].mxu0 }
 0x3f7   : > { %v10121_v0 = vpop.f32.mrb[99].mxu1  ;;  %v11644_v53 = vld [vmem:[%s17159_s3 + $0xa8] sm:$0xff]  }
 0x3f8   : > { %v15550_v39 = vadd.f32 %v3958_v40, %v3829_v44  ;;  %10339 = vmatmul.mubr.msk.bf16.gmra.mrb[204].mxu0 %vm2820_vm0, %v14898_v3 }
 0x3f9   : > { %10383 = vmatmul.mubr.msk.bf16.gmra.mrb[204].mxu1 %vm2820_vm0, %v14916_v6  ;;  %10342 = vmatprep.mubr.msk.bf16.mxu0 %vm11764_vm1, %v17768_v19 }
 0x3fa   : > { %10386 = vmatprep.mubr.msk.bf16.mxu1 %vm11764_vm1, %v17768_v19 }
 0x3fb   : > { %v3803_v63 = vpop.f32.mrb[100].mxu0 }
 0x3fc   : > { %v3830_v36 = vadd.f32 %v3803_v63, %v15407_v37  ;;  %v3963_v58 = vpop.f32.mrb[100].mxu1  ;;  %v10080_v55 = vpop.f32.mrb[101].mxu0 }
 0x3fd   : > { %v10124_v22 = vpop.f32.mrb[101].mxu1  ;;  %v3806_v50 = vpop.f32.mrb[102].mxu0 }
 0x3fe   : > { %v15561_v10 = vadd.f32 %v3963_v58, %v3830_v36  ;;  %v3831_v3 = vadd.f32 %v3806_v50, %v15411_v18  ;;  %v3966_v59 = vpop.f32.mrb[102].mxu1  ;;  %v10081_v51 = vpop.f32.mrb[103].mxu0  ;;  %v17772_v50 = vld [vmem:[#allocation245_spill] sm:$0xff] }
 0x3ff   : > { %v10125_v32 = vpop.f32.mrb[103].mxu1 }
 0x400   : > { %v15564_v25 = vadd.f32 %v3966_v59, %v3831_v3  ;;  %10343 = vmatmul.mubr.msk.bf16.gmra.mrb[208].mxu0 %vm2820_vm0, %v14916_v6  ;;  %v11647_v59 = vld [vmem:[%s17159_s3 + $0xd0] sm:$0xff]  }
 0x401   : > { %10387 = vmatmul.mubr.msk.bf16.gmra.mrb[208].mxu1 %vm2820_vm0, %v15065_v41  ;;  %10346 = vmatprep.mubr.msk.bf16.mxu0 %vm11764_vm1, %v17768_v19 }
 0x402   : > { %10390 = vmatprep.mubr.msk.bf16.mxu1 %vm11764_vm1, %v17768_v19 }
 0x403   : > { %v3811_v37 = vpop.f32.mrb[104].mxu0 }
 0x404   : > { %v3971_v23 = vpop.f32.mrb[104].mxu1  ;;  %v10084_v18 = vpop.f32.mrb[105].mxu0 }
 0x405   : > { %v10128_v9 = vpop.f32.mrb[105].mxu1  ;;  %v3813_v14 = vpop.f32.mrb[106].mxu0 }
 0x406   : > { %v3973_v33 = vpop.f32.mrb[106].mxu1  ;;  %v10085_v49 = vpop.f32.mrb[107].mxu0 }
 0x407   : > { %v10129_v30 = vpop.f32.mrb[107].mxu1 }
 0x408   : > { %10347 = vmatmul.mubr.msk.bf16.gmra.mrb[212].mxu0 %vm2820_vm0, %v14934_v62  ;;  %v11648_v30 = vld [vmem:[%s17159_s3 + $0xb8] sm:$0xff]  }
 0x409   : > { %10391 = vmatmul.mubr.msk.bf16.gmra.mrb[212].mxu1 %vm2820_vm0, %v15078_v43  ;;  %10402 = vmatprep.mubr.msk.bf16.mxu0 %vm11764_vm1, %v17768_v19 }
 0x40a   : > { %10446 = vmatprep.mubr.msk.bf16.mxu1 %vm11764_vm1, %v17768_v19 }
 0x40b   : > { %v4095_v6 = vpop.f32.mrb[108].mxu0 }
 0x40c   : > { %v4164_v41 = vadd.f32 %v4095_v6, %v15431_v28  ;;  %v4283_v5 = vpop.f32.mrb[108].mxu1  ;;  %v10140_v46 = vpop.f32.mrb[109].mxu0  ;;  %v11642_v28 = vld [vmem:[%s17159_s3 + $0xa0] sm:$0xff]  }
 0x40d   : > { %v10184_v16 = vpop.f32.mrb[109].mxu1  ;;  %v4098_v24 = vpop.f32.mrb[110].mxu0 }
 0x40e   : > { %v15583_v56 = vadd.f32 %v4283_v5, %v4164_v41  ;;  %v4165_v62 = vadd.f32 %v4098_v24, %v15434_v20  ;;  %v4286_v60 = vpop.f32.mrb[110].mxu1  ;;  %v10141_v31 = vpop.f32.mrb[111].mxu0  ;;  %v11643_v20 = vld [vmem:[%s17159_s3 + $0xc0] sm:$0xff]  }
 0x40f   : > { %v10185_v43 = vpop.f32.mrb[111].mxu1 }
 0x410   : > { %v15586_v45 = vadd.f32 %v4286_v60, %v4165_v62  ;;  %10403 = vmatmul.mubr.msk.bf16.vlgmr.msra.gmra.mrb[216].mxu0 %vm2820_vm0, %v15091_v8 }
 0x411   : > { %10447 = vmatmul.mubr.msk.bf16.vlgmr.msra.gmra.mrb[216].mxu1 %vm2820_vm0, %v15095_v26  ;;  %10483 = vmatpush3.bf16.msra.mxu0 %v11642_v28 }
 0x412   : > { %10527 = vmatpush3.bf16.msra.mxu1 %v11643_v20  ;;  %10406 = vmatprep.mubr.msk.bf16.mxu0 %vm11764_vm1, %v17768_v19 }
 0x413   : > { %v4103_v7 = vpop.f32.mrb[112].mxu0  ;;  %10450 = vmatprep.mubr.msk.bf16.mxu1 %vm11764_vm1, %v17768_v19  ;;  %10484 = vmatprep.subr.bf16.mxu0 %v17768_v19 }
 0x414   : > { %v4166_v8 = vadd.f32 %v4103_v7, %v15456_v2  ;;  %v4291_v26 = vpop.f32.mrb[112].mxu1  ;;  %v10144_v61 = vpop.f32.mrb[113].mxu0  ;;  %10528 = vmatprep.subr.bf16.mxu1 %v17768_v19  ;;  %v11645_v2 = vld [vmem:[%s17159_s3 + $0xc8] sm:$0xff]  }
 0x415   : > { %v10188_v44 = vpop.f32.mrb[113].mxu1  ;;  %v4106_v40 = vpop.f32.mrb[114].mxu0  ;;  %10485 = vmatpush3.bf16.msra.mxu0 %v11644_v53 }
 0x416   : > { %v15608_v0 = vadd.f32 %v4291_v26, %v4166_v8  ;;  %v4167_v63 = vadd.f32 %v4106_v40, %v15464_v57  ;;  %v4294_v36 = vpop.f32.mrb[114].mxu1  ;;  %v10145_v58 = vpop.f32.mrb[115].mxu0  ;;  %10529 = vmatpush3.bf16.msra.mxu1 %v11645_v2  ;;  %10486 = vmatprep.subr.bf16.mxu0 %v17768_v19  ;;  %v11646_v57 = vld [vmem:[%s17159_s3 + $0xb0] sm:$0xff]   ;;  %v17774_v26 = vld [vmem:[#allocation247_spill] sm:$0xff] }
 0x417   : > { %v10189_v55 = vpop.f32.mrb[115].mxu1  ;;  %10530 = vmatprep.subr.bf16.mxu1 %v17768_v19 }
 0x418   : > { %v15616_v22 = vadd.f32 %v4294_v36, %v4167_v63  ;;  %10407 = vmatmul.mubr.msk.bf16.gmra.mrb[220].mxu0 %vm2820_vm0, %v15117_v12 }
 0x419   : > { %10451 = vmatmul.mubr.msk.bf16.gmra.mrb[220].mxu1 %vm2820_vm0, %v17772_v50  ;;  %10410 = vmatprep.mubr.msk.bf16.mxu0 %vm11764_vm1, %v17768_v19 }
 0x41a   : > { %10454 = vmatprep.mubr.msk.bf16.mxu1 %vm11764_vm1, %v17768_v19  ;;  %10487 = vmatpush3.bf16.msra.mxu0 %v11646_v57  ;;  %v17775_v57 = vld [vmem:[#allocation248_spill] sm:$0xff] }
 0x41b   : > { %v4111_v3 = vpop.f32.mrb[116].mxu0  ;;  %10531 = vmatpush3.bf16.msra.mxu1 %v11647_v59  ;;  %10488 = vmatprep.subr.bf16.mxu0 %v17768_v19 }
 0x41c   : > { %v4168_v51 = vadd.f32 %v4111_v3, %v15483_v17  ;;  %v4299_v32 = vpop.f32.mrb[116].mxu1  ;;  %v10148_v37 = vpop.f32.mrb[117].mxu0  ;;  %10532 = vmatprep.subr.bf16.mxu1 %v17768_v19  ;;  %v11649_v17 = vld [vmem:[%s17159_s3 + $0xd8] sm:$0xff]  }
 0x41d   : > { %v10192_v23 = vpop.f32.mrb[117].mxu1  ;;  %v4114_v18 = vpop.f32.mrb[118].mxu0 }
 0x41e   : > { %v15635_v9 = vadd.f32 %v4299_v32, %v4168_v51  ;;  %v4169_v14 = vadd.f32 %v4114_v18, %v15493_v13  ;;  %v4302_v33 = vpop.f32.mrb[118].mxu1  ;;  %v10149_v49 = vpop.f32.mrb[119].mxu0  ;;  %10489 = vmatpush3.bf16.msra.mxu0 %v11648_v30  ;;  %v17773_v13 = vld [vmem:[#allocation246_spill] sm:$0xff]  ;;  %v17776_v30 = vld [vmem:[#allocation249_spill] sm:$0xff] }
 0x41f   : > { %v10193_v6 = vpop.f32.mrb[119].mxu1  ;;  %10533 = vmatpush3.bf16.msra.mxu1 %v11649_v17  ;;  %10570 = vmatprep.subr.bf16.mxu0 %v17768_v19 }
 0x420   : > { %v15645_v41 = vadd.f32 %v4302_v33, %v4169_v14  ;;  %10411 = vmatmul.mubr.msk.bf16.gmra.mrb[224].mxu0 %vm2820_vm0, %v15147_v42  ;;  %10614 = vmatprep.subr.bf16.mxu1 %v17768_v19 }
 0x421   : > { %10455 = vmatmul.mubr.msk.bf16.gmra.mrb[224].mxu1 %vm2820_vm0, %v17773_v13  ;;  %10414 = vmatprep.mubr.msk.bf16.mxu0 %vm11764_vm1, %v17768_v19 }
 0x422   : > { %10458 = vmatprep.mubr.msk.bf16.mxu1 %vm11764_vm1, %v17768_v19 }
 0x423   : > { %v4119_v5 = vpop.f32.mrb[120].mxu0 }
 0x424   : > { %v4170_v46 = vadd.f32 %v4119_v5, %v15505_v38  ;;  %v4307_v16 = vpop.f32.mrb[120].mxu1  ;;  %v10152_v24 = vpop.f32.mrb[121].mxu0 }
 0x425   : > { %v10196_v62 = vpop.f32.mrb[121].mxu1  ;;  %v4122_v60 = vpop.f32.mrb[122].mxu0 }
 0x426   : > { %v15657_v31 = vadd.f32 %v4307_v16, %v4170_v46  ;;  %v4171_v43 = vadd.f32 %v4122_v60, %v15508_v27  ;;  %v4310_v28 = vpop.f32.mrb[122].mxu1  ;;  %v10153_v20 = vpop.f32.mrb[123].mxu0 }
 0x427   : > { %v10197_v7 = vpop.f32.mrb[123].mxu1 }
 0x428   : > { %v15660_v8 = vadd.f32 %v4310_v28, %v4171_v43  ;;  %10415 = vmatmul.mubr.msk.bf16.gmra.mrb[228].mxu0 %vm2820_vm0, %v15169_v34  ;;  %v17777_v28 = vld [vmem:[#allocation250_spill] sm:$0xff] }
 0x429   : > { %10459 = vmatmul.mubr.msk.bf16.gmra.mrb[228].mxu1 %vm2820_vm0, %v17774_v26  ;;  %10418 = vmatprep.mubr.msk.bf16.mxu0 %vm11764_vm1, %v17768_v19 }
 0x42a   : > { %10462 = vmatprep.mubr.msk.bf16.mxu1 %vm11764_vm1, %v17768_v19 }
 0x42b   : > { %v4127_v38 = vpop.f32.mrb[124].mxu0 }
 0x42c   : > { %v4172_v27 = vadd.f32 %v4127_v38, %v15519_v54  ;;  %v4315_v61 = vpop.f32.mrb[124].mxu1  ;;  %v10156_v44 = vpop.f32.mrb[125].mxu0 }
 0x42d   : > { %v10200_v40 = vpop.f32.mrb[125].mxu1  ;;  %v4130_v53 = vpop.f32.mrb[126].mxu0 }
 0x42e   : > { %v15671_v63 = vadd.f32 %v4315_v61, %v4172_v27  ;;  %v4173_v36 = vadd.f32 %v4130_v53, %v15522_v52  ;;  %v4318_v58 = vpop.f32.mrb[126].mxu1  ;;  %v10157_v2 = vpop.f32.mrb[127].mxu0 }
 0x42f   : > { %v10201_v55 = vpop.f32.mrb[127].mxu1 }
 0x430   : > { %v15674_v50 = vadd.f32 %v4318_v58, %v4173_v36  ;;  %10419 = vmatmul.mubr.msk.bf16.gmra.mrb[232].mxu0 %vm2820_vm0, %v15187_v29  ;;  %v17778_v58 = vld [vmem:[#allocation251_spill] sm:$0xff] }
 0x431   : > { %10463 = vmatmul.mubr.msk.bf16.gmra.mrb[232].mxu1 %vm2820_vm0, %v17775_v57  ;;  %10422 = vmatprep.mubr.msk.bf16.mxu0 %vm11764_vm1, %v17768_v19 }
 0x432   : > { %10466 = vmatprep.mubr.msk.bf16.mxu1 %vm11764_vm1, %v17768_v19 }
 0x433   : > { %v4135_v54 = vpop.f32.mrb[128].mxu0 }
 0x434   : > { %v4174_v52 = vadd.f32 %v4135_v54, %v15533_v1  ;;  %v4323_v3 = vpop.f32.mrb[128].mxu1  ;;  %v10160_v59 = vpop.f32.mrb[129].mxu0 }
 0x435   : > { %v10204_v51 = vpop.f32.mrb[129].mxu1  ;;  %v4138_v32 = vpop.f32.mrb[130].mxu0  ;;  %v17779_v59 = vld [vmem:[#allocation252_spill] sm:$0xff] }
 0x436   : > { %v15685_v37 = vadd.f32 %v4323_v3, %v4174_v52  ;;  %v4175_v23 = vadd.f32 %v4138_v32, %v15536_v48  ;;  %v4326_v18 = vpop.f32.mrb[130].mxu1  ;;  %v10161_v14 = vpop.f32.mrb[131].mxu0  ;;  %v17780_v51 = vld [vmem:[#allocation253_spill] sm:$0xff]  ;;  %v8459_v32 = vld [vmem:[%s14594_s25 + $0x1c8] sm:$0xff] }
 0x437   : > { %v10205_v33 = vpop.f32.mrb[131].mxu1 }
 0x438   : > { %v15688_v49 = vadd.f32 %v4326_v18, %v4175_v23  ;;  %10423 = vmatmul.mubr.msk.bf16.gmra.mrb[236].mxu0 %vm2820_vm0, %v15205_v11  ;;  %v15736_v23 = vld [vmem:[%s14594_s25 + $0x1d0] sm:$0xff] }
 0x439   : > { %10467 = vmatmul.mubr.msk.bf16.gmra.mrb[236].mxu1 %vm2820_vm0, %v17776_v30  ;;  %10426 = vmatprep.mubr.msk.bf16.mxu0 %vm11764_vm1, %v17768_v19 }
 0x43a   : > { %10470 = vmatprep.mubr.msk.bf16.mxu1 %vm11764_vm1, %v17768_v19 }
 0x43b   : > { %v4143_v1 = vpop.f32.mrb[132].mxu0 }
 0x43c   : > { %v4176_v48 = vadd.f32 %v4143_v1, %v15547_v15  ;;  %v4331_v6 = vpop.f32.mrb[132].mxu1  ;;  %v10164_v17 = vpop.f32.mrb[133].mxu0 }
 0x43d   : > { %v10208_v13 = vpop.f32.mrb[133].mxu1  ;;  %v4146_v5 = vpop.f32.mrb[134].mxu0 }
 0x43e   : > { %v15699_v46 = vadd.f32 %v4331_v6, %v4176_v48  ;;  %v4177_v16 = vadd.f32 %v4146_v5, %v15550_v39  ;;  %v4334_v24 = vpop.f32.mrb[134].mxu1  ;;  %v10165_v62 = vpop.f32.mrb[135].mxu0  ;;  %v5249_v6 = vpack.c.bf16 %v15736_v23, %v8459_v32 }
 0x43f   : > { %v10209_v60 = vpop.f32.mrb[135].mxu1  ;;  %v15759_v62 = vld [vmem:[%s14594_s25 + $0x1e0] sm:$0xff] }
 0x440   : > { %v15702_v43 = vadd.f32 %v4334_v24, %v4177_v16  ;;  %10427 = vmatmul.mubr.msk.bf16.gmra.mrb[240].mxu0 %vm2820_vm0, %v15223_v4  ;;  %v15756_v24 = vld [vmem:[%s14594_s25 + $0x1d8] sm:$0xff] }
 0x441   : > { %10471 = vmatmul.mubr.msk.bf16.gmra.mrb[240].mxu1 %vm2820_vm0, %v17777_v28  ;;  %10430 = vmatprep.mubr.msk.bf16.mxu0 %vm11764_vm1, %v17768_v19 }
 0x442   : > { %10474 = vmatprep.mubr.msk.bf16.mxu1 %vm11764_vm1, %v17768_v19 }
 0x443   : > { %v4151_v15 = vpop.f32.mrb[136].mxu0 }
 0x444   : > { %v4178_v39 = vadd.f32 %v4151_v15, %v15561_v10  ;;  %v4339_v20 = vpop.f32.mrb[136].mxu1  ;;  %v10168_v7 = vpop.f32.mrb[137].mxu0 }
 0x445   : > { %v10212_v26 = vpop.f32.mrb[137].mxu1  ;;  %v4154_v38 = vpop.f32.mrb[138].mxu0 }
 0x446   : > { %v15713_v27 = vadd.f32 %v4339_v20, %v4178_v39  ;;  %v4179_v61 = vadd.f32 %v4154_v38, %v15564_v25  ;;  %v4342_v44 = vpop.f32.mrb[138].mxu1  ;;  %v10169_v40 = vpop.f32.mrb[139].mxu0  ;;  %v15777_v39 = vpack.c.bf16 %v15759_v62, %v15756_v24  ;;  %v11652_v26 = vld [vmem:[%s17159_s3 + $0xe8] sm:$0xff]  }
 0x447   : > { %v10213_v53 = vpop.f32.mrb[139].mxu1 }
 0x448   : > { %v15716_v36 = vadd.f32 %v4342_v44, %v4179_v61  ;;  %10431 = vmatmul.mubr.msk.bf16.gmra.mrb[244].mxu0 %vm2820_vm0, %v15243_v47  ;;  %v11653_v44 = vld [vmem:[%s17159_s3 + $0x108] sm:$0xff]   ;;  %v15802_v53 = vld [vmem:[%s14594_s25 + $0x1f0] sm:$0xff] }
 0x449   : > { %10475 = vmatmul.mubr.msk.bf16.gmra.mrb[244].mxu1 %vm2820_vm0, %v17778_v58  ;;  %10434 = vmatprep.mubr.msk.bf16.mxu0 %vm11764_vm1, %v17768_v19  ;;  %v11654_v58 = vld [vmem:[%s17159_s3 + $0xf0] sm:$0xff]  }
 0x44a   : > { %10478 = vmatprep.mubr.msk.bf16.mxu1 %vm11764_vm1, %v17768_v19 }
 0x44b   : > { %v4159_v10 = vpop.f32.mrb[140].mxu0 }
 0x44c   : > { %v4347_v25 = vpop.f32.mrb[140].mxu1  ;;  %v10172_v2 = vpop.f32.mrb[141].mxu0 }
 0x44d   : > { %v10216_v55 = vpop.f32.mrb[141].mxu1  ;;  %v4161_v57 = vpop.f32.mrb[142].mxu0 }
 0x44e   : > { %v4349_v54 = vpop.f32.mrb[142].mxu1  ;;  %v10173_v52 = vpop.f32.mrb[143].mxu0 }
 0x44f   : > { %v10217_v3 = vpop.f32.mrb[143].mxu1 }
 0x450   : > { %10435 = vmatmul.mubr.msk.bf16.gmra.mrb[248].mxu0 %vm2820_vm0, %v17779_v59 }
 0x451   : > { %10479 = vmatmul.mubr.msk.bf16.gmra.mrb[248].mxu1 %vm2820_vm0, %v17780_v51  ;;  %10490 = vmatprep.mubr.msk.bf16.mxu0 %vm11764_vm1, %v17768_v19  ;;  %v11656_v51 = vld [vmem:[%s17159_s3 + $0xf8] sm:$0xff]  }
 0x452   : > { %10534 = vmatprep.mubr.msk.bf16.mxu1 %vm11764_vm1, %v17768_v19 }
 0x453   : > { %v4443_v18 = vpop.f32.mrb[144].mxu0 }
 0x454   : > { %v15739_v14 = vadd.f32 %v4443_v18, %v15583_v56  ;;  %v15741_v33 = vpop.f32.mrb[144].mxu1  ;;  %v10228_v30 = vpop.f32.mrb[145].mxu0  ;;  %v11650_v56 = vld [vmem:[%s17159_s3 + $0xe0] sm:$0xff]   ;;  %v11657_v18 = vld [vmem:[%s17159_s3 + $0x118] sm:$0xff]  }
 0x455   : > { %v10272_v1 = vpop.f32.mrb[145].mxu1  ;;  %v4446_v48 = vpop.f32.mrb[146].mxu0  ;;  %v15846_v30 = vld [vmem:[%s14594_s25 + $0x200] sm:$0xff] }
 0x456   : > { %v15745_v17 = vadd.f32 %v4446_v48, %v15586_v45  ;;  %v15747_v13 = vpop.f32.mrb[146].mxu1  ;;  %v10229_v5 = vpop.f32.mrb[147].mxu0  ;;  %v11651_v45 = vld [vmem:[%s17159_s3 + $0x100] sm:$0xff]  }
 0x457   : > { %v10273_v16 = vpop.f32.mrb[147].mxu1 }
 0x458   : > { %10491 = vmatmul.mubr.msk.bf16.vlgmr.msra.gmra.mrb[252].mxu0 %vm2820_vm0, %v15117_v12 }
 0x459   : > { %10535 = vmatmul.mubr.msk.bf16.vlgmr.msra.gmra.mrb[252].mxu1 %vm2820_vm0, %v5249_v6  ;;  %10571 = vmatpush3.bf16.msra.mxu0 %v11650_v56 }
 0x45a   : > { %10615 = vmatpush3.bf16.msra.mxu1 %v11651_v45  ;;  %10494 = vmatprep.mubr.msk.bf16.mxu0 %vm11764_vm1, %v17768_v19 }
 0x45b   : > { %v4451_v12 = vpop.f32.mrb[148].mxu0  ;;  %10538 = vmatprep.mubr.msk.bf16.mxu1 %vm11764_vm1, %v17768_v19  ;;  %10572 = vmatprep.subr.bf16.mxu0 %v17768_v19 }
 0x45c   : > { %v15770_v60 = vadd.f32 %v4451_v12, %v15608_v0  ;;  %v15772_v28 = vpop.f32.mrb[148].mxu1  ;;  %v10232_v15 = vpop.f32.mrb[149].mxu0  ;;  %10616 = vmatprep.subr.bf16.mxu1 %v17768_v19 }
 0x45d   : > { %v10276_v20 = vpop.f32.mrb[149].mxu1  ;;  %v4454_v7 = vpop.f32.mrb[150].mxu0  ;;  %10573 = vmatpush3.bf16.msra.mxu0 %v11652_v26 }
 0x45e   : > { %v15783_v0 = vadd.f32 %v4454_v7, %v15616_v22  ;;  %v15785_v38 = vpop.f32.mrb[150].mxu1  ;;  %v10233_v61 = vpop.f32.mrb[151].mxu0  ;;  %10617 = vmatpush3.bf16.msra.mxu1 %v11653_v44  ;;  %10574 = vmatprep.subr.bf16.mxu0 %v17768_v19  ;;  %v15799_v22 = vld [vmem:[%s14594_s25 + $0x1e8] sm:$0xff] }
 0x45f   : > { %v10277_v40 = vpop.f32.mrb[151].mxu1  ;;  %10618 = vmatprep.subr.bf16.mxu1 %v17768_v19  ;;  %v15821_v57 = vpack.c.bf16 %v15802_v53, %v15799_v22 }
 0x460   : > { %10495 = vmatmul.mubr.msk.bf16.gmra.mrb[0].mxu0 %vm2820_vm0, %v15147_v42  ;;  %v11655_v42 = vld [vmem:[%s17159_s3 + $0x110] sm:$0xff]  }
 0x461   : > { %10539 = vmatmul.mubr.msk.bf16.gmra.mrb[0].mxu1 %vm2820_vm0, %v15777_v39  ;;  %10498 = vmatprep.mubr.msk.bf16.mxu0 %vm11764_vm1, %v17768_v19 }
 0x462   : > { %10542 = vmatprep.mubr.msk.bf16.mxu1 %vm11764_vm1, %v17768_v19  ;;  %10575 = vmatpush3.bf16.msra.mxu0 %v11654_v58 }
 0x463   : > { %v4459_v10 = vpop.f32.mrb[152].mxu0  ;;  %10619 = vmatpush3.bf16.msra.mxu1 %v11655_v42  ;;  %10576 = vmatprep.subr.bf16.mxu0 %v17768_v19 }
 0x464   : > { %v15814_v25 = vadd.f32 %v4459_v10, %v15635_v9  ;;  %v15816_v2 = vpop.f32.mrb[152].mxu1  ;;  %v10236_v55 = vpop.f32.mrb[153].mxu0  ;;  %10620 = vmatprep.subr.bf16.mxu1 %v17768_v19 }
 0x465   : > { %v10280_v54 = vpop.f32.mrb[153].mxu1  ;;  %v4462_v52 = vpop.f32.mrb[154].mxu0 }
 0x466   : > { %v15824_v3 = vadd.f32 %v4462_v52, %v15645_v41  ;;  %v15826_v59 = vpop.f32.mrb[154].mxu1  ;;  %v10237_v9 = vpop.f32.mrb[155].mxu0  ;;  %10577 = vmatpush3.bf16.msra.mxu0 %v11656_v51  ;;  %v15841_v41 = vld [vmem:[%s14594_s25 + $0x1f8] sm:$0xff] }
 0x467   : > { %v10281_v32 = vpop.f32.mrb[155].mxu1  ;;  %10621 = vmatpush3.bf16.msra.mxu1 %v11657_v18  ;;  %v15855_v56 = vpack.c.bf16 %v15846_v30, %v15841_v41 }
 0x468   : > { %10499 = vmatmul.mubr.msk.bf16.gmra.mrb[4].mxu0 %vm2820_vm0, %v15169_v34 }
 0x469   : > { %10543 = vmatmul.mubr.msk.bf16.gmra.mrb[4].mxu1 %vm2820_vm0, %v15821_v57  ;;  %10502 = vmatprep.mubr.msk.bf16.mxu0 %vm11764_vm1, %v17768_v19 }
 0x46a   : > { %10546 = vmatprep.mubr.msk.bf16.mxu1 %vm11764_vm1, %v17768_v19 }
 0x46b   : > { %v4467_v1 = vpop.f32.mrb[156].mxu0 }
 0x46c   : > { %v15849_v48 = vadd.f32 %v4467_v1, %v15657_v31  ;;  %v15851_v34 = vpop.f32.mrb[156].mxu1  ;;  %v10240_v6 = vpop.f32.mrb[157].mxu0  ;;  %v15871_v31 = vld [vmem:[%s14594_s25 + $0x208] sm:$0xff] }
 0x46d   : > { %v10284_v5 = vpop.f32.mrb[157].mxu1  ;;  %v4470_v16 = vpop.f32.mrb[158].mxu0 }
 0x46e   : > { %v15858_v45 = vadd.f32 %v4470_v16, %v15660_v8  ;;  %v15860_v12 = vpop.f32.mrb[158].mxu1  ;;  %v10241_v15 = vpop.f32.mrb[159].mxu0  ;;  %v15874_v8 = vld [vmem:[%s14594_s25 + $0x210] sm:$0xff] }
 0x46f   : > { %v10285_v20 = vpop.f32.mrb[159].mxu1  ;;  %v15883_v58 = vpack.c.bf16 %v15874_v8, %v15871_v31 }
 0x470   : > { %10503 = vmatmul.mubr.msk.bf16.gmra.mrb[8].mxu0 %vm2820_vm0, %v15187_v29 }
 0x471   : > { %10547 = vmatmul.mubr.msk.bf16.gmra.mrb[8].mxu1 %vm2820_vm0, %v15855_v56  ;;  %10506 = vmatprep.mubr.msk.bf16.mxu0 %vm11764_vm1, %v17768_v19 }
 0x472   : > { %10550 = vmatprep.mubr.msk.bf16.mxu1 %vm11764_vm1, %v17768_v19 }
 0x473   : > { %v4475_v7 = vpop.f32.mrb[160].mxu0 }
 0x474   : > { %v15877_v26 = vadd.f32 %v4475_v7, %v15671_v63  ;;  %v15879_v29 = vpop.f32.mrb[160].mxu1  ;;  %v10244_v61 = vpop.f32.mrb[161].mxu0  ;;  %v15899_v63 = vld [vmem:[%s14594_s25 + $0x218] sm:$0xff] }
 0x475   : > { %v10288_v44 = vpop.f32.mrb[161].mxu1  ;;  %v4478_v40 = vpop.f32.mrb[162].mxu0 }
 0x476   : > { %v15886_v10 = vadd.f32 %v4478_v40, %v15674_v50  ;;  %v15888_v42 = vpop.f32.mrb[162].mxu1  ;;  %v10245_v55 = vpop.f32.mrb[163].mxu0  ;;  %v15902_v50 = vld [vmem:[%s14594_s25 + $0x220] sm:$0xff] }
 0x477   : > { %v10289_v54 = vpop.f32.mrb[163].mxu1  ;;  %v15911_v1 = vpack.c.bf16 %v15902_v50, %v15899_v63 }
 0x478   : > { %10507 = vmatmul.mubr.msk.bf16.gmra.mrb[12].mxu0 %vm2820_vm0, %v15205_v11 }
 0x479   : > { %10551 = vmatmul.mubr.msk.bf16.gmra.mrb[12].mxu1 %vm2820_vm0, %v15883_v58  ;;  %10510 = vmatprep.mubr.msk.bf16.mxu0 %vm11764_vm1, %v17768_v19 }
 0x47a   : > { %10554 = vmatprep.mubr.msk.bf16.mxu1 %vm11764_vm1, %v17768_v19 }
 0x47b   : > { %v4483_v52 = vpop.f32.mrb[164].mxu0 }
 0x47c   : > { %v15905_v9 = vadd.f32 %v4483_v52, %v15685_v37  ;;  %v15907_v11 = vpop.f32.mrb[164].mxu1  ;;  %v10248_v51 = vpop.f32.mrb[165].mxu0  ;;  %v15927_v37 = vld [vmem:[%s14594_s25 + $0x228] sm:$0xff] }
 0x47d   : > { %v10292_v32 = vpop.f32.mrb[165].mxu1  ;;  %v4486_v18 = vpop.f32.mrb[166].mxu0 }
 0x47e   : > { %v15914_v6 = vadd.f32 %v4486_v18, %v15688_v49  ;;  %v15916_v5 = vpop.f32.mrb[166].mxu1  ;;  %v10249_v16 = vpop.f32.mrb[167].mxu0  ;;  %v15930_v49 = vld [vmem:[%s14594_s25 + $0x230] sm:$0xff] }
 0x47f   : > { %v10293_v15 = vpop.f32.mrb[167].mxu1  ;;  %v15939_v55 = vpack.c.bf16 %v15930_v49, %v15927_v37 }
 0x480   : > { %17781 = vst [vmem:[#allocation245_spill] sm:$0xff] %v15914_v6  ;;  %10511 = vmatmul.mubr.msk.bf16.gmra.mrb[16].mxu0 %vm2820_vm0, %v15223_v4 }
 0x481   : > { %10555 = vmatmul.mubr.msk.bf16.gmra.mrb[16].mxu1 %vm2820_vm0, %v15911_v1  ;;  %10514 = vmatprep.mubr.msk.bf16.mxu0 %vm11764_vm1, %v17768_v19 }
 0x482   : > { %10558 = vmatprep.mubr.msk.bf16.mxu1 %vm11764_vm1, %v17768_v19 }
 0x483   : > { %v4491_v20 = vpop.f32.mrb[168].mxu0 }
 0x484   : > { %v15933_v7 = vadd.f32 %v4491_v20, %v15699_v46  ;;  %v15935_v4 = vpop.f32.mrb[168].mxu1  ;;  %v10252_v61 = vpop.f32.mrb[169].mxu0  ;;  %v15955_v46 = vld [vmem:[%s14594_s25 + $0x238] sm:$0xff] }
 0x485   : > { %v10296_v44 = vpop.f32.mrb[169].mxu1  ;;  %v4494_v40 = vpop.f32.mrb[170].mxu0 }
 0x486   : > { %17782 = vst [vmem:[#allocation246_spill] sm:$0xff] %v15933_v7  ;;  %v15942_v54 = vadd.f32 %v4494_v40, %v15702_v43  ;;  %v15944_v52 = vpop.f32.mrb[170].mxu1  ;;  %v10253_v51 = vpop.f32.mrb[171].mxu0  ;;  %v15958_v43 = vld [vmem:[%s14594_s25 + $0x240] sm:$0xff] }
 0x487   : > { %v10297_v32 = vpop.f32.mrb[171].mxu1  ;;  %v15967_v44 = vpack.c.bf16 %v15958_v43, %v15955_v46 }
 0x488   : > { %17783 = vst [vmem:[#allocation247_spill] sm:$0xff] %v15942_v54  ;;  %10515 = vmatmul.mubr.msk.bf16.gmra.mrb[20].mxu0 %vm2820_vm0, %v15243_v47 }
 0x489   : > { %10559 = vmatmul.mubr.msk.bf16.gmra.mrb[20].mxu1 %vm2820_vm0, %v15939_v55  ;;  %10518 = vmatprep.mubr.msk.bf16.mxu0 %vm11764_vm1, %v17768_v19 }
 0x48a   : > { %10562 = vmatprep.mubr.msk.bf16.mxu1 %vm11764_vm1, %v17768_v19 }
 0x48b   : > { %v4499_v18 = vpop.f32.mrb[172].mxu0 }
 0x48c   : > { %v15961_v16 = vadd.f32 %v4499_v18, %v15713_v27  ;;  %v15963_v15 = vpop.f32.mrb[172].mxu1  ;;  %v10256_v47 = vpop.f32.mrb[173].mxu0  ;;  %v15983_v27 = vld [vmem:[%s14594_s25 + $0x248] sm:$0xff] }
 0x48d   : > { %v10300_v20 = vpop.f32.mrb[173].mxu1  ;;  %v4502_v61 = vpop.f32.mrb[174].mxu0 }
 0x48e   : > { %17784 = vst [vmem:[#allocation248_spill] sm:$0xff] %v15961_v16  ;;  %v15970_v40 = vadd.f32 %v4502_v61, %v15716_v36  ;;  %v15972_v51 = vpop.f32.mrb[174].mxu1  ;;  %v10257_v32 = vpop.f32.mrb[175].mxu0 }
 0x48f   : > { %v10301_v54 = vpop.f32.mrb[175].mxu1 }
 0x490   : > { %17785 = vst [vmem:[#allocation249_spill] sm:$0xff] %v15970_v40  ;;  %10519 = vmatmul.mubr.msk.bf16.gmra.mrb[24].mxu0 %vm2820_vm0, %v15404_v21  ;;  %v5257_v54 = vpack.c.bf16 %v15983_v27, %v15983_v27 }
 0x491   : > { %10563 = vmatmul.mubr.msk.bf16.gmra.mrb[24].mxu1 %vm2820_vm0, %v15967_v44  ;;  %10522 = vmatprep.mubr.msk.bf16.mxu0 %vm11764_vm1, %v17768_v19 }
 0x492   : > { %10566 = vmatprep.mubr.msk.bf16.mxu1 %vm11764_vm1, %v17768_v19 }
 0x493   : > { %v4507_v36 = vpop.f32.mrb[176].mxu0 }
 0x494   : > { %v4665_v18 = vpop.f32.mrb[176].mxu1  ;;  %v10260_v47 = vpop.f32.mrb[177].mxu0 }
 0x495   : > { %v10304_v20 = vpop.f32.mrb[177].mxu1  ;;  %v4509_v61 = vpop.f32.mrb[178].mxu0  ;;  %v5404_v18 = vpack.c.bf16 %v15756_v24, %v15736_v23 }
 0x496   : > { %v4667_v21 = vpop.f32.mrb[178].mxu1  ;;  %v10261_v32 = vpop.f32.mrb[179].mxu0 }
 0x497   : > { %v10305_v40 = vpop.f32.mrb[179].mxu1 }
 0x498   : > { %10523 = vmatmul.mubr.msk.bf16.gmra.mrb[28].mxu0 %vm2820_vm0, %v15420_v35 }
 0x499   : > { %10567 = vmatmul.mubr.msk.bf16.gmra.mrb[28].mxu1 %vm2820_vm0, %v5257_v54  ;;  %10578 = vmatprep.mubr.msk.bf16.mxu0 %vm11764_vm1, %v17768_v19 }
 0x49a   : > { %10622 = vmatprep.mubr.msk.bf16.mxu1 %vm11764_vm1, %v17768_v19 }
 0x49b   : > { %v4704_v36 = vpop.f32.mrb[180].mxu0 }
 0x49c   : > { %v4705_v47 = vadd.f32 %v4704_v36, %v15741_v33  ;;  %v4807_v20 = vpop.f32.mrb[180].mxu1  ;;  %v10316_v61 = vpop.f32.mrb[181].mxu0  ;;  %v5405_v33 = vpack.c.bf16 %v15799_v22, %v15759_v62 }
 0x49d   : > { %v10360_v40 = vpop.f32.mrb[181].mxu1  ;;  %v4707_v21 = vpop.f32.mrb[182].mxu0 }
 0x49e   : > { %v15997_v32 = vadd.f32 %v4807_v20, %v4705_v47  ;;  %v4708_v35 = vadd.f32 %v4707_v21, %v15747_v13  ;;  %v4810_v54 = vpop.f32.mrb[182].mxu1  ;;  %v10317_v16 = vpop.f32.mrb[183].mxu0 }
 0x49f   : > { %v10361_v7 = vpop.f32.mrb[183].mxu1 }
 0x4a0   : > { %v16000_v6 = vadd.f32 %v4810_v54, %v4708_v35  ;;  %10579 = vmatmul.mubr.msk.bf16.vlgmr.msra.gmra.mrb[32].mxu0 %vm2820_vm0, %v5404_v18 }
 0x4a1   : > { %10623 = vmatmul.mubr.msk.bf16.vlgmr.msra.gmra.mrb[32].mxu1 %vm2820_vm0, %v15777_v39  ;;  %10582 = vmatprep.mubr.msk.bf16.mxu0 %vm11764_vm1, %v17768_v19 }
 0x4a2   : > { %10626 = vmatprep.mubr.msk.bf16.mxu1 %vm11764_vm1, %v17768_v19 }
 0x4a3   : > { %v4712_v23 = vpop.f32.mrb[184].mxu0 }
 0x4a4   : > { %v4713_v13 = vadd.f32 %v4712_v23, %v15772_v28  ;;  %v4815_v24 = vpop.f32.mrb[184].mxu1  ;;  %v10320_v7 = vpop.f32.mrb[185].mxu0  ;;  %v5406_v28 = vpack.c.bf16 %v15841_v41, %v15802_v53 }
 0x4a5   : > { %v10364_v16 = vpop.f32.mrb[185].mxu1  ;;  %v4715_v36 = vpop.f32.mrb[186].mxu0 }
 0x4a6   : > { %v16012_v18 = vadd.f32 %v4815_v24, %v4713_v13  ;;  %v4716_v39 = vadd.f32 %v4715_v36, %v15785_v38  ;;  %v4818_v47 = vpop.f32.mrb[186].mxu1  ;;  %v10321_v20 = vpop.f32.mrb[187].mxu0  ;;  %v5407_v16 = vpack.c.bf16 %v15871_v31, %v15846_v30 }
 0x4a7   : > { %v10365_v61 = vpop.f32.mrb[187].mxu1 }
 0x4a8   : > { %v16015_v40 = vadd.f32 %v4818_v47, %v4716_v39  ;;  %10583 = vmatmul.mubr.msk.bf16.gmra.mrb[36].mxu0 %vm2820_vm0, %v5405_v33 }
 0x4a9   : > { %10627 = vmatmul.mubr.msk.bf16.gmra.mrb[36].mxu1 %vm2820_vm0, %v15821_v57  ;;  %10586 = vmatprep.mubr.msk.bf16.mxu0 %vm11764_vm1, %v17768_v19 }
 0x4aa   : > { %10630 = vmatprep.mubr.msk.bf16.mxu1 %vm11764_vm1, %v17768_v19 }
 0x4ab   : > { %v4720_v62 = vpop.f32.mrb[188].mxu0 }
 0x4ac   : > { %v4721_v38 = vadd.f32 %v4720_v62, %v15816_v2  ;;  %v4823_v22 = vpop.f32.mrb[188].mxu1  ;;  %v10324_v21 = vpop.f32.mrb[189].mxu0 }
 0x4ad   : > { %v10368_v35 = vpop.f32.mrb[189].mxu1  ;;  %v4723_v54 = vpop.f32.mrb[190].mxu0 }
 0x4ae   : > { %v16027_v23 = vadd.f32 %v4823_v22, %v4721_v38  ;;  %v4724_v57 = vadd.f32 %v4723_v54, %v15826_v59  ;;  %v4826_v33 = vpop.f32.mrb[190].mxu1  ;;  %v10325_v13 = vpop.f32.mrb[191].mxu0  ;;  %v5408_v38 = vpack.c.bf16 %v15899_v63, %v15874_v8 }
 0x4af   : > { %v10369_v24 = vpop.f32.mrb[191].mxu1 }
 0x4b0   : > { %v16030_v7 = vadd.f32 %v4826_v33, %v4724_v57  ;;  %10587 = vmatmul.mubr.msk.bf16.gmra.mrb[40].mxu0 %vm2820_vm0, %v5406_v28  ;;  %v5409_v24 = vpack.c.bf16 %v15927_v37, %v15902_v50 }
 0x4b1   : > { %10631 = vmatmul.mubr.msk.bf16.gmra.mrb[40].mxu1 %vm2820_vm0, %v15855_v56  ;;  %10590 = vmatprep.mubr.msk.bf16.mxu0 %vm11764_vm1, %v17768_v19 }
 0x4b2   : > { %10634 = vmatprep.mubr.msk.bf16.mxu1 %vm11764_vm1, %v17768_v19 }
 0x4b3   : > { %v4728_v53 = vpop.f32.mrb[192].mxu0 }
 0x4b4   : > { %v4729_v2 = vadd.f32 %v4728_v53, %v15851_v34  ;;  %v4831_v59 = vpop.f32.mrb[192].mxu1  ;;  %v10328_v41 = vpop.f32.mrb[193].mxu0 }
 0x4b5   : > { %v10372_v36 = vpop.f32.mrb[193].mxu1  ;;  %v4731_v39 = vpop.f32.mrb[194].mxu0 }
 0x4b6   : > { %v16042_v47 = vadd.f32 %v4831_v59, %v4729_v2  ;;  %v4732_v56 = vadd.f32 %v4731_v39, %v15860_v12  ;;  %v4834_v20 = vpop.f32.mrb[194].mxu1  ;;  %v10329_v61 = vpop.f32.mrb[195].mxu0 }
 0x4b7   : > { %v10373_v62 = vpop.f32.mrb[195].mxu1 }
 0x4b8   : > { %v16045_v28 = vadd.f32 %v4834_v20, %v4732_v56  ;;  %10591 = vmatmul.mubr.msk.bf16.gmra.mrb[44].mxu0 %vm2820_vm0, %v5407_v16  ;;  %v5410_v56 = vpack.c.bf16 %v15955_v46, %v15930_v49  ;;  %v8476_v49 = vld [vmem:[%s14594_s25 + $0x250] sm:$0xff] }
 0x4b9   : > { %10635 = vmatmul.mubr.msk.bf16.gmra.mrb[44].mxu1 %vm2820_vm0, %v15883_v58  ;;  %10594 = vmatprep.mubr.msk.bf16.mxu0 %vm11764_vm1, %v17768_v19 }
 0x4ba   : > { %10638 = vmatprep.mubr.msk.bf16.mxu1 %vm11764_vm1, %v17768_v19 }
 0x4bb   : > { %v4736_v30 = vpop.f32.mrb[196].mxu0 }
 0x4bc   : > { %v4737_v34 = vadd.f32 %v4736_v30, %v15879_v29  ;;  %v4839_v12 = vpop.f32.mrb[196].mxu1  ;;  %v10332_v31 = vpop.f32.mrb[197].mxu0 }
 0x4bd   : > { %v10376_v22 = vpop.f32.mrb[197].mxu1  ;;  %v4739_v21 = vpop.f32.mrb[198].mxu0 }
 0x4be   : > { %v16057_v35 = vadd.f32 %v4839_v12, %v4737_v34  ;;  %v4740_v58 = vadd.f32 %v4739_v21, %v15888_v42  ;;  %v4842_v54 = vpop.f32.mrb[198].mxu1  ;;  %v10333_v57 = vpop.f32.mrb[199].mxu0  ;;  %v5411_v22 = vpack.c.bf16 %v15983_v27, %v15958_v43  ;;  %v8477_v43 = vld [vmem:[%s14594_s25 + $0x258] sm:$0xff] }
 0x4bf   : > { %v10377_v33 = vpop.f32.mrb[199].mxu1 }
 0x4c0   : > { %v16060_v13 = vadd.f32 %v4842_v54, %v4740_v58  ;;  %10595 = vmatmul.mubr.msk.bf16.gmra.mrb[48].mxu0 %vm2820_vm0, %v5408_v38 }
 0x4c1   : > { %10639 = vmatmul.mubr.msk.bf16.gmra.mrb[48].mxu1 %vm2820_vm0, %v15911_v1  ;;  %10598 = vmatprep.mubr.msk.bf16.mxu0 %vm11764_vm1, %v17768_v19 }
 0x4c2   : > { %10642 = vmatprep.mubr.msk.bf16.mxu1 %vm11764_vm1, %v17768_v19 }
 0x4c3   : > { %v4744_v8 = vpop.f32.mrb[200].mxu0 }
 0x4c4   : > { %v4745_v29 = vadd.f32 %v4744_v8, %v15907_v11  ;;  %v4847_v42 = vpop.f32.mrb[200].mxu1  ;;  %v10336_v63 = vpop.f32.mrb[201].mxu0 }
 0x4c5   : > { %v10380_v53 = vpop.f32.mrb[201].mxu1  ;;  %v4747_v2 = vpop.f32.mrb[202].mxu0 }
 0x4c6   : > { %v16072_v59 = vadd.f32 %v4847_v42, %v4745_v29  ;;  %v4748_v1 = vadd.f32 %v4747_v2, %v15916_v5  ;;  %v4850_v41 = vpop.f32.mrb[202].mxu1  ;;  %v10337_v16 = vpop.f32.mrb[203].mxu0  ;;  %v5560_v2 = vpack.c.bf16 %v8477_v43, %v8477_v43 }
 0x4c7   : > { %v10381_v36 = vpop.f32.mrb[203].mxu1 }
 0x4c8   : > { %v16075_v39 = vadd.f32 %v4850_v41, %v4748_v1  ;;  %10599 = vmatmul.mubr.msk.bf16.gmra.mrb[52].mxu0 %vm2820_vm0, %v5409_v24 }
 0x4c9   : > { %10643 = vmatmul.mubr.msk.bf16.gmra.mrb[52].mxu1 %vm2820_vm0, %v15939_v55  ;;  %10602 = vmatprep.mubr.msk.bf16.mxu0 %vm11764_vm1, %v17768_v19 }
 0x4ca   : > { %10646 = vmatprep.mubr.msk.bf16.mxu1 %vm11764_vm1, %v17768_v19 }
 0x4cb   : > { %v4752_v50 = vpop.f32.mrb[204].mxu0 }
 0x4cc   : > { %v4753_v11 = vadd.f32 %v4752_v50, %v15935_v4  ;;  %v4855_v5 = vpop.f32.mrb[204].mxu1  ;;  %v10340_v37 = vpop.f32.mrb[205].mxu0 }
 0x4cd   : > { %v10384_v20 = vpop.f32.mrb[205].mxu1  ;;  %v4755_v61 = vpop.f32.mrb[206].mxu0 }
 0x4ce   : > { %v16087_v62 = vadd.f32 %v4855_v5, %v4753_v11  ;;  %v4756_v55 = vadd.f32 %v4755_v61, %v15944_v52  ;;  %v4858_v30 = vpop.f32.mrb[206].mxu1  ;;  %v10341_v34 = vpop.f32.mrb[207].mxu0 }
 0x4cf   : > { %v10385_v12 = vpop.f32.mrb[207].mxu1 }
 0x4d0   : > { %v16090_v31 = vadd.f32 %v4858_v30, %v4756_v55  ;;  %10603 = vmatmul.mubr.msk.bf16.gmra.mrb[56].mxu0 %vm2820_vm0, %v5410_v56 }
 0x4d1   : > { %10647 = vmatmul.mubr.msk.bf16.gmra.mrb[56].mxu1 %vm2820_vm0, %v15967_v44  ;;  %10606 = vmatprep.mubr.msk.bf16.mxu0 %vm11764_vm1, %v17768_v19  ;;  %v5559_v44 = vpack.c.bf16 %v8476_v49, %v15983_v27 }
 0x4d2   : > { %10650 = vmatprep.mubr.msk.bf16.mxu1 %vm11764_vm1, %v17768_v19 }
 0x4d3   : > { %v4760_v4 = vpop.f32.mrb[208].mxu0 }
 0x4d4   : > { %v4761_v52 = vadd.f32 %v4760_v4, %v15963_v15  ;;  %v4863_v46 = vpop.f32.mrb[208].mxu1  ;;  %v10344_v38 = vpop.f32.mrb[209].mxu0 }
 0x4d5   : > { %v10388_v21 = vpop.f32.mrb[209].mxu1  ;;  %v4763_v58 = vpop.f32.mrb[210].mxu0 }
 0x4d6   : > { %v16104_v54 = vadd.f32 %v4863_v46, %v4761_v52  ;;  %v4764_v57 = vadd.f32 %v4763_v58, %v15972_v51  ;;  %v4866_v33 = vpop.f32.mrb[210].mxu1  ;;  %v10345_v8 = vpop.f32.mrb[211].mxu0  ;;  %v5412_v51 = vpack.c.bf16 %v8476_v49, %v8476_v49 }
 0x4d7   : > { %v10389_v29 = vpop.f32.mrb[211].mxu1 }
 0x4d8   : > { %v16107_v42 = vadd.f32 %v4866_v33, %v4764_v57  ;;  %10607 = vmatmul.mubr.msk.bf16.gmra.mrb[60].mxu0 %vm2820_vm0, %v5411_v22 }
 0x4d9   : > { %10651 = vmatmul.mubr.msk.bf16.gmra.mrb[60].mxu1 %vm2820_vm0, %v5559_v44  ;;  %10610 = vmatprep.mubr.msk.bf16.mxu0 %vm11764_vm1, %v17768_v19 }
 0x4da   : > { %10654 = vmatprep.mubr.msk.bf16.mxu1 %vm11764_vm1, %v17768_v19 }
 0x4db   : > { %v4768_v15 = vpop.f32.mrb[212].mxu0 }
 0x4dc   : > { %v4871_v27 = vpop.f32.mrb[212].mxu1  ;;  %v10348_v63 = vpop.f32.mrb[213].mxu0 }
 0x4dd   : > { %v10392_v24 = vpop.f32.mrb[213].mxu1  ;;  %v4770_v53 = vpop.f32.mrb[214].mxu0 }
 0x4de   : > { %v4873_v1 = vpop.f32.mrb[214].mxu1  ;;  %v10349_v41 = vpop.f32.mrb[215].mxu0 }
 0x4df   : > { %v10393_v16 = vpop.f32.mrb[215].mxu1 }
 0x4e0   : > { %10611 = vmatmul.mubr.msk.bf16.gmra.mrb[64].mxu0 %vm2820_vm0, %v5412_v51 }
 0x4e1   : > { %10655 = vmatmul.mubr.msk.bf16.gmra.mrb[64].mxu1 %vm2820_vm0, %v5560_v2 }
 0x4e3   : > { %v4926_v36 = vpop.f32.mrb[216].mxu0 }
 0x4e4   : > { %v4995_v50 = vadd.f32 %v4926_v36, %v15997_v32  ;;  %v5045_v11 = vpop.f32.mrb[216].mxu1  ;;  %v10404_v19 = vpop.f32.mrb[217].mxu0 }
 0x4e5   : > { %v10448_v5 = vpop.f32.mrb[217].mxu1  ;;  %v4929_v37 = vpop.f32.mrb[218].mxu0 }
 0x4e6   : > { %v16119_v56 = vadd.f32 %v5045_v11, %v4995_v50  ;;  %v4996_v20 = vadd.f32 %v4929_v37, %v16000_v6  ;;  %v5048_v61 = vpop.f32.mrb[218].mxu1  ;;  %v10405_v55 = vpop.f32.mrb[219].mxu0 }
 0x4e7   : > { %v10449_v30 = vpop.f32.mrb[219].mxu1 }
 0x4e8   : > { %v16122_v34 = vadd.f32 %v5048_v61, %v4996_v20 }
 0x4eb   : > { %v4934_v12 = vpop.f32.mrb[220].mxu0 }
 0x4ec   : > { %v4997_v49 = vadd.f32 %v4934_v12, %v16012_v18  ;;  %v5053_v4 = vpop.f32.mrb[220].mxu1  ;;  %v10408_v52 = vpop.f32.mrb[221].mxu0 }
 0x4ed   : > { %v10452_v46 = vpop.f32.mrb[221].mxu1  ;;  %v4937_v32 = vpop.f32.mrb[222].mxu0 }
 0x4ee   : > { %v16125_v38 = vadd.f32 %v5053_v4, %v4997_v49  ;;  %v4998_v22 = vadd.f32 %v4937_v32, %v16015_v40  ;;  %v5056_v21 = vpop.f32.mrb[222].mxu1  ;;  %v10409_v58 = vpop.f32.mrb[223].mxu0 }
 0x4ef   : > { %v10453_v44 = vpop.f32.mrb[223].mxu1 }
 0x4f0   : > { %v16128_v6 = vadd.f32 %v5056_v21, %v4998_v22 }
 0x4f3   : > { %v4942_v57 = vpop.f32.mrb[224].mxu0 }
 0x4f4   : > { %v4999_v33 = vadd.f32 %v4942_v57, %v16027_v23  ;;  %v5061_v8 = vpop.f32.mrb[224].mxu1  ;;  %v10412_v29 = vpop.f32.mrb[225].mxu0 }
 0x4f5   : > { %v10456_v43 = vpop.f32.mrb[225].mxu1  ;;  %v4945_v18 = vpop.f32.mrb[226].mxu0 }
 0x4f6   : > { %v16131_v15 = vadd.f32 %v5061_v8, %v4999_v33  ;;  %v5000_v27 = vadd.f32 %v4945_v18, %v16030_v7  ;;  %v5064_v63 = vpop.f32.mrb[226].mxu1  ;;  %v10413_v51 = vpop.f32.mrb[227].mxu0 }
 0x4f7   : > { %v10457_v24 = vpop.f32.mrb[227].mxu1 }
 0x4f8   : > { %v16134_v40 = vadd.f32 %v5064_v63, %v5000_v27 }
 0x4fb   : > { %v4950_v53 = vpop.f32.mrb[228].mxu0 }
 0x4fc   : > { %v5001_v2 = vadd.f32 %v4950_v53, %v16042_v47  ;;  %v5069_v1 = vpop.f32.mrb[228].mxu1  ;;  %v10416_v41 = vpop.f32.mrb[229].mxu0 }
 0x4fd   : > { %v10460_v16 = vpop.f32.mrb[229].mxu1  ;;  %v4953_v23 = vpop.f32.mrb[230].mxu0 }
 0x4fe   : > { %v16137_v36 = vadd.f32 %v5069_v1, %v5001_v2  ;;  %v5002_v50 = vadd.f32 %v4953_v23, %v16045_v28  ;;  %v5072_v11 = vpop.f32.mrb[230].mxu1  ;;  %v10417_v19 = vpop.f32.mrb[231].mxu0 }
 0x4ff   : > { %v10461_v5 = vpop.f32.mrb[231].mxu1 }
 0x500   : > { %v16140_v7 = vadd.f32 %v5072_v11, %v5002_v50 }
 0x503   : > { %v4958_v37 = vpop.f32.mrb[232].mxu0 }
 0x504   : > { %v5003_v20 = vadd.f32 %v4958_v37, %v16057_v35  ;;  %v5077_v61 = vpop.f32.mrb[232].mxu1  ;;  %v10420_v55 = vpop.f32.mrb[233].mxu0 }
 0x505   : > { %v10464_v30 = vpop.f32.mrb[233].mxu1  ;;  %v4961_v47 = vpop.f32.mrb[234].mxu0 }
 0x506   : > { %v16143_v12 = vadd.f32 %v5077_v61, %v5003_v20  ;;  %v5004_v49 = vadd.f32 %v4961_v47, %v16060_v13  ;;  %v5080_v4 = vpop.f32.mrb[234].mxu1  ;;  %v10421_v52 = vpop.f32.mrb[235].mxu0 }
 0x507   : > { %v10465_v46 = vpop.f32.mrb[235].mxu1 }
 0x508   : > { %v16146_v28 = vadd.f32 %v5080_v4, %v5004_v49 }
 0x50b   : > { %v4966_v32 = vpop.f32.mrb[236].mxu0 }
 0x50c   : > { %v5005_v22 = vadd.f32 %v4966_v32, %v16072_v59  ;;  %v5085_v21 = vpop.f32.mrb[236].mxu1  ;;  %v10424_v58 = vpop.f32.mrb[237].mxu0 }
 0x50d   : > { %v10468_v44 = vpop.f32.mrb[237].mxu1  ;;  %v4969_v35 = vpop.f32.mrb[238].mxu0 }
 0x50e   : > { %v16149_v57 = vadd.f32 %v5085_v21, %v5005_v22  ;;  %v5006_v33 = vadd.f32 %v4969_v35, %v16075_v39  ;;  %v5088_v8 = vpop.f32.mrb[238].mxu1  ;;  %v10425_v29 = vpop.f32.mrb[239].mxu0 }
 0x50f   : > { %v10469_v43 = vpop.f32.mrb[239].mxu1 }
 0x510   : > { %v16152_v13 = vadd.f32 %v5088_v8, %v5006_v33 }
 0x513   : > { %v4974_v18 = vpop.f32.mrb[240].mxu0 }
 0x514   : > { %v5007_v27 = vadd.f32 %v4974_v18, %v16087_v62  ;;  %v5093_v63 = vpop.f32.mrb[240].mxu1  ;;  %v10428_v51 = vpop.f32.mrb[241].mxu0 }
 0x515   : > { %v10472_v24 = vpop.f32.mrb[241].mxu1  ;;  %v4977_v59 = vpop.f32.mrb[242].mxu0 }
 0x516   : > { %v16155_v53 = vadd.f32 %v5093_v63, %v5007_v27  ;;  %v5008_v2 = vadd.f32 %v4977_v59, %v16090_v31  ;;  %v5096_v1 = vpop.f32.mrb[242].mxu1  ;;  %v10429_v41 = vpop.f32.mrb[243].mxu0 }
 0x517   : > { %v10473_v16 = vpop.f32.mrb[243].mxu1 }
 0x518   : > { %v16158_v39 = vadd.f32 %v5096_v1, %v5008_v2 }
 0x51b   : > { %v4982_v23 = vpop.f32.mrb[244].mxu0 }
 0x51c   : > { %v5009_v50 = vadd.f32 %v4982_v23, %v16104_v54  ;;  %v5101_v11 = vpop.f32.mrb[244].mxu1  ;;  %v10432_v19 = vpop.f32.mrb[245].mxu0 }
 0x51d   : > { %v10476_v5 = vpop.f32.mrb[245].mxu1  ;;  %v4985_v62 = vpop.f32.mrb[246].mxu0 }
 0x51e   : > { %v16161_v37 = vadd.f32 %v5101_v11, %v5009_v50  ;;  %v5010_v20 = vadd.f32 %v4985_v62, %v16107_v42  ;;  %v5104_v61 = vpop.f32.mrb[246].mxu1  ;;  %v10433_v55 = vpop.f32.mrb[247].mxu0 }
 0x51f   : > { %v10477_v30 = vpop.f32.mrb[247].mxu1 }
 0x520   : > { %v16164_v31 = vadd.f32 %v5104_v61, %v5010_v20 }
 0x523   : > { %v4990_v47 = vpop.f32.mrb[248].mxu0 }
 0x524   : > { %v5109_v49 = vpop.f32.mrb[248].mxu1  ;;  %v10436_v4 = vpop.f32.mrb[249].mxu0 }
 0x525   : > { %v10480_v52 = vpop.f32.mrb[249].mxu1  ;;  %v4992_v46 = vpop.f32.mrb[250].mxu0 }
 0x526   : > { %v5111_v32 = vpop.f32.mrb[250].mxu1  ;;  %v10437_v54 = vpop.f32.mrb[251].mxu0 }
 0x527   : > { %v10481_v22 = vpop.f32.mrb[251].mxu1 }
 0x52b   : > { %v5164_v21 = vpop.f32.mrb[252].mxu0 }
 0x52c   : > { %v5233_v58 = vadd.f32 %v5164_v21, %v16119_v56  ;;  %v5319_v44 = vpop.f32.mrb[252].mxu1  ;;  %v10492_v35 = vpop.f32.mrb[253].mxu0 }
 0x52d   : > { %v10536_v33 = vpop.f32.mrb[253].mxu1  ;;  %v5167_v42 = vpop.f32.mrb[254].mxu0 }
 0x52e   : > { %v16167_v8 = vadd.f32 %v5319_v44, %v5233_v58  ;;  %v5234_v29 = vadd.f32 %v5167_v42, %v16122_v34  ;;  %v5322_v43 = vpop.f32.mrb[254].mxu1  ;;  %v10493_v18 = vpop.f32.mrb[255].mxu0 }
 0x52f   : > { %v10537_v27 = vpop.f32.mrb[255].mxu1 }
 0x530   : > { %v16170_v63 = vadd.f32 %v5322_v43, %v5234_v29 }
 0x533   : > { %v5172_v51 = vpop.f32.mrb[0].mxu0 }
 0x534   : > { %v5235_v24 = vadd.f32 %v5172_v51, %v16125_v38  ;;  %v5327_v59 = vpop.f32.mrb[0].mxu1  ;;  %v10496_v2 = vpop.f32.mrb[1].mxu0 }
 0x535   : > { %v10540_v1 = vpop.f32.mrb[1].mxu1  ;;  %v5175_v56 = vpop.f32.mrb[2].mxu0 }
 0x536   : > { %v16173_v41 = vadd.f32 %v5327_v59, %v5235_v24  ;;  %v5236_v16 = vadd.f32 %v5175_v56, %v16128_v6  ;;  %v5330_v23 = vpop.f32.mrb[2].mxu1  ;;  %v10497_v50 = vpop.f32.mrb[3].mxu0 }
 0x537   : > { %v10541_v11 = vpop.f32.mrb[3].mxu1 }
 0x538   : > { %v16176_v34 = vadd.f32 %v5330_v23, %v5236_v16 }
 0x53b   : > { %v5180_v19 = vpop.f32.mrb[4].mxu0 }
 0x53c   : > { %v5237_v5 = vadd.f32 %v5180_v19, %v16131_v15  ;;  %v5335_v62 = vpop.f32.mrb[4].mxu1  ;;  %v10500_v20 = vpop.f32.mrb[5].mxu0 }
 0x53d   : > { %v10544_v61 = vpop.f32.mrb[5].mxu1  ;;  %v5183_v38 = vpop.f32.mrb[6].mxu0 }
 0x53e   : > { %v16179_v55 = vadd.f32 %v5335_v62, %v5237_v5  ;;  %v5238_v30 = vadd.f32 %v5183_v38, %v16134_v40  ;;  %v5338_v47 = vpop.f32.mrb[6].mxu1  ;;  %v10501_v49 = vpop.f32.mrb[7].mxu0 }
 0x53f   : > { %v10545_v4 = vpop.f32.mrb[7].mxu1 }
 0x540   : > { %v16182_v6 = vadd.f32 %v5338_v47, %v5238_v30 }
 0x543   : > { %v5188_v52 = vpop.f32.mrb[8].mxu0 }
 0x544   : > { %v5239_v46 = vadd.f32 %v5188_v52, %v16137_v36  ;;  %v5343_v32 = vpop.f32.mrb[8].mxu1  ;;  %v10504_v54 = vpop.f32.mrb[9].mxu0 }
 0x545   : > { %v10548_v22 = vpop.f32.mrb[9].mxu1  ;;  %v5191_v15 = vpop.f32.mrb[10].mxu0 }
 0x546   : > { %v16185_v21 = vadd.f32 %v5343_v32, %v5239_v46  ;;  %v5240_v58 = vadd.f32 %v5191_v15, %v16140_v7  ;;  %v5346_v44 = vpop.f32.mrb[10].mxu1  ;;  %v10505_v35 = vpop.f32.mrb[11].mxu0 }
 0x547   : > { %v10549_v33 = vpop.f32.mrb[11].mxu1 }
 0x548   : > { %v16188_v40 = vadd.f32 %v5346_v44, %v5240_v58 }
 0x54b   : > { %v5196_v42 = vpop.f32.mrb[12].mxu0 }
 0x54c   : > { %v5241_v29 = vadd.f32 %v5196_v42, %v16143_v12  ;;  %v5351_v43 = vpop.f32.mrb[12].mxu1  ;;  %v10508_v18 = vpop.f32.mrb[13].mxu0 }
 0x54d   : > { %v10552_v27 = vpop.f32.mrb[13].mxu1  ;;  %v5199_v36 = vpop.f32.mrb[14].mxu0 }
 0x54e   : > { %v16191_v51 = vadd.f32 %v5351_v43, %v5241_v29  ;;  %v5242_v24 = vadd.f32 %v5199_v36, %v16146_v28  ;;  %v5354_v59 = vpop.f32.mrb[14].mxu1  ;;  %v10509_v2 = vpop.f32.mrb[15].mxu0 }
 0x54f   : > { %v10553_v1 = vpop.f32.mrb[15].mxu1 }
 0x550   : > { %v16194_v7 = vadd.f32 %v5354_v59, %v5242_v24 }
 0x553   : > { %v5204_v56 = vpop.f32.mrb[16].mxu0 }
 0x554   : > { %v5243_v16 = vadd.f32 %v5204_v56, %v16149_v57  ;;  %v5359_v23 = vpop.f32.mrb[16].mxu1  ;;  %v10512_v50 = vpop.f32.mrb[17].mxu0 }
 0x555   : > { %v10556_v11 = vpop.f32.mrb[17].mxu1  ;;  %v5207_v12 = vpop.f32.mrb[18].mxu0 }
 0x556   : > { %v16197_v19 = vadd.f32 %v5359_v23, %v5243_v16  ;;  %v5244_v5 = vadd.f32 %v5207_v12, %v16152_v13  ;;  %v5362_v62 = vpop.f32.mrb[18].mxu1  ;;  %v10513_v20 = vpop.f32.mrb[19].mxu0  ;;  %v16217_v23 = vld [vmem:[%s17160_s4] ss:$0 sm:$0xff] }
 0x557   : > { %v10557_v61 = vpop.f32.mrb[19].mxu1  ;;  %v4535_v20 = vadd.f32 %v16217_v23, %v15739_v14 }
 0x558   : > { %v16200_v28 = vadd.f32 %v5362_v62, %v5244_v5 }
 0x55b   : > { %v5212_v38 = vpop.f32.mrb[20].mxu0 }
 0x55c   : > { %v5245_v30 = vadd.f32 %v5212_v38, %v16155_v53  ;;  %v5367_v47 = vpop.f32.mrb[20].mxu1  ;;  %v10516_v49 = vpop.f32.mrb[21].mxu0 }
 0x55d   : > { %v10560_v4 = vpop.f32.mrb[21].mxu1  ;;  %v5215_v57 = vpop.f32.mrb[22].mxu0 }
 0x55e   : > { %v16203_v52 = vadd.f32 %v5367_v47, %v5245_v30  ;;  %v5246_v46 = vadd.f32 %v5215_v57, %v16158_v39  ;;  %v5370_v32 = vpop.f32.mrb[22].mxu1  ;;  %v10517_v54 = vpop.f32.mrb[23].mxu0  ;;  %v4536_v4 = vadd.f32 %v16217_v23, %v15745_v17  ;;  %v4537_v17 = vadd.f32 %v16217_v23, %v15770_v60 }
 0x55f   : > { %v10561_v22 = vpop.f32.mrb[23].mxu1 }
 0x560   : > { %v16206_v13 = vadd.f32 %v5370_v32, %v5246_v46  ;;  %v4551_v46 = vmax.f32 %v4535_v20, 0.0  ;;  %v4539_v20 = vadd.f32 %v16217_v23, %v15814_v25 }
 0x563   : > { %v5220_v15 = vpop.f32.mrb[24].mxu0 }
 0x564   : > { %v5247_v58 = vadd.f32 %v5220_v15, %v16161_v37  ;;  %v5375_v44 = vpop.f32.mrb[24].mxu1  ;;  %v10520_v35 = vpop.f32.mrb[25].mxu0  ;;  %v4552_v15 = vmax.f32 %v4536_v4, 0.0 }
 0x565   : > { %v10564_v33 = vpop.f32.mrb[25].mxu1  ;;  %v5223_v53 = vpop.f32.mrb[26].mxu0 }
 0x566   : > { %v16209_v42 = vadd.f32 %v5375_v44, %v5247_v58  ;;  %v5248_v29 = vadd.f32 %v5223_v53, %v16164_v31  ;;  %v5378_v43 = vpop.f32.mrb[26].mxu1  ;;  %v10521_v18 = vpop.f32.mrb[27].mxu0 }
 0x567   : > { %v10565_v27 = vpop.f32.mrb[27].mxu1 }
 0x568   : > { %v16212_v39 = vadd.f32 %v5378_v43, %v5248_v29 }
 0x56b   : > { %v5228_v36 = vpop.f32.mrb[28].mxu0 }
 0x56c   : > { %v5383_v24 = vpop.f32.mrb[28].mxu1  ;;  %v10524_v59 = vpop.f32.mrb[29].mxu0 }
 0x56d   : > { %v10568_v2 = vpop.f32.mrb[29].mxu1  ;;  %v5230_v1 = vpop.f32.mrb[30].mxu0  ;;  %v4538_v59 = vadd.f32 %v16217_v23, %v15783_v0 }
 0x56e   : > { %v5385_v56 = vpop.f32.mrb[30].mxu1  ;;  %v10525_v37 = vpop.f32.mrb[31].mxu0 }
 0x56f   : > { %v10569_v16 = vpop.f32.mrb[31].mxu1  ;;  %v4553_v56 = vmax.f32 %v4537_v17, 0.0 }
 0x570   : > { %v4554_v16 = vmax.f32 %v4538_v59, 0.0 }
 0x573   : > { %v5474_v50 = vpop.f32.mrb[32].mxu0 }
 0x574   : > { %v5543_v31 = vadd.f32 %v5474_v50, %v16167_v8  ;;  %v5601_v11 = vpop.f32.mrb[32].mxu1  ;;  %v10580_v12 = vpop.f32.mrb[33].mxu0 }
 0x575   : > { %v10624_v5 = vpop.f32.mrb[33].mxu1  ;;  %v5477_v62 = vpop.f32.mrb[34].mxu0 }
 0x576   : > { %v5670_v61 = vadd.f32 %v5601_v11, %v5543_v31  ;;  %v5544_v38 = vadd.f32 %v5477_v62, %v16170_v63  ;;  %v5604_v30 = vpop.f32.mrb[34].mxu1  ;;  %v10581_v47 = vpop.f32.mrb[35].mxu0 }
 0x577   : > { %v10625_v49 = vpop.f32.mrb[35].mxu1 }
 0x578   : > { %v5686_v57 = vadd.f32 %v16217_v23, %v5670_v61  ;;  %v5671_v8 = vadd.f32 %v5604_v30, %v5544_v38 }
 0x57a   : > { %v5702_v32 = vmax.f32 %v5686_v57, 0.0  ;;  %v5687_v54 = vadd.f32 %v16217_v23, %v5671_v8  ;;  %v4540_v57 = vadd.f32 %v16217_v23, %v15824_v3 }
 0x57b   : > { %v5482_v22 = vpop.f32.mrb[36].mxu0 }
 0x57c   : > { %v5718_v14 = vmax.f32 %v4551_v46, %v5702_v32  ;;  %v5703_v58 = vmax.f32 %v5687_v54, 0.0  ;;  %v5545_v63 = vadd.f32 %v5482_v22, %v16173_v41  ;;  %v5609_v44 = vpop.f32.mrb[36].mxu1  ;;  %v10584_v35 = vpop.f32.mrb[37].mxu0  ;;  %v4555_v32 = vmax.f32 %v4539_v20, 0.0 }
 0x57d   : > { %v10628_v33 = vpop.f32.mrb[37].mxu1  ;;  %v5485_v53 = vpop.f32.mrb[38].mxu0 }
 0x57e   : > { %v5719_v29 = vmax.f32 %v4552_v15, %v5703_v58  ;;  %v5672_v43 = vadd.f32 %v5609_v44, %v5545_v63  ;;  %v5546_v18 = vadd.f32 %v5485_v53, %v16176_v34  ;;  %v5612_v27 = vpop.f32.mrb[38].mxu1  ;;  %v10585_v36 = vpop.f32.mrb[39].mxu0  ;;  %v4556_v15 = vmax.f32 %v4540_v57, 0.0 }
 0x57f   : > { %v10629_v24 = vpop.f32.mrb[39].mxu1  ;;  %v4541_v33 = vadd.f32 %v16217_v23, %v15849_v48  ;;  %v4542_v36 = vadd.f32 %v16217_v23, %v15858_v45 }
 0x580   : > { %v5734_v2 = vmax.f32 %v5718_v14, %v5719_v29  ;;  %v5688_v41 = vadd.f32 %v16217_v23, %v5672_v43  ;;  %v5673_v1 = vadd.f32 %v5612_v27, %v5546_v18 }
 0x582   : > { %5737 = vst.msk [vmem:[%s16235_s21] sm:$0xff] %vm2820_vm0, %v5734_v2  ;;  %v5704_v60 = vmax.f32 %v5688_v41, 0.0  ;;  %v5689_v37 = vadd.f32 %v16217_v23, %v5673_v1  ;;  %v4557_v2 = vmax.f32 %v4541_v33, 0.0 }
 0x583   : > { %v5490_v34 = vpop.f32.mrb[40].mxu0 }
 0x584   : > { %v5720_v50 = vmax.f32 %v4553_v56, %v5704_v60  ;;  %v5705_v31 = vmax.f32 %v5689_v37, 0.0  ;;  %v5547_v11 = vadd.f32 %v5490_v34, %v16179_v55  ;;  %v5617_v0 = vpop.f32.mrb[40].mxu1  ;;  %v10588_v12 = vpop.f32.mrb[41].mxu0  ;;  %v4558_v56 = vmax.f32 %v4542_v36, 0.0 }
 0x585   : > { %v10632_v5 = vpop.f32.mrb[41].mxu1  ;;  %v5493_v62 = vpop.f32.mrb[42].mxu0 }
 0x586   : > { %v5721_v61 = vmax.f32 %v4554_v16, %v5705_v31  ;;  %v5674_v38 = vadd.f32 %v5617_v0, %v5547_v11  ;;  %v5548_v30 = vadd.f32 %v5493_v62, %v16182_v6  ;;  %v5620_v47 = vpop.f32.mrb[42].mxu1  ;;  %v10589_v49 = vpop.f32.mrb[43].mxu0  ;;  %v4543_v31 = vadd.f32 %v16217_v23, %v15877_v26 }
 0x587   : > { %v10633_v4 = vpop.f32.mrb[43].mxu1 }
 0x588   : > { %v5738_v8 = vmax.f32 %v5720_v50, %v5721_v61  ;;  %v5690_v55 = vadd.f32 %v16217_v23, %v5674_v38  ;;  %v5675_v46 = vadd.f32 %v5620_v47, %v5548_v30  ;;  %v4544_v61 = vadd.f32 %v16217_v23, %v15886_v10 }
 0x589   : > { %v4559_v47 = vmax.f32 %v4543_v31, 0.0 }
 0x58a   : > { %5739 = vst.msk [vmem:[%s16235_s21 + $0x8] sm:$0xff] %vm2820_vm0, %v5738_v8  ;;  %v5706_v54 = vmax.f32 %v5690_v55, 0.0  ;;  %v5691_v25 = vadd.f32 %v16217_v23, %v5675_v46  ;;  %v4560_v57 = vmax.f32 %v4544_v61, 0.0 }
 0x58b   : > { %v5498_v22 = vpop.f32.mrb[44].mxu0 }
 0x58c   : > { %v5722_v14 = vmax.f32 %v4555_v32, %v5706_v54  ;;  %v5707_v6 = vmax.f32 %v5691_v25, 0.0  ;;  %v5549_v58 = vadd.f32 %v5498_v22, %v16185_v21  ;;  %v5625_v63 = vpop.f32.mrb[44].mxu1  ;;  %v10592_v44 = vpop.f32.mrb[45].mxu0  ;;  %v4545_v25 = vadd.f32 %v16217_v23, %v15905_v9 }
 0x58d   : > { %v10636_v3 = vpop.f32.mrb[45].mxu1  ;;  %v5501_v35 = vpop.f32.mrb[46].mxu0  ;;  %v17786_v44 = vld [vmem:[#allocation245_spill] sm:$0xff] }
 0x58e   : > { %v5723_v53 = vmax.f32 %v4556_v15, %v5707_v6  ;;  %v5676_v17 = vadd.f32 %v5625_v63, %v5549_v58  ;;  %v5550_v29 = vadd.f32 %v5501_v35, %v16188_v40  ;;  %v5628_v43 = vpop.f32.mrb[46].mxu1  ;;  %v10593_v18 = vpop.f32.mrb[47].mxu0  ;;  %v4546_v3 = vadd.f32 %v16217_v23, %v17786_v44 }
 0x58f   : > { %v10637_v27 = vpop.f32.mrb[47].mxu1 }
 0x590   : > { %v5740_v24 = vmax.f32 %v5722_v14, %v5723_v53  ;;  %v5692_v21 = vadd.f32 %v16217_v23, %v5676_v17  ;;  %v5677_v59 = vadd.f32 %v5628_v43, %v5550_v29  ;;  %v4561_v53 = vmax.f32 %v4545_v25, 0.0 }
 0x591   : > { %v4562_v43 = vmax.f32 %v4546_v3, 0.0 }
 0x592   : > { %5741 = vst.msk [vmem:[%s16235_s21 + $0x10] sm:$0xff] %vm2820_vm0, %v5740_v24  ;;  %v5708_v41 = vmax.f32 %v5692_v21, 0.0  ;;  %v5693_v48 = vadd.f32 %v16217_v23, %v5677_v59 }
 0x593   : > { %v5506_v1 = vpop.f32.mrb[48].mxu0 }
 0x594   : > { %v5724_v60 = vmax.f32 %v4557_v2, %v5708_v41  ;;  %v5709_v40 = vmax.f32 %v5693_v48, 0.0  ;;  %v5551_v37 = vadd.f32 %v5506_v1, %v16191_v51  ;;  %v5633_v34 = vpop.f32.mrb[48].mxu1  ;;  %v10596_v16 = vpop.f32.mrb[49].mxu0  ;;  %v17787_v2 = vld [vmem:[#allocation246_spill] sm:$0xff] }
 0x595   : > { %v10640_v45 = vpop.f32.mrb[49].mxu1  ;;  %v5509_v50 = vpop.f32.mrb[50].mxu0  ;;  %v4547_v41 = vadd.f32 %v16217_v23, %v17787_v2 }
 0x596   : > { %v5725_v11 = vmax.f32 %v4558_v56, %v5709_v40  ;;  %v5678_v0 = vadd.f32 %v5633_v34, %v5551_v37  ;;  %v5552_v12 = vadd.f32 %v5509_v50, %v16194_v7  ;;  %v5636_v5 = vpop.f32.mrb[50].mxu1  ;;  %v10597_v62 = vpop.f32.mrb[51].mxu0  ;;  %v17788_v34 = vld [vmem:[#allocation247_spill] sm:$0xff] }
 0x597   : > { %v10641_v20 = vpop.f32.mrb[51].mxu1  ;;  %v4548_v16 = vadd.f32 %v16217_v23, %v17788_v34  ;;  %v4563_v31 = vmax.f32 %v4547_v41, 0.0 }
 0x598   : > { %v5742_v38 = vmax.f32 %v5724_v60, %v5725_v11  ;;  %v5694_v51 = vadd.f32 %v16217_v23, %v5678_v0  ;;  %v5679_v30 = vadd.f32 %v5636_v5, %v5552_v12 }
 0x599   : > { %v4564_v5 = vmax.f32 %v4548_v16, 0.0 }
 0x59a   : > { %5743 = vst.msk [vmem:[%s16235_s21 + $0x18] sm:$0xff] %vm2820_vm0, %v5742_v38  ;;  %v5710_v49 = vmax.f32 %v5694_v51, 0.0  ;;  %v5695_v26 = vadd.f32 %v16217_v23, %v5679_v30 }
 0x59b   : > { %v5514_v4 = vpop.f32.mrb[52].mxu0 }
 0x59c   : > { %v5726_v8 = vmax.f32 %v4559_v47, %v5710_v49  ;;  %v5711_v7 = vmax.f32 %v5695_v26, 0.0  ;;  %v5553_v55 = vadd.f32 %v5514_v4, %v16197_v19  ;;  %v5641_v46 = vpop.f32.mrb[52].mxu1  ;;  %v10600_v32 = vpop.f32.mrb[53].mxu0  ;;  %v17789_v47 = vld [vmem:[#allocation248_spill] sm:$0xff] }
 0x59d   : > { %v10644_v10 = vpop.f32.mrb[53].mxu1  ;;  %v5517_v54 = vpop.f32.mrb[54].mxu0  ;;  %v4549_v49 = vadd.f32 %v16217_v23, %v17789_v47 }
 0x59e   : > { %v5727_v22 = vmax.f32 %v4560_v57, %v5711_v7  ;;  %v5680_v15 = vadd.f32 %v5641_v46, %v5553_v55  ;;  %v5554_v14 = vadd.f32 %v5517_v54, %v16200_v28  ;;  %v5644_v6 = vpop.f32.mrb[54].mxu1  ;;  %v10601_v58 = vpop.f32.mrb[55].mxu0  ;;  %v17790_v46 = vld [vmem:[#allocation249_spill] sm:$0xff] }
 0x59f   : > { %v10645_v63 = vpop.f32.mrb[55].mxu1  ;;  %v4550_v32 = vadd.f32 %v16217_v23, %v17790_v46  ;;  %v4565_v25 = vmax.f32 %v4549_v49, 0.0 }
 0x5a0   : > { %v5744_v35 = vmax.f32 %v5726_v8, %v5727_v22  ;;  %v5696_v19 = vadd.f32 %v16217_v23, %v5680_v15  ;;  %v5681_v33 = vadd.f32 %v5644_v6, %v5554_v14 }
 0x5a1   : > { %v4566_v6 = vmax.f32 %v4550_v32, 0.0 }
 0x5a2   : > { %5745 = vst.msk [vmem:[%s16235_s21 + $0x20] sm:$0xff] %vm2820_vm0, %v5744_v35  ;;  %v5712_v17 = vmax.f32 %v5696_v19, 0.0  ;;  %v5697_v9 = vadd.f32 %v16217_v23, %v5681_v33 }
 0x5a3   : > { %v5522_v29 = vpop.f32.mrb[56].mxu0 }
 0x5a4   : > { %v5728_v18 = vmax.f32 %v4561_v53, %v5712_v17  ;;  %v5713_v28 = vmax.f32 %v5697_v9, 0.0  ;;  %v5555_v27 = vadd.f32 %v5522_v29, %v16203_v52  ;;  %v5649_v36 = vpop.f32.mrb[56].mxu1  ;;  %v10604_v24 = vpop.f32.mrb[57].mxu0 }
 0x5a5   : > { %v10648_v21 = vpop.f32.mrb[57].mxu1  ;;  %v5525_v59 = vpop.f32.mrb[58].mxu0 }
 0x5a6   : > { %v5729_v48 = vmax.f32 %v4562_v43, %v5713_v28  ;;  %v5682_v1 = vadd.f32 %v5649_v36, %v5555_v27  ;;  %v5556_v56 = vadd.f32 %v5525_v59, %v16206_v13  ;;  %v5652_v60 = vpop.f32.mrb[58].mxu1  ;;  %v10605_v40 = vpop.f32.mrb[59].mxu0 }
 0x5a7   : > { %v10649_v37 = vpop.f32.mrb[59].mxu1 }
 0x5a8   : > { %v5746_v45 = vmax.f32 %v5728_v18, %v5729_v48  ;;  %v5698_v52 = vadd.f32 %v16217_v23, %v5682_v1  ;;  %v5683_v50 = vadd.f32 %v5652_v60, %v5556_v56 }
 0x5aa   : > { %5747 = vst.msk [vmem:[%s16235_s21 + $0x28] sm:$0xff] %vm2820_vm0, %v5746_v45  ;;  %v5714_v11 = vmax.f32 %v5698_v52, 0.0  ;;  %v5699_v0 = vadd.f32 %v16217_v23, %v5683_v50 }
 0x5ab   : > { %v5530_v12 = vpop.f32.mrb[60].mxu0 }
 0x5ac   : > { %v5730_v62 = vmax.f32 %v4563_v31, %v5714_v11  ;;  %v5715_v13 = vmax.f32 %v5699_v0, 0.0  ;;  %v5557_v20 = vadd.f32 %v5530_v12, %v16209_v42  ;;  %v5657_v61 = vpop.f32.mrb[60].mxu1  ;;  %v10608_v38 = vpop.f32.mrb[61].mxu0 }
 0x5ad   : > { %v10652_v51 = vpop.f32.mrb[61].mxu1  ;;  %v5533_v30 = vpop.f32.mrb[62].mxu0 }
 0x5ae   : > { %v5731_v26 = vmax.f32 %v4564_v5, %v5715_v13  ;;  %v5684_v4 = vadd.f32 %v5657_v61, %v5557_v20  ;;  %v5558_v57 = vadd.f32 %v5533_v30, %v16212_v39  ;;  %v5660_v8 = vpop.f32.mrb[62].mxu1  ;;  %v10609_v7 = vpop.f32.mrb[63].mxu0 }
 0x5af   : > { %v10653_v55 = vpop.f32.mrb[63].mxu1 }
 0x5b0   : > { %v5748_v10 = vmax.f32 %v5730_v62, %v5731_v26  ;;  %v5700_v42 = vadd.f32 %v16217_v23, %v5684_v4  ;;  %v5685_v54 = vadd.f32 %v5660_v8, %v5558_v57 }
 0x5b2   : > { %5749 = vst.msk [vmem:[%s16235_s21 + $0x30] sm:$0xff] %vm2820_vm0, %v5748_v10  ;;  %v5716_v22 = vmax.f32 %v5700_v42, 0.0  ;;  %v5701_v15 = vadd.f32 %v16217_v23, %v5685_v54 }
 0x5b3   : > { %v5538_v14 = vpop.f32.mrb[64].mxu0 }
 0x5b4   : > { %v5732_v39 = vmax.f32 %v4565_v25, %v5716_v22  ;;  %v5717_v58 = vmax.f32 %v5701_v15, 0.0  ;;  %v5665_v63 = vpop.f32.mrb[64].mxu1  ;;  %v10612_v44 = vpop.f32.mrb[65].mxu0  ;;  %2862 = sbr.rel (!%p2860_p1) target bundleno = 591 (0x24f), region = 145 }
 0x5b5   : > { %v10656_v3 = vpop.f32.mrb[65].mxu1  ;;  %v5540_v35 = vpop.f32.mrb[66].mxu0 }
 0x5b6   : > { %v5733_v19 = vmax.f32 %v4566_v6, %v5717_v58  ;;  %v5667_v33 = vpop.f32.mrb[66].mxu1  ;;  %v10613_v53 = vpop.f32.mrb[67].mxu0 }
 0x5b7   : > { %v10657_v17 = vpop.f32.mrb[67].mxu1 }
 0x5b8   : > { %v5750_v9 = vmax.f32 %v5732_v39, %v5733_v19 }
 0x5ba   : > { %5751 = vst.msk [vmem:[%s16235_s21 + $0x38] sm:$0xff] %vm2820_vm0, %v5750_v9 }
 0x5bb LB: > { %v16313_v23 = vld [vmem:[%s17161_s5 + $0x20] sm:$0xff]   ;;  %v11765_v29 = vmov 0.0   ;;  %v16326_v18 = vld [vmem:[%s17161_s5 + $0x28] sm:$0xff]   ;;  %vm11766_vm2 = vmmov 0   ;;  %s9049_s29 = sshll.u32 %s11760_s22, 7  ;;  %v16345_v27 = vld [vmem:[%s17161_s5 + $0x30] sm:$0xff]   ;;  %s11760_s22 = sphi %s16305_s22, %s5757_s22  }
 0x5bc   : > { %10658 = vmatprep.subr.bf16.mxu0 %v11765_v29  ;;  %10678 = vmatprep.subr.bf16.mxu1 %v11765_v29  ;;  %v16320_v43 = vld [vmem:[%s17161_s5] sm:$0xff]   ;;  %v16335_v28 = vld [vmem:[%s17161_s5 + $0x8] sm:$0xff]   ;;  %v16352_v36 = vld [vmem:[%s17161_s5 + $0x10] sm:$0xff]   ;;  %s16365_s15 = scalar_lea.vmem [#allocation3], %s9049_s29  ;;  %s7359_s29 = smul.u32 24, %s11760_s22 }
 0x5bd   : > { %10659 = vmatpush3.bf16.msra.mxu0 %v16313_v23  ;;  %10666 = vmatprep.mubr.msk.bf16.mxu0 %vm11766_vm2, %v11765_v29  ;;  %v16358_v24 = vld [vmem:[%s17161_s5 + $0x38] sm:$0xff]   ;;  %v16378_v56 = vld [vmem:[%s17161_s5 + $0x40] sm:$0xff]   ;;  %v16394_v40 = vld [vmem:[%s17161_s5 + $0x48] sm:$0xff]   ;;  %s5757_s22 = sadd.s32 1, %s11760_s22  }
 0x5be   : > { %10679 = vmatpush3.bf16.msra.mxu1 %v16320_v43  ;;  %10660 = vmatprep.subr.bf16.mxu0 %v11765_v29  ;;  %v16363_v21 = vld [vmem:[%s17161_s5 + $0x18] sm:$0xff]   ;;  %v16385_v60 = vld [vmem:[%s17161_s5 + $0x60] sm:$0xff]   ;;  %v16403_v16 = vld [vmem:[%s17161_s5 + $0x68] sm:$0xff]   ;;  %s16924_s30 = scalar_lea.vmem [#allocation4], %s7359_s29  ;;  %p5754_p2 = scmp.ge.s32.totalorder %s5757_s22, 3  }
 0x5bf   : > { %10680 = vmatprep.subr.bf16.mxu1 %v11765_v29  ;;  %10686 = vmatprep.mubr.msk.bf16.mxu1 %vm11766_vm2, %v11765_v29  ;;  %v16414_v50 = vld [vmem:[%s17161_s5 + $0x50] sm:$0xff]   ;;  %v16432_v12 = vld [vmem:[%s17161_s5 + $0x58] sm:$0xff]   ;;  %v16463_v51 = vld [vmem:[%s17161_s5 + $0x80] sm:$0xff]   ;;  %vm11768_vm3 = vmmov (%p5754_p2), 0  }
 0x5c0   : > { %v16422_v31 = vld [vmem:[%s17161_s5 + $0x70] sm:$0xff]   ;;  %v16443_v5 = vld [vmem:[%s17161_s5 + $0x78] sm:$0xff]   ;;  %v16468_v30 = vld [vmem:[%s17161_s5 + $0xa0] sm:$0xff]  }
 0x5c1   : > { %10661 = vmatpush3.bf16.msra.mxu0 %v16326_v18  ;;  %v5762_v59 = vld [vmem:[%s16365_s15 + $0x8] sm:$0xff]  ;;  %v5763_v2 = vld [vmem:[%s16365_s15 + $0x10] sm:$0xff]  ;;  %v5761_v41 = vld [vmem:[%s16365_s15] sm:$0xff] }
 0x5c2   : > { %10681 = vmatpush3.bf16.msra.mxu1 %v16335_v28  ;;  %10662 = vmatprep.subr.bf16.mxu0 %v11765_v29  ;;  %v5813_v48 = vpack.c.bf16 %v5763_v2, %v5762_v59  ;;  %v5802_v1 = vpack.c.bf16 %v5762_v59, %v5761_v41  ;;  %v5764_v37 = vld [vmem:[%s16365_s15 + $0x18] sm:$0xff]  ;;  %v5765_v34 = vld [vmem:[%s16365_s15 + $0x20] sm:$0xff]  ;;  %v5766_v11 = vld [vmem:[%s16365_s15 + $0x28] sm:$0xff] }
 0x5c3   : > { %10682 = vmatprep.subr.bf16.mxu1 %v11765_v29  ;;  %v5814_v45 = vpack.c.bf16 %v5765_v34, %v5764_v37  ;;  %v5803_v52 = vpack.c.bf16 %v5764_v37, %v5763_v2  ;;  %v5767_v0 = vld [vmem:[%s16365_s15 + $0x30] sm:$0xff]  ;;  %v5804_v13 = vpack.c.bf16 %v5766_v11, %v5765_v34  ;;  %v8746_v20 = vld [vmem:[%s16365_s15 + $0x40] sm:$0xff]  ;;  %v8747_v61 = vld [vmem:[%s16365_s15 + $0x48] sm:$0xff] }
 0x5c4   : > { %v5815_v62 = vpack.c.bf16 %v5767_v0, %v5766_v11  ;;  %v16458_v38 = vpack.c.bf16 %v8747_v61, %v8746_v20  ;;  %v16477_v47 = vld [vmem:[%s17161_s5 + $0x88] sm:$0xff]   ;;  %v8748_v49 = vld [vmem:[%s16365_s15 + $0x50] sm:$0xff]  ;;  %v8749_v26 = vld [vmem:[%s16365_s15 + $0x58] sm:$0xff] }
 0x5c5   : > { %10663 = vmatpush3.bf16.msra.mxu0 %v16345_v27  ;;  %v16486_v4 = vld [vmem:[%s17161_s5 + $0xa8] sm:$0xff]   ;;  %v16494_v57 = vpack.c.bf16 %v8749_v26, %v8748_v49  ;;  %v16499_v8 = vld [vmem:[%s17161_s5 + $0x90] sm:$0xff]   ;;  %v5768_v55 = vld [vmem:[%s16365_s15 + $0x38] sm:$0xff]  ;;  %v16546_v22 = vpack.c.bf16 %v8748_v49, %v8747_v61 }
 0x5c6   : > { %10683 = vmatpush3.bf16.msra.mxu1 %v16352_v36  ;;  %10664 = vmatprep.subr.bf16.mxu0 %v11765_v29  ;;  %v16507_v7 = vld [vmem:[%s17161_s5 + $0xb0] sm:$0xff]   ;;  %v16517_v46 = vld [vmem:[%s17161_s5 + $0x98] sm:$0xff]   ;;  %v8750_v32 = vld [vmem:[%s16365_s15 + $0x60] sm:$0xff]  ;;  %v6006_v54 = vpack.c.bf16 %v5768_v55, %v5767_v0 }
 0x5c7   : > { %10684 = vmatprep.subr.bf16.mxu1 %v11765_v29  ;;  %v8751_v10 = vld [vmem:[%s16365_s15 + $0x68] sm:$0xff]  ;;  %v16530_v42 = vld [vmem:[%s17161_s5 + $0xb8] sm:$0xff]   ;;  %v16551_v15 = vld [vmem:[%s17161_s5 + $0xc0] sm:$0xff]   ;;  %v16579_v58 = vpack.c.bf16 %v8750_v32, %v8749_v26 }
 0x5c8   : > { %v16533_v25 = vpack.c.bf16 %v8751_v10, %v8750_v32  ;;  %v16556_v14 = vld [vmem:[%s17161_s5 + $0xe0] sm:$0xff]   ;;  %v16566_v6 = vld [vmem:[%s17161_s5 + $0xc8] sm:$0xff]   ;;  %v16586_v63 = vld [vmem:[%s17161_s5 + $0xd0] sm:$0xff]  }
 0x5c9   : > { %10665 = vmatpush3.bf16.msra.mxu0 %v16358_v24  ;;  %v16573_v39 = vld [vmem:[%s17161_s5 + $0xe8] sm:$0xff]   ;;  %v16594_v44 = vld [vmem:[%s17161_s5 + $0xf0] sm:$0xff]   ;;  %v16605_v35 = vld [vmem:[%s17161_s5 + $0xd8] sm:$0xff]  }
 0x5ca   : > { %10685 = vmatpush3.bf16.msra.mxu1 %v16363_v21  ;;  %10698 = vmatprep.subr.bf16.mxu0 %v11765_v29  ;;  %v8752_v3 = vld [vmem:[%s16365_s15 + $0x70] sm:$0xff]  ;;  %v8753_v19 = vld [vmem:[%s16365_s15 + $0x78] sm:$0xff]  ;;  %v8756_v9 = vld [vmem:[%s16365_s15 + $0x80] sm:$0xff] }
 0x5cb   : > { %10718 = vmatprep.subr.bf16.mxu1 %v11765_v29  ;;  %v16617_v33 = vld [vmem:[%s17161_s5 + $0xf8] sm:$0xff]   ;;  %v16619_v53 = vpack.c.bf16 %v8752_v3, %v8751_v10  ;;  %v16622_v17 = vpack.c.bf16 %v8753_v19, %v8752_v3  ;;  %v8757_v59 = vld [vmem:[%s16365_s15 + $0x88] sm:$0xff]  ;;  %v8758_v2 = vld [vmem:[%s16365_s15 + $0x90] sm:$0xff] }
 0x5cc   : > { %10667 = vmatmul.mubr.msk.bf16.vlgmr.msra.gmra.mrb[0].mxu0 %vm2820_vm0, %v5813_v48  ;;  %v16639_v41 = vpack.c.bf16 %v8757_v59, %v8756_v9  ;;  %v16641_v48 = vpack.c.bf16 %v8758_v2, %v8757_v59  ;;  %v16656_v37 = vld [vmem:[%s17161_s5 + $0x108] sm:$0xff]   ;;  %v8759_v34 = vld [vmem:[%s16365_s15 + $0x98] sm:$0xff] }
 0x5cd   : > { %10687 = vmatmul.mubr.msk.bf16.vlgmr.msra.gmra.mrb[0].mxu1 %vm2820_vm0, %v5802_v1  ;;  %10699 = vmatpush3.bf16.msra.mxu0 %v16378_v56  ;;  %v16646_v1 = vld [vmem:[%s17161_s5 + $0x100] sm:$0xff]   ;;  %v8761_v0 = vld [vmem:[%s16365_s15 + $0xa8] sm:$0xff]  ;;  %v8773_v61 = vld [vmem:[%s16365_s15 + $0xf8] sm:$0xff] }
 0x5ce   : > { %10719 = vmatpush3.bf16.msra.mxu1 %v16385_v60  ;;  %10700 = vmatprep.subr.bf16.mxu0 %v11765_v29 }
 0x5cf   : > { %10670 = vmatprep.mubr.msk.bf16.mxu0 %vm11766_vm2, %v11765_v29  ;;  %10690 = vmatprep.mubr.msk.bf16.mxu1 %vm11766_vm2, %v11765_v29 }
 0x5d0   : > { %10720 = vmatprep.subr.bf16.mxu1 %v11765_v29 }
 0x5d1   : > { %10701 = vmatpush3.bf16.msra.mxu0 %v16394_v40 }
 0x5d2   : > { %10721 = vmatpush3.bf16.msra.mxu1 %v16403_v16  ;;  %10702 = vmatprep.subr.bf16.mxu0 %v11765_v29 }
 0x5d3   : > { %10722 = vmatprep.subr.bf16.mxu1 %v11765_v29 }
 0x5d4   : > { %10671 = vmatmul.mubr.msk.bf16.gmra.mrb[4].mxu0 %vm2820_vm0, %v5814_v45  ;;  %v8760_v45 = vld [vmem:[%s16365_s15 + $0xa0] sm:$0xff] }
 0x5d5   : > { %10691 = vmatmul.mubr.msk.bf16.gmra.mrb[4].mxu1 %vm2820_vm0, %v5803_v52  ;;  %10703 = vmatpush3.bf16.msra.mxu0 %v16414_v50  ;;  %v16670_v11 = vpack.c.bf16 %v8760_v45, %v8759_v34 }
 0x5d6   : > { %10674 = vmatprep.mubr.msk.bf16.mxu0 %vm11766_vm2, %v11765_v29  ;;  %10694 = vmatprep.mubr.msk.bf16.mxu1 %vm11766_vm2, %v11765_v29 }
 0x5d7   : > { %10723 = vmatpush3.bf16.msra.mxu1 %v16422_v31  ;;  %10704 = vmatprep.subr.bf16.mxu0 %v11765_v29 }
 0x5d8   : > { %10724 = vmatprep.subr.bf16.mxu1 %v11765_v29 }
 0x5d9   : > { %10705 = vmatpush3.bf16.msra.mxu0 %v16432_v12 }
 0x5da   : > { %10738 = vmatprep.subr.bf16.mxu0 %v11765_v29 }
 0x5db   : > { %10725 = vmatpush3.bf16.msra.mxu1 %v16443_v5 }
 0x5dc   : > { %10675 = vmatmul.mubr.msk.bf16.gmra.mrb[8].mxu0 %vm2820_vm0, %v5815_v62  ;;  %10758 = vmatprep.subr.bf16.mxu1 %v11765_v29  ;;  %v16689_v62 = vld [vmem:[%s17161_s5 + $0x118] sm:$0xff]  }
 0x5dd   : > { %10695 = vmatmul.mubr.msk.bf16.gmra.mrb[8].mxu1 %vm2820_vm0, %v5804_v13  ;;  %10706 = vmatprep.mubr.msk.bf16.mxu0 %vm11766_vm2, %v11765_v29 }
 0x5de   : > { %10726 = vmatprep.mubr.msk.bf16.mxu1 %vm11766_vm2, %v11765_v29 }
 0x5e4   : > { %10707 = vmatmul.mubr.msk.bf16.vlgmr.msra.gmra.mrb[12].mxu0 %vm2820_vm0, %v5803_v52  ;;  %v16666_v52 = vpack.c.bf16 %v8759_v34, %v8758_v2 }
 0x5e5   : > { %10727 = vmatmul.mubr.msk.bf16.vlgmr.msra.gmra.mrb[12].mxu1 %vm2820_vm0, %v16458_v38  ;;  %10739 = vmatpush3.bf16.msra.mxu0 %v16463_v51 }
 0x5e6   : > { %10759 = vmatpush3.bf16.msra.mxu1 %v16468_v30  ;;  %10740 = vmatprep.subr.bf16.mxu0 %v11765_v29 }
 0x5e7   : > { %10710 = vmatprep.mubr.msk.bf16.mxu0 %vm11766_vm2, %v11765_v29  ;;  %10730 = vmatprep.mubr.msk.bf16.mxu1 %vm11766_vm2, %v11765_v29 }
 0x5e8   : > { %10760 = vmatprep.subr.bf16.mxu1 %v11765_v29 }
 0x5e9   : > { %10741 = vmatpush3.bf16.msra.mxu0 %v16477_v47 }
 0x5ea   : > { %10761 = vmatpush3.bf16.msra.mxu1 %v16486_v4  ;;  %10742 = vmatprep.subr.bf16.mxu0 %v11765_v29 }
 0x5eb   : > { %10762 = vmatprep.subr.bf16.mxu1 %v11765_v29 }
 0x5ec   : > { %10711 = vmatmul.mubr.msk.bf16.gmra.mrb[16].mxu0 %vm2820_vm0, %v5804_v13  ;;  %v16698_v13 = vpack.c.bf16 %v8761_v0, %v8760_v45 }
 0x5ed   : > { %10731 = vmatmul.mubr.msk.bf16.gmra.mrb[16].mxu1 %vm2820_vm0, %v16494_v57  ;;  %10743 = vmatpush3.bf16.msra.mxu0 %v16499_v8 }
 0x5ee   : > { %10714 = vmatprep.mubr.msk.bf16.mxu0 %vm11766_vm2, %v11765_v29  ;;  %10734 = vmatprep.mubr.msk.bf16.mxu1 %vm11766_vm2, %v11765_v29 }
 0x5ef   : > { %10763 = vmatpush3.bf16.msra.mxu1 %v16507_v7  ;;  %10744 = vmatprep.subr.bf16.mxu0 %v11765_v29 }
 0x5f0   : > { %10764 = vmatprep.subr.bf16.mxu1 %v11765_v29 }
 0x5f1   : > { %10745 = vmatpush3.bf16.msra.mxu0 %v16517_v46 }
 0x5f2   : > { %10778 = vmatprep.subr.bf16.mxu0 %v11765_v29 }
 0x5f3   : > { %10765 = vmatpush3.bf16.msra.mxu1 %v16530_v42 }
 0x5f4   : > { %10715 = vmatmul.mubr.msk.bf16.gmra.mrb[20].mxu0 %vm2820_vm0, %v6006_v54  ;;  %10798 = vmatprep.subr.bf16.mxu1 %v11765_v29 }
 0x5f5   : > { %10735 = vmatmul.mubr.msk.bf16.gmra.mrb[20].mxu1 %vm2820_vm0, %v16533_v25  ;;  %10746 = vmatprep.mubr.msk.bf16.mxu0 %vm11766_vm2, %v11765_v29 }
 0x5f6   : > { %10766 = vmatprep.mubr.msk.bf16.mxu1 %vm11766_vm2, %v11765_v29 }
 0x5fc   : > { %10747 = vmatmul.mubr.msk.bf16.vlgmr.msra.gmra.mrb[24].mxu0 %vm2820_vm0, %v16546_v22 }
 0x5fd   : > { %10767 = vmatmul.mubr.msk.bf16.vlgmr.msra.gmra.mrb[24].mxu1 %vm2820_vm0, %v16494_v57  ;;  %10779 = vmatpush3.bf16.msra.mxu0 %v16551_v15 }
 0x5fe   : > { %10799 = vmatpush3.bf16.msra.mxu1 %v16556_v14  ;;  %10780 = vmatprep.subr.bf16.mxu0 %v11765_v29 }
 0x5ff   : > { %10750 = vmatprep.mubr.msk.bf16.mxu0 %vm11766_vm2, %v11765_v29  ;;  %10770 = vmatprep.mubr.msk.bf16.mxu1 %vm11766_vm2, %v11765_v29 }
 0x600   : > { %10800 = vmatprep.subr.bf16.mxu1 %v11765_v29 }
 0x601   : > { %10781 = vmatpush3.bf16.msra.mxu0 %v16566_v6 }
 0x602   : > { %10801 = vmatpush3.bf16.msra.mxu1 %v16573_v39  ;;  %10782 = vmatprep.subr.bf16.mxu0 %v11765_v29 }
 0x603   : > { %10802 = vmatprep.subr.bf16.mxu1 %v11765_v29 }
 0x604   : > { %10751 = vmatmul.mubr.msk.bf16.gmra.mrb[28].mxu0 %vm2820_vm0, %v16579_v58 }
 0x605   : > { %10771 = vmatmul.mubr.msk.bf16.gmra.mrb[28].mxu1 %vm2820_vm0, %v16533_v25  ;;  %10783 = vmatpush3.bf16.msra.mxu0 %v16586_v63 }
 0x606   : > { %10754 = vmatprep.mubr.msk.bf16.mxu0 %vm11766_vm2, %v11765_v29  ;;  %10774 = vmatprep.mubr.msk.bf16.mxu1 %vm11766_vm2, %v11765_v29 }
 0x607   : > { %10803 = vmatpush3.bf16.msra.mxu1 %v16594_v44  ;;  %10784 = vmatprep.subr.bf16.mxu0 %v11765_v29 }
 0x608   : > { %10804 = vmatprep.subr.bf16.mxu1 %v11765_v29 }
 0x609   : > { %10785 = vmatpush3.bf16.msra.mxu0 %v16605_v35 }
 0x60a   : > { %10818 = vmatprep.subr.bf16.mxu0 %v11765_v29 }
 0x60b   : > { %10805 = vmatpush3.bf16.msra.mxu1 %v16617_v33 }
 0x60c   : > { %10755 = vmatmul.mubr.msk.bf16.gmra.mrb[32].mxu0 %vm2820_vm0, %v16619_v53  ;;  %10838 = vmatprep.subr.bf16.mxu1 %v11765_v29 }
 0x60d   : > { %10775 = vmatmul.mubr.msk.bf16.gmra.mrb[32].mxu1 %vm2820_vm0, %v16622_v17  ;;  %10786 = vmatprep.mubr.msk.bf16.mxu0 %vm11766_vm2, %v11765_v29 }
 0x60e   : > { %10806 = vmatprep.mubr.msk.bf16.mxu1 %vm11766_vm2, %v11765_v29 }
 0x614   : > { %10787 = vmatmul.mubr.msk.bf16.vlgmr.msra.gmra.mrb[36].mxu0 %vm2820_vm0, %v16639_v41 }
 0x615   : > { %10807 = vmatmul.mubr.msk.bf16.vlgmr.msra.gmra.mrb[36].mxu1 %vm2820_vm0, %v16641_v48  ;;  %10819 = vmatpush3.bf16.msra.mxu0 %v16646_v1 }
 0x616   : > { %10839 = vmatpush3.bf16.msra.mxu1 %v16313_v23  ;;  %10820 = vmatprep.subr.bf16.mxu0 %v11765_v29  ;;  %v16675_v23 = vld [vmem:[%s17161_s5 + $0x110] sm:$0xff]  }
 0x617   : > { %10790 = vmatprep.mubr.msk.bf16.mxu0 %vm11766_vm2, %v11765_v29  ;;  %10810 = vmatprep.mubr.msk.bf16.mxu1 %vm11766_vm2, %v11765_v29 }
 0x618   : > { %10840 = vmatprep.subr.bf16.mxu1 %v11765_v29 }
 0x619   : > { %10821 = vmatpush3.bf16.msra.mxu0 %v16656_v37 }
 0x61a   : > { %10841 = vmatpush3.bf16.msra.mxu1 %v16326_v18  ;;  %10822 = vmatprep.subr.bf16.mxu0 %v11765_v29  ;;  %v8762_v18 = vld [vmem:[%s16365_s15 + $0xb0] sm:$0xff] }
 0x61b   : > { %10842 = vmatprep.subr.bf16.mxu1 %v11765_v29  ;;  %v16701_v20 = vpack.c.bf16 %v8762_v18, %v8761_v0 }
 0x61c   : > { %10791 = vmatmul.mubr.msk.bf16.gmra.mrb[40].mxu0 %vm2820_vm0, %v16666_v52 }
 0x61d   : > { %10811 = vmatmul.mubr.msk.bf16.gmra.mrb[40].mxu1 %vm2820_vm0, %v16670_v11  ;;  %10823 = vmatpush3.bf16.msra.mxu0 %v16675_v23 }
 0x61e   : > { %10794 = vmatprep.mubr.msk.bf16.mxu0 %vm11766_vm2, %v11765_v29  ;;  %10814 = vmatprep.mubr.msk.bf16.mxu1 %vm11766_vm2, %v11765_v29 }
 0x61f   : > { %10843 = vmatpush3.bf16.msra.mxu1 %v16345_v27  ;;  %10824 = vmatprep.subr.bf16.mxu0 %v11765_v29  ;;  %v8766_v27 = vld [vmem:[%s16365_s15 + $0xc0] sm:$0xff] }
 0x620   : > { %10844 = vmatprep.subr.bf16.mxu1 %v11765_v29 }
 0x621   : > { %10825 = vmatpush3.bf16.msra.mxu0 %v16689_v62 }
 0x622   : > { %10858 = vmatprep.subr.bf16.mxu0 %v11765_v29 }
 0x623   : > { %10845 = vmatpush3.bf16.msra.mxu1 %v16358_v24 }
 0x624   : > { %10795 = vmatmul.mubr.msk.bf16.gmra.mrb[44].mxu0 %vm2820_vm0, %v16698_v13  ;;  %10878 = vmatprep.subr.bf16.mxu1 %v11765_v29 }
 0x625   : > { %10815 = vmatmul.mubr.msk.bf16.gmra.mrb[44].mxu1 %vm2820_vm0, %v16701_v20  ;;  %10826 = vmatprep.mubr.msk.bf16.mxu0 %vm11766_vm2, %v11765_v29 }
 0x626   : > { %10846 = vmatprep.mubr.msk.bf16.mxu1 %vm11766_vm2, %v11765_v29 }
 0x62c   : > { %10827 = vmatmul.mubr.msk.bf16.vlgmr.msra.gmra.mrb[48].mxu0 %vm2820_vm0, %v16666_v52 }
 0x62d   : > { %10847 = vmatmul.mubr.msk.bf16.vlgmr.msra.gmra.mrb[48].mxu1 %vm2820_vm0, %v16546_v22  ;;  %10859 = vmatpush3.bf16.msra.mxu0 %v16320_v43  ;;  %v8763_v43 = vld [vmem:[%s16365_s15 + $0xb8] sm:$0xff] }
 0x62e   : > { %10879 = vmatpush3.bf16.msra.mxu1 %v16378_v56  ;;  %10860 = vmatprep.subr.bf16.mxu0 %v11765_v29  ;;  %v8769_v56 = vld [vmem:[%s16365_s15 + $0xd8] sm:$0xff] }
 0x62f   : > { %10830 = vmatprep.mubr.msk.bf16.mxu0 %vm11766_vm2, %v11765_v29  ;;  %10850 = vmatprep.mubr.msk.bf16.mxu1 %vm11766_vm2, %v11765_v29 }
 0x630   : > { %10880 = vmatprep.subr.bf16.mxu1 %v11765_v29 }
 0x631   : > { %10861 = vmatpush3.bf16.msra.mxu0 %v16335_v28  ;;  %v16743_v28 = vpack.c.bf16 %v8763_v43, %v8762_v18 }
 0x632   : > { %10881 = vmatpush3.bf16.msra.mxu1 %v16394_v40  ;;  %10862 = vmatprep.subr.bf16.mxu0 %v11765_v29  ;;  %v8770_v40 = vld [vmem:[%s16365_s15 + $0xe0] sm:$0xff] }
 0x633   : > { %10882 = vmatprep.subr.bf16.mxu1 %v11765_v29 }
 0x634   : > { %10831 = vmatmul.mubr.msk.bf16.gmra.mrb[52].mxu0 %vm2820_vm0, %v16698_v13 }
 0x635   : > { %10851 = vmatmul.mubr.msk.bf16.gmra.mrb[52].mxu1 %vm2820_vm0, %v16579_v58  ;;  %10863 = vmatpush3.bf16.msra.mxu0 %v16352_v36  ;;  %v8767_v36 = vld [vmem:[%s16365_s15 + $0xc8] sm:$0xff] }
 0x636   : > { %10834 = vmatprep.mubr.msk.bf16.mxu0 %vm11766_vm2, %v11765_v29  ;;  %10854 = vmatprep.mubr.msk.bf16.mxu1 %vm11766_vm2, %v11765_v29  ;;  %v7123_v24 = vpack.c.bf16 %v8767_v36, %v8766_v27 }
 0x637   : > { %10883 = vmatpush3.bf16.msra.mxu1 %v16414_v50  ;;  %10864 = vmatprep.subr.bf16.mxu0 %v11765_v29 }
 0x638   : > { %10884 = vmatprep.subr.bf16.mxu1 %v11765_v29 }
 0x639   : > { %10865 = vmatpush3.bf16.msra.mxu0 %v16363_v21  ;;  %v8768_v21 = vld [vmem:[%s16365_s15 + $0xd0] sm:$0xff] }
 0x63a   : > { %10898 = vmatprep.subr.bf16.mxu0 %v11765_v29 }
 0x63b   : > { %10885 = vmatpush3.bf16.msra.mxu1 %v16432_v12  ;;  %v7199_v12 = vpack.c.bf16 %v8770_v40, %v8769_v56 }
 0x63c   : > { %10835 = vmatmul.mubr.msk.bf16.gmra.mrb[56].mxu0 %vm2820_vm0, %v16743_v28  ;;  %10918 = vmatprep.subr.bf16.mxu1 %v11765_v29 }
 0x63d   : > { %10855 = vmatmul.mubr.msk.bf16.gmra.mrb[56].mxu1 %vm2820_vm0, %v16619_v53  ;;  %10866 = vmatprep.mubr.msk.bf16.mxu0 %vm11766_vm2, %v11765_v29 }
 0x63e   : > { %10886 = vmatprep.mubr.msk.bf16.mxu1 %vm11766_vm2, %v11765_v29 }
 0x644   : > { %10867 = vmatmul.mubr.msk.bf16.vlgmr.msra.gmra.mrb[60].mxu0 %vm2820_vm0, %v16458_v38 }
 0x645   : > { %10887 = vmatmul.mubr.msk.bf16.vlgmr.msra.gmra.mrb[60].mxu1 %vm2820_vm0, %v16494_v57  ;;  %10899 = vmatpush3.bf16.msra.mxu0 %v16385_v60  ;;  %v7124_v60 = vpack.c.bf16 %v8769_v56, %v8768_v21 }
 0x646   : > { %10919 = vmatpush3.bf16.msra.mxu1 %v16463_v51  ;;  %10900 = vmatprep.subr.bf16.mxu0 %v11765_v29 }
 0x647   : > { %10870 = vmatprep.mubr.msk.bf16.mxu0 %vm11766_vm2, %v11765_v29  ;;  %10890 = vmatprep.mubr.msk.bf16.mxu1 %vm11766_vm2, %v11765_v29 }
 0x648   : > { %10920 = vmatprep.subr.bf16.mxu1 %v11765_v29 }
 0x649   : > { %10901 = vmatpush3.bf16.msra.mxu0 %v16403_v16  ;;  %v8771_v16 = vld [vmem:[%s16365_s15 + $0xe8] sm:$0xff] }
 0x64a   : > { %10921 = vmatpush3.bf16.msra.mxu1 %v16477_v47  ;;  %10902 = vmatprep.subr.bf16.mxu0 %v11765_v29  ;;  %v7125_v50 = vpack.c.bf16 %v8771_v16, %v8770_v40 }
 0x64b   : > { %10922 = vmatprep.subr.bf16.mxu1 %v11765_v29 }
 0x64c   : > { %10871 = vmatmul.mubr.msk.bf16.gmra.mrb[64].mxu0 %vm2820_vm0, %v16494_v57 }
 0x64d   : > { %10891 = vmatmul.mubr.msk.bf16.gmra.mrb[64].mxu1 %vm2820_vm0, %v16533_v25  ;;  %10903 = vmatpush3.bf16.msra.mxu0 %v16422_v31  ;;  %v7198_v31 = vpack.c.bf16 %v8768_v21, %v8767_v36 }
 0x64e   : > { %10874 = vmatprep.mubr.msk.bf16.mxu0 %vm11766_vm2, %v11765_v29  ;;  %10894 = vmatprep.mubr.msk.bf16.mxu1 %vm11766_vm2, %v11765_v29 }
 0x64f   : > { %10923 = vmatpush3.bf16.msra.mxu1 %v16499_v8  ;;  %10904 = vmatprep.subr.bf16.mxu0 %v11765_v29 }
 0x650   : > { %10924 = vmatprep.subr.bf16.mxu1 %v11765_v29 }
 0x651   : > { %10905 = vmatpush3.bf16.msra.mxu0 %v16443_v5  ;;  %v8772_v5 = vld [vmem:[%s16365_s15 + $0xf0] sm:$0xff] }
 0x652   : > { %10938 = vmatprep.subr.bf16.mxu0 %v11765_v29  ;;  %v7200_v38 = vpack.c.bf16 %v8772_v5, %v8771_v16  ;;  %v7273_v51 = vpack.c.bf16 %v8773_v61, %v8772_v5 }
 0x653   : > { %10925 = vmatpush3.bf16.msra.mxu1 %v16517_v46 }
 0x654   : > { %10875 = vmatmul.mubr.msk.bf16.gmra.mrb[68].mxu0 %vm2820_vm0, %v16533_v25  ;;  %10958 = vmatprep.subr.bf16.mxu1 %v11765_v29 }
 0x655   : > { %10895 = vmatmul.mubr.msk.bf16.gmra.mrb[68].mxu1 %vm2820_vm0, %v16622_v17  ;;  %10906 = vmatprep.mubr.msk.bf16.mxu0 %vm11766_vm2, %v11765_v29 }
 0x656   : > { %10926 = vmatprep.mubr.msk.bf16.mxu1 %vm11766_vm2, %v11765_v29 }
 0x65c   : > { %10907 = vmatmul.mubr.msk.bf16.vlgmr.msra.gmra.mrb[72].mxu0 %vm2820_vm0, %v16639_v41 }
 0x65d   : > { %10927 = vmatmul.mubr.msk.bf16.vlgmr.msra.gmra.mrb[72].mxu1 %vm2820_vm0, %v16641_v48  ;;  %10939 = vmatpush3.bf16.msra.mxu0 %v16468_v30 }
 0x65e   : > { %10959 = vmatpush3.bf16.msra.mxu1 %v16551_v15  ;;  %10940 = vmatprep.subr.bf16.mxu0 %v11765_v29 }
 0x65f   : > { %10910 = vmatprep.mubr.msk.bf16.mxu0 %vm11766_vm2, %v11765_v29  ;;  %10930 = vmatprep.mubr.msk.bf16.mxu1 %vm11766_vm2, %v11765_v29 }
 0x660   : > { %10960 = vmatprep.subr.bf16.mxu1 %v11765_v29 }
 0x661   : > { %10941 = vmatpush3.bf16.msra.mxu0 %v16486_v4 }
 0x662   : > { %10961 = vmatpush3.bf16.msra.mxu1 %v16566_v6  ;;  %10942 = vmatprep.subr.bf16.mxu0 %v11765_v29 }
 0x663   : > { %10962 = vmatprep.subr.bf16.mxu1 %v11765_v29 }
 0x664   : > { %10911 = vmatmul.mubr.msk.bf16.gmra.mrb[76].mxu0 %vm2820_vm0, %v16666_v52 }
 0x665   : > { %10931 = vmatmul.mubr.msk.bf16.gmra.mrb[76].mxu1 %vm2820_vm0, %v16670_v11  ;;  %10943 = vmatpush3.bf16.msra.mxu0 %v16507_v7 }
 0x666   : > { %10914 = vmatprep.mubr.msk.bf16.mxu0 %vm11766_vm2, %v11765_v29  ;;  %10934 = vmatprep.mubr.msk.bf16.mxu1 %vm11766_vm2, %v11765_v29 }
 0x667   : > { %10963 = vmatpush3.bf16.msra.mxu1 %v16586_v63  ;;  %10944 = vmatprep.subr.bf16.mxu0 %v11765_v29 }
 0x668   : > { %10964 = vmatprep.subr.bf16.mxu1 %v11765_v29 }
 0x669   : > { %10945 = vmatpush3.bf16.msra.mxu0 %v16530_v42 }
 0x66a   : > { %10978 = vmatprep.subr.bf16.mxu0 %v11765_v29 }
 0x66b   : > { %10965 = vmatpush3.bf16.msra.mxu1 %v16605_v35 }
 0x66c   : > { %10915 = vmatmul.mubr.msk.bf16.gmra.mrb[80].mxu0 %vm2820_vm0, %v16698_v13  ;;  %10998 = vmatprep.subr.bf16.mxu1 %v11765_v29 }
 0x66d   : > { %10935 = vmatmul.mubr.msk.bf16.gmra.mrb[80].mxu1 %vm2820_vm0, %v16701_v20  ;;  %10946 = vmatprep.mubr.msk.bf16.mxu0 %vm11766_vm2, %v11765_v29 }
 0x66e   : > { %10966 = vmatprep.mubr.msk.bf16.mxu1 %vm11766_vm2, %v11765_v29 }
 0x674   : > { %10947 = vmatmul.mubr.msk.bf16.vlgmr.msra.gmra.mrb[84].mxu0 %vm2820_vm0, %v16666_v52 }
 0x675   : > { %10967 = vmatmul.mubr.msk.bf16.vlgmr.msra.gmra.mrb[84].mxu1 %vm2820_vm0, %v7123_v24  ;;  %10979 = vmatpush3.bf16.msra.mxu0 %v16556_v14 }
 0x676   : > { %10999 = vmatpush3.bf16.msra.mxu1 %v16646_v1  ;;  %10980 = vmatprep.subr.bf16.mxu0 %v11765_v29 }
 0x677   : > { %10950 = vmatprep.mubr.msk.bf16.mxu0 %vm11766_vm2, %v11765_v29  ;;  %10970 = vmatprep.mubr.msk.bf16.mxu1 %vm11766_vm2, %v11765_v29 }
 0x678   : > { %11000 = vmatprep.subr.bf16.mxu1 %v11765_v29 }
 0x679   : > { %10981 = vmatpush3.bf16.msra.mxu0 %v16573_v39 }
 0x67a   : > { %11001 = vmatpush3.bf16.msra.mxu1 %v16656_v37  ;;  %10982 = vmatprep.subr.bf16.mxu0 %v11765_v29 }
 0x67b   : > { %11002 = vmatprep.subr.bf16.mxu1 %v11765_v29 }
 0x67c   : > { %10951 = vmatmul.mubr.msk.bf16.gmra.mrb[88].mxu0 %vm2820_vm0, %v16698_v13 }
 0x67d   : > { %10971 = vmatmul.mubr.msk.bf16.gmra.mrb[88].mxu1 %vm2820_vm0, %v7124_v60  ;;  %10983 = vmatpush3.bf16.msra.mxu0 %v16594_v44 }
 0x67e   : > { %10954 = vmatprep.mubr.msk.bf16.mxu0 %vm11766_vm2, %v11765_v29  ;;  %10974 = vmatprep.mubr.msk.bf16.mxu1 %vm11766_vm2, %v11765_v29 }
 0x67f   : > { %11003 = vmatpush3.bf16.msra.mxu1 %v16675_v23  ;;  %10984 = vmatprep.subr.bf16.mxu0 %v11765_v29 }
 0x680   : > { %11004 = vmatprep.subr.bf16.mxu1 %v11765_v29 }
 0x681   : > { %10985 = vmatpush3.bf16.msra.mxu0 %v16617_v33 }
 0x683   : > { %11005 = vmatpush3.bf16.msra.mxu1 %v16689_v62 }
 0x684   : > { %10955 = vmatmul.mubr.msk.bf16.gmra.mrb[92].mxu0 %vm2820_vm0, %v16743_v28 }
 0x685   : > { %10975 = vmatmul.mubr.msk.bf16.gmra.mrb[92].mxu1 %vm2820_vm0, %v7125_v50  ;;  %10986 = vmatprep.mubr.msk.bf16.mxu0 %vm11766_vm2, %v11765_v29 }
 0x686   : > { %11006 = vmatprep.mubr.msk.bf16.mxu1 %vm11766_vm2, %v11765_v29 }
 0x68c   : > { %10987 = vmatmul.mubr.msk.bf16.vlgmr.msra.gmra.mrb[96].mxu0 %vm2820_vm0, %v7198_v31 }
 0x68d   : > { %11007 = vmatmul.mubr.msk.bf16.vlgmr.msra.gmra.mrb[96].mxu1 %vm2820_vm0, %v7124_v60  ;;  %10990 = vmatprep.mubr.msk.bf16.mxu0 %vm11766_vm2, %v11765_v29 }
 0x68e   : > { %11010 = vmatprep.mubr.msk.bf16.mxu1 %vm11766_vm2, %v11765_v29 }
 0x694   : > { %10991 = vmatmul.mubr.msk.bf16.gmra.mrb[100].mxu0 %vm2820_vm0, %v7199_v12 }
 0x695   : > { %11011 = vmatmul.mubr.msk.bf16.gmra.mrb[100].mxu1 %vm2820_vm0, %v7125_v50  ;;  %10994 = vmatprep.mubr.msk.bf16.mxu0 %vm11766_vm2, %v11765_v29 }
 0x696   : > { %11014 = vmatprep.mubr.msk.bf16.mxu1 %vm11766_vm2, %v11765_v29 }
 0x69c   : > { %10995 = vmatmul.mubr.msk.bf16.gmra.mrb[104].mxu0 %vm2820_vm0, %v7200_v38 }
 0x69d   : > { %11015 = vmatmul.mubr.msk.bf16.gmra.mrb[104].mxu1 %vm2820_vm0, %v7273_v51 }
 0x69f   : > { %v5893_v30 = vpop.f32.mrb[0].mxu0 }
 0x6a0   : > { %v5983_v47 = vpop.f32.mrb[0].mxu1  ;;  %v10668_v49 = vpop.f32.mrb[1].mxu0 }
 0x6a1   : > { %v5984_v26 = vadd.f32 %v5983_v47, %v5893_v30  ;;  %v10688_v4 = vpop.f32.mrb[1].mxu1  ;;  %v5896_v57 = vpop.f32.mrb[2].mxu0 }
 0x6a2   : > { %v5986_v8 = vpop.f32.mrb[2].mxu1  ;;  %v10669_v7 = vpop.f32.mrb[3].mxu0 }
 0x6a3   : > { %v5987_v55 = vadd.f32 %v5986_v8, %v5896_v57  ;;  %v10689_v46 = vpop.f32.mrb[3].mxu1 }
 0x6a7   : > { %v5901_v32 = vpop.f32.mrb[4].mxu0 }
 0x6a8   : > { %v5991_v10 = vpop.f32.mrb[4].mxu1  ;;  %v10672_v29 = vpop.f32.mrb[5].mxu0 }
 0x6a9   : > { %v5992_v42 = vadd.f32 %v5991_v10, %v5901_v32  ;;  %v10692_v54 = vpop.f32.mrb[5].mxu1  ;;  %v5904_v25 = vpop.f32.mrb[6].mxu0 }
 0x6aa   : > { %v5994_v22 = vpop.f32.mrb[6].mxu1  ;;  %v10673_v15 = vpop.f32.mrb[7].mxu0 }
 0x6ab   : > { %v5995_v14 = vadd.f32 %v5994_v22, %v5904_v25  ;;  %v10693_v6 = vpop.f32.mrb[7].mxu1 }
 0x6af   : > { %v5909_v39 = vpop.f32.mrb[8].mxu0 }
 0x6b0   : > { %v5999_v58 = vpop.f32.mrb[8].mxu1  ;;  %v10676_v63 = vpop.f32.mrb[9].mxu0 }
 0x6b1   : > { %v6000_v44 = vadd.f32 %v5999_v58, %v5909_v39  ;;  %v10696_v3 = vpop.f32.mrb[9].mxu1  ;;  %v5912_v35 = vpop.f32.mrb[10].mxu0 }
 0x6b2   : > { %v6002_v19 = vpop.f32.mrb[10].mxu1  ;;  %v10677_v33 = vpop.f32.mrb[11].mxu0 }
 0x6b3   : > { %v6003_v53 = vadd.f32 %v6002_v19, %v5912_v35  ;;  %v10697_v17 = vpop.f32.mrb[11].mxu1 }
 0x6b7   : > { %v6077_v9 = vpop.f32.mrb[12].mxu0 }
 0x6b8   : > { %v6100_v59 = vadd.f32 %v6077_v9, %v5984_v26  ;;  %v6185_v2 = vpop.f32.mrb[12].mxu1  ;;  %v10708_v41 = vpop.f32.mrb[13].mxu0 }
 0x6b9   : > { %v10728_v48 = vpop.f32.mrb[13].mxu1  ;;  %v6080_v1 = vpop.f32.mrb[14].mxu0 }
 0x6ba   : > { %v6208_v37 = vadd.f32 %v6185_v2, %v6100_v59  ;;  %v6101_v34 = vadd.f32 %v6080_v1, %v5987_v55  ;;  %v6188_v45 = vpop.f32.mrb[14].mxu1  ;;  %v10709_v52 = vpop.f32.mrb[15].mxu0 }
 0x6bb   : > { %v10729_v11 = vpop.f32.mrb[15].mxu1 }
 0x6bc   : > { %v6209_v23 = vadd.f32 %v6188_v45, %v6101_v34 }
 0x6bf   : > { %v6085_v0 = vpop.f32.mrb[16].mxu0 }
 0x6c0   : > { %v6102_v62 = vadd.f32 %v6085_v0, %v5992_v42  ;;  %v6193_v18 = vpop.f32.mrb[16].mxu1  ;;  %v10712_v13 = vpop.f32.mrb[17].mxu0 }
 0x6c1   : > { %v10732_v20 = vpop.f32.mrb[17].mxu1  ;;  %v6088_v43 = vpop.f32.mrb[18].mxu0 }
 0x6c2   : > { %v6210_v28 = vadd.f32 %v6193_v18, %v6102_v62  ;;  %v6103_v27 = vadd.f32 %v6088_v43, %v5995_v14  ;;  %v6196_v36 = vpop.f32.mrb[18].mxu1  ;;  %v10713_v24 = vpop.f32.mrb[19].mxu0 }
 0x6c3   : > { %v10733_v21 = vpop.f32.mrb[19].mxu1 }
 0x6c4   : > { %v6211_v56 = vadd.f32 %v6196_v36, %v6103_v27 }
 0x6c7   : > { %v6093_v60 = vpop.f32.mrb[20].mxu0 }
 0x6c8   : > { %v6104_v40 = vadd.f32 %v6093_v60, %v6000_v44  ;;  %v6201_v16 = vpop.f32.mrb[20].mxu1  ;;  %v10716_v50 = vpop.f32.mrb[21].mxu0 }
 0x6c9   : > { %v10736_v31 = vpop.f32.mrb[21].mxu1  ;;  %v6096_v12 = vpop.f32.mrb[22].mxu0 }
 0x6ca   : > { %v6212_v5 = vadd.f32 %v6201_v16, %v6104_v40  ;;  %v6105_v61 = vadd.f32 %v6096_v12, %v6003_v53  ;;  %v6204_v38 = vpop.f32.mrb[22].mxu1  ;;  %v10717_v51 = vpop.f32.mrb[23].mxu0 }
 0x6cb   : > { %v10737_v30 = vpop.f32.mrb[23].mxu1 }
 0x6cc   : > { %v6213_v47 = vadd.f32 %v6204_v38, %v6105_v61 }
 0x6cf   : > { %v6293_v49 = vpop.f32.mrb[24].mxu0 }
 0x6d0   : > { %v6316_v26 = vadd.f32 %v6293_v49, %v6208_v37  ;;  %v6393_v4 = vpop.f32.mrb[24].mxu1  ;;  %v10748_v57 = vpop.f32.mrb[25].mxu0 }
 0x6d1   : > { %v10768_v8 = vpop.f32.mrb[25].mxu1  ;;  %v6296_v7 = vpop.f32.mrb[26].mxu0 }
 0x6d2   : > { %v6416_v55 = vadd.f32 %v6393_v4, %v6316_v26  ;;  %v6317_v46 = vadd.f32 %v6296_v7, %v6209_v23  ;;  %v6396_v32 = vpop.f32.mrb[26].mxu1  ;;  %v10749_v10 = vpop.f32.mrb[27].mxu0 }
 0x6d3   : > { %v10769_v29 = vpop.f32.mrb[27].mxu1 }
 0x6d4   : > { %v6417_v42 = vadd.f32 %v6396_v32, %v6317_v46 }
 0x6d7   : > { %v6301_v54 = vpop.f32.mrb[28].mxu0 }
 0x6d8   : > { %v6318_v25 = vadd.f32 %v6301_v54, %v6210_v28  ;;  %v6401_v22 = vpop.f32.mrb[28].mxu1  ;;  %v10752_v15 = vpop.f32.mrb[29].mxu0 }
 0x6d9   : > { %v10772_v14 = vpop.f32.mrb[29].mxu1  ;;  %v6304_v6 = vpop.f32.mrb[30].mxu0 }
 0x6da   : > { %v6418_v39 = vadd.f32 %v6401_v22, %v6318_v25  ;;  %v6319_v58 = vadd.f32 %v6304_v6, %v6211_v56  ;;  %v6404_v63 = vpop.f32.mrb[30].mxu1  ;;  %v10753_v44 = vpop.f32.mrb[31].mxu0 }
 0x6db   : > { %v10773_v3 = vpop.f32.mrb[31].mxu1 }
 0x6dc   : > { %v6419_v35 = vadd.f32 %v6404_v63, %v6319_v58 }
 0x6df   : > { %v6309_v19 = vpop.f32.mrb[32].mxu0 }
 0x6e0   : > { %v6320_v33 = vadd.f32 %v6309_v19, %v6212_v5  ;;  %v6409_v53 = vpop.f32.mrb[32].mxu1  ;;  %v10756_v17 = vpop.f32.mrb[33].mxu0 }
 0x6e1   : > { %v10776_v9 = vpop.f32.mrb[33].mxu1  ;;  %v6312_v59 = vpop.f32.mrb[34].mxu0 }
 0x6e2   : > { %v6420_v2 = vadd.f32 %v6409_v53, %v6320_v33  ;;  %v6321_v41 = vadd.f32 %v6312_v59, %v6213_v47  ;;  %v6412_v48 = vpop.f32.mrb[34].mxu1  ;;  %v10757_v1 = vpop.f32.mrb[35].mxu0 }
 0x6e3   : > { %v10777_v37 = vpop.f32.mrb[35].mxu1 }
 0x6e4   : > { %v6421_v34 = vadd.f32 %v6412_v48, %v6321_v41 }
 0x6e7   : > { %v6501_v45 = vpop.f32.mrb[36].mxu0 }
 0x6e8   : > { %v6524_v52 = vadd.f32 %v6501_v45, %v6416_v55  ;;  %v6609_v11 = vpop.f32.mrb[36].mxu1  ;;  %v10788_v23 = vpop.f32.mrb[37].mxu0 }
 0x6e9   : > { %v10808_v0 = vpop.f32.mrb[37].mxu1  ;;  %v6504_v62 = vpop.f32.mrb[38].mxu0 }
 0x6ea   : > { %v6632_v18 = vadd.f32 %v6609_v11, %v6524_v52  ;;  %v6525_v13 = vadd.f32 %v6504_v62, %v6417_v42  ;;  %v6612_v20 = vpop.f32.mrb[38].mxu1  ;;  %v10789_v43 = vpop.f32.mrb[39].mxu0 }
 0x6eb   : > { %v10809_v28 = vpop.f32.mrb[39].mxu1 }
 0x6ec   : > { %v6633_v27 = vadd.f32 %v6612_v20, %v6525_v13 }
 0x6ef   : > { %v6509_v36 = vpop.f32.mrb[40].mxu0 }
 0x6f0   : > { %v6526_v24 = vadd.f32 %v6509_v36, %v6418_v39  ;;  %v6617_v21 = vpop.f32.mrb[40].mxu1  ;;  %v10792_v56 = vpop.f32.mrb[41].mxu0 }
 0x6f1   : > { %v10812_v60 = vpop.f32.mrb[41].mxu1  ;;  %v6512_v40 = vpop.f32.mrb[42].mxu0 }
 0x6f2   : > { %v6634_v16 = vadd.f32 %v6617_v21, %v6526_v24  ;;  %v6527_v50 = vadd.f32 %v6512_v40, %v6419_v35  ;;  %v6620_v31 = vpop.f32.mrb[42].mxu1  ;;  %v10793_v12 = vpop.f32.mrb[43].mxu0 }
 0x6f3   : > { %v10813_v5 = vpop.f32.mrb[43].mxu1 }
 0x6f4   : > { %v6635_v61 = vadd.f32 %v6620_v31, %v6527_v50 }
 0x6f7   : > { %v6517_v38 = vpop.f32.mrb[44].mxu0 }
 0x6f8   : > { %v6528_v51 = vadd.f32 %v6517_v38, %v6420_v2  ;;  %v6625_v30 = vpop.f32.mrb[44].mxu1  ;;  %v10796_v47 = vpop.f32.mrb[45].mxu0 }
 0x6f9   : > { %v10816_v49 = vpop.f32.mrb[45].mxu1  ;;  %v6520_v26 = vpop.f32.mrb[46].mxu0 }
 0x6fa   : > { %v6636_v4 = vadd.f32 %v6625_v30, %v6528_v51  ;;  %v6529_v57 = vadd.f32 %v6520_v26, %v6421_v34  ;;  %v6628_v8 = vpop.f32.mrb[46].mxu1  ;;  %v10797_v7 = vpop.f32.mrb[47].mxu0 }
 0x6fb   : > { %v10817_v55 = vpop.f32.mrb[47].mxu1 }
 0x6fc   : > { %v6637_v46 = vadd.f32 %v6628_v8, %v6529_v57 }
 0x6ff   : > { %v6709_v32 = vpop.f32.mrb[48].mxu0 }
 0x700   : > { %v16895_v10 = vadd.f32 %v6709_v32, %v6632_v18  ;;  %v6791_v29 = vpop.f32.mrb[48].mxu1  ;;  %v10828_v42 = vpop.f32.mrb[49].mxu0 }
 0x701   : > { %v10848_v54 = vpop.f32.mrb[49].mxu1  ;;  %v6712_v25 = vpop.f32.mrb[50].mxu0 }
 0x702   : > { %v16897_v22 = vadd.f32 %v6712_v25, %v6633_v27  ;;  %v6794_v15 = vpop.f32.mrb[50].mxu1  ;;  %v10829_v14 = vpop.f32.mrb[51].mxu0 }
 0x703   : > { %v10849_v6 = vpop.f32.mrb[51].mxu1 }
 0x707   : > { %v6717_v39 = vpop.f32.mrb[52].mxu0 }
 0x708   : > { %v16899_v58 = vadd.f32 %v6717_v39, %v6634_v16  ;;  %v6799_v63 = vpop.f32.mrb[52].mxu1  ;;  %v10832_v44 = vpop.f32.mrb[53].mxu0 }
 0x709   : > { %v10852_v3 = vpop.f32.mrb[53].mxu1  ;;  %v6720_v35 = vpop.f32.mrb[54].mxu0 }
 0x70a   : > { %v16901_v19 = vadd.f32 %v6720_v35, %v6635_v61  ;;  %v6802_v33 = vpop.f32.mrb[54].mxu1  ;;  %v10833_v53 = vpop.f32.mrb[55].mxu0 }
 0x70b   : > { %v10853_v17 = vpop.f32.mrb[55].mxu1 }
 0x70f   : > { %v6725_v9 = vpop.f32.mrb[56].mxu0 }
 0x710   : > { %v16903_v59 = vadd.f32 %v6725_v9, %v6636_v4  ;;  %v6807_v2 = vpop.f32.mrb[56].mxu1  ;;  %v10836_v41 = vpop.f32.mrb[57].mxu0 }
 0x711   : > { %v10856_v48 = vpop.f32.mrb[57].mxu1  ;;  %v6728_v1 = vpop.f32.mrb[58].mxu0 }
 0x712   : > { %v16905_v37 = vadd.f32 %v6728_v1, %v6637_v46  ;;  %v6810_v34 = vpop.f32.mrb[58].mxu1  ;;  %v10837_v45 = vpop.f32.mrb[59].mxu0 }
 0x713   : > { %v10857_v52 = vpop.f32.mrb[59].mxu1 }
 0x717   : > { %v6848_v11 = vpop.f32.mrb[60].mxu0 }
 0x718   : > { %v6849_v23 = vadd.f32 %v6848_v11, %v6791_v29  ;;  %v6905_v0 = vpop.f32.mrb[60].mxu1  ;;  %v10868_v62 = vpop.f32.mrb[61].mxu0 }
 0x719   : > { %v10888_v18 = vpop.f32.mrb[61].mxu1  ;;  %v6851_v13 = vpop.f32.mrb[62].mxu0 }
 0x71a   : > { %v6928_v20 = vadd.f32 %v6905_v0, %v6849_v23  ;;  %v6852_v43 = vadd.f32 %v6851_v13, %v6794_v15  ;;  %v6908_v28 = vpop.f32.mrb[62].mxu1  ;;  %v10869_v27 = vpop.f32.mrb[63].mxu0 }
 0x71b   : > { %v10889_v36 = vpop.f32.mrb[63].mxu1 }
 0x71c   : > { %v6929_v24 = vadd.f32 %v6908_v28, %v6852_v43 }
 0x71f   : > { %v6856_v21 = vpop.f32.mrb[64].mxu0 }
 0x720   : > { %v6857_v56 = vadd.f32 %v6856_v21, %v6799_v63  ;;  %v6913_v60 = vpop.f32.mrb[64].mxu1  ;;  %v10872_v40 = vpop.f32.mrb[65].mxu0 }
 0x721   : > { %v10892_v16 = vpop.f32.mrb[65].mxu1  ;;  %v6859_v50 = vpop.f32.mrb[66].mxu0 }
 0x722   : > { %v6930_v31 = vadd.f32 %v6913_v60, %v6857_v56  ;;  %v6860_v12 = vadd.f32 %v6859_v50, %v6802_v33  ;;  %v6916_v5 = vpop.f32.mrb[66].mxu1  ;;  %v10873_v61 = vpop.f32.mrb[67].mxu0 }
 0x723   : > { %v10893_v38 = vpop.f32.mrb[67].mxu1 }
 0x724   : > { %v6931_v51 = vadd.f32 %v6916_v5, %v6860_v12 }
 0x727   : > { %v6864_v30 = vpop.f32.mrb[68].mxu0 }
 0x728   : > { %v6865_v47 = vadd.f32 %v6864_v30, %v6807_v2  ;;  %v6921_v49 = vpop.f32.mrb[68].mxu1  ;;  %v10876_v26 = vpop.f32.mrb[69].mxu0 }
 0x729   : > { %v10896_v4 = vpop.f32.mrb[69].mxu1  ;;  %v6867_v57 = vpop.f32.mrb[70].mxu0 }
 0x72a   : > { %v6932_v8 = vadd.f32 %v6921_v49, %v6865_v47  ;;  %v6868_v7 = vadd.f32 %v6867_v57, %v6810_v34  ;;  %v6924_v55 = vpop.f32.mrb[70].mxu1  ;;  %v10877_v46 = vpop.f32.mrb[71].mxu0 }
 0x72b   : > { %v10897_v32 = vpop.f32.mrb[71].mxu1 }
 0x72c   : > { %v6933_v29 = vadd.f32 %v6924_v55, %v6868_v7 }
 0x72f   : > { %v6968_v42 = vpop.f32.mrb[72].mxu0 }
 0x730   : > { %v6991_v54 = vadd.f32 %v6968_v42, %v6928_v20  ;;  %v7031_v25 = vpop.f32.mrb[72].mxu1  ;;  %v10908_v15 = vpop.f32.mrb[73].mxu0 }
 0x731   : > { %v10928_v14 = vpop.f32.mrb[73].mxu1  ;;  %v6971_v6 = vpop.f32.mrb[74].mxu0 }
 0x732   : > { %v7054_v39 = vadd.f32 %v7031_v25, %v6991_v54  ;;  %v6992_v63 = vadd.f32 %v6971_v6, %v6929_v24  ;;  %v7034_v44 = vpop.f32.mrb[74].mxu1  ;;  %v10909_v3 = vpop.f32.mrb[75].mxu0 }
 0x733   : > { %v10929_v35 = vpop.f32.mrb[75].mxu1 }
 0x734   : > { %v7055_v33 = vadd.f32 %v7034_v44, %v6992_v63 }
 0x737   : > { %v6976_v53 = vpop.f32.mrb[76].mxu0 }
 0x738   : > { %v6993_v17 = vadd.f32 %v6976_v53, %v6930_v31  ;;  %v7039_v9 = vpop.f32.mrb[76].mxu1  ;;  %v10912_v2 = vpop.f32.mrb[77].mxu0 }
 0x739   : > { %v10932_v41 = vpop.f32.mrb[77].mxu1  ;;  %v6979_v48 = vpop.f32.mrb[78].mxu0 }
 0x73a   : > { %v7056_v1 = vadd.f32 %v7039_v9, %v6993_v17  ;;  %v6994_v34 = vadd.f32 %v6979_v48, %v6931_v51  ;;  %v7042_v45 = vpop.f32.mrb[78].mxu1  ;;  %v10913_v52 = vpop.f32.mrb[79].mxu0  ;;  %v16910_v9 = vld [vmem:[%s17162_s6] ss:$0 sm:$0xff] }
 0x73b   : > { %v10933_v11 = vpop.f32.mrb[79].mxu1  ;;  %v6745_v52 = vadd.f32 %v16910_v9, %v16895_v10 }
 0x73c   : > { %v7057_v23 = vadd.f32 %v7042_v45, %v6994_v34 }
 0x73f   : > { %v6984_v0 = vpop.f32.mrb[80].mxu0 }
 0x740   : > { %v6995_v62 = vadd.f32 %v6984_v0, %v6932_v8  ;;  %v7047_v18 = vpop.f32.mrb[80].mxu1  ;;  %v10916_v13 = vpop.f32.mrb[81].mxu0 }
 0x741   : > { %v10936_v20 = vpop.f32.mrb[81].mxu1  ;;  %v6987_v43 = vpop.f32.mrb[82].mxu0  ;;  %v6746_v13 = vadd.f32 %v16910_v9, %v16897_v22  ;;  %v6747_v22 = vadd.f32 %v16910_v9, %v16899_v58 }
 0x742   : > { %v7058_v28 = vadd.f32 %v7047_v18, %v6995_v62  ;;  %v6996_v27 = vadd.f32 %v6987_v43, %v6933_v29  ;;  %v7050_v36 = vpop.f32.mrb[82].mxu1  ;;  %v10917_v24 = vpop.f32.mrb[83].mxu0 }
 0x743   : > { %v10937_v21 = vpop.f32.mrb[83].mxu1 }
 0x744   : > { %v7059_v56 = vadd.f32 %v7050_v36, %v6996_v27  ;;  %v6752_v21 = vmax.f32 %v6746_v13, 0.0  ;;  %v11700_v13 = vld [vmem:[%s17163_s7 + $0x38] sm:$0xff] (%p5754_p2)  }
 0x747   : > { %v7094_v60 = vpop.f32.mrb[84].mxu0 }
 0x748   : > { %v7117_v40 = vadd.f32 %v7094_v60, %v7054_v39  ;;  %v7169_v16 = vpop.f32.mrb[84].mxu1  ;;  %v10948_v50 = vpop.f32.mrb[85].mxu0 }
 0x749   : > { %v10968_v31 = vpop.f32.mrb[85].mxu1  ;;  %v7097_v12 = vpop.f32.mrb[86].mxu0 }
 0x74a   : > { %v7192_v5 = vadd.f32 %v7169_v16, %v7117_v40  ;;  %v7118_v61 = vadd.f32 %v7097_v12, %v7055_v33  ;;  %v7172_v38 = vpop.f32.mrb[86].mxu1  ;;  %v10949_v51 = vpop.f32.mrb[87].mxu0 }
 0x74b   : > { %v10969_v30 = vpop.f32.mrb[87].mxu1 }
 0x74c   : > { %v7193_v47 = vadd.f32 %v7172_v38, %v7118_v61 }
 0x74f   : > { %v7102_v49 = vpop.f32.mrb[88].mxu0 }
 0x750   : > { %v7119_v26 = vadd.f32 %v7102_v49, %v7056_v1  ;;  %v7177_v4 = vpop.f32.mrb[88].mxu1  ;;  %v10952_v57 = vpop.f32.mrb[89].mxu0 }
 0x751   : > { %v10972_v8 = vpop.f32.mrb[89].mxu1  ;;  %v7105_v7 = vpop.f32.mrb[90].mxu0  ;;  %v6753_v57 = vmax.f32 %v6747_v22, 0.0 }
 0x752   : > { %v7194_v55 = vadd.f32 %v7177_v4, %v7119_v26  ;;  %v7120_v46 = vadd.f32 %v7105_v7, %v7057_v23  ;;  %v7180_v32 = vpop.f32.mrb[90].mxu1  ;;  %v10953_v29 = vpop.f32.mrb[91].mxu0 }
 0x753   : > { %v10973_v42 = vpop.f32.mrb[91].mxu1 }
 0x754   : > { %v7195_v54 = vadd.f32 %v7180_v32, %v7120_v46 }
 0x757   : > { %v7110_v25 = vpop.f32.mrb[92].mxu0 }
 0x758   : > { %v7121_v15 = vadd.f32 %v7110_v25, %v7058_v28  ;;  %v7185_v14 = vpop.f32.mrb[92].mxu1  ;;  %v10956_v6 = vpop.f32.mrb[93].mxu0  ;;  %v6751_v28 = vmax.f32 %v6745_v52, 0.0 }
 0x759   : > { %v10976_v39 = vpop.f32.mrb[93].mxu1  ;;  %v7113_v63 = vpop.f32.mrb[94].mxu0 }
 0x75a   : > { %v7196_v44 = vadd.f32 %v7185_v14, %v7121_v15  ;;  %v7122_v3 = vadd.f32 %v7113_v63, %v7059_v56  ;;  %v7188_v35 = vpop.f32.mrb[94].mxu1  ;;  %v10957_v33 = vpop.f32.mrb[95].mxu0  ;;  %v6749_v15 = vadd.f32 %v16910_v9, %v16903_v59 }
 0x75b   : > { %v10977_v53 = vpop.f32.mrb[95].mxu1  ;;  %v6750_v33 = vadd.f32 %v16910_v9, %v16905_v37  ;;  %v11694_v37 = vld [vmem:[%s17163_s7 + $0x20] sm:$0xff] (%p5754_p2)  }
 0x75c   : > { %v7197_v17 = vadd.f32 %v7188_v35, %v7122_v3 }
 0x75f   : > { %v7244_v2 = vpop.f32.mrb[96].mxu0 }
 0x760   : > { %v7267_v41 = vadd.f32 %v7244_v2, %v7192_v5  ;;  %v7311_v48 = vpop.f32.mrb[96].mxu1  ;;  %v10988_v1 = vpop.f32.mrb[97].mxu0 }
 0x761   : > { %v11008_v34 = vpop.f32.mrb[97].mxu1  ;;  %v7247_v45 = vpop.f32.mrb[98].mxu0  ;;  %v6756_v1 = vmax.f32 %v6750_v33, 0.0  ;;  %v11729_v33 = vld [vmem:[%s17163_s7 + $0x118] sm:$0xff] (%p5754_p2)  }
 0x762   : > { %v7334_v11 = vadd.f32 %v7311_v48, %v7267_v41  ;;  %v7268_v23 = vadd.f32 %v7247_v45, %v7193_v47  ;;  %v7314_v0 = vpop.f32.mrb[98].mxu1  ;;  %v10989_v62 = vpop.f32.mrb[99].mxu0  ;;  %v6748_v47 = vadd.f32 %v16910_v9, %v16901_v19  ;;  %v6755_v41 = vmax.f32 %v6749_v15, 0.0  ;;  %v11725_v15 = vld [vmem:[%s17163_s7 + $0xf8] sm:$0xff] (%p5754_p2)  }
 0x763   : > { %v11009_v18 = vpop.f32.mrb[99].mxu1  ;;  %v11698_v62 = vld [vmem:[%s17163_s7 + $0x30] sm:$0xff] (%p5754_p2)  }
 0x764   : > { %v7340_v20 = vadd.f32 %v16910_v9, %v7334_v11  ;;  %v7335_v43 = vadd.f32 %v7314_v0, %v7268_v23  ;;  %v11767_v11 = vmov (%p5754_p2), 0.0   ;;  %v11696_v23 = vld [vmem:[%s17163_s7 + $0x28] sm:$0xff] (%p5754_p2)   ;;  %v11699_v18 = vld [vmem:[%s17163_s7 + $0x10] sm:$0xff] (%p5754_p2)  }
 0x765   :  { %11018 = vmatprep.subr.bf16.mxu0 (%p5754_p2), %v11767_v11  ;;  %11030 = vmatprep.subr.bf16.mxu1 (%p5754_p2), %v11767_v11  ;;  %v11697_v0 = vld [vmem:[%s17163_s7 + $0x8] sm:$0xff] (%p5754_p2)  }
 0x766   : > { %v7346_v27 = vmax.f32 %v7340_v20, 0.0  ;;  %v7341_v36 = vadd.f32 %v16910_v9, %v7335_v43  ;;  %11019 = vmatpush3.bf16.msra.mxu0 (%p5754_p2), %v11694_v37  ;;  %11026 = vmatprep.mubr.msk.bf16.mxu0 (%p5754_p2), %vm11768_vm3, %v11767_v11  ;;  %v11701_v20 = vld [vmem:[%s17163_s7 + $0x18] sm:$0xff] (%p5754_p2)  }
 0x767   : > { %v7252_v24 = vpop.f32.mrb[100].mxu0  ;;  %11020 = vmatprep.subr.bf16.mxu0 (%p5754_p2), %v11767_v11  ;;  %11038 = vmatprep.mubr.msk.bf16.mxu1 (%p5754_p2), %vm11768_vm3, %v11767_v11 }
 0x768   : > { %v7352_v56 = vmax.f32 %v6751_v28, %v7346_v27  ;;  %v7347_v10 = vmax.f32 %v7341_v36, 0.0  ;;  %v7269_v60 = vadd.f32 %v7252_v24, %v7194_v55  ;;  %v7319_v40 = vpop.f32.mrb[100].mxu1  ;;  %v10992_v16 = vpop.f32.mrb[101].mxu0  ;;  %v6754_v55 = vmax.f32 %v6748_v47, 0.0  ;;  %v11702_v24 = vld [vmem:[%s17163_s7 + $0x40] sm:$0xff] (%p5754_p2)   ;;  %v11714_v47 = vld [vmem:[%s17163_s7 + $0x90] sm:$0xff] (%p5754_p2)  }
 0x769   : > { %v11012_v50 = vpop.f32.mrb[101].mxu1  ;;  %v7255_v31 = vpop.f32.mrb[102].mxu0  ;;  %v11708_v16 = vld [vmem:[%s17163_s7 + $0x58] sm:$0xff] (%p5754_p2)  }
 0x76a   : > { %v7353_v12 = vmax.f32 %v6752_v21, %v7347_v10  ;;  %v7336_v5 = vadd.f32 %v7319_v40, %v7269_v60  ;;  %v7270_v61 = vadd.f32 %v7255_v31, %v7195_v54  ;;  %v7322_v38 = vpop.f32.mrb[102].mxu1  ;;  %v10993_v51 = vpop.f32.mrb[103].mxu0  ;;  %11021 = vmatpush3.bf16.msra.mxu0 (%p5754_p2), %v11696_v23  ;;  %v11703_v21 = vld [vmem:[%s17163_s7 + $0x60] sm:$0xff] (%p5754_p2)   ;;  %v11705_v10 = vld [vmem:[%s17163_s7 + $0x68] sm:$0xff] (%p5754_p2)   ;;  %v11706_v60 = vld [vmem:[%s17163_s7 + $0x50] sm:$0xff] (%p5754_p2)  }
 0x76b   : > { %v11013_v30 = vpop.f32.mrb[103].mxu1  ;;  %11022 = vmatprep.subr.bf16.mxu0 (%p5754_p2), %v11767_v11  ;;  %v11707_v40 = vld [vmem:[%s17163_s7 + $0x70] sm:$0xff] (%p5754_p2)   ;;  %v11709_v50 = vld [vmem:[%s17163_s7 + $0x78] sm:$0xff] (%p5754_p2)   ;;  %v11712_v51 = vld [vmem:[%s17163_s7 + $0x88] sm:$0xff] (%p5754_p2)  }
 0x76c   : > { %v7358_v49 = vmax.f32 %v7352_v56, %v7353_v12  ;;  %v7342_v26 = vadd.f32 %v16910_v9, %v7336_v5  ;;  %v7337_v4 = vadd.f32 %v7322_v38, %v7270_v61  ;;  %v11704_v56 = vld [vmem:[%s17163_s7 + $0x48] sm:$0xff] (%p5754_p2)   ;;  %v11710_v5 = vld [vmem:[%s17163_s7 + $0x80] sm:$0xff] (%p5754_p2)  }
 0x76d   :  { %v11711_v38 = vld [vmem:[%s17163_s7 + $0xa0] sm:$0xff] (%p5754_p2)   ;;  %v11713_v30 = vld [vmem:[%s17163_s7 + $0xa8] sm:$0xff] (%p5754_p2)  }
 0x76e   : > { %7361 = vst.msk [vmem:[%s16924_s30] sm:$0xff] %vm2820_vm0, %v7358_v49  ;;  %v7348_v58 = vmax.f32 %v7342_v26, 0.0  ;;  %v7343_v8 = vadd.f32 %v16910_v9, %v7337_v4  ;;  %11023 = vmatpush3.bf16.msra.mxu0 (%p5754_p2), %v11698_v62  ;;  %v11715_v49 = vld [vmem:[%s17163_s7 + $0xb0] sm:$0xff] (%p5754_p2)   ;;  %v11716_v26 = vld [vmem:[%s17163_s7 + $0x98] sm:$0xff] (%p5754_p2)  }
 0x76f   : > { %v7260_v7 = vpop.f32.mrb[104].mxu0  ;;  %11024 = vmatprep.subr.bf16.mxu0 (%p5754_p2), %v11767_v11 }
 0x770   : > { %v7354_v46 = vmax.f32 %v6753_v57, %v7348_v58  ;;  %v7349_v32 = vmax.f32 %v7343_v8, 0.0  ;;  %v7271_v29 = vadd.f32 %v7260_v7, %v7196_v44  ;;  %v7327_v42 = vpop.f32.mrb[104].mxu1  ;;  %v10996_v19 = vpop.f32.mrb[105].mxu0  ;;  %v11717_v57 = vld [vmem:[%s17163_s7 + $0xb8] sm:$0xff] (%p5754_p2)   ;;  %v11718_v7 = vld [vmem:[%s17163_s7 + $0xc0] sm:$0xff] (%p5754_p2)  }
 0x771   : > { %v11016_v54 = vpop.f32.mrb[105].mxu1  ;;  %v7263_v25 = vpop.f32.mrb[106].mxu0  ;;  %v11723_v19 = vld [vmem:[%s17163_s7 + $0xf0] sm:$0xff] (%p5754_p2)  }
 0x772   : > { %v7355_v14 = vmax.f32 %v6754_v55, %v7349_v32  ;;  %v7338_v6 = vadd.f32 %v7327_v42, %v7271_v29  ;;  %v7272_v39 = vadd.f32 %v7263_v25, %v7197_v17  ;;  %v7330_v63 = vpop.f32.mrb[106].mxu1  ;;  %v10997_v3 = vpop.f32.mrb[107].mxu0  ;;  %11025 = vmatpush3.bf16.msra.mxu0 (%p5754_p2), %v11700_v13  ;;  %v11720_v32 = vld [vmem:[%s17163_s7 + $0xc8] sm:$0xff] (%p5754_p2)   ;;  %v11722_v42 = vld [vmem:[%s17163_s7 + $0xd0] sm:$0xff] (%p5754_p2)   ;;  %v11724_v54 = vld [vmem:[%s17163_s7 + $0xd8] sm:$0xff] (%p5754_p2)  }
 0x773   : > { %v11017_v35 = vpop.f32.mrb[107].mxu1  ;;  %11042 = vmatprep.subr.bf16.mxu0 (%p5754_p2), %v11767_v11  ;;  %v11721_v29 = vld [vmem:[%s17163_s7 + $0xe8] sm:$0xff] (%p5754_p2)  }
 0x774   : > { %v7362_v53 = vmax.f32 %v7354_v46, %v7355_v14  ;;  %v7344_v44 = vadd.f32 %v16910_v9, %v7338_v6  ;;  %v7339_v2 = vadd.f32 %v7330_v63, %v7272_v39  ;;  %v11719_v46 = vld [vmem:[%s17163_s7 + $0xe0] sm:$0xff] (%p5754_p2)   ;;  %v11727_v3 = vld [vmem:[%s17163_s7 + $0x108] sm:$0xff] (%p5754_p2)   ;;  %v11728_v35 = vld [vmem:[%s17163_s7 + $0x110] sm:$0xff] (%p5754_p2)  }
 0x775   :  { %v11726_v39 = vld [vmem:[%s17163_s7 + $0x100] sm:$0xff] (%p5754_p2)  }
 0x776   : > { %7363 = vst.msk [vmem:[%s16924_s30 + $0x8] sm:$0xff] %vm2820_vm0, %v7362_v53  ;;  %v7350_v48 = vmax.f32 %v7344_v44, 0.0  ;;  %v7345_v59 = vadd.f32 %v16910_v9, %v7339_v2  ;;  %v11695_v9 = vld [vmem:[%s17163_s7] sm:$0xff] (%p5754_p2)  }
 0x777   :  { %11031 = vmatpush3.bf16.msra.mxu1 (%p5754_p2), %v11695_v9  ;;  %v11730_v2 = vld [vmem:[%s17165_s9] sm:$0xff] (%p5754_p2)  }
 0x778   : > { %v7356_v34 = vmax.f32 %v6755_v41, %v7350_v48  ;;  %v7351_v17 = vmax.f32 %v7345_v59, 0.0  ;;  %5756 = sbr.rel (!%p5754_p2) target bundleno = 1467 (0x5bb), region = 156  ;;  %11032 = vmatprep.subr.bf16.mxu1 (%p5754_p2), %v11767_v11  ;;  %v11731_v41 = vld [vmem:[%s17165_s9 + $0x8] sm:$0xff] (%p5754_p2)   ;;  %v11732_v48 = vld [vmem:[%s17165_s9 + $0x10] sm:$0xff] (%p5754_p2)   ;;  %v11733_v59 = vld [vmem:[%s17165_s9 + $0x18] sm:$0xff] (%p5754_p2)  }
 0x77a   : > { %v7357_v45 = vmax.f32 %v6756_v1, %v7351_v17  ;;  %v11734_v1 = vld [vmem:[%s17165_s9 + $0x20] sm:$0xff] (%p5754_p2)   ;;  %v11736_v17 = vld [vmem:[%s17165_s9 + $0x30] sm:$0xff] (%p5754_p2)  }
 0x77b   :  { %11033 = vmatpush3.bf16.msra.mxu1 (%p5754_p2), %v11697_v0 }
 0x77c   : > { %v7364_v52 = vmax.f32 %v7356_v34, %v7357_v45  ;;  %11034 = vmatprep.subr.bf16.mxu1 (%p5754_p2), %v11767_v11  ;;  %v11735_v34 = vld [vmem:[%s17165_s9 + $0x28] sm:$0xff] (%p5754_p2)   ;;  %v11737_v45 = vld [vmem:[%s17165_s9 + $0x38] sm:$0xff] (%p5754_p2)  }
 0x77e   : > { %7365 = vst.msk [vmem:[%s16924_s30 + $0x10] sm:$0xff] %vm2820_vm0, %v7364_v52 }
 0x77f   :  { %11035 = vmatpush3.bf16.msra.mxu1 %v11699_v18 }
 0x780   :  { %11036 = vmatprep.subr.bf16.mxu1 %v11767_v11 }
 0x783   :  { %11037 = vmatpush3.bf16.msra.mxu1 %v11701_v20 }
 0x784   :  { %11054 = vmatprep.subr.bf16.mxu1 %v11767_v11 }
 0x785   :  { %v7376_v43 = vld [vmem:[#allocation4 + $0x8] sm:$0xff]  ;;  %v7366_v28 = vld [vmem:[#allocation4] sm:$0xff]  ;;  %v7522_v31 = vld [vmem:[#allocation4 + $0x10] sm:$0xff] }
 0x786   :  { %v7377_v27 = vpack.c.bf16 %v7376_v43, %v7376_v43  ;;  %v7367_v36 = vpack.c.bf16 %v7366_v28, %v7366_v28  ;;  %v7602_v22 = vld [vmem:[#allocation4 + $0x18] sm:$0xff]  ;;  %v7523_v12 = vpack.c.bf16 %v7522_v31, %v7522_v31  ;;  %v7681_v4 = vld [vmem:[#allocation4 + $0x20] sm:$0xff]  ;;  %v7760_v58 = vld [vmem:[#allocation4 + $0x28] sm:$0xff] }
 0x787   :  { %v7603_v61 = vpack.c.bf16 %v7602_v22, %v7602_v22  ;;  %v7682_v8 = vpack.c.bf16 %v7681_v4, %v7681_v4  ;;  %v7761_v55 = vpack.c.bf16 %v7760_v58, %v7760_v58  ;;  %v7840_v25 = vld [vmem:[#allocation4 + $0x30] sm:$0xff]  ;;  %v7919_v14 = vld [vmem:[#allocation4 + $0x38] sm:$0xff]  ;;  %v7998_v53 = vld [vmem:[#allocation4 + $0x40] sm:$0xff] }
 0x788   :  { %11027 = vmatmul.mubr.msk.bf16.vlgmr.msra.gmra.mrb[0].mxu0 %vm2820_vm0, %v7377_v27  ;;  %11039 = vmatmul.mubr.msk.bf16.vlgmr.msra.gmra.mrb[0].mxu1 %vm2820_vm0, %v7367_v36  ;;  %v7841_v6 = vpack.c.bf16 %v7840_v25, %v7840_v25  ;;  %v7920_v63 = vpack.c.bf16 %v7919_v14, %v7919_v14  ;;  %v7999_v44 = vpack.c.bf16 %v7998_v53, %v7998_v53 }
 0x789   :  { %11043 = vmatpush3.bf16.msra.mxu0 %v11702_v24  ;;  %11055 = vmatpush3.bf16.msra.mxu1 %v11703_v21 }
 0x78a   :  { %11044 = vmatprep.subr.bf16.mxu0 %v11767_v11  ;;  %11056 = vmatprep.subr.bf16.mxu1 %v11767_v11 }
 0x78b   :  { %11050 = vmatprep.mubr.msk.bf16.mxu0 %vm11768_vm3, %v11767_v11  ;;  %11062 = vmatprep.mubr.msk.bf16.mxu1 %vm11768_vm3, %v11767_v11 }
 0x78d   :  { %11045 = vmatpush3.bf16.msra.mxu0 %v11704_v56  ;;  %11057 = vmatpush3.bf16.msra.mxu1 %v11705_v10 }
 0x78e   :  { %11046 = vmatprep.subr.bf16.mxu0 %v11767_v11  ;;  %11058 = vmatprep.subr.bf16.mxu1 %v11767_v11 }
 0x791   :  { %11047 = vmatpush3.bf16.msra.mxu0 %v11706_v60  ;;  %11059 = vmatpush3.bf16.msra.mxu1 %v11707_v40 }
 0x792   :  { %11048 = vmatprep.subr.bf16.mxu0 %v11767_v11  ;;  %11060 = vmatprep.subr.bf16.mxu1 %v11767_v11 }
 0x795   :  { %11049 = vmatpush3.bf16.msra.mxu0 %v11708_v16  ;;  %11061 = vmatpush3.bf16.msra.mxu1 %v11709_v50 }
 0x796   :  { %11066 = vmatprep.subr.bf16.mxu0 %v11767_v11  ;;  %11078 = vmatprep.subr.bf16.mxu1 %v11767_v11 }
 0x798   :  { %11051 = vmatmul.mubr.msk.bf16.vlgmr.msra.gmra.mrb[4].mxu0 %vm2820_vm0, %v7523_v12  ;;  %11063 = vmatmul.mubr.msk.bf16.vlgmr.msra.gmra.mrb[4].mxu1 %vm2820_vm0, %v7603_v61 }
 0x799   :  { %11067 = vmatpush3.bf16.msra.mxu0 %v11710_v5  ;;  %11079 = vmatpush3.bf16.msra.mxu1 %v11711_v38 }
 0x79a   :  { %11068 = vmatprep.subr.bf16.mxu0 %v11767_v11  ;;  %11080 = vmatprep.subr.bf16.mxu1 %v11767_v11 }
 0x79b   :  { %11074 = vmatprep.mubr.msk.bf16.mxu0 %vm11768_vm3, %v11767_v11  ;;  %11086 = vmatprep.mubr.msk.bf16.mxu1 %vm11768_vm3, %v11767_v11 }
 0x79d   :  { %11069 = vmatpush3.bf16.msra.mxu0 %v11712_v51  ;;  %11081 = vmatpush3.bf16.msra.mxu1 %v11713_v30 }
 0x79e   :  { %11070 = vmatprep.subr.bf16.mxu0 %v11767_v11  ;;  %11082 = vmatprep.subr.bf16.mxu1 %v11767_v11 }
 0x7a1   :  { %11071 = vmatpush3.bf16.msra.mxu0 %v11714_v47  ;;  %11083 = vmatpush3.bf16.msra.mxu1 %v11715_v49 }
 0x7a2   :  { %11072 = vmatprep.subr.bf16.mxu0 %v11767_v11  ;;  %11084 = vmatprep.subr.bf16.mxu1 %v11767_v11 }
 0x7a5   :  { %11073 = vmatpush3.bf16.msra.mxu0 %v11716_v26  ;;  %11085 = vmatpush3.bf16.msra.mxu1 %v11717_v57 }
 0x7a6   :  { %11090 = vmatprep.subr.bf16.mxu0 %v11767_v11  ;;  %11102 = vmatprep.subr.bf16.mxu1 %v11767_v11 }
 0x7a8   :  { %11075 = vmatmul.mubr.msk.bf16.vlgmr.msra.gmra.mrb[8].mxu0 %vm2820_vm0, %v7682_v8  ;;  %11087 = vmatmul.mubr.msk.bf16.vlgmr.msra.gmra.mrb[8].mxu1 %vm2820_vm0, %v7761_v55 }
 0x7a9   :  { %11091 = vmatpush3.bf16.msra.mxu0 %v11718_v7  ;;  %11103 = vmatpush3.bf16.msra.mxu1 %v11719_v46 }
 0x7aa   :  { %11092 = vmatprep.subr.bf16.mxu0 %v11767_v11  ;;  %11104 = vmatprep.subr.bf16.mxu1 %v11767_v11 }
 0x7ab   :  { %11098 = vmatprep.mubr.msk.bf16.mxu0 %vm11768_vm3, %v11767_v11  ;;  %11110 = vmatprep.mubr.msk.bf16.mxu1 %vm11768_vm3, %v11767_v11 }
 0x7ad   :  { %11093 = vmatpush3.bf16.msra.mxu0 %v11720_v32  ;;  %11105 = vmatpush3.bf16.msra.mxu1 %v11721_v29  ;;  %v9038_v32 = vld [vmem:[%s17164_s8] ss:$0 sm:$0xff] }
 0x7ae   :  { %11094 = vmatprep.subr.bf16.mxu0 %v11767_v11  ;;  %11106 = vmatprep.subr.bf16.mxu1 %v11767_v11 }
 0x7b1   :  { %11095 = vmatpush3.bf16.msra.mxu0 %v11722_v42  ;;  %11107 = vmatpush3.bf16.msra.mxu1 %v11723_v19 }
 0x7b2   :  { %11096 = vmatprep.subr.bf16.mxu0 %v11767_v11  ;;  %11108 = vmatprep.subr.bf16.mxu1 %v11767_v11 }
 0x7b5   :  { %11097 = vmatpush3.bf16.msra.mxu0 %v11724_v54  ;;  %11109 = vmatpush3.bf16.msra.mxu1 %v11725_v15 }
 0x7b6   :  { %11114 = vmatprep.subr.bf16.mxu0 %v11767_v11  ;;  %11126 = vmatprep.subr.bf16.mxu1 %v11767_v11 }
 0x7b8   :  { %11099 = vmatmul.mubr.msk.bf16.vlgmr.msra.gmra.mrb[12].mxu0 %vm2820_vm0, %v7841_v6  ;;  %11111 = vmatmul.mubr.msk.bf16.vlgmr.msra.gmra.mrb[12].mxu1 %vm2820_vm0, %v7920_v63  ;;  %v9039_v6 = vld [vmem:[%s17166_s10] ss:$0 sm:$0xff] }
 0x7b9   :  { %11115 = vmatpush3.bf16.msra.mxu0 %v11726_v39  ;;  %11122 = vmatprep.mubr.msk.bf16.mxu0 %vm11768_vm3, %v11767_v11 }
 0x7ba   :  { %11116 = vmatprep.subr.bf16.mxu0 %v11767_v11  ;;  %11142 = vmatprep.mubr.msk.bf16.mxu1 %vm11768_vm3, %v11767_v11 }
 0x7bb   :  { %11127 = vmatpush3.bf16.msra.mxu1 %v11730_v2 }
 0x7bc   :  { %11128 = vmatprep.subr.bf16.mxu1 %v11767_v11 }
 0x7bd   :  { %11117 = vmatpush3.bf16.msra.mxu0 %v11727_v3 }
 0x7be   :  { %11118 = vmatprep.subr.bf16.mxu0 %v11767_v11 }
 0x7bf   :  { %11129 = vmatpush3.bf16.msra.mxu1 %v11731_v41 }
 0x7c0   :  { %11130 = vmatprep.subr.bf16.mxu1 %v11767_v11 }
 0x7c1   :  { %11119 = vmatpush3.bf16.msra.mxu0 %v11728_v35 }
 0x7c2   :  { %11120 = vmatprep.subr.bf16.mxu0 %v11767_v11 }
 0x7c3   :  { %11131 = vmatpush3.bf16.msra.mxu1 %v11732_v48 }
 0x7c4   :  { %11132 = vmatprep.subr.bf16.mxu1 %v11767_v11 }
 0x7c5   :  { %11121 = vmatpush3.bf16.msra.mxu0 %v11729_v33 }
 0x7c7   :  { %11133 = vmatpush3.bf16.msra.mxu1 %v11733_v59 }
 0x7c8   :  { %11123 = vmatmul.mubr.msk.bf16.vlgmr.msra.gmra.mrb[16].mxu0 %vm2820_vm0, %v7999_v44  ;;  %11134 = vmatprep.subr.bf16.mxu1 %v11767_v11 }
 0x7cb   :  { %11135 = vmatpush3.bf16.msra.mxu1 %v11734_v1 }
 0x7cc   :  { %11136 = vmatprep.subr.bf16.mxu1 %v11767_v11 }
 0x7cf   :  { %11137 = vmatpush3.bf16.msra.mxu1 %v11735_v34 }
 0x7d0   :  { %11138 = vmatprep.subr.bf16.mxu1 %v11767_v11 }
 0x7d3   :  { %11139 = vmatpush3.bf16.msra.mxu1 %v11736_v17 }
 0x7d4   :  { %11140 = vmatprep.subr.bf16.mxu1 %v11767_v11 }
 0x7d7   :  { %11141 = vmatpush3.bf16.msra.mxu1 %v11737_v45 }
 0x85b   :  { %v7449_v52 = vpop.f32.mrb[0].mxu0  ;;  %v7516_v9 = vpop.f32.mrb[0].mxu1 }
 0x85c   :  { %v11028_v37 = vpop.f32.mrb[1].mxu0  ;;  %v7517_v23 = vadd.f32 %v7516_v9, %v7449_v52  ;;  %v11040_v62 = vpop.f32.mrb[1].mxu1 }
 0x85d   :  { %v7452_v0 = vpop.f32.mrb[2].mxu0  ;;  %v7519_v13 = vpop.f32.mrb[2].mxu1 }
 0x85e   :  { %v11029_v18 = vpop.f32.mrb[3].mxu0  ;;  %v11041_v20 = vpop.f32.mrb[3].mxu1 }
 0x86b   :  { %v7594_v43 = vpop.f32.mrb[4].mxu0  ;;  %v7674_v36 = vpop.f32.mrb[4].mxu1 }
 0x86c   :  { %v7600_v28 = vadd.f32 %v7594_v43, %v7517_v23  ;;  %v11052_v27 = vpop.f32.mrb[5].mxu0  ;;  %v11064_v11 = vpop.f32.mrb[5].mxu1 }
 0x86d   :  { %v7597_v24 = vpop.f32.mrb[6].mxu0  ;;  %v7677_v10 = vpop.f32.mrb[6].mxu1 }
 0x86e   :  { %v7680_v21 = vadd.f32 %v7674_v36, %v7600_v28  ;;  %v11053_v56 = vpop.f32.mrb[7].mxu0  ;;  %v11065_v60 = vpop.f32.mrb[7].mxu1 }
 0x87b   :  { %v7753_v40 = vpop.f32.mrb[8].mxu0  ;;  %v7832_v31 = vpop.f32.mrb[8].mxu1 }
 0x87c   :  { %v7759_v16 = vadd.f32 %v7753_v40, %v7680_v21  ;;  %v11076_v50 = vpop.f32.mrb[9].mxu0  ;;  %v11088_v12 = vpop.f32.mrb[9].mxu1 }
 0x87d   :  { %v7756_v22 = vpop.f32.mrb[10].mxu0  ;;  %v7835_v38 = vpop.f32.mrb[10].mxu1 }
 0x87e   :  { %v7838_v5 = vadd.f32 %v7832_v31, %v7759_v16  ;;  %v11077_v61 = vpop.f32.mrb[11].mxu0  ;;  %v11089_v51 = vpop.f32.mrb[11].mxu1 }
 0x88b   :  { %v7912_v30 = vpop.f32.mrb[12].mxu0  ;;  %v7991_v26 = vpop.f32.mrb[12].mxu1 }
 0x88c   :  { %v7918_v47 = vadd.f32 %v7912_v30, %v7838_v5  ;;  %v11100_v49 = vpop.f32.mrb[13].mxu0  ;;  %v11112_v57 = vpop.f32.mrb[13].mxu1 }
 0x88d   :  { %v7915_v4 = vpop.f32.mrb[14].mxu0  ;;  %v7994_v7 = vpop.f32.mrb[14].mxu1 }
 0x88e   :  { %v7997_v58 = vadd.f32 %v7991_v26, %v7918_v47  ;;  %v11101_v8 = vpop.f32.mrb[15].mxu0  ;;  %v11113_v55 = vpop.f32.mrb[15].mxu1 }
 0x89b   :  { %v8070_v46 = vpop.f32.mrb[16].mxu0 }
 0x89c   :  { %v8076_v29 = vadd.f32 %v8070_v46, %v7997_v58  ;;  %v11124_v42 = vpop.f32.mrb[17].mxu0 }
 0x89d   :  { %v8073_v19 = vpop.f32.mrb[18].mxu0 }
 0x89e   :  { %v8084_v54 = vadd.f32 %v9038_v32, %v8076_v29  ;;  %v11125_v25 = vpop.f32.mrb[19].mxu0 }
 0x8a0   :  { %v8085_v15 = vmax.f32 %v8084_v54, 0.0 }
 0x8a2   :  { %v8086_v14 = vpack.c.bf16 %v8085_v15, %v8085_v15 }
 0x8a4   :  { %11143 = vmatmul.mubr.bf16.vlgmr.msra.gmra.mrb[16].mxu1 %v8086_v14 }
 0x977   :  { %v8192_v39 = vpop.f32.mrb[16].mxu1 }
 0x978   :  { %v8193_v63 = vadd.f32 %v9039_v6, %v8192_v39  ;;  %v11144_v3 = vpop.f32.mrb[17].mxu1 }
 0x979   :  { %v8195_v35 = vpop.f32.mrb[18].mxu1 }
 0x97a   :  { %8198 = vst [vmem:[%s17167_s11] sm:$0xff] %v8193_v63  ;;  %v11145_v33 = vpop.f32.mrb[19].mxu1 }

</bundles_post_ra>
